<compile_context>
chip_gen: v7x
topology: tpu7x:2x2x1
jax: 0.10.0
libtpu: 0.0.40
codegen_flags: <defaults>
</compile_context>

<pallas_src>
import functools

import jax
import jax.numpy as jnp
from jax import lax
from jax.experimental import pallas as pl
from jax.experimental.pallas import tpu as pltpu

_BF16 = jnp.bfloat16
_F32 = jnp.float32

# dot_general dimension numbers for A @ B^T (contract last dim of both).
_NT_DIMS = (((1,), (1,)), ((), ()))


# ----------------------------------------------------------------------------
# In-kernel helpers (traced inside the Pallas kernel only)
# ----------------------------------------------------------------------------

def _mm(a, b):
    """2-D matmul, bf16 operands on the MXU, f32 accumulation."""
    return jnp.dot(a.astype(_BF16), b.astype(_BF16), preferred_element_type=_F32)


def _layernorm(x, g, b):
    """PyTorch LayerNorm over last dim (biased variance, eps=1e-5), f32."""
    mu = jnp.mean(x, axis=-1, keepdims=True)
    var = jnp.mean((x - mu) ** 2, axis=-1, keepdims=True)
    return (x - mu) * lax.rsqrt(var + 1e-5) * g + b


def _mha(xq, xkv, w4, b4, n_heads, head_dim):
    """Multi-head attention with merged full-width projections.

    w4: (4, d, d) stacked [Wq, Wk, Wv, Wo] (column-major "x @ W" convention);
    b4: (4, d) stacked biases.  Q/K/V/O are single (L, d) @ (d, d) matmuls;
    only the tiny per-head attention core (hd=8) loops over heads, using
    A @ B^T dot_general (no transposes, no lane-splitting reshapes).
    """
    scale = 1.0 / float(head_dim) ** 0.5
    q = _mm(xq, w4[0]) + b4[0]          # (Lq, d)
    k = _mm(xkv, w4[1]) + b4[1]         # (Lk, d)
    v = _mm(xkv, w4[2]) + b4[2]         # (Lk, d)

    ctxs = []
    for h in range(n_heads):
        sl = slice(h * head_dim, (h + 1) * head_dim)
        s = lax.dot_general(q[:, sl].astype(_BF16), k[:, sl].astype(_BF16),
                            _NT_DIMS, preferred_element_type=_F32) * scale
        s = s - jnp.max(s, axis=-1, keepdims=True)
        p = jnp.exp(s)
        p = p * pl.reciprocal(jnp.sum(p, axis=-1, keepdims=True), approx=True)
        ctxs.append(_mm(p, v[:, sl]))   # (Lq, hd)
    ctx = jnp.concatenate(ctxs, axis=-1)            # (Lq, H*hd) = (Lq, d)
    return _mm(ctx, w4[3]) + b4[3]                  # (Lq, d)


# ----------------------------------------------------------------------------
# Fused forward kernel
#   per grid step (b, s): pool one image into a VMEM scratch row;
#   at s == S-1: fc -> encoder -> decoder -> log_softmax -> store.
# ----------------------------------------------------------------------------

def fused_forward_kernel(x_ref, *refs, treedef, n_heads):
    *w_flat, o_ref, feat_ref = refs
    P = jax.tree_util.tree_unflatten(treedef, list(w_flat))

    s_idx = pl.program_id(1)
    S = feat_ref.shape[0]
    HW = x_ref.shape[2]
    d = o_ref.shape[2]
    hd = d // n_heads

    # --- Inception classifier head, streamed: one lane-dense ones-row MXU
    #     contraction per image block (HW, C) -> (1, C), f32 accumulation. ----
    xs = x_ref[0, 0]                                       # (HW, C) bf16
    ones_row = jnp.ones((1, HW), dtype=_BF16)
    pooled = jnp.dot(ones_row, xs, preferred_element_type=_F32) * (1.0 / HW)

    @pl.when(s_idx == 0)
    def _init():
        feat_ref[...] = jnp.zeros_like(feat_ref)

    # Select-write row s of the (S, C) scratch (full-block RMW: trivially
    # lowerable, 32 KiB, fully hidden behind the next block's DMA).
    row_ids = lax.broadcasted_iota(jnp.int32, (S, 1), 0)
    feat_ref[...] = jnp.where(row_ids == s_idx, pooled, feat_ref[...])

    # --- Last image of this batch element: run fc + transformer + log_softmax.
    @pl.when(s_idx == S - 1)
    def _run():
        def ffn(x, tree, l):
            h = jnp.maximum(_mm(x, tree["w1"][l]) + tree["b1"][l], 0.0)
            return _mm(h, tree["w2"][l]) + tree["b2"][l]

        feat = feat_ref[...]                               # (S, C) f32
        seq = _mm(feat, P["fc_w"][...]) + P["fc_b"][...]   # (S, d)

        # Encoder stack (post-norm, ReLU FFN) + final encoder LayerNorm.
        enc = P["enc"]
        n_layers = enc["w1"].shape[0]
        mem = seq
        for l in range(n_layers):
            a = _mha(mem, mem, enc["attn_w"][l], enc["attn_b"][l], n_heads, hd)
            ln = enc["ln1"][l]
            mem = _layernorm(mem + a, ln[0], ln[1])
            ln = enc["ln2"][l]
            mem = _layernorm(mem + ffn(mem, enc, l), ln[0], ln[1])
        en = P["enc_norm"][...]
        mem = _layernorm(mem, en[0], en[1])

        # Decoder stack (self-attn, cross-attn, FFN) + final decoder norm.
        dec = P["dec"]
        out = seq
        for l in range(n_layers):
            a = _mha(out, out, dec["self_w"][l], dec["self_b"][l], n_heads, hd)
            ln = dec["ln1"][l]
            out = _layernorm(out + a, ln[0], ln[1])
            a = _mha(out, mem, dec["cross_w"][l], dec["cross_b"][l], n_heads, hd)
            ln = dec["ln2"][l]
            out = _layernorm(out + a, ln[0], ln[1])
            ln = dec["ln3"][l]
            out = _layernorm(out + ffn(out, dec, l), ln[0], ln[1])
        dn = P["dec_norm"][...]
        out = _layernorm(out, dn[0], dn[1])

        # log_softmax over d_model (f32, numerically stable).
        m = jnp.max(out, axis=-1, keepdims=True)
        z = out - m
        lse = jnp.log(jnp.sum(jnp.exp(z), axis=-1, keepdims=True))
        o_ref[0] = (z - lse).astype(o_ref.dtype)


# ----------------------------------------------------------------------------
# Wrapper: one pallas_call, grid=(B, S) — batch parallel, images streamed.
# ----------------------------------------------------------------------------

def inception_transformer_forward(x, params, config):
    """x: (B, S, C=2048, H, W) per-image NCHW Inception feature maps."""
    B, S, C, H, W = x.shape
    d = config["d_model"]
    HW = H * W

    # TODO(synk): the pretrained Inception-v3 conv backbone is not translated;
    # only its classifier head (global average pool -> fc(2048, d_model)) is
    # implemented, on pre-extracted 2048-channel feature maps.
    # Cast to bf16 first (halves the dominant HBM stream), then go channel-last
    # so the streamed block is lane-dense (C=2048 on the 128-lane axis).
    x_cl = jnp.transpose(x.astype(jnp.bfloat16).reshape(B, S, C, HW),
                         (0, 1, 3, 2))                      # (B, S, HW, C) bf16

    flat, treedef = jax.tree_util.tree_flatten(params)
    kern = functools.partial(fused_forward_kernel, treedef=treedef,
                             n_heads=config["n_heads"])

    in_specs = [pl.BlockSpec((1, 1, HW, C), lambda b, s: (b, s, 0, 0))]
    for leaf in flat:
        in_specs.append(
            pl.BlockSpec(leaf.shape, lambda b, s, nd=leaf.ndim: (0,) * nd))

    return pl.pallas_call(
        kern,
        grid=(B, S),
        in_specs=in_specs,
        out_specs=pl.BlockSpec((1, S, d), lambda b, s: (b, 0, 0)),
        out_shape=jax.ShapeDtypeStruct((B, S, d), jnp.float32),
        scratch_shapes=[pltpu.VMEM((S, C), jnp.float32)],
        compiler_params=pltpu.CompilerParams(
            dimension_semantics=("parallel", "arbitrary"),
            vmem_limit_bytes=32 * 1024 * 1024),
    )(x_cl, *flat)


# ----------------------------------------------------------------------------
# Deterministic parameter init (shapes from the module's __init__)
# ----------------------------------------------------------------------------

def init_params(key, config, c_feat=2048):
    d = config["d_model"]
    dff = config["dim_feedforward"]
    L = config["n_layers"]
    state = [key]

    def nxt():
        state[0], sub = jax.random.split(state[0])
        return sub

    W = lambda shape: jax.random.normal(nxt(), shape, jnp.float32) * 0.02
    Z = lambda shape: jnp.zeros(shape, jnp.float32)

    # NOTE (porting): PyTorch nn.MultiheadAttention stores in_proj_weight as
    # (3d, d) and nn.Linear weights as (out, in); importing real weights means
    # slicing the in_proj into Wq/Wk/Wv, transposing every Linear weight to the
    # "x @ W" convention used here, and stacking [Wq, Wk, Wv, Wo] -> (4, d, d).
    def attn_w():
        return W((L, 4, d, d))

    def attn_b():
        return Z((L, 4, d))

    def ln_stack():                        # (L, 2, d): [:,0]=gamma, [:,1]=beta
        return jnp.stack([jnp.ones((L, d), jnp.float32),
                          jnp.zeros((L, d), jnp.float32)], axis=1)

    def ln_single():                       # (2, d)
        return jnp.stack([jnp.ones((d,), jnp.float32),
                          jnp.zeros((d,), jnp.float32)], axis=0)

    return dict(
        fc_w=W((c_feat, d)), fc_b=Z((1, d)),
        enc=dict(attn_w=attn_w(), attn_b=attn_b(),
                 w1=W((L, d, dff)), b1=Z((L, 1, dff)),
                 w2=W((L, dff, d)), b2=Z((L, 1, d)),
                 ln1=ln_stack(), ln2=ln_stack()),
        enc_norm=ln_single(),
        dec=dict(self_w=attn_w(), self_b=attn_b(),
                 cross_w=attn_w(), cross_b=attn_b(),
                 w1=W((L, d, dff)), b1=Z((L, 1, dff)),
                 w2=W((L, dff, d)), b2=Z((L, 1, d)),
                 ln1=ln_stack(), ln2=ln_stack(), ln3=ln_stack()),
        dec_norm=ln_single(),
    )


# ----------------------------------------------------------------------------
# Main
# ----------------------------------------------------------------------------

if __name__ == "__main__":
    config = dict(d_model=32, n_heads=4, n_layers=2, dim_feedforward=64,
                  dropout=0.0, activation="relu", device="tpu")

    key = jax.random.PRNGKey(0)
    k_x, k_p = jax.random.split(key)

    B, S, C, H, W = 2, 4, 2048, 8, 8
    x = jax.random.normal(k_x, (B, S, C, H, W), jnp.float32)
    params = init_params(k_p, config)

    fwd = jax.jit(functools.partial(inception_transformer_forward, config=config))
    y = jax.block_until_ready(fwd(x, params))

    assert y.shape == (B, S, config["d_model"])
    assert bool(jnp.all(jnp.isfinite(y)))
    # log_softmax rows should exponentiate-and-sum to ~1
    assert bool(jnp.allclose(jnp.sum(jnp.exp(y), axis=-1), 1.0, atol=1e-3))
    print("KERNEL_OK")
</pallas_src>

<mosaic_0001>
module attributes {stable_mosaic.version = 11 : i64} {
  func.func @fused_forward_kernel(%arg0: i32, %arg1: i32, %arg2: memref<1x1x64x2048xbf16, #tpu.memory_space<vmem>>, %arg3: memref<2x1x64xf32, #tpu.memory_space<vmem>>, %arg4: memref<2x1x32xf32, #tpu.memory_space<vmem>>, %arg5: memref<2x4x32xf32, #tpu.memory_space<vmem>>, %arg6: memref<2x4x32x32xf32, #tpu.memory_space<vmem>>, %arg7: memref<2x2x32xf32, #tpu.memory_space<vmem>>, %arg8: memref<2x2x32xf32, #tpu.memory_space<vmem>>, %arg9: memref<2x2x32xf32, #tpu.memory_space<vmem>>, %arg10: memref<2x4x32xf32, #tpu.memory_space<vmem>>, %arg11: memref<2x4x32x32xf32, #tpu.memory_space<vmem>>, %arg12: memref<2x32x64xf32, #tpu.memory_space<vmem>>, %arg13: memref<2x64x32xf32, #tpu.memory_space<vmem>>, %arg14: memref<2x32xf32, #tpu.memory_space<vmem>>, %arg15: memref<2x4x32xf32, #tpu.memory_space<vmem>>, %arg16: memref<2x4x32x32xf32, #tpu.memory_space<vmem>>, %arg17: memref<2x1x64xf32, #tpu.memory_space<vmem>>, %arg18: memref<2x1x32xf32, #tpu.memory_space<vmem>>, %arg19: memref<2x2x32xf32, #tpu.memory_space<vmem>>, %arg20: memref<2x2x32xf32, #tpu.memory_space<vmem>>, %arg21: memref<2x32x64xf32, #tpu.memory_space<vmem>>, %arg22: memref<2x64x32xf32, #tpu.memory_space<vmem>>, %arg23: memref<2x32xf32, #tpu.memory_space<vmem>>, %arg24: memref<1x32xf32, #tpu.memory_space<vmem>>, %arg25: memref<2048x32xf32, #tpu.memory_space<vmem>>, %arg26: memref<1x4x32xf32, #tpu.memory_space<vmem>>, %arg27: memref<4x2048xf32, #tpu.memory_space<vmem>>) attributes {dimension_semantics = [#tpu.dimension_semantics<parallel>, #tpu.dimension_semantics<arbitrary>], iteration_bounds = array<i64: 2, 4>, scalar_prefetch = 0 : i64, scratch_operands = 1 : i64, tpu.core_type = #tpu.core_type<tc>, window_params = [{transform_indices = @transform_0, window_bounds = array<i64: 1, 1, 64, 2048>}, {pipeline_mode = #tpu.pipeline_mode<synchronous>, transform_indices = @transform_1, window_bounds = array<i64: 2, 1, 64>}, {pipeline_mode = #tpu.pipeline_mode<synchronous>, transform_indices = @transform_2, window_bounds = array<i64: 2, 1, 32>}, {pipeline_mode = #tpu.pipeline_mode<synchronous>, transform_indices = @transform_3, window_bounds = array<i64: 2, 4, 32>}, {pipeline_mode = #tpu.pipeline_mode<synchronous>, transform_indices = @transform_4, window_bounds = array<i64: 2, 4, 32, 32>}, {pipeline_mode = #tpu.pipeline_mode<synchronous>, transform_indices = @transform_5, window_bounds = array<i64: 2, 2, 32>}, {pipeline_mode = #tpu.pipeline_mode<synchronous>, transform_indices = @transform_6, window_bounds = array<i64: 2, 2, 32>}, {pipeline_mode = #tpu.pipeline_mode<synchronous>, transform_indices = @transform_7, window_bounds = array<i64: 2, 2, 32>}, {pipeline_mode = #tpu.pipeline_mode<synchronous>, transform_indices = @transform_8, window_bounds = array<i64: 2, 4, 32>}, {pipeline_mode = #tpu.pipeline_mode<synchronous>, transform_indices = @transform_9, window_bounds = array<i64: 2, 4, 32, 32>}, {pipeline_mode = #tpu.pipeline_mode<synchronous>, transform_indices = @transform_10, window_bounds = array<i64: 2, 32, 64>}, {pipeline_mode = #tpu.pipeline_mode<synchronous>, transform_indices = @transform_11, window_bounds = array<i64: 2, 64, 32>}, {pipeline_mode = #tpu.pipeline_mode<synchronous>, transform_indices = @transform_12, window_bounds = array<i64: 2, 32>}, {pipeline_mode = #tpu.pipeline_mode<synchronous>, transform_indices = @transform_13, window_bounds = array<i64: 2, 4, 32>}, {pipeline_mode = #tpu.pipeline_mode<synchronous>, transform_indices = @transform_14, window_bounds = array<i64: 2, 4, 32, 32>}, {pipeline_mode = #tpu.pipeline_mode<synchronous>, transform_indices = @transform_15, window_bounds = array<i64: 2, 1, 64>}, {pipeline_mode = #tpu.pipeline_mode<synchronous>, transform_indices = @transform_16, window_bounds = array<i64: 2, 1, 32>}, {pipeline_mode = #tpu.pipeline_mode<synchronous>, transform_indices = @transform_17, window_bounds = array<i64: 2, 2, 32>}, {pipeline_mode = #tpu.pipeline_mode<synchronous>, transform_indices = @transform_18, window_bounds = array<i64: 2, 2, 32>}, {pipeline_mode = #tpu.pipeline_mode<synchronous>, transform_indices = @transform_19, window_bounds = array<i64: 2, 32, 64>}, {pipeline_mode = #tpu.pipeline_mode<synchronous>, transform_indices = @transform_20, window_bounds = array<i64: 2, 64, 32>}, {pipeline_mode = #tpu.pipeline_mode<synchronous>, transform_indices = @transform_21, window_bounds = array<i64: 2, 32>}, {pipeline_mode = #tpu.pipeline_mode<synchronous>, transform_indices = @transform_22, window_bounds = array<i64: 1, 32>}, {pipeline_mode = #tpu.pipeline_mode<synchronous>, transform_indices = @transform_23, window_bounds = array<i64: 2048, 32>}, {transform_indices = @transform_24, window_bounds = array<i64: 1, 4, 32>}]} {
    %c0 = arith.constant 0 : index
    %c0_0 = arith.constant 0 : index
    %c0_1 = arith.constant 0 : index
    %c0_2 = arith.constant 0 : index
    %0 = vector.load %arg2[%c0, %c0_0, %c0_1, %c0_2] : memref<1x1x64x2048xbf16, #tpu.memory_space<vmem>>, vector<1x1x64x2048xbf16>
    %1 = vector.shape_cast %0 : vector<1x1x64x2048xbf16> to vector<64x2048xbf16>
    %cst = arith.constant 1.000000e+00 : bf16
    %2 = vector.broadcast %cst : bf16 to vector<1x64xbf16>
    %cst_3 = arith.constant dense<0.000000e+00> : vector<1x2048xf32>
    %3 = tpu.matmul %2, %1, %cst_3 {dimension_numbers = #tpu.dot_dimension_numbers<[1], [0], [0], [1], [0, 0, 1, 1], [], []>} : vector<1x64xbf16>, vector<64x2048xbf16>, vector<1x2048xf32> -> vector<1x2048xf32>
    %cst_4 = arith.constant 1.562500e-02 : f32
    %4 = vector.broadcast %cst_4 : f32 to vector<1x2048xf32>
    %5 = arith.mulf %3, %4 : vector<1x2048xf32>
    %c0_i32 = arith.constant 0 : i32
    %6 = arith.cmpi eq, %arg1, %c0_i32 : i32
    %7 = arith.extui %6 : i1 to i32
    %c0_i32_5 = arith.constant 0 : i32
    %8 = arith.cmpi ne, %7, %c0_i32_5 : i32
    scf.if %8 {
      %cst_11 = arith.constant 0.000000e+00 : f32
      %22 = vector.broadcast %cst_11 : f32 to vector<4x2048xf32>
      %c0_12 = arith.constant 0 : index
      %c0_13 = arith.constant 0 : index
      %23 = vector.load %arg27[%c0_12, %c0_13] : memref<4x2048xf32, #tpu.memory_space<vmem>>, vector<4x2048xf32>
      tpu.vector_store %arg27[%c0_12, %c0_13], %22 {strides = array<i32>} : memref<4x2048xf32, #tpu.memory_space<vmem>>, vector<4x2048xf32>,
    } else {
    }
    %9 = tpu.iota {dimensions = array<i32: 0>} : vector<4x1xi32>
    %10 = vector.broadcast %arg1 : i32 to vector<4x1xi32>
    %11 = arith.cmpi eq, %9, %10 : vector<4x1xi32>
    %c0_6 = arith.constant 0 : index
    %c0_7 = arith.constant 0 : index
    %12 = vector.load %arg27[%c0_6, %c0_7] : memref<4x2048xf32, #tpu.memory_space<vmem>>, vector<4x2048xf32>
    %13 = vector.shape_cast %11 : vector<4x1xi1> to vector<4x1xi1>
    %14 = vector.broadcast %13 : vector<4x1xi1> to vector<4x2048xi1>
    %15 = vector.shape_cast %5 : vector<1x2048xf32> to vector<1x2048xf32>
    %16 = vector.broadcast %15 : vector<1x2048xf32> to vector<4x2048xf32>
    %17 = arith.select %14, %16, %12 : vector<4x2048xi1>, vector<4x2048xf32>
    %c0_8 = arith.constant 0 : index
    %c0_9 = arith.constant 0 : index
    %18 = vector.load %arg27[%c0_8, %c0_9] : memref<4x2048xf32, #tpu.memory_space<vmem>>, vector<4x2048xf32>
    tpu.vector_store %arg27[%c0_8, %c0_9], %17 {strides = array<i32>} : memref<4x2048xf32, #tpu.memory_space<vmem>>, vector<4x2048xf32>,
    %c3_i32 = arith.constant 3 : i32
    %19 = arith.cmpi eq, %arg1, %c3_i32 : i32
    %20 = arith.extui %19 : i1 to i32
    %c0_i32_10 = arith.constant 0 : i32
    %21 = arith.cmpi ne, %20, %c0_i32_10 : i32
    scf.if %21 {
      %c0_11 = arith.constant 0 : index
      %c0_12 = arith.constant 0 : index
      %22 = vector.load %arg27[%c0_11, %c0_12] : memref<4x2048xf32, #tpu.memory_space<vmem>>, vector<4x2048xf32>
      %c0_13 = arith.constant 0 : index
      %c0_14 = arith.constant 0 : index
      %23 = vector.load %arg25[%c0_13, %c0_14] : memref<2048x32xf32, #tpu.memory_space<vmem>>, vector<2048x32xf32>
      %24 = arith.truncf %22 : vector<4x2048xf32> to vector<4x2048xbf16>
      %25 = arith.truncf %23 : vector<2048x32xf32> to vector<2048x32xbf16>
      %cst_15 = arith.constant dense<0.000000e+00> : vector<4x32xf32>
      %26 = tpu.matmul %24, %25, %cst_15 {dimension_numbers = #tpu.dot_dimension_numbers<[1], [0], [0], [1], [0, 0, 1, 1], [], []>} : vector<4x2048xbf16>, vector<2048x32xbf16>, vector<4x32xf32> -> vector<4x32xf32>
      %c0_16 = arith.constant 0 : index
      %c0_17 = arith.constant 0 : index
      %27 = vector.load %arg24[%c0_16, %c0_17] : memref<1x32xf32, #tpu.memory_space<vmem>>, vector<1x32xf32>
      %28 = vector.broadcast %27 : vector<1x32xf32> to vector<4x32xf32>
      %29 = arith.addf %26, %28 : vector<4x32xf32>
      %c0_18 = arith.constant 0 : index
      %c0_19 = arith.constant 0 : index
      %c0_20 = arith.constant 0 : index
      %c0_21 = arith.constant 0 : index
      %30 = vector.load %arg16[%c0_18, %c0_19, %c0_20, %c0_21] : memref<2x4x32x32xf32, #tpu.memory_space<vmem>>, vector<1x4x32x32xf32>
      %31 = vector.shape_cast %30 : vector<1x4x32x32xf32> to vector<4x32x32xf32>
      %c0_22 = arith.constant 0 : index
      %c0_23 = arith.constant 0 : index
      %c0_24 = arith.constant 0 : index
      %32 = vector.load %arg15[%c0_22, %c0_23, %c0_24] : memref<2x4x32xf32, #tpu.memory_space<vmem>>, vector<1x4x32xf32>
      %33 = vector.shape_cast %32 : vector<1x4x32xf32> to vector<4x32xf32>
      %34 = vector.extract_strided_slice %31 {offsets = [0, 0, 0], sizes = [1, 32, 32], strides = [1, 1, 1]} : vector<4x32x32xf32> to vector<1x32x32xf32>
      %35 = vector.shape_cast %34 : vector<1x32x32xf32> to vector<32x32xf32>
      %36 = arith.truncf %29 : vector<4x32xf32> to vector<4x32xbf16>
      %37 = arith.truncf %35 : vector<32x32xf32> to vector<32x32xbf16>
      %cst_25 = arith.constant dense<0.000000e+00> : vector<4x32xf32>
      %38 = tpu.matmul %36, %37, %cst_25 {dimension_numbers = #tpu.dot_dimension_numbers<[1], [0], [0], [1], [0, 0, 1, 1], [], []>} : vector<4x32xbf16>, vector<32x32xbf16>, vector<4x32xf32> -> vector<4x32xf32>
      %39 = vector.extract_strided_slice %33 {offsets = [0, 0], sizes = [1, 32], strides = [1, 1]} : vector<4x32xf32> to vector<1x32xf32>
      %40 = vector.shape_cast %39 : vector<1x32xf32> to vector<32xf32>
      %41 = vector.shape_cast %40 : vector<32xf32> to vector<1x32xf32>
      %42 = vector.broadcast %41 : vector<1x32xf32> to vector<4x32xf32>
      %43 = arith.addf %38, %42 : vector<4x32xf32>
      %44 = vector.extract_strided_slice %31 {offsets = [1, 0, 0], sizes = [1, 32, 32], strides = [1, 1, 1]} : vector<4x32x32xf32> to vector<1x32x32xf32>
      %45 = vector.shape_cast %44 : vector<1x32x32xf32> to vector<32x32xf32>
      %46 = arith.truncf %29 : vector<4x32xf32> to vector<4x32xbf16>
      %47 = arith.truncf %45 : vector<32x32xf32> to vector<32x32xbf16>
      %cst_26 = arith.constant dense<0.000000e+00> : vector<4x32xf32>
      %48 = tpu.matmul %46, %47, %cst_26 {dimension_numbers = #tpu.dot_dimension_numbers<[1], [0], [0], [1], [0, 0, 1, 1], [], []>} : vector<4x32xbf16>, vector<32x32xbf16>, vector<4x32xf32> -> vector<4x32xf32>
      %49 = vector.extract_strided_slice %33 {offsets = [1, 0], sizes = [1, 32], strides = [1, 1]} : vector<4x32xf32> to vector<1x32xf32>
      %50 = vector.shape_cast %49 : vector<1x32xf32> to vector<32xf32>
      %51 = vector.shape_cast %50 : vector<32xf32> to vector<1x32xf32>
      %52 = vector.broadcast %51 : vector<1x32xf32> to vector<4x32xf32>
      %53 = arith.addf %48, %52 : vector<4x32xf32>
      %54 = vector.extract_strided_slice %31 {offsets = [2, 0, 0], sizes = [1, 32, 32], strides = [1, 1, 1]} : vector<4x32x32xf32> to vector<1x32x32xf32>
      %55 = vector.shape_cast %54 : vector<1x32x32xf32> to vector<32x32xf32>
      %56 = arith.truncf %29 : vector<4x32xf32> to vector<4x32xbf16>
      %57 = arith.truncf %55 : vector<32x32xf32> to vector<32x32xbf16>
      %cst_27 = arith.constant dense<0.000000e+00> : vector<4x32xf32>
      %58 = tpu.matmul %56, %57, %cst_27 {dimension_numbers = #tpu.dot_dimension_numbers<[1], [0], [0], [1], [0, 0, 1, 1], [], []>} : vector<4x32xbf16>, vector<32x32xbf16>, vector<4x32xf32> -> vector<4x32xf32>
      %59 = vector.extract_strided_slice %33 {offsets = [2, 0], sizes = [1, 32], strides = [1, 1]} : vector<4x32xf32> to vector<1x32xf32>
      %60 = vector.shape_cast %59 : vector<1x32xf32> to vector<32xf32>
      %61 = vector.shape_cast %60 : vector<32xf32> to vector<1x32xf32>
      %62 = vector.broadcast %61 : vector<1x32xf32> to vector<4x32xf32>
      %63 = arith.addf %58, %62 : vector<4x32xf32>
      %64 = vector.extract_strided_slice %43 {offsets = [0, 0], sizes = [4, 8], strides = [1, 1]} : vector<4x32xf32> to vector<4x8xf32>
      %65 = arith.truncf %64 : vector<4x8xf32> to vector<4x8xbf16>
      %66 = vector.extract_strided_slice %53 {offsets = [0, 0], sizes = [4, 8], strides = [1, 1]} : vector<4x32xf32> to vector<4x8xf32>
      %67 = arith.truncf %66 : vector<4x8xf32> to vector<4x8xbf16>
      %cst_28 = arith.constant dense<0.000000e+00> : vector<4x4xf32>
      %68 = tpu.matmul %65, %67, %cst_28 {dimension_numbers = #tpu.dot_dimension_numbers<[1], [1], [0], [0], [0, 0, 1, 0], [], []>} : vector<4x8xbf16>, vector<4x8xbf16>, vector<4x4xf32> -> vector<4x4xf32>
      %cst_29 = arith.constant 0.353553385 : f32
      %69 = vector.broadcast %cst_29 : f32 to vector<4x4xf32>
      %70 = arith.mulf %68, %69 : vector<4x4xf32>
      %cst_30 = arith.constant dense<0xFF800000> : vector<4xf32>
      %71 = vector.multi_reduction <maximumf>, %70, %cst_30 [1] : vector<4x4xf32> to vector<4xf32>
      %72 = vector.shape_cast %71 : vector<4xf32> to vector<4x1xf32>
      %73 = vector.broadcast %72 : vector<4x1xf32> to vector<4x4xf32>
      %74 = arith.subf %70, %73 : vector<4x4xf32>
      %75 = math.exp %74 : vector<4x4xf32>
      %cst_31 = arith.constant dense<0.000000e+00> : vector<4xf32>
      %76 = vector.multi_reduction <add>, %75, %cst_31 [1] : vector<4x4xf32> to vector<4xf32>
      %77 = vector.shape_cast %76 : vector<4xf32> to vector<4x1xf32>
      %78 = tpu.reciprocal %77 {approx = true} : vector<4x1xf32> -> vector<4x1xf32>
      %79 = vector.broadcast %78 : vector<4x1xf32> to vector<4x4xf32>
      %80 = arith.mulf %75, %79 : vector<4x4xf32>
      %81 = vector.extract_strided_slice %63 {offsets = [0, 0], sizes = [4, 8], strides = [1, 1]} : vector<4x32xf32> to vector<4x8xf32>
      %82 = arith.truncf %80 : vector<4x4xf32> to vector<4x4xbf16>
      %83 = arith.truncf %81 : vector<4x8xf32> to vector<4x8xbf16>
      %cst_32 = arith.constant dense<0.000000e+00> : vector<4x8xf32>
      %84 = tpu.matmul %82, %83, %cst_32 {dimension_numbers = #tpu.dot_dimension_numbers<[1], [0], [0], [1], [0, 0, 1, 1], [], []>} : vector<4x4xbf16>, vector<4x8xbf16>, vector<4x8xf32> -> vector<4x8xf32>
      %85 = vector.extract_strided_slice %43 {offsets = [0, 8], sizes = [4, 8], strides = [1, 1]} : vector<4x32xf32> to vector<4x8xf32>
      %86 = arith.truncf %85 : vector<4x8xf32> to vector<4x8xbf16>
      %87 = vector.extract_strided_slice %53 {offsets = [0, 8], sizes = [4, 8], strides = [1, 1]} : vector<4x32xf32> to vector<4x8xf32>
      %88 = arith.truncf %87 : vector<4x8xf32> to vector<4x8xbf16>
      %cst_33 = arith.constant dense<0.000000e+00> : vector<4x4xf32>
      %89 = tpu.matmul %86, %88, %cst_33 {dimension_numbers = #tpu.dot_dimension_numbers<[1], [1], [0], [0], [0, 0, 1, 0], [], []>} : vector<4x8xbf16>, vector<4x8xbf16>, vector<4x4xf32> -> vector<4x4xf32>
      %cst_34 = arith.constant 0.353553385 : f32
      %90 = vector.broadcast %cst_34 : f32 to vector<4x4xf32>
      %91 = arith.mulf %89, %90 : vector<4x4xf32>
      %cst_35 = arith.constant dense<0xFF800000> : vector<4xf32>
      %92 = vector.multi_reduction <maximumf>, %91, %cst_35 [1] : vector<4x4xf32> to vector<4xf32>
      %93 = vector.shape_cast %92 : vector<4xf32> to vector<4x1xf32>
      %94 = vector.broadcast %93 : vector<4x1xf32> to vector<4x4xf32>
      %95 = arith.subf %91, %94 : vector<4x4xf32>
      %96 = math.exp %95 : vector<4x4xf32>
      %cst_36 = arith.constant dense<0.000000e+00> : vector<4xf32>
      %97 = vector.multi_reduction <add>, %96, %cst_36 [1] : vector<4x4xf32> to vector<4xf32>
      %98 = vector.shape_cast %97 : vector<4xf32> to vector<4x1xf32>
      %99 = tpu.reciprocal %98 {approx = true} : vector<4x1xf32> -> vector<4x1xf32>
      %100 = vector.broadcast %99 : vector<4x1xf32> to vector<4x4xf32>
      %101 = arith.mulf %96, %100 : vector<4x4xf32>
      %102 = vector.extract_strided_slice %63 {offsets = [0, 8], sizes = [4, 8], strides = [1, 1]} : vector<4x32xf32> to vector<4x8xf32>
      %103 = arith.truncf %101 : vector<4x4xf32> to vector<4x4xbf16>
      %104 = arith.truncf %102 : vector<4x8xf32> to vector<4x8xbf16>
      %cst_37 = arith.constant dense<0.000000e+00> : vector<4x8xf32>
      %105 = tpu.matmul %103, %104, %cst_37 {dimension_numbers = #tpu.dot_dimension_numbers<[1], [0], [0], [1], [0, 0, 1, 1], [], []>} : vector<4x4xbf16>, vector<4x8xbf16>, vector<4x8xf32> -> vector<4x8xf32>
      %106 = vector.extract_strided_slice %43 {offsets = [0, 16], sizes = [4, 8], strides = [1, 1]} : vector<4x32xf32> to vector<4x8xf32>
      %107 = arith.truncf %106 : vector<4x8xf32> to vector<4x8xbf16>
      %108 = vector.extract_strided_slice %53 {offsets = [0, 16], sizes = [4, 8], strides = [1, 1]} : vector<4x32xf32> to vector<4x8xf32>
      %109 = arith.truncf %108 : vector<4x8xf32> to vector<4x8xbf16>
      %cst_38 = arith.constant dense<0.000000e+00> : vector<4x4xf32>
      %110 = tpu.matmul %107, %109, %cst_38 {dimension_numbers = #tpu.dot_dimension_numbers<[1], [1], [0], [0], [0, 0, 1, 0], [], []>} : vector<4x8xbf16>, vector<4x8xbf16>, vector<4x4xf32> -> vector<4x4xf32>
      %cst_39 = arith.constant 0.353553385 : f32
      %111 = vector.broadcast %cst_39 : f32 to vector<4x4xf32>
      %112 = arith.mulf %110, %111 : vector<4x4xf32>
      %cst_40 = arith.constant dense<0xFF800000> : vector<4xf32>
      %113 = vector.multi_reduction <maximumf>, %112, %cst_40 [1] : vector<4x4xf32> to vector<4xf32>
      %114 = vector.shape_cast %113 : vector<4xf32> to vector<4x1xf32>
      %115 = vector.broadcast %114 : vector<4x1xf32> to vector<4x4xf32>
      %116 = arith.subf %112, %115 : vector<4x4xf32>
      %117 = math.exp %116 : vector<4x4xf32>
      %cst_41 = arith.constant dense<0.000000e+00> : vector<4xf32>
      %118 = vector.multi_reduction <add>, %117, %cst_41 [1] : vector<4x4xf32> to vector<4xf32>
      %119 = vector.shape_cast %118 : vector<4xf32> to vector<4x1xf32>
      %120 = tpu.reciprocal %119 {approx = true} : vector<4x1xf32> -> vector<4x1xf32>
      %121 = vector.broadcast %120 : vector<4x1xf32> to vector<4x4xf32>
      %122 = arith.mulf %117, %121 : vector<4x4xf32>
      %123 = vector.extract_strided_slice %63 {offsets = [0, 16], sizes = [4, 8], strides = [1, 1]} : vector<4x32xf32> to vector<4x8xf32>
      %124 = arith.truncf %122 : vector<4x4xf32> to vector<4x4xbf16>
      %125 = arith.truncf %123 : vector<4x8xf32> to vector<4x8xbf16>
      %cst_42 = arith.constant dense<0.000000e+00> : vector<4x8xf32>
      %126 = tpu.matmul %124, %125, %cst_42 {dimension_numbers = #tpu.dot_dimension_numbers<[1], [0], [0], [1], [0, 0, 1, 1], [], []>} : vector<4x4xbf16>, vector<4x8xbf16>, vector<4x8xf32> -> vector<4x8xf32>
      %127 = vector.extract_strided_slice %43 {offsets = [0, 24], sizes = [4, 8], strides = [1, 1]} : vector<4x32xf32> to vector<4x8xf32>
      %128 = arith.truncf %127 : vector<4x8xf32> to vector<4x8xbf16>
      %129 = vector.extract_strided_slice %53 {offsets = [0, 24], sizes = [4, 8], strides = [1, 1]} : vector<4x32xf32> to vector<4x8xf32>
      %130 = arith.truncf %129 : vector<4x8xf32> to vector<4x8xbf16>
      %cst_43 = arith.constant dense<0.000000e+00> : vector<4x4xf32>
      %131 = tpu.matmul %128, %130, %cst_43 {dimension_numbers = #tpu.dot_dimension_numbers<[1], [1], [0], [0], [0, 0, 1, 0], [], []>} : vector<4x8xbf16>, vector<4x8xbf16>, vector<4x4xf32> -> vector<4x4xf32>
      %cst_44 = arith.constant 0.353553385 : f32
      %132 = vector.broadcast %cst_44 : f32 to vector<4x4xf32>
      %133 = arith.mulf %131, %132 : vector<4x4xf32>
      %cst_45 = arith.constant dense<0xFF800000> : vector<4xf32>
      %134 = vector.multi_reduction <maximumf>, %133, %cst_45 [1] : vector<4x4xf32> to vector<4xf32>
      %135 = vector.shape_cast %134 : vector<4xf32> to vector<4x1xf32>
      %136 = vector.broadcast %135 : vector<4x1xf32> to vector<4x4xf32>
      %137 = arith.subf %133, %136 : vector<4x4xf32>
      %138 = math.exp %137 : vector<4x4xf32>
      %cst_46 = arith.constant dense<0.000000e+00> : vector<4xf32>
      %139 = vector.multi_reduction <add>, %138, %cst_46 [1] : vector<4x4xf32> to vector<4xf32>
      %140 = vector.shape_cast %139 : vector<4xf32> to vector<4x1xf32>
      %141 = tpu.reciprocal %140 {approx = true} : vector<4x1xf32> -> vector<4x1xf32>
      %142 = vector.broadcast %141 : vector<4x1xf32> to vector<4x4xf32>
      %143 = arith.mulf %138, %142 : vector<4x4xf32>
      %144 = vector.extract_strided_slice %63 {offsets = [0, 24], sizes = [4, 8], strides = [1, 1]} : vector<4x32xf32> to vector<4x8xf32>
      %145 = arith.truncf %143 : vector<4x4xf32> to vector<4x4xbf16>
      %146 = arith.truncf %144 : vector<4x8xf32> to vector<4x8xbf16>
      %cst_47 = arith.constant dense<0.000000e+00> : vector<4x8xf32>
      %147 = tpu.matmul %145, %146, %cst_47 {dimension_numbers = #tpu.dot_dimension_numbers<[1], [0], [0], [1], [0, 0, 1, 1], [], []>} : vector<4x4xbf16>, vector<4x8xbf16>, vector<4x8xf32> -> vector<4x8xf32>
      %148 = tpu.concatenate %84, %105, %126, %147 in 1 : vector<4x8xf32>, vector<4x8xf32>, vector<4x8xf32>, vector<4x8xf32> -> vector<4x32xf32>
      %149 = vector.extract_strided_slice %31 {offsets = [3, 0, 0], sizes = [1, 32, 32], strides = [1, 1, 1]} : vector<4x32x32xf32> to vector<1x32x32xf32>
      %150 = vector.shape_cast %149 : vector<1x32x32xf32> to vector<32x32xf32>
      %151 = arith.truncf %148 : vector<4x32xf32> to vector<4x32xbf16>
      %152 = arith.truncf %150 : vector<32x32xf32> to vector<32x32xbf16>
      %cst_48 = arith.constant dense<0.000000e+00> : vector<4x32xf32>
      %153 = tpu.matmul %151, %152, %cst_48 {dimension_numbers = #tpu.dot_dimension_numbers<[1], [0], [0], [1], [0, 0, 1, 1], [], []>} : vector<4x32xbf16>, vector<32x32xbf16>, vector<4x32xf32> -> vector<4x32xf32>
      %154 = vector.extract_strided_slice %33 {offsets = [3, 0], sizes = [1, 32], strides = [1, 1]} : vector<4x32xf32> to vector<1x32xf32>
      %155 = vector.shape_cast %154 : vector<1x32xf32> to vector<32xf32>
      %156 = vector.shape_cast %155 : vector<32xf32> to vector<1x32xf32>
      %157 = vector.broadcast %156 : vector<1x32xf32> to vector<4x32xf32>
      %158 = arith.addf %153, %157 : vector<4x32xf32>
      %c0_49 = arith.constant 0 : index
      %c0_50 = arith.constant 0 : index
      %c0_51 = arith.constant 0 : index
      %159 = vector.load %arg19[%c0_49, %c0_50, %c0_51] : memref<2x2x32xf32, #tpu.memory_space<vmem>>, vector<1x2x32xf32>
      %160 = vector.shape_cast %159 : vector<1x2x32xf32> to vector<2x32xf32>
      %161 = arith.addf %29, %158 : vector<4x32xf32>
      %162 = vector.extract_strided_slice %160 {offsets = [0, 0], sizes = [1, 32], strides = [1, 1]} : vector<2x32xf32> to vector<1x32xf32>
      %163 = vector.shape_cast %162 : vector<1x32xf32> to vector<32xf32>
      %164 = vector.extract_strided_slice %160 {offsets = [1, 0], sizes = [1, 32], strides = [1, 1]} : vector<2x32xf32> to vector<1x32xf32>
      %165 = vector.shape_cast %164 : vector<1x32xf32> to vector<32xf32>
      %cst_52 = arith.constant dense<0.000000e+00> : vector<4xf32>
      %166 = vector.multi_reduction <add>, %161, %cst_52 [1] : vector<4x32xf32> to vector<4xf32>
      %167 = vector.shape_cast %166 : vector<4xf32> to vector<4x1xf32>
      %cst_53 = arith.constant 3.200000e+01 : f32
      %168 = vector.broadcast %cst_53 : f32 to vector<4x1xf32>
      %169 = arith.divf %167, %168 : vector<4x1xf32>
      %170 = vector.broadcast %169 : vector<4x1xf32> to vector<4x32xf32>
      %171 = arith.subf %161, %170 : vector<4x32xf32>
      %172 = arith.mulf %171, %171 : vector<4x32xf32>
      %cst_54 = arith.constant dense<0.000000e+00> : vector<4xf32>
      %173 = vector.multi_reduction <add>, %172, %cst_54 [1] : vector<4x32xf32> to vector<4xf32>
      %174 = vector.shape_cast %173 : vector<4xf32> to vector<4x1xf32>
      %cst_55 = arith.constant 3.200000e+01 : f32
      %175 = vector.broadcast %cst_55 : f32 to vector<4x1xf32>
      %176 = arith.divf %174, %175 : vector<4x1xf32>
      %177 = vector.broadcast %169 : vector<4x1xf32> to vector<4x32xf32>
      %178 = arith.subf %161, %177 : vector<4x32xf32>
      %cst_56 = arith.constant 9.99999974E-6 : f32
      %179 = vector.broadcast %cst_56 : f32 to vector<4x1xf32>
      %180 = arith.addf %176, %179 : vector<4x1xf32>
      %181 = math.rsqrt %180 : vector<4x1xf32>
      %182 = vector.broadcast %181 : vector<4x1xf32> to vector<4x32xf32>
      %183 = arith.mulf %178, %182 : vector<4x32xf32>
      %184 = vector.shape_cast %163 : vector<32xf32> to vector<1x32xf32>
      %185 = vector.broadcast %184 : vector<1x32xf32> to vector<4x32xf32>
      %186 = arith.mulf %183, %185 : vector<4x32xf32>
      %187 = vector.shape_cast %165 : vector<32xf32> to vector<1x32xf32>
      %188 = vector.broadcast %187 : vector<1x32xf32> to vector<4x32xf32>
      %189 = arith.addf %186, %188 : vector<4x32xf32>
      %c0_57 = arith.constant 0 : index
      %c0_58 = arith.constant 0 : index
      %c0_59 = arith.constant 0 : index
      %190 = vector.load %arg20[%c0_57, %c0_58, %c0_59] : memref<2x2x32xf32, #tpu.memory_space<vmem>>, vector<1x2x32xf32>
      %191 = vector.shape_cast %190 : vector<1x2x32xf32> to vector<2x32xf32>
      %c0_60 = arith.constant 0 : index
      %c0_61 = arith.constant 0 : index
      %c0_62 = arith.constant 0 : index
      %192 = vector.load %arg21[%c0_60, %c0_61, %c0_62] : memref<2x32x64xf32, #tpu.memory_space<vmem>>, vector<1x32x64xf32>
      %193 = vector.shape_cast %192 : vector<1x32x64xf32> to vector<32x64xf32>
      %194 = arith.truncf %189 : vector<4x32xf32> to vector<4x32xbf16>
      %195 = arith.truncf %193 : vector<32x64xf32> to vector<32x64xbf16>
      %cst_63 = arith.constant dense<0.000000e+00> : vector<4x64xf32>
      %196 = tpu.matmul %194, %195, %cst_63 {dimension_numbers = #tpu.dot_dimension_numbers<[1], [0], [0], [1], [0, 0, 1, 1], [], []>} : vector<4x32xbf16>, vector<32x64xbf16>, vector<4x64xf32> -> vector<4x64xf32>
      %c0_64 = arith.constant 0 : index
      %c0_65 = arith.constant 0 : index
      %c0_66 = arith.constant 0 : index
      %197 = vector.load %arg17[%c0_64, %c0_65, %c0_66] : memref<2x1x64xf32, #tpu.memory_space<vmem>>, vector<1x1x64xf32>
      %198 = vector.shape_cast %197 : vector<1x1x64xf32> to vector<1x64xf32>
      %199 = vector.broadcast %198 : vector<1x64xf32> to vector<4x64xf32>
      %200 = arith.addf %196, %199 : vector<4x64xf32>
      %cst_67 = arith.constant 0.000000e+00 : f32
      %201 = vector.broadcast %cst_67 : f32 to vector<4x64xf32>
      %202 = arith.maximumf %200, %201 : vector<4x64xf32>
      %c0_68 = arith.constant 0 : index
      %c0_69 = arith.constant 0 : index
      %c0_70 = arith.constant 0 : index
      %203 = vector.load %arg22[%c0_68, %c0_69, %c0_70] : memref<2x64x32xf32, #tpu.memory_space<vmem>>, vector<1x64x32xf32>
      %204 = vector.shape_cast %203 : vector<1x64x32xf32> to vector<64x32xf32>
      %205 = arith.truncf %202 : vector<4x64xf32> to vector<4x64xbf16>
      %206 = arith.truncf %204 : vector<64x32xf32> to vector<64x32xbf16>
      %cst_71 = arith.constant dense<0.000000e+00> : vector<4x32xf32>
      %207 = tpu.matmul %205, %206, %cst_71 {dimension_numbers = #tpu.dot_dimension_numbers<[1], [0], [0], [1], [0, 0, 1, 1], [], []>} : vector<4x64xbf16>, vector<64x32xbf16>, vector<4x32xf32> -> vector<4x32xf32>
      %c0_72 = arith.constant 0 : index
      %c0_73 = arith.constant 0 : index
      %c0_74 = arith.constant 0 : index
      %208 = vector.load %arg18[%c0_72, %c0_73, %c0_74] : memref<2x1x32xf32, #tpu.memory_space<vmem>>, vector<1x1x32xf32>
      %209 = vector.shape_cast %208 : vector<1x1x32xf32> to vector<1x32xf32>
      %210 = vector.broadcast %209 : vector<1x32xf32> to vector<4x32xf32>
      %211 = arith.addf %207, %210 : vector<4x32xf32>
      %212 = arith.addf %189, %211 : vector<4x32xf32>
      %213 = vector.extract_strided_slice %191 {offsets = [0, 0], sizes = [1, 32], strides = [1, 1]} : vector<2x32xf32> to vector<1x32xf32>
      %214 = vector.shape_cast %213 : vector<1x32xf32> to vector<32xf32>
      %215 = vector.extract_strided_slice %191 {offsets = [1, 0], sizes = [1, 32], strides = [1, 1]} : vector<2x32xf32> to vector<1x32xf32>
      %216 = vector.shape_cast %215 : vector<1x32xf32> to vector<32xf32>
      %cst_75 = arith.constant dense<0.000000e+00> : vector<4xf32>
      %217 = vector.multi_reduction <add>, %212, %cst_75 [1] : vector<4x32xf32> to vector<4xf32>
      %218 = vector.shape_cast %217 : vector<4xf32> to vector<4x1xf32>
      %cst_76 = arith.constant 3.200000e+01 : f32
      %219 = vector.broadcast %cst_76 : f32 to vector<4x1xf32>
      %220 = arith.divf %218, %219 : vector<4x1xf32>
      %221 = vector.broadcast %220 : vector<4x1xf32> to vector<4x32xf32>
      %222 = arith.subf %212, %221 : vector<4x32xf32>
      %223 = arith.mulf %222, %222 : vector<4x32xf32>
      %cst_77 = arith.constant dense<0.000000e+00> : vector<4xf32>
      %224 = vector.multi_reduction <add>, %223, %cst_77 [1] : vector<4x32xf32> to vector<4xf32>
      %225 = vector.shape_cast %224 : vector<4xf32> to vector<4x1xf32>
      %cst_78 = arith.constant 3.200000e+01 : f32
      %226 = vector.broadcast %cst_78 : f32 to vector<4x1xf32>
      %227 = arith.divf %225, %226 : vector<4x1xf32>
      %228 = vector.broadcast %220 : vector<4x1xf32> to vector<4x32xf32>
      %229 = arith.subf %212, %228 : vector<4x32xf32>
      %cst_79 = arith.constant 9.99999974E-6 : f32
      %230 = vector.broadcast %cst_79 : f32 to vector<4x1xf32>
      %231 = arith.addf %227, %230 : vector<4x1xf32>
      %232 = math.rsqrt %231 : vector<4x1xf32>
      %233 = vector.broadcast %232 : vector<4x1xf32> to vector<4x32xf32>
      %234 = arith.mulf %229, %233 : vector<4x32xf32>
      %235 = vector.shape_cast %214 : vector<32xf32> to vector<1x32xf32>
      %236 = vector.broadcast %235 : vector<1x32xf32> to vector<4x32xf32>
      %237 = arith.mulf %234, %236 : vector<4x32xf32>
      %238 = vector.shape_cast %216 : vector<32xf32> to vector<1x32xf32>
      %239 = vector.broadcast %238 : vector<1x32xf32> to vector<4x32xf32>
      %240 = arith.addf %237, %239 : vector<4x32xf32>
      %c1 = arith.constant 1 : index
      %c0_80 = arith.constant 0 : index
      %c0_81 = arith.constant 0 : index
      %c0_82 = arith.constant 0 : index
      %241 = vector.load %arg16[%c1, %c0_80, %c0_81, %c0_82] : memref<2x4x32x32xf32, #tpu.memory_space<vmem>>, vector<1x4x32x32xf32>
      %242 = vector.shape_cast %241 : vector<1x4x32x32xf32> to vector<4x32x32xf32>
      %c1_83 = arith.constant 1 : index
      %c0_84 = arith.constant 0 : index
      %c0_85 = arith.constant 0 : index
      %243 = vector.load %arg15[%c1_83, %c0_84, %c0_85] : memref<2x4x32xf32, #tpu.memory_space<vmem>>, vector<1x4x32xf32>
      %244 = vector.shape_cast %243 : vector<1x4x32xf32> to vector<4x32xf32>
      %245 = vector.extract_strided_slice %242 {offsets = [0, 0, 0], sizes = [1, 32, 32], strides = [1, 1, 1]} : vector<4x32x32xf32> to vector<1x32x32xf32>
      %246 = vector.shape_cast %245 : vector<1x32x32xf32> to vector<32x32xf32>
      %247 = arith.truncf %240 : vector<4x32xf32> to vector<4x32xbf16>
      %248 = arith.truncf %246 : vector<32x32xf32> to vector<32x32xbf16>
      %cst_86 = arith.constant dense<0.000000e+00> : vector<4x32xf32>
      %249 = tpu.matmul %247, %248, %cst_86 {dimension_numbers = #tpu.dot_dimension_numbers<[1], [0], [0], [1], [0, 0, 1, 1], [], []>} : vector<4x32xbf16>, vector<32x32xbf16>, vector<4x32xf32> -> vector<4x32xf32>
      %250 = vector.extract_strided_slice %244 {offsets = [0, 0], sizes = [1, 32], strides = [1, 1]} : vector<4x32xf32> to vector<1x32xf32>
      %251 = vector.shape_cast %250 : vector<1x32xf32> to vector<32xf32>
      %252 = vector.shape_cast %251 : vector<32xf32> to vector<1x32xf32>
      %253 = vector.broadcast %252 : vector<1x32xf32> to vector<4x32xf32>
      %254 = arith.addf %249, %253 : vector<4x32xf32>
      %255 = vector.extract_strided_slice %242 {offsets = [1, 0, 0], sizes = [1, 32, 32], strides = [1, 1, 1]} : vector<4x32x32xf32> to vector<1x32x32xf32>
      %256 = vector.shape_cast %255 : vector<1x32x32xf32> to vector<32x32xf32>
      %257 = arith.truncf %240 : vector<4x32xf32> to vector<4x32xbf16>
      %258 = arith.truncf %256 : vector<32x32xf32> to vector<32x32xbf16>
      %cst_87 = arith.constant dense<0.000000e+00> : vector<4x32xf32>
      %259 = tpu.matmul %257, %258, %cst_87 {dimension_numbers = #tpu.dot_dimension_numbers<[1], [0], [0], [1], [0, 0, 1, 1], [], []>} : vector<4x32xbf16>, vector<32x32xbf16>, vector<4x32xf32> -> vector<4x32xf32>
      %260 = vector.extract_strided_slice %244 {offsets = [1, 0], sizes = [1, 32], strides = [1, 1]} : vector<4x32xf32> to vector<1x32xf32>
      %261 = vector.shape_cast %260 : vector<1x32xf32> to vector<32xf32>
      %262 = vector.shape_cast %261 : vector<32xf32> to vector<1x32xf32>
      %263 = vector.broadcast %262 : vector<1x32xf32> to vector<4x32xf32>
      %264 = arith.addf %259, %263 : vector<4x32xf32>
      %265 = vector.extract_strided_slice %242 {offsets = [2, 0, 0], sizes = [1, 32, 32], strides = [1, 1, 1]} : vector<4x32x32xf32> to vector<1x32x32xf32>
      %266 = vector.shape_cast %265 : vector<1x32x32xf32> to vector<32x32xf32>
      %267 = arith.truncf %240 : vector<4x32xf32> to vector<4x32xbf16>
      %268 = arith.truncf %266 : vector<32x32xf32> to vector<32x32xbf16>
      %cst_88 = arith.constant dense<0.000000e+00> : vector<4x32xf32>
      %269 = tpu.matmul %267, %268, %cst_88 {dimension_numbers = #tpu.dot_dimension_numbers<[1], [0], [0], [1], [0, 0, 1, 1], [], []>} : vector<4x32xbf16>, vector<32x32xbf16>, vector<4x32xf32> -> vector<4x32xf32>
      %270 = vector.extract_strided_slice %244 {offsets = [2, 0], sizes = [1, 32], strides = [1, 1]} : vector<4x32xf32> to vector<1x32xf32>
      %271 = vector.shape_cast %270 : vector<1x32xf32> to vector<32xf32>
      %272 = vector.shape_cast %271 : vector<32xf32> to vector<1x32xf32>
      %273 = vector.broadcast %272 : vector<1x32xf32> to vector<4x32xf32>
      %274 = arith.addf %269, %273 : vector<4x32xf32>
      %275 = vector.extract_strided_slice %254 {offsets = [0, 0], sizes = [4, 8], strides = [1, 1]} : vector<4x32xf32> to vector<4x8xf32>
      %276 = arith.truncf %275 : vector<4x8xf32> to vector<4x8xbf16>
      %277 = vector.extract_strided_slice %264 {offsets = [0, 0], sizes = [4, 8], strides = [1, 1]} : vector<4x32xf32> to vector<4x8xf32>
      %278 = arith.truncf %277 : vector<4x8xf32> to vector<4x8xbf16>
      %cst_89 = arith.constant dense<0.000000e+00> : vector<4x4xf32>
      %279 = tpu.matmul %276, %278, %cst_89 {dimension_numbers = #tpu.dot_dimension_numbers<[1], [1], [0], [0], [0, 0, 1, 0], [], []>} : vector<4x8xbf16>, vector<4x8xbf16>, vector<4x4xf32> -> vector<4x4xf32>
      %cst_90 = arith.constant 0.353553385 : f32
      %280 = vector.broadcast %cst_90 : f32 to vector<4x4xf32>
      %281 = arith.mulf %279, %280 : vector<4x4xf32>
      %cst_91 = arith.constant dense<0xFF800000> : vector<4xf32>
      %282 = vector.multi_reduction <maximumf>, %281, %cst_91 [1] : vector<4x4xf32> to vector<4xf32>
      %283 = vector.shape_cast %282 : vector<4xf32> to vector<4x1xf32>
      %284 = vector.broadcast %283 : vector<4x1xf32> to vector<4x4xf32>
      %285 = arith.subf %281, %284 : vector<4x4xf32>
      %286 = math.exp %285 : vector<4x4xf32>
      %cst_92 = arith.constant dense<0.000000e+00> : vector<4xf32>
      %287 = vector.multi_reduction <add>, %286, %cst_92 [1] : vector<4x4xf32> to vector<4xf32>
      %288 = vector.shape_cast %287 : vector<4xf32> to vector<4x1xf32>
      %289 = tpu.reciprocal %288 {approx = true} : vector<4x1xf32> -> vector<4x1xf32>
      %290 = vector.broadcast %289 : vector<4x1xf32> to vector<4x4xf32>
      %291 = arith.mulf %286, %290 : vector<4x4xf32>
      %292 = vector.extract_strided_slice %274 {offsets = [0, 0], sizes = [4, 8], strides = [1, 1]} : vector<4x32xf32> to vector<4x8xf32>
      %293 = arith.truncf %291 : vector<4x4xf32> to vector<4x4xbf16>
      %294 = arith.truncf %292 : vector<4x8xf32> to vector<4x8xbf16>
      %cst_93 = arith.constant dense<0.000000e+00> : vector<4x8xf32>
      %295 = tpu.matmul %293, %294, %cst_93 {dimension_numbers = #tpu.dot_dimension_numbers<[1], [0], [0], [1], [0, 0, 1, 1], [], []>} : vector<4x4xbf16>, vector<4x8xbf16>, vector<4x8xf32> -> vector<4x8xf32>
      %296 = vector.extract_strided_slice %254 {offsets = [0, 8], sizes = [4, 8], strides = [1, 1]} : vector<4x32xf32> to vector<4x8xf32>
      %297 = arith.truncf %296 : vector<4x8xf32> to vector<4x8xbf16>
      %298 = vector.extract_strided_slice %264 {offsets = [0, 8], sizes = [4, 8], strides = [1, 1]} : vector<4x32xf32> to vector<4x8xf32>
      %299 = arith.truncf %298 : vector<4x8xf32> to vector<4x8xbf16>
      %cst_94 = arith.constant dense<0.000000e+00> : vector<4x4xf32>
      %300 = tpu.matmul %297, %299, %cst_94 {dimension_numbers = #tpu.dot_dimension_numbers<[1], [1], [0], [0], [0, 0, 1, 0], [], []>} : vector<4x8xbf16>, vector<4x8xbf16>, vector<4x4xf32> -> vector<4x4xf32>
      %cst_95 = arith.constant 0.353553385 : f32
      %301 = vector.broadcast %cst_95 : f32 to vector<4x4xf32>
      %302 = arith.mulf %300, %301 : vector<4x4xf32>
      %cst_96 = arith.constant dense<0xFF800000> : vector<4xf32>
      %303 = vector.multi_reduction <maximumf>, %302, %cst_96 [1] : vector<4x4xf32> to vector<4xf32>
      %304 = vector.shape_cast %303 : vector<4xf32> to vector<4x1xf32>
      %305 = vector.broadcast %304 : vector<4x1xf32> to vector<4x4xf32>
      %306 = arith.subf %302, %305 : vector<4x4xf32>
      %307 = math.exp %306 : vector<4x4xf32>
      %cst_97 = arith.constant dense<0.000000e+00> : vector<4xf32>
      %308 = vector.multi_reduction <add>, %307, %cst_97 [1] : vector<4x4xf32> to vector<4xf32>
      %309 = vector.shape_cast %308 : vector<4xf32> to vector<4x1xf32>
      %310 = tpu.reciprocal %309 {approx = true} : vector<4x1xf32> -> vector<4x1xf32>
      %311 = vector.broadcast %310 : vector<4x1xf32> to vector<4x4xf32>
      %312 = arith.mulf %307, %311 : vector<4x4xf32>
      %313 = vector.extract_strided_slice %274 {offsets = [0, 8], sizes = [4, 8], strides = [1, 1]} : vector<4x32xf32> to vector<4x8xf32>
      %314 = arith.truncf %312 : vector<4x4xf32> to vector<4x4xbf16>
      %315 = arith.truncf %313 : vector<4x8xf32> to vector<4x8xbf16>
      %cst_98 = arith.constant dense<0.000000e+00> : vector<4x8xf32>
      %316 = tpu.matmul %314, %315, %cst_98 {dimension_numbers = #tpu.dot_dimension_numbers<[1], [0], [0], [1], [0, 0, 1, 1], [], []>} : vector<4x4xbf16>, vector<4x8xbf16>, vector<4x8xf32> -> vector<4x8xf32>
      %317 = vector.extract_strided_slice %254 {offsets = [0, 16], sizes = [4, 8], strides = [1, 1]} : vector<4x32xf32> to vector<4x8xf32>
      %318 = arith.truncf %317 : vector<4x8xf32> to vector<4x8xbf16>
      %319 = vector.extract_strided_slice %264 {offsets = [0, 16], sizes = [4, 8], strides = [1, 1]} : vector<4x32xf32> to vector<4x8xf32>
      %320 = arith.truncf %319 : vector<4x8xf32> to vector<4x8xbf16>
      %cst_99 = arith.constant dense<0.000000e+00> : vector<4x4xf32>
      %321 = tpu.matmul %318, %320, %cst_99 {dimension_numbers = #tpu.dot_dimension_numbers<[1], [1], [0], [0], [0, 0, 1, 0], [], []>} : vector<4x8xbf16>, vector<4x8xbf16>, vector<4x4xf32> -> vector<4x4xf32>
      %cst_100 = arith.constant 0.353553385 : f32
      %322 = vector.broadcast %cst_100 : f32 to vector<4x4xf32>
      %323 = arith.mulf %321, %322 : vector<4x4xf32>
      %cst_101 = arith.constant dense<0xFF800000> : vector<4xf32>
      %324 = vector.multi_reduction <maximumf>, %323, %cst_101 [1] : vector<4x4xf32> to vector<4xf32>
      %325 = vector.shape_cast %324 : vector<4xf32> to vector<4x1xf32>
      %326 = vector.broadcast %325 : vector<4x1xf32> to vector<4x4xf32>
      %327 = arith.subf %323, %326 : vector<4x4xf32>
      %328 = math.exp %327 : vector<4x4xf32>
      %cst_102 = arith.constant dense<0.000000e+00> : vector<4xf32>
      %329 = vector.multi_reduction <add>, %328, %cst_102 [1] : vector<4x4xf32> to vector<4xf32>
      %330 = vector.shape_cast %329 : vector<4xf32> to vector<4x1xf32>
      %331 = tpu.reciprocal %330 {approx = true} : vector<4x1xf32> -> vector<4x1xf32>
      %332 = vector.broadcast %331 : vector<4x1xf32> to vector<4x4xf32>
      %333 = arith.mulf %328, %332 : vector<4x4xf32>
      %334 = vector.extract_strided_slice %274 {offsets = [0, 16], sizes = [4, 8], strides = [1, 1]} : vector<4x32xf32> to vector<4x8xf32>
      %335 = arith.truncf %333 : vector<4x4xf32> to vector<4x4xbf16>
      %336 = arith.truncf %334 : vector<4x8xf32> to vector<4x8xbf16>
      %cst_103 = arith.constant dense<0.000000e+00> : vector<4x8xf32>
      %337 = tpu.matmul %335, %336, %cst_103 {dimension_numbers = #tpu.dot_dimension_numbers<[1], [0], [0], [1], [0, 0, 1, 1], [], []>} : vector<4x4xbf16>, vector<4x8xbf16>, vector<4x8xf32> -> vector<4x8xf32>
      %338 = vector.extract_strided_slice %254 {offsets = [0, 24], sizes = [4, 8], strides = [1, 1]} : vector<4x32xf32> to vector<4x8xf32>
      %339 = arith.truncf %338 : vector<4x8xf32> to vector<4x8xbf16>
      %340 = vector.extract_strided_slice %264 {offsets = [0, 24], sizes = [4, 8], strides = [1, 1]} : vector<4x32xf32> to vector<4x8xf32>
      %341 = arith.truncf %340 : vector<4x8xf32> to vector<4x8xbf16>
      %cst_104 = arith.constant dense<0.000000e+00> : vector<4x4xf32>
      %342 = tpu.matmul %339, %341, %cst_104 {dimension_numbers = #tpu.dot_dimension_numbers<[1], [1], [0], [0], [0, 0, 1, 0], [], []>} : vector<4x8xbf16>, vector<4x8xbf16>, vector<4x4xf32> -> vector<4x4xf32>
      %cst_105 = arith.constant 0.353553385 : f32
      %343 = vector.broadcast %cst_105 : f32 to vector<4x4xf32>
      %344 = arith.mulf %342, %343 : vector<4x4xf32>
      %cst_106 = arith.constant dense<0xFF800000> : vector<4xf32>
      %345 = vector.multi_reduction <maximumf>, %344, %cst_106 [1] : vector<4x4xf32> to vector<4xf32>
      %346 = vector.shape_cast %345 : vector<4xf32> to vector<4x1xf32>
      %347 = vector.broadcast %346 : vector<4x1xf32> to vector<4x4xf32>
      %348 = arith.subf %344, %347 : vector<4x4xf32>
      %349 = math.exp %348 : vector<4x4xf32>
      %cst_107 = arith.constant dense<0.000000e+00> : vector<4xf32>
      %350 = vector.multi_reduction <add>, %349, %cst_107 [1] : vector<4x4xf32> to vector<4xf32>
      %351 = vector.shape_cast %350 : vector<4xf32> to vector<4x1xf32>
      %352 = tpu.reciprocal %351 {approx = true} : vector<4x1xf32> -> vector<4x1xf32>
      %353 = vector.broadcast %352 : vector<4x1xf32> to vector<4x4xf32>
      %354 = arith.mulf %349, %353 : vector<4x4xf32>
      %355 = vector.extract_strided_slice %274 {offsets = [0, 24], sizes = [4, 8], strides = [1, 1]} : vector<4x32xf32> to vector<4x8xf32>
      %356 = arith.truncf %354 : vector<4x4xf32> to vector<4x4xbf16>
      %357 = arith.truncf %355 : vector<4x8xf32> to vector<4x8xbf16>
      %cst_108 = arith.constant dense<0.000000e+00> : vector<4x8xf32>
      %358 = tpu.matmul %356, %357, %cst_108 {dimension_numbers = #tpu.dot_dimension_numbers<[1], [0], [0], [1], [0, 0, 1, 1], [], []>} : vector<4x4xbf16>, vector<4x8xbf16>, vector<4x8xf32> -> vector<4x8xf32>
      %359 = tpu.concatenate %295, %316, %337, %358 in 1 : vector<4x8xf32>, vector<4x8xf32>, vector<4x8xf32>, vector<4x8xf32> -> vector<4x32xf32>
      %360 = vector.extract_strided_slice %242 {offsets = [3, 0, 0], sizes = [1, 32, 32], strides = [1, 1, 1]} : vector<4x32x32xf32> to vector<1x32x32xf32>
      %361 = vector.shape_cast %360 : vector<1x32x32xf32> to vector<32x32xf32>
      %362 = arith.truncf %359 : vector<4x32xf32> to vector<4x32xbf16>
      %363 = arith.truncf %361 : vector<32x32xf32> to vector<32x32xbf16>
      %cst_109 = arith.constant dense<0.000000e+00> : vector<4x32xf32>
      %364 = tpu.matmul %362, %363, %cst_109 {dimension_numbers = #tpu.dot_dimension_numbers<[1], [0], [0], [1], [0, 0, 1, 1], [], []>} : vector<4x32xbf16>, vector<32x32xbf16>, vector<4x32xf32> -> vector<4x32xf32>
      %365 = vector.extract_strided_slice %244 {offsets = [3, 0], sizes = [1, 32], strides = [1, 1]} : vector<4x32xf32> to vector<1x32xf32>
      %366 = vector.shape_cast %365 : vector<1x32xf32> to vector<32xf32>
      %367 = vector.shape_cast %366 : vector<32xf32> to vector<1x32xf32>
      %368 = vector.broadcast %367 : vector<1x32xf32> to vector<4x32xf32>
      %369 = arith.addf %364, %368 : vector<4x32xf32>
      %c1_110 = arith.constant 1 : index
      %c0_111 = arith.constant 0 : index
      %c0_112 = arith.constant 0 : index
      %370 = vector.load %arg19[%c1_110, %c0_111, %c0_112] : memref<2x2x32xf32, #tpu.memory_space<vmem>>, vector<1x2x32xf32>
      %371 = vector.shape_cast %370 : vector<1x2x32xf32> to vector<2x32xf32>
      %372 = arith.addf %240, %369 : vector<4x32xf32>
      %373 = vector.extract_strided_slice %371 {offsets = [0, 0], sizes = [1, 32], strides = [1, 1]} : vector<2x32xf32> to vector<1x32xf32>
      %374 = vector.shape_cast %373 : vector<1x32xf32> to vector<32xf32>
      %375 = vector.extract_strided_slice %371 {offsets = [1, 0], sizes = [1, 32], strides = [1, 1]} : vector<2x32xf32> to vector<1x32xf32>
      %376 = vector.shape_cast %375 : vector<1x32xf32> to vector<32xf32>
      %cst_113 = arith.constant dense<0.000000e+00> : vector<4xf32>
      %377 = vector.multi_reduction <add>, %372, %cst_113 [1] : vector<4x32xf32> to vector<4xf32>
      %378 = vector.shape_cast %377 : vector<4xf32> to vector<4x1xf32>
      %cst_114 = arith.constant 3.200000e+01 : f32
      %379 = vector.broadcast %cst_114 : f32 to vector<4x1xf32>
      %380 = arith.divf %378, %379 : vector<4x1xf32>
      %381 = vector.broadcast %380 : vector<4x1xf32> to vector<4x32xf32>
      %382 = arith.subf %372, %381 : vector<4x32xf32>
      %383 = arith.mulf %382, %382 : vector<4x32xf32>
      %cst_115 = arith.constant dense<0.000000e+00> : vector<4xf32>
      %384 = vector.multi_reduction <add>, %383, %cst_115 [1] : vector<4x32xf32> to vector<4xf32>
      %385 = vector.shape_cast %384 : vector<4xf32> to vector<4x1xf32>
      %cst_116 = arith.constant 3.200000e+01 : f32
      %386 = vector.broadcast %cst_116 : f32 to vector<4x1xf32>
      %387 = arith.divf %385, %386 : vector<4x1xf32>
      %388 = vector.broadcast %380 : vector<4x1xf32> to vector<4x32xf32>
      %389 = arith.subf %372, %388 : vector<4x32xf32>
      %cst_117 = arith.constant 9.99999974E-6 : f32
      %390 = vector.broadcast %cst_117 : f32 to vector<4x1xf32>
      %391 = arith.addf %387, %390 : vector<4x1xf32>
      %392 = math.rsqrt %391 : vector<4x1xf32>
      %393 = vector.broadcast %392 : vector<4x1xf32> to vector<4x32xf32>
      %394 = arith.mulf %389, %393 : vector<4x32xf32>
      %395 = vector.shape_cast %374 : vector<32xf32> to vector<1x32xf32>
      %396 = vector.broadcast %395 : vector<1x32xf32> to vector<4x32xf32>
      %397 = arith.mulf %394, %396 : vector<4x32xf32>
      %398 = vector.shape_cast %376 : vector<32xf32> to vector<1x32xf32>
      %399 = vector.broadcast %398 : vector<1x32xf32> to vector<4x32xf32>
      %400 = arith.addf %397, %399 : vector<4x32xf32>
      %c1_118 = arith.constant 1 : index
      %c0_119 = arith.constant 0 : index
      %c0_120 = arith.constant 0 : index
      %401 = vector.load %arg20[%c1_118, %c0_119, %c0_120] : memref<2x2x32xf32, #tpu.memory_space<vmem>>, vector<1x2x32xf32>
      %402 = vector.shape_cast %401 : vector<1x2x32xf32> to vector<2x32xf32>
      %c1_121 = arith.constant 1 : index
      %c0_122 = arith.constant 0 : index
      %c0_123 = arith.constant 0 : index
      %403 = vector.load %arg21[%c1_121, %c0_122, %c0_123] : memref<2x32x64xf32, #tpu.memory_space<vmem>>, vector<1x32x64xf32>
      %404 = vector.shape_cast %403 : vector<1x32x64xf32> to vector<32x64xf32>
      %405 = arith.truncf %400 : vector<4x32xf32> to vector<4x32xbf16>
      %406 = arith.truncf %404 : vector<32x64xf32> to vector<32x64xbf16>
      %cst_124 = arith.constant dense<0.000000e+00> : vector<4x64xf32>
      %407 = tpu.matmul %405, %406, %cst_124 {dimension_numbers = #tpu.dot_dimension_numbers<[1], [0], [0], [1], [0, 0, 1, 1], [], []>} : vector<4x32xbf16>, vector<32x64xbf16>, vector<4x64xf32> -> vector<4x64xf32>
      %c1_125 = arith.constant 1 : index
      %c0_126 = arith.constant 0 : index
      %c0_127 = arith.constant 0 : index
      %408 = vector.load %arg17[%c1_125, %c0_126, %c0_127] : memref<2x1x64xf32, #tpu.memory_space<vmem>>, vector<1x1x64xf32>
      %409 = vector.shape_cast %408 : vector<1x1x64xf32> to vector<1x64xf32>
      %410 = vector.broadcast %409 : vector<1x64xf32> to vector<4x64xf32>
      %411 = arith.addf %407, %410 : vector<4x64xf32>
      %cst_128 = arith.constant 0.000000e+00 : f32
      %412 = vector.broadcast %cst_128 : f32 to vector<4x64xf32>
      %413 = arith.maximumf %411, %412 : vector<4x64xf32>
      %c1_129 = arith.constant 1 : index
      %c0_130 = arith.constant 0 : index
      %c0_131 = arith.constant 0 : index
      %414 = vector.load %arg22[%c1_129, %c0_130, %c0_131] : memref<2x64x32xf32, #tpu.memory_space<vmem>>, vector<1x64x32xf32>
      %415 = vector.shape_cast %414 : vector<1x64x32xf32> to vector<64x32xf32>
      %416 = arith.truncf %413 : vector<4x64xf32> to vector<4x64xbf16>
      %417 = arith.truncf %415 : vector<64x32xf32> to vector<64x32xbf16>
      %cst_132 = arith.constant dense<0.000000e+00> : vector<4x32xf32>
      %418 = tpu.matmul %416, %417, %cst_132 {dimension_numbers = #tpu.dot_dimension_numbers<[1], [0], [0], [1], [0, 0, 1, 1], [], []>} : vector<4x64xbf16>, vector<64x32xbf16>, vector<4x32xf32> -> vector<4x32xf32>
      %c1_133 = arith.constant 1 : index
      %c0_134 = arith.constant 0 : index
      %c0_135 = arith.constant 0 : index
      %419 = vector.load %arg18[%c1_133, %c0_134, %c0_135] : memref<2x1x32xf32, #tpu.memory_space<vmem>>, vector<1x1x32xf32>
      %420 = vector.shape_cast %419 : vector<1x1x32xf32> to vector<1x32xf32>
      %421 = vector.broadcast %420 : vector<1x32xf32> to vector<4x32xf32>
      %422 = arith.addf %418, %421 : vector<4x32xf32>
      %423 = arith.addf %400, %422 : vector<4x32xf32>
      %424 = vector.extract_strided_slice %402 {offsets = [0, 0], sizes = [1, 32], strides = [1, 1]} : vector<2x32xf32> to vector<1x32xf32>
      %425 = vector.shape_cast %424 : vector<1x32xf32> to vector<32xf32>
      %426 = vector.extract_strided_slice %402 {offsets = [1, 0], sizes = [1, 32], strides = [1, 1]} : vector<2x32xf32> to vector<1x32xf32>
      %427 = vector.shape_cast %426 : vector<1x32xf32> to vector<32xf32>
      %cst_136 = arith.constant dense<0.000000e+00> : vector<4xf32>
      %428 = vector.multi_reduction <add>, %423, %cst_136 [1] : vector<4x32xf32> to vector<4xf32>
      %429 = vector.shape_cast %428 : vector<4xf32> to vector<4x1xf32>
      %cst_137 = arith.constant 3.200000e+01 : f32
      %430 = vector.broadcast %cst_137 : f32 to vector<4x1xf32>
      %431 = arith.divf %429, %430 : vector<4x1xf32>
      %432 = vector.broadcast %431 : vector<4x1xf32> to vector<4x32xf32>
      %433 = arith.subf %423, %432 : vector<4x32xf32>
      %434 = arith.mulf %433, %433 : vector<4x32xf32>
      %cst_138 = arith.constant dense<0.000000e+00> : vector<4xf32>
      %435 = vector.multi_reduction <add>, %434, %cst_138 [1] : vector<4x32xf32> to vector<4xf32>
      %436 = vector.shape_cast %435 : vector<4xf32> to vector<4x1xf32>
      %cst_139 = arith.constant 3.200000e+01 : f32
      %437 = vector.broadcast %cst_139 : f32 to vector<4x1xf32>
      %438 = arith.divf %436, %437 : vector<4x1xf32>
      %439 = vector.broadcast %431 : vector<4x1xf32> to vector<4x32xf32>
      %440 = arith.subf %423, %439 : vector<4x32xf32>
      %cst_140 = arith.constant 9.99999974E-6 : f32
      %441 = vector.broadcast %cst_140 : f32 to vector<4x1xf32>
      %442 = arith.addf %438, %441 : vector<4x1xf32>
      %443 = math.rsqrt %442 : vector<4x1xf32>
      %444 = vector.broadcast %443 : vector<4x1xf32> to vector<4x32xf32>
      %445 = arith.mulf %440, %444 : vector<4x32xf32>
      %446 = vector.shape_cast %425 : vector<32xf32> to vector<1x32xf32>
      %447 = vector.broadcast %446 : vector<1x32xf32> to vector<4x32xf32>
      %448 = arith.mulf %445, %447 : vector<4x32xf32>
      %449 = vector.shape_cast %427 : vector<32xf32> to vector<1x32xf32>
      %450 = vector.broadcast %449 : vector<1x32xf32> to vector<4x32xf32>
      %451 = arith.addf %448, %450 : vector<4x32xf32>
      %c0_141 = arith.constant 0 : index
      %c0_142 = arith.constant 0 : index
      %452 = vector.load %arg23[%c0_141, %c0_142] : memref<2x32xf32, #tpu.memory_space<vmem>>, vector<2x32xf32>
      %453 = vector.extract_strided_slice %452 {offsets = [0, 0], sizes = [1, 32], strides = [1, 1]} : vector<2x32xf32> to vector<1x32xf32>
      %454 = vector.shape_cast %453 : vector<1x32xf32> to vector<32xf32>
      %455 = vector.extract_strided_slice %452 {offsets = [1, 0], sizes = [1, 32], strides = [1, 1]} : vector<2x32xf32> to vector<1x32xf32>
      %456 = vector.shape_cast %455 : vector<1x32xf32> to vector<32xf32>
      %cst_143 = arith.constant dense<0.000000e+00> : vector<4xf32>
      %457 = vector.multi_reduction <add>, %451, %cst_143 [1] : vector<4x32xf32> to vector<4xf32>
      %458 = vector.shape_cast %457 : vector<4xf32> to vector<4x1xf32>
      %cst_144 = arith.constant 3.200000e+01 : f32
      %459 = vector.broadcast %cst_144 : f32 to vector<4x1xf32>
      %460 = arith.divf %458, %459 : vector<4x1xf32>
      %461 = vector.broadcast %460 : vector<4x1xf32> to vector<4x32xf32>
      %462 = arith.subf %451, %461 : vector<4x32xf32>
      %463 = arith.mulf %462, %462 : vector<4x32xf32>
      %cst_145 = arith.constant dense<0.000000e+00> : vector<4xf32>
      %464 = vector.multi_reduction <add>, %463, %cst_145 [1] : vector<4x32xf32> to vector<4xf32>
      %465 = vector.shape_cast %464 : vector<4xf32> to vector<4x1xf32>
      %cst_146 = arith.constant 3.200000e+01 : f32
      %466 = vector.broadcast %cst_146 : f32 to vector<4x1xf32>
      %467 = arith.divf %465, %466 : vector<4x1xf32>
      %468 = vector.broadcast %460 : vector<4x1xf32> to vector<4x32xf32>
      %469 = arith.subf %451, %468 : vector<4x32xf32>
      %cst_147 = arith.constant 9.99999974E-6 : f32
      %470 = vector.broadcast %cst_147 : f32 to vector<4x1xf32>
      %471 = arith.addf %467, %470 : vector<4x1xf32>
      %472 = math.rsqrt %471 : vector<4x1xf32>
      %473 = vector.broadcast %472 : vector<4x1xf32> to vector<4x32xf32>
      %474 = arith.mulf %469, %473 : vector<4x32xf32>
      %475 = vector.shape_cast %454 : vector<32xf32> to vector<1x32xf32>
      %476 = vector.broadcast %475 : vector<1x32xf32> to vector<4x32xf32>
      %477 = arith.mulf %474, %476 : vector<4x32xf32>
      %478 = vector.shape_cast %456 : vector<32xf32> to vector<1x32xf32>
      %479 = vector.broadcast %478 : vector<1x32xf32> to vector<4x32xf32>
      %480 = arith.addf %477, %479 : vector<4x32xf32>
      %c0_148 = arith.constant 0 : index
      %c0_149 = arith.constant 0 : index
      %c0_150 = arith.constant 0 : index
      %c0_151 = arith.constant 0 : index
      %481 = vector.load %arg11[%c0_148, %c0_149, %c0_150, %c0_151] : memref<2x4x32x32xf32, #tpu.memory_space<vmem>>, vector<1x4x32x32xf32>
      %482 = vector.shape_cast %481 : vector<1x4x32x32xf32> to vector<4x32x32xf32>
      %c0_152 = arith.constant 0 : index
      %c0_153 = arith.constant 0 : index
      %c0_154 = arith.constant 0 : index
      %483 = vector.load %arg10[%c0_152, %c0_153, %c0_154] : memref<2x4x32xf32, #tpu.memory_space<vmem>>, vector<1x4x32xf32>
      %484 = vector.shape_cast %483 : vector<1x4x32xf32> to vector<4x32xf32>
      %485 = vector.extract_strided_slice %482 {offsets = [0, 0, 0], sizes = [1, 32, 32], strides = [1, 1, 1]} : vector<4x32x32xf32> to vector<1x32x32xf32>
      %486 = vector.shape_cast %485 : vector<1x32x32xf32> to vector<32x32xf32>
      %487 = arith.truncf %29 : vector<4x32xf32> to vector<4x32xbf16>
      %488 = arith.truncf %486 : vector<32x32xf32> to vector<32x32xbf16>
      %cst_155 = arith.constant dense<0.000000e+00> : vector<4x32xf32>
      %489 = tpu.matmul %487, %488, %cst_155 {dimension_numbers = #tpu.dot_dimension_numbers<[1], [0], [0], [1], [0, 0, 1, 1], [], []>} : vector<4x32xbf16>, vector<32x32xbf16>, vector<4x32xf32> -> vector<4x32xf32>
      %490 = vector.extract_strided_slice %484 {offsets = [0, 0], sizes = [1, 32], strides = [1, 1]} : vector<4x32xf32> to vector<1x32xf32>
      %491 = vector.shape_cast %490 : vector<1x32xf32> to vector<32xf32>
      %492 = vector.shape_cast %491 : vector<32xf32> to vector<1x32xf32>
      %493 = vector.broadcast %492 : vector<1x32xf32> to vector<4x32xf32>
      %494 = arith.addf %489, %493 : vector<4x32xf32>
      %495 = vector.extract_strided_slice %482 {offsets = [1, 0, 0], sizes = [1, 32, 32], strides = [1, 1, 1]} : vector<4x32x32xf32> to vector<1x32x32xf32>
      %496 = vector.shape_cast %495 : vector<1x32x32xf32> to vector<32x32xf32>
      %497 = arith.truncf %29 : vector<4x32xf32> to vector<4x32xbf16>
      %498 = arith.truncf %496 : vector<32x32xf32> to vector<32x32xbf16>
      %cst_156 = arith.constant dense<0.000000e+00> : vector<4x32xf32>
      %499 = tpu.matmul %497, %498, %cst_156 {dimension_numbers = #tpu.dot_dimension_numbers<[1], [0], [0], [1], [0, 0, 1, 1], [], []>} : vector<4x32xbf16>, vector<32x32xbf16>, vector<4x32xf32> -> vector<4x32xf32>
      %500 = vector.extract_strided_slice %484 {offsets = [1, 0], sizes = [1, 32], strides = [1, 1]} : vector<4x32xf32> to vector<1x32xf32>
      %501 = vector.shape_cast %500 : vector<1x32xf32> to vector<32xf32>
      %502 = vector.shape_cast %501 : vector<32xf32> to vector<1x32xf32>
      %503 = vector.broadcast %502 : vector<1x32xf32> to vector<4x32xf32>
      %504 = arith.addf %499, %503 : vector<4x32xf32>
      %505 = vector.extract_strided_slice %482 {offsets = [2, 0, 0], sizes = [1, 32, 32], strides = [1, 1, 1]} : vector<4x32x32xf32> to vector<1x32x32xf32>
      %506 = vector.shape_cast %505 : vector<1x32x32xf32> to vector<32x32xf32>
      %507 = arith.truncf %29 : vector<4x32xf32> to vector<4x32xbf16>
      %508 = arith.truncf %506 : vector<32x32xf32> to vector<32x32xbf16>
      %cst_157 = arith.constant dense<0.000000e+00> : vector<4x32xf32>
      %509 = tpu.matmul %507, %508, %cst_157 {dimension_numbers = #tpu.dot_dimension_numbers<[1], [0], [0], [1], [0, 0, 1, 1], [], []>} : vector<4x32xbf16>, vector<32x32xbf16>, vector<4x32xf32> -> vector<4x32xf32>
      %510 = vector.extract_strided_slice %484 {offsets = [2, 0], sizes = [1, 32], strides = [1, 1]} : vector<4x32xf32> to vector<1x32xf32>
      %511 = vector.shape_cast %510 : vector<1x32xf32> to vector<32xf32>
      %512 = vector.shape_cast %511 : vector<32xf32> to vector<1x32xf32>
      %513 = vector.broadcast %512 : vector<1x32xf32> to vector<4x32xf32>
      %514 = arith.addf %509, %513 : vector<4x32xf32>
      %515 = vector.extract_strided_slice %494 {offsets = [0, 0], sizes = [4, 8], strides = [1, 1]} : vector<4x32xf32> to vector<4x8xf32>
      %516 = arith.truncf %515 : vector<4x8xf32> to vector<4x8xbf16>
      %517 = vector.extract_strided_slice %504 {offsets = [0, 0], sizes = [4, 8], strides = [1, 1]} : vector<4x32xf32> to vector<4x8xf32>
      %518 = arith.truncf %517 : vector<4x8xf32> to vector<4x8xbf16>
      %cst_158 = arith.constant dense<0.000000e+00> : vector<4x4xf32>
      %519 = tpu.matmul %516, %518, %cst_158 {dimension_numbers = #tpu.dot_dimension_numbers<[1], [1], [0], [0], [0, 0, 1, 0], [], []>} : vector<4x8xbf16>, vector<4x8xbf16>, vector<4x4xf32> -> vector<4x4xf32>
      %cst_159 = arith.constant 0.353553385 : f32
      %520 = vector.broadcast %cst_159 : f32 to vector<4x4xf32>
      %521 = arith.mulf %519, %520 : vector<4x4xf32>
      %cst_160 = arith.constant dense<0xFF800000> : vector<4xf32>
      %522 = vector.multi_reduction <maximumf>, %521, %cst_160 [1] : vector<4x4xf32> to vector<4xf32>
      %523 = vector.shape_cast %522 : vector<4xf32> to vector<4x1xf32>
      %524 = vector.broadcast %523 : vector<4x1xf32> to vector<4x4xf32>
      %525 = arith.subf %521, %524 : vector<4x4xf32>
      %526 = math.exp %525 : vector<4x4xf32>
      %cst_161 = arith.constant dense<0.000000e+00> : vector<4xf32>
      %527 = vector.multi_reduction <add>, %526, %cst_161 [1] : vector<4x4xf32> to vector<4xf32>
      %528 = vector.shape_cast %527 : vector<4xf32> to vector<4x1xf32>
      %529 = tpu.reciprocal %528 {approx = true} : vector<4x1xf32> -> vector<4x1xf32>
      %530 = vector.broadcast %529 : vector<4x1xf32> to vector<4x4xf32>
      %531 = arith.mulf %526, %530 : vector<4x4xf32>
      %532 = vector.extract_strided_slice %514 {offsets = [0, 0], sizes = [4, 8], strides = [1, 1]} : vector<4x32xf32> to vector<4x8xf32>
      %533 = arith.truncf %531 : vector<4x4xf32> to vector<4x4xbf16>
      %534 = arith.truncf %532 : vector<4x8xf32> to vector<4x8xbf16>
      %cst_162 = arith.constant dense<0.000000e+00> : vector<4x8xf32>
      %535 = tpu.matmul %533, %534, %cst_162 {dimension_numbers = #tpu.dot_dimension_numbers<[1], [0], [0], [1], [0, 0, 1, 1], [], []>} : vector<4x4xbf16>, vector<4x8xbf16>, vector<4x8xf32> -> vector<4x8xf32>
      %536 = vector.extract_strided_slice %494 {offsets = [0, 8], sizes = [4, 8], strides = [1, 1]} : vector<4x32xf32> to vector<4x8xf32>
      %537 = arith.truncf %536 : vector<4x8xf32> to vector<4x8xbf16>
      %538 = vector.extract_strided_slice %504 {offsets = [0, 8], sizes = [4, 8], strides = [1, 1]} : vector<4x32xf32> to vector<4x8xf32>
      %539 = arith.truncf %538 : vector<4x8xf32> to vector<4x8xbf16>
      %cst_163 = arith.constant dense<0.000000e+00> : vector<4x4xf32>
      %540 = tpu.matmul %537, %539, %cst_163 {dimension_numbers = #tpu.dot_dimension_numbers<[1], [1], [0], [0], [0, 0, 1, 0], [], []>} : vector<4x8xbf16>, vector<4x8xbf16>, vector<4x4xf32> -> vector<4x4xf32>
      %cst_164 = arith.constant 0.353553385 : f32
      %541 = vector.broadcast %cst_164 : f32 to vector<4x4xf32>
      %542 = arith.mulf %540, %541 : vector<4x4xf32>
      %cst_165 = arith.constant dense<0xFF800000> : vector<4xf32>
      %543 = vector.multi_reduction <maximumf>, %542, %cst_165 [1] : vector<4x4xf32> to vector<4xf32>
      %544 = vector.shape_cast %543 : vector<4xf32> to vector<4x1xf32>
      %545 = vector.broadcast %544 : vector<4x1xf32> to vector<4x4xf32>
      %546 = arith.subf %542, %545 : vector<4x4xf32>
      %547 = math.exp %546 : vector<4x4xf32>
      %cst_166 = arith.constant dense<0.000000e+00> : vector<4xf32>
      %548 = vector.multi_reduction <add>, %547, %cst_166 [1] : vector<4x4xf32> to vector<4xf32>
      %549 = vector.shape_cast %548 : vector<4xf32> to vector<4x1xf32>
      %550 = tpu.reciprocal %549 {approx = true} : vector<4x1xf32> -> vector<4x1xf32>
      %551 = vector.broadcast %550 : vector<4x1xf32> to vector<4x4xf32>
      %552 = arith.mulf %547, %551 : vector<4x4xf32>
      %553 = vector.extract_strided_slice %514 {offsets = [0, 8], sizes = [4, 8], strides = [1, 1]} : vector<4x32xf32> to vector<4x8xf32>
      %554 = arith.truncf %552 : vector<4x4xf32> to vector<4x4xbf16>
      %555 = arith.truncf %553 : vector<4x8xf32> to vector<4x8xbf16>
      %cst_167 = arith.constant dense<0.000000e+00> : vector<4x8xf32>
      %556 = tpu.matmul %554, %555, %cst_167 {dimension_numbers = #tpu.dot_dimension_numbers<[1], [0], [0], [1], [0, 0, 1, 1], [], []>} : vector<4x4xbf16>, vector<4x8xbf16>, vector<4x8xf32> -> vector<4x8xf32>
      %557 = vector.extract_strided_slice %494 {offsets = [0, 16], sizes = [4, 8], strides = [1, 1]} : vector<4x32xf32> to vector<4x8xf32>
      %558 = arith.truncf %557 : vector<4x8xf32> to vector<4x8xbf16>
      %559 = vector.extract_strided_slice %504 {offsets = [0, 16], sizes = [4, 8], strides = [1, 1]} : vector<4x32xf32> to vector<4x8xf32>
      %560 = arith.truncf %559 : vector<4x8xf32> to vector<4x8xbf16>
      %cst_168 = arith.constant dense<0.000000e+00> : vector<4x4xf32>
      %561 = tpu.matmul %558, %560, %cst_168 {dimension_numbers = #tpu.dot_dimension_numbers<[1], [1], [0], [0], [0, 0, 1, 0], [], []>} : vector<4x8xbf16>, vector<4x8xbf16>, vector<4x4xf32> -> vector<4x4xf32>
      %cst_169 = arith.constant 0.353553385 : f32
      %562 = vector.broadcast %cst_169 : f32 to vector<4x4xf32>
      %563 = arith.mulf %561, %562 : vector<4x4xf32>
      %cst_170 = arith.constant dense<0xFF800000> : vector<4xf32>
      %564 = vector.multi_reduction <maximumf>, %563, %cst_170 [1] : vector<4x4xf32> to vector<4xf32>
      %565 = vector.shape_cast %564 : vector<4xf32> to vector<4x1xf32>
      %566 = vector.broadcast %565 : vector<4x1xf32> to vector<4x4xf32>
      %567 = arith.subf %563, %566 : vector<4x4xf32>
      %568 = math.exp %567 : vector<4x4xf32>
      %cst_171 = arith.constant dense<0.000000e+00> : vector<4xf32>
      %569 = vector.multi_reduction <add>, %568, %cst_171 [1] : vector<4x4xf32> to vector<4xf32>
      %570 = vector.shape_cast %569 : vector<4xf32> to vector<4x1xf32>
      %571 = tpu.reciprocal %570 {approx = true} : vector<4x1xf32> -> vector<4x1xf32>
      %572 = vector.broadcast %571 : vector<4x1xf32> to vector<4x4xf32>
      %573 = arith.mulf %568, %572 : vector<4x4xf32>
      %574 = vector.extract_strided_slice %514 {offsets = [0, 16], sizes = [4, 8], strides = [1, 1]} : vector<4x32xf32> to vector<4x8xf32>
      %575 = arith.truncf %573 : vector<4x4xf32> to vector<4x4xbf16>
      %576 = arith.truncf %574 : vector<4x8xf32> to vector<4x8xbf16>
      %cst_172 = arith.constant dense<0.000000e+00> : vector<4x8xf32>
      %577 = tpu.matmul %575, %576, %cst_172 {dimension_numbers = #tpu.dot_dimension_numbers<[1], [0], [0], [1], [0, 0, 1, 1], [], []>} : vector<4x4xbf16>, vector<4x8xbf16>, vector<4x8xf32> -> vector<4x8xf32>
      %578 = vector.extract_strided_slice %494 {offsets = [0, 24], sizes = [4, 8], strides = [1, 1]} : vector<4x32xf32> to vector<4x8xf32>
      %579 = arith.truncf %578 : vector<4x8xf32> to vector<4x8xbf16>
      %580 = vector.extract_strided_slice %504 {offsets = [0, 24], sizes = [4, 8], strides = [1, 1]} : vector<4x32xf32> to vector<4x8xf32>
      %581 = arith.truncf %580 : vector<4x8xf32> to vector<4x8xbf16>
      %cst_173 = arith.constant dense<0.000000e+00> : vector<4x4xf32>
      %582 = tpu.matmul %579, %581, %cst_173 {dimension_numbers = #tpu.dot_dimension_numbers<[1], [1], [0], [0], [0, 0, 1, 0], [], []>} : vector<4x8xbf16>, vector<4x8xbf16>, vector<4x4xf32> -> vector<4x4xf32>
      %cst_174 = arith.constant 0.353553385 : f32
      %583 = vector.broadcast %cst_174 : f32 to vector<4x4xf32>
      %584 = arith.mulf %582, %583 : vector<4x4xf32>
      %cst_175 = arith.constant dense<0xFF800000> : vector<4xf32>
      %585 = vector.multi_reduction <maximumf>, %584, %cst_175 [1] : vector<4x4xf32> to vector<4xf32>
      %586 = vector.shape_cast %585 : vector<4xf32> to vector<4x1xf32>
      %587 = vector.broadcast %586 : vector<4x1xf32> to vector<4x4xf32>
      %588 = arith.subf %584, %587 : vector<4x4xf32>
      %589 = math.exp %588 : vector<4x4xf32>
      %cst_176 = arith.constant dense<0.000000e+00> : vector<4xf32>
      %590 = vector.multi_reduction <add>, %589, %cst_176 [1] : vector<4x4xf32> to vector<4xf32>
      %591 = vector.shape_cast %590 : vector<4xf32> to vector<4x1xf32>
      %592 = tpu.reciprocal %591 {approx = true} : vector<4x1xf32> -> vector<4x1xf32>
      %593 = vector.broadcast %592 : vector<4x1xf32> to vector<4x4xf32>
      %594 = arith.mulf %589, %593 : vector<4x4xf32>
      %595 = vector.extract_strided_slice %514 {offsets = [0, 24], sizes = [4, 8], strides = [1, 1]} : vector<4x32xf32> to vector<4x8xf32>
      %596 = arith.truncf %594 : vector<4x4xf32> to vector<4x4xbf16>
      %597 = arith.truncf %595 : vector<4x8xf32> to vector<4x8xbf16>
      %cst_177 = arith.constant dense<0.000000e+00> : vector<4x8xf32>
      %598 = tpu.matmul %596, %597, %cst_177 {dimension_numbers = #tpu.dot_dimension_numbers<[1], [0], [0], [1], [0, 0, 1, 1], [], []>} : vector<4x4xbf16>, vector<4x8xbf16>, vector<4x8xf32> -> vector<4x8xf32>
      %599 = tpu.concatenate %535, %556, %577, %598 in 1 : vector<4x8xf32>, vector<4x8xf32>, vector<4x8xf32>, vector<4x8xf32> -> vector<4x32xf32>
      %600 = vector.extract_strided_slice %482 {offsets = [3, 0, 0], sizes = [1, 32, 32], strides = [1, 1, 1]} : vector<4x32x32xf32> to vector<1x32x32xf32>
      %601 = vector.shape_cast %600 : vector<1x32x32xf32> to vector<32x32xf32>
      %602 = arith.truncf %599 : vector<4x32xf32> to vector<4x32xbf16>
      %603 = arith.truncf %601 : vector<32x32xf32> to vector<32x32xbf16>
      %cst_178 = arith.constant dense<0.000000e+00> : vector<4x32xf32>
      %604 = tpu.matmul %602, %603, %cst_178 {dimension_numbers = #tpu.dot_dimension_numbers<[1], [0], [0], [1], [0, 0, 1, 1], [], []>} : vector<4x32xbf16>, vector<32x32xbf16>, vector<4x32xf32> -> vector<4x32xf32>
      %605 = vector.extract_strided_slice %484 {offsets = [3, 0], sizes = [1, 32], strides = [1, 1]} : vector<4x32xf32> to vector<1x32xf32>
      %606 = vector.shape_cast %605 : vector<1x32xf32> to vector<32xf32>
      %607 = vector.shape_cast %606 : vector<32xf32> to vector<1x32xf32>
      %608 = vector.broadcast %607 : vector<1x32xf32> to vector<4x32xf32>
      %609 = arith.addf %604, %608 : vector<4x32xf32>
      %c0_179 = arith.constant 0 : index
      %c0_180 = arith.constant 0 : index
      %c0_181 = arith.constant 0 : index
      %610 = vector.load %arg7[%c0_179, %c0_180, %c0_181] : memref<2x2x32xf32, #tpu.memory_space<vmem>>, vector<1x2x32xf32>
      %611 = vector.shape_cast %610 : vector<1x2x32xf32> to vector<2x32xf32>
      %612 = arith.addf %29, %609 : vector<4x32xf32>
      %613 = vector.extract_strided_slice %611 {offsets = [0, 0], sizes = [1, 32], strides = [1, 1]} : vector<2x32xf32> to vector<1x32xf32>
      %614 = vector.shape_cast %613 : vector<1x32xf32> to vector<32xf32>
      %615 = vector.extract_strided_slice %611 {offsets = [1, 0], sizes = [1, 32], strides = [1, 1]} : vector<2x32xf32> to vector<1x32xf32>
      %616 = vector.shape_cast %615 : vector<1x32xf32> to vector<32xf32>
      %cst_182 = arith.constant dense<0.000000e+00> : vector<4xf32>
      %617 = vector.multi_reduction <add>, %612, %cst_182 [1] : vector<4x32xf32> to vector<4xf32>
      %618 = vector.shape_cast %617 : vector<4xf32> to vector<4x1xf32>
      %cst_183 = arith.constant 3.200000e+01 : f32
      %619 = vector.broadcast %cst_183 : f32 to vector<4x1xf32>
      %620 = arith.divf %618, %619 : vector<4x1xf32>
      %621 = vector.broadcast %620 : vector<4x1xf32> to vector<4x32xf32>
      %622 = arith.subf %612, %621 : vector<4x32xf32>
      %623 = arith.mulf %622, %622 : vector<4x32xf32>
      %cst_184 = arith.constant dense<0.000000e+00> : vector<4xf32>
      %624 = vector.multi_reduction <add>, %623, %cst_184 [1] : vector<4x32xf32> to vector<4xf32>
      %625 = vector.shape_cast %624 : vector<4xf32> to vector<4x1xf32>
      %cst_185 = arith.constant 3.200000e+01 : f32
      %626 = vector.broadcast %cst_185 : f32 to vector<4x1xf32>
      %627 = arith.divf %625, %626 : vector<4x1xf32>
      %628 = vector.broadcast %620 : vector<4x1xf32> to vector<4x32xf32>
      %629 = arith.subf %612, %628 : vector<4x32xf32>
      %cst_186 = arith.constant 9.99999974E-6 : f32
      %630 = vector.broadcast %cst_186 : f32 to vector<4x1xf32>
      %631 = arith.addf %627, %630 : vector<4x1xf32>
      %632 = math.rsqrt %631 : vector<4x1xf32>
      %633 = vector.broadcast %632 : vector<4x1xf32> to vector<4x32xf32>
      %634 = arith.mulf %629, %633 : vector<4x32xf32>
      %635 = vector.shape_cast %614 : vector<32xf32> to vector<1x32xf32>
      %636 = vector.broadcast %635 : vector<1x32xf32> to vector<4x32xf32>
      %637 = arith.mulf %634, %636 : vector<4x32xf32>
      %638 = vector.shape_cast %616 : vector<32xf32> to vector<1x32xf32>
      %639 = vector.broadcast %638 : vector<1x32xf32> to vector<4x32xf32>
      %640 = arith.addf %637, %639 : vector<4x32xf32>
      %c0_187 = arith.constant 0 : index
      %c0_188 = arith.constant 0 : index
      %c0_189 = arith.constant 0 : index
      %c0_190 = arith.constant 0 : index
      %641 = vector.load %arg6[%c0_187, %c0_188, %c0_189, %c0_190] : memref<2x4x32x32xf32, #tpu.memory_space<vmem>>, vector<1x4x32x32xf32>
      %642 = vector.shape_cast %641 : vector<1x4x32x32xf32> to vector<4x32x32xf32>
      %c0_191 = arith.constant 0 : index
      %c0_192 = arith.constant 0 : index
      %c0_193 = arith.constant 0 : index
      %643 = vector.load %arg5[%c0_191, %c0_192, %c0_193] : memref<2x4x32xf32, #tpu.memory_space<vmem>>, vector<1x4x32xf32>
      %644 = vector.shape_cast %643 : vector<1x4x32xf32> to vector<4x32xf32>
      %645 = vector.extract_strided_slice %642 {offsets = [0, 0, 0], sizes = [1, 32, 32], strides = [1, 1, 1]} : vector<4x32x32xf32> to vector<1x32x32xf32>
      %646 = vector.shape_cast %645 : vector<1x32x32xf32> to vector<32x32xf32>
      %647 = arith.truncf %640 : vector<4x32xf32> to vector<4x32xbf16>
      %648 = arith.truncf %646 : vector<32x32xf32> to vector<32x32xbf16>
      %cst_194 = arith.constant dense<0.000000e+00> : vector<4x32xf32>
      %649 = tpu.matmul %647, %648, %cst_194 {dimension_numbers = #tpu.dot_dimension_numbers<[1], [0], [0], [1], [0, 0, 1, 1], [], []>} : vector<4x32xbf16>, vector<32x32xbf16>, vector<4x32xf32> -> vector<4x32xf32>
      %650 = vector.extract_strided_slice %644 {offsets = [0, 0], sizes = [1, 32], strides = [1, 1]} : vector<4x32xf32> to vector<1x32xf32>
      %651 = vector.shape_cast %650 : vector<1x32xf32> to vector<32xf32>
      %652 = vector.shape_cast %651 : vector<32xf32> to vector<1x32xf32>
      %653 = vector.broadcast %652 : vector<1x32xf32> to vector<4x32xf32>
      %654 = arith.addf %649, %653 : vector<4x32xf32>
      %655 = vector.extract_strided_slice %642 {offsets = [1, 0, 0], sizes = [1, 32, 32], strides = [1, 1, 1]} : vector<4x32x32xf32> to vector<1x32x32xf32>
      %656 = vector.shape_cast %655 : vector<1x32x32xf32> to vector<32x32xf32>
      %657 = arith.truncf %480 : vector<4x32xf32> to vector<4x32xbf16>
      %658 = arith.truncf %656 : vector<32x32xf32> to vector<32x32xbf16>
      %cst_195 = arith.constant dense<0.000000e+00> : vector<4x32xf32>
      %659 = tpu.matmul %657, %658, %cst_195 {dimension_numbers = #tpu.dot_dimension_numbers<[1], [0], [0], [1], [0, 0, 1, 1], [], []>} : vector<4x32xbf16>, vector<32x32xbf16>, vector<4x32xf32> -> vector<4x32xf32>
      %660 = vector.extract_strided_slice %644 {offsets = [1, 0], sizes = [1, 32], strides = [1, 1]} : vector<4x32xf32> to vector<1x32xf32>
      %661 = vector.shape_cast %660 : vector<1x32xf32> to vector<32xf32>
      %662 = vector.shape_cast %661 : vector<32xf32> to vector<1x32xf32>
      %663 = vector.broadcast %662 : vector<1x32xf32> to vector<4x32xf32>
      %664 = arith.addf %659, %663 : vector<4x32xf32>
      %665 = vector.extract_strided_slice %642 {offsets = [2, 0, 0], sizes = [1, 32, 32], strides = [1, 1, 1]} : vector<4x32x32xf32> to vector<1x32x32xf32>
      %666 = vector.shape_cast %665 : vector<1x32x32xf32> to vector<32x32xf32>
      %667 = arith.truncf %480 : vector<4x32xf32> to vector<4x32xbf16>
      %668 = arith.truncf %666 : vector<32x32xf32> to vector<32x32xbf16>
      %cst_196 = arith.constant dense<0.000000e+00> : vector<4x32xf32>
      %669 = tpu.matmul %667, %668, %cst_196 {dimension_numbers = #tpu.dot_dimension_numbers<[1], [0], [0], [1], [0, 0, 1, 1], [], []>} : vector<4x32xbf16>, vector<32x32xbf16>, vector<4x32xf32> -> vector<4x32xf32>
      %670 = vector.extract_strided_slice %644 {offsets = [2, 0], sizes = [1, 32], strides = [1, 1]} : vector<4x32xf32> to vector<1x32xf32>
      %671 = vector.shape_cast %670 : vector<1x32xf32> to vector<32xf32>
      %672 = vector.shape_cast %671 : vector<32xf32> to vector<1x32xf32>
      %673 = vector.broadcast %672 : vector<1x32xf32> to vector<4x32xf32>
      %674 = arith.addf %669, %673 : vector<4x32xf32>
      %675 = vector.extract_strided_slice %654 {offsets = [0, 0], sizes = [4, 8], strides = [1, 1]} : vector<4x32xf32> to vector<4x8xf32>
      %676 = arith.truncf %675 : vector<4x8xf32> to vector<4x8xbf16>
      %677 = vector.extract_strided_slice %664 {offsets = [0, 0], sizes = [4, 8], strides = [1, 1]} : vector<4x32xf32> to vector<4x8xf32>
      %678 = arith.truncf %677 : vector<4x8xf32> to vector<4x8xbf16>
      %cst_197 = arith.constant dense<0.000000e+00> : vector<4x4xf32>
      %679 = tpu.matmul %676, %678, %cst_197 {dimension_numbers = #tpu.dot_dimension_numbers<[1], [1], [0], [0], [0, 0, 1, 0], [], []>} : vector<4x8xbf16>, vector<4x8xbf16>, vector<4x4xf32> -> vector<4x4xf32>
      %cst_198 = arith.constant 0.353553385 : f32
      %680 = vector.broadcast %cst_198 : f32 to vector<4x4xf32>
      %681 = arith.mulf %679, %680 : vector<4x4xf32>
      %cst_199 = arith.constant dense<0xFF800000> : vector<4xf32>
      %682 = vector.multi_reduction <maximumf>, %681, %cst_199 [1] : vector<4x4xf32> to vector<4xf32>
      %683 = vector.shape_cast %682 : vector<4xf32> to vector<4x1xf32>
      %684 = vector.broadcast %683 : vector<4x1xf32> to vector<4x4xf32>
      %685 = arith.subf %681, %684 : vector<4x4xf32>
      %686 = math.exp %685 : vector<4x4xf32>
      %cst_200 = arith.constant dense<0.000000e+00> : vector<4xf32>
      %687 = vector.multi_reduction <add>, %686, %cst_200 [1] : vector<4x4xf32> to vector<4xf32>
      %688 = vector.shape_cast %687 : vector<4xf32> to vector<4x1xf32>
      %689 = tpu.reciprocal %688 {approx = true} : vector<4x1xf32> -> vector<4x1xf32>
      %690 = vector.broadcast %689 : vector<4x1xf32> to vector<4x4xf32>
      %691 = arith.mulf %686, %690 : vector<4x4xf32>
      %692 = vector.extract_strided_slice %674 {offsets = [0, 0], sizes = [4, 8], strides = [1, 1]} : vector<4x32xf32> to vector<4x8xf32>
      %693 = arith.truncf %691 : vector<4x4xf32> to vector<4x4xbf16>
      %694 = arith.truncf %692 : vector<4x8xf32> to vector<4x8xbf16>
      %cst_201 = arith.constant dense<0.000000e+00> : vector<4x8xf32>
      %695 = tpu.matmul %693, %694, %cst_201 {dimension_numbers = #tpu.dot_dimension_numbers<[1], [0], [0], [1], [0, 0, 1, 1], [], []>} : vector<4x4xbf16>, vector<4x8xbf16>, vector<4x8xf32> -> vector<4x8xf32>
      %696 = vector.extract_strided_slice %654 {offsets = [0, 8], sizes = [4, 8], strides = [1, 1]} : vector<4x32xf32> to vector<4x8xf32>
      %697 = arith.truncf %696 : vector<4x8xf32> to vector<4x8xbf16>
      %698 = vector.extract_strided_slice %664 {offsets = [0, 8], sizes = [4, 8], strides = [1, 1]} : vector<4x32xf32> to vector<4x8xf32>
      %699 = arith.truncf %698 : vector<4x8xf32> to vector<4x8xbf16>
      %cst_202 = arith.constant dense<0.000000e+00> : vector<4x4xf32>
      %700 = tpu.matmul %697, %699, %cst_202 {dimension_numbers = #tpu.dot_dimension_numbers<[1], [1], [0], [0], [0, 0, 1, 0], [], []>} : vector<4x8xbf16>, vector<4x8xbf16>, vector<4x4xf32> -> vector<4x4xf32>
      %cst_203 = arith.constant 0.353553385 : f32
      %701 = vector.broadcast %cst_203 : f32 to vector<4x4xf32>
      %702 = arith.mulf %700, %701 : vector<4x4xf32>
      %cst_204 = arith.constant dense<0xFF800000> : vector<4xf32>
      %703 = vector.multi_reduction <maximumf>, %702, %cst_204 [1] : vector<4x4xf32> to vector<4xf32>
      %704 = vector.shape_cast %703 : vector<4xf32> to vector<4x1xf32>
      %705 = vector.broadcast %704 : vector<4x1xf32> to vector<4x4xf32>
      %706 = arith.subf %702, %705 : vector<4x4xf32>
      %707 = math.exp %706 : vector<4x4xf32>
      %cst_205 = arith.constant dense<0.000000e+00> : vector<4xf32>
      %708 = vector.multi_reduction <add>, %707, %cst_205 [1] : vector<4x4xf32> to vector<4xf32>
      %709 = vector.shape_cast %708 : vector<4xf32> to vector<4x1xf32>
      %710 = tpu.reciprocal %709 {approx = true} : vector<4x1xf32> -> vector<4x1xf32>
      %711 = vector.broadcast %710 : vector<4x1xf32> to vector<4x4xf32>
      %712 = arith.mulf %707, %711 : vector<4x4xf32>
      %713 = vector.extract_strided_slice %674 {offsets = [0, 8], sizes = [4, 8], strides = [1, 1]} : vector<4x32xf32> to vector<4x8xf32>
      %714 = arith.truncf %712 : vector<4x4xf32> to vector<4x4xbf16>
      %715 = arith.truncf %713 : vector<4x8xf32> to vector<4x8xbf16>
      %cst_206 = arith.constant dense<0.000000e+00> : vector<4x8xf32>
      %716 = tpu.matmul %714, %715, %cst_206 {dimension_numbers = #tpu.dot_dimension_numbers<[1], [0], [0], [1], [0, 0, 1, 1], [], []>} : vector<4x4xbf16>, vector<4x8xbf16>, vector<4x8xf32> -> vector<4x8xf32>
      %717 = vector.extract_strided_slice %654 {offsets = [0, 16], sizes = [4, 8], strides = [1, 1]} : vector<4x32xf32> to vector<4x8xf32>
      %718 = arith.truncf %717 : vector<4x8xf32> to vector<4x8xbf16>
      %719 = vector.extract_strided_slice %664 {offsets = [0, 16], sizes = [4, 8], strides = [1, 1]} : vector<4x32xf32> to vector<4x8xf32>
      %720 = arith.truncf %719 : vector<4x8xf32> to vector<4x8xbf16>
      %cst_207 = arith.constant dense<0.000000e+00> : vector<4x4xf32>
      %721 = tpu.matmul %718, %720, %cst_207 {dimension_numbers = #tpu.dot_dimension_numbers<[1], [1], [0], [0], [0, 0, 1, 0], [], []>} : vector<4x8xbf16>, vector<4x8xbf16>, vector<4x4xf32> -> vector<4x4xf32>
      %cst_208 = arith.constant 0.353553385 : f32
      %722 = vector.broadcast %cst_208 : f32 to vector<4x4xf32>
      %723 = arith.mulf %721, %722 : vector<4x4xf32>
      %cst_209 = arith.constant dense<0xFF800000> : vector<4xf32>
      %724 = vector.multi_reduction <maximumf>, %723, %cst_209 [1] : vector<4x4xf32> to vector<4xf32>
      %725 = vector.shape_cast %724 : vector<4xf32> to vector<4x1xf32>
      %726 = vector.broadcast %725 : vector<4x1xf32> to vector<4x4xf32>
      %727 = arith.subf %723, %726 : vector<4x4xf32>
      %728 = math.exp %727 : vector<4x4xf32>
      %cst_210 = arith.constant dense<0.000000e+00> : vector<4xf32>
      %729 = vector.multi_reduction <add>, %728, %cst_210 [1] : vector<4x4xf32> to vector<4xf32>
      %730 = vector.shape_cast %729 : vector<4xf32> to vector<4x1xf32>
      %731 = tpu.reciprocal %730 {approx = true} : vector<4x1xf32> -> vector<4x1xf32>
      %732 = vector.broadcast %731 : vector<4x1xf32> to vector<4x4xf32>
      %733 = arith.mulf %728, %732 : vector<4x4xf32>
      %734 = vector.extract_strided_slice %674 {offsets = [0, 16], sizes = [4, 8], strides = [1, 1]} : vector<4x32xf32> to vector<4x8xf32>
      %735 = arith.truncf %733 : vector<4x4xf32> to vector<4x4xbf16>
      %736 = arith.truncf %734 : vector<4x8xf32> to vector<4x8xbf16>
      %cst_211 = arith.constant dense<0.000000e+00> : vector<4x8xf32>
      %737 = tpu.matmul %735, %736, %cst_211 {dimension_numbers = #tpu.dot_dimension_numbers<[1], [0], [0], [1], [0, 0, 1, 1], [], []>} : vector<4x4xbf16>, vector<4x8xbf16>, vector<4x8xf32> -> vector<4x8xf32>
      %738 = vector.extract_strided_slice %654 {offsets = [0, 24], sizes = [4, 8], strides = [1, 1]} : vector<4x32xf32> to vector<4x8xf32>
      %739 = arith.truncf %738 : vector<4x8xf32> to vector<4x8xbf16>
      %740 = vector.extract_strided_slice %664 {offsets = [0, 24], sizes = [4, 8], strides = [1, 1]} : vector<4x32xf32> to vector<4x8xf32>
      %741 = arith.truncf %740 : vector<4x8xf32> to vector<4x8xbf16>
      %cst_212 = arith.constant dense<0.000000e+00> : vector<4x4xf32>
      %742 = tpu.matmul %739, %741, %cst_212 {dimension_numbers = #tpu.dot_dimension_numbers<[1], [1], [0], [0], [0, 0, 1, 0], [], []>} : vector<4x8xbf16>, vector<4x8xbf16>, vector<4x4xf32> -> vector<4x4xf32>
      %cst_213 = arith.constant 0.353553385 : f32
      %743 = vector.broadcast %cst_213 : f32 to vector<4x4xf32>
      %744 = arith.mulf %742, %743 : vector<4x4xf32>
      %cst_214 = arith.constant dense<0xFF800000> : vector<4xf32>
      %745 = vector.multi_reduction <maximumf>, %744, %cst_214 [1] : vector<4x4xf32> to vector<4xf32>
      %746 = vector.shape_cast %745 : vector<4xf32> to vector<4x1xf32>
      %747 = vector.broadcast %746 : vector<4x1xf32> to vector<4x4xf32>
      %748 = arith.subf %744, %747 : vector<4x4xf32>
      %749 = math.exp %748 : vector<4x4xf32>
      %cst_215 = arith.constant dense<0.000000e+00> : vector<4xf32>
      %750 = vector.multi_reduction <add>, %749, %cst_215 [1] : vector<4x4xf32> to vector<4xf32>
      %751 = vector.shape_cast %750 : vector<4xf32> to vector<4x1xf32>
      %752 = tpu.reciprocal %751 {approx = true} : vector<4x1xf32> -> vector<4x1xf32>
      %753 = vector.broadcast %752 : vector<4x1xf32> to vector<4x4xf32>
      %754 = arith.mulf %749, %753 : vector<4x4xf32>
      %755 = vector.extract_strided_slice %674 {offsets = [0, 24], sizes = [4, 8], strides = [1, 1]} : vector<4x32xf32> to vector<4x8xf32>
      %756 = arith.truncf %754 : vector<4x4xf32> to vector<4x4xbf16>
      %757 = arith.truncf %755 : vector<4x8xf32> to vector<4x8xbf16>
      %cst_216 = arith.constant dense<0.000000e+00> : vector<4x8xf32>
      %758 = tpu.matmul %756, %757, %cst_216 {dimension_numbers = #tpu.dot_dimension_numbers<[1], [0], [0], [1], [0, 0, 1, 1], [], []>} : vector<4x4xbf16>, vector<4x8xbf16>, vector<4x8xf32> -> vector<4x8xf32>
      %759 = tpu.concatenate %695, %716, %737, %758 in 1 : vector<4x8xf32>, vector<4x8xf32>, vector<4x8xf32>, vector<4x8xf32> -> vector<4x32xf32>
      %760 = vector.extract_strided_slice %642 {offsets = [3, 0, 0], sizes = [1, 32, 32], strides = [1, 1, 1]} : vector<4x32x32xf32> to vector<1x32x32xf32>
      %761 = vector.shape_cast %760 : vector<1x32x32xf32> to vector<32x32xf32>
      %762 = arith.truncf %759 : vector<4x32xf32> to vector<4x32xbf16>
      %763 = arith.truncf %761 : vector<32x32xf32> to vector<32x32xbf16>
      %cst_217 = arith.constant dense<0.000000e+00> : vector<4x32xf32>
      %764 = tpu.matmul %762, %763, %cst_217 {dimension_numbers = #tpu.dot_dimension_numbers<[1], [0], [0], [1], [0, 0, 1, 1], [], []>} : vector<4x32xbf16>, vector<32x32xbf16>, vector<4x32xf32> -> vector<4x32xf32>
      %765 = vector.extract_strided_slice %644 {offsets = [3, 0], sizes = [1, 32], strides = [1, 1]} : vector<4x32xf32> to vector<1x32xf32>
      %766 = vector.shape_cast %765 : vector<1x32xf32> to vector<32xf32>
      %767 = vector.shape_cast %766 : vector<32xf32> to vector<1x32xf32>
      %768 = vector.broadcast %767 : vector<1x32xf32> to vector<4x32xf32>
      %769 = arith.addf %764, %768 : vector<4x32xf32>
      %c0_218 = arith.constant 0 : index
      %c0_219 = arith.constant 0 : index
      %c0_220 = arith.constant 0 : index
      %770 = vector.load %arg8[%c0_218, %c0_219, %c0_220] : memref<2x2x32xf32, #tpu.memory_space<vmem>>, vector<1x2x32xf32>
      %771 = vector.shape_cast %770 : vector<1x2x32xf32> to vector<2x32xf32>
      %772 = arith.addf %640, %769 : vector<4x32xf32>
      %773 = vector.extract_strided_slice %771 {offsets = [0, 0], sizes = [1, 32], strides = [1, 1]} : vector<2x32xf32> to vector<1x32xf32>
      %774 = vector.shape_cast %773 : vector<1x32xf32> to vector<32xf32>
      %775 = vector.extract_strided_slice %771 {offsets = [1, 0], sizes = [1, 32], strides = [1, 1]} : vector<2x32xf32> to vector<1x32xf32>
      %776 = vector.shape_cast %775 : vector<1x32xf32> to vector<32xf32>
      %cst_221 = arith.constant dense<0.000000e+00> : vector<4xf32>
      %777 = vector.multi_reduction <add>, %772, %cst_221 [1] : vector<4x32xf32> to vector<4xf32>
      %778 = vector.shape_cast %777 : vector<4xf32> to vector<4x1xf32>
      %cst_222 = arith.constant 3.200000e+01 : f32
      %779 = vector.broadcast %cst_222 : f32 to vector<4x1xf32>
      %780 = arith.divf %778, %779 : vector<4x1xf32>
      %781 = vector.broadcast %780 : vector<4x1xf32> to vector<4x32xf32>
      %782 = arith.subf %772, %781 : vector<4x32xf32>
      %783 = arith.mulf %782, %782 : vector<4x32xf32>
      %cst_223 = arith.constant dense<0.000000e+00> : vector<4xf32>
      %784 = vector.multi_reduction <add>, %783, %cst_223 [1] : vector<4x32xf32> to vector<4xf32>
      %785 = vector.shape_cast %784 : vector<4xf32> to vector<4x1xf32>
      %cst_224 = arith.constant 3.200000e+01 : f32
      %786 = vector.broadcast %cst_224 : f32 to vector<4x1xf32>
      %787 = arith.divf %785, %786 : vector<4x1xf32>
      %788 = vector.broadcast %780 : vector<4x1xf32> to vector<4x32xf32>
      %789 = arith.subf %772, %788 : vector<4x32xf32>
      %cst_225 = arith.constant 9.99999974E-6 : f32
      %790 = vector.broadcast %cst_225 : f32 to vector<4x1xf32>
      %791 = arith.addf %787, %790 : vector<4x1xf32>
      %792 = math.rsqrt %791 : vector<4x1xf32>
      %793 = vector.broadcast %792 : vector<4x1xf32> to vector<4x32xf32>
      %794 = arith.mulf %789, %793 : vector<4x32xf32>
      %795 = vector.shape_cast %774 : vector<32xf32> to vector<1x32xf32>
      %796 = vector.broadcast %795 : vector<1x32xf32> to vector<4x32xf32>
      %797 = arith.mulf %794, %796 : vector<4x32xf32>
      %798 = vector.shape_cast %776 : vector<32xf32> to vector<1x32xf32>
      %799 = vector.broadcast %798 : vector<1x32xf32> to vector<4x32xf32>
      %800 = arith.addf %797, %799 : vector<4x32xf32>
      %c0_226 = arith.constant 0 : index
      %c0_227 = arith.constant 0 : index
      %c0_228 = arith.constant 0 : index
      %801 = vector.load %arg9[%c0_226, %c0_227, %c0_228] : memref<2x2x32xf32, #tpu.memory_space<vmem>>, vector<1x2x32xf32>
      %802 = vector.shape_cast %801 : vector<1x2x32xf32> to vector<2x32xf32>
      %c0_229 = arith.constant 0 : index
      %c0_230 = arith.constant 0 : index
      %c0_231 = arith.constant 0 : index
      %803 = vector.load %arg12[%c0_229, %c0_230, %c0_231] : memref<2x32x64xf32, #tpu.memory_space<vmem>>, vector<1x32x64xf32>
      %804 = vector.shape_cast %803 : vector<1x32x64xf32> to vector<32x64xf32>
      %805 = arith.truncf %800 : vector<4x32xf32> to vector<4x32xbf16>
      %806 = arith.truncf %804 : vector<32x64xf32> to vector<32x64xbf16>
      %cst_232 = arith.constant dense<0.000000e+00> : vector<4x64xf32>
      %807 = tpu.matmul %805, %806, %cst_232 {dimension_numbers = #tpu.dot_dimension_numbers<[1], [0], [0], [1], [0, 0, 1, 1], [], []>} : vector<4x32xbf16>, vector<32x64xbf16>, vector<4x64xf32> -> vector<4x64xf32>
      %c0_233 = arith.constant 0 : index
      %c0_234 = arith.constant 0 : index
      %c0_235 = arith.constant 0 : index
      %808 = vector.load %arg3[%c0_233, %c0_234, %c0_235] : memref<2x1x64xf32, #tpu.memory_space<vmem>>, vector<1x1x64xf32>
      %809 = vector.shape_cast %808 : vector<1x1x64xf32> to vector<1x64xf32>
      %810 = vector.broadcast %809 : vector<1x64xf32> to vector<4x64xf32>
      %811 = arith.addf %807, %810 : vector<4x64xf32>
      %cst_236 = arith.constant 0.000000e+00 : f32
      %812 = vector.broadcast %cst_236 : f32 to vector<4x64xf32>
      %813 = arith.maximumf %811, %812 : vector<4x64xf32>
      %c0_237 = arith.constant 0 : index
      %c0_238 = arith.constant 0 : index
      %c0_239 = arith.constant 0 : index
      %814 = vector.load %arg13[%c0_237, %c0_238, %c0_239] : memref<2x64x32xf32, #tpu.memory_space<vmem>>, vector<1x64x32xf32>
      %815 = vector.shape_cast %814 : vector<1x64x32xf32> to vector<64x32xf32>
      %816 = arith.truncf %813 : vector<4x64xf32> to vector<4x64xbf16>
      %817 = arith.truncf %815 : vector<64x32xf32> to vector<64x32xbf16>
      %cst_240 = arith.constant dense<0.000000e+00> : vector<4x32xf32>
      %818 = tpu.matmul %816, %817, %cst_240 {dimension_numbers = #tpu.dot_dimension_numbers<[1], [0], [0], [1], [0, 0, 1, 1], [], []>} : vector<4x64xbf16>, vector<64x32xbf16>, vector<4x32xf32> -> vector<4x32xf32>
      %c0_241 = arith.constant 0 : index
      %c0_242 = arith.constant 0 : index
      %c0_243 = arith.constant 0 : index
      %819 = vector.load %arg4[%c0_241, %c0_242, %c0_243] : memref<2x1x32xf32, #tpu.memory_space<vmem>>, vector<1x1x32xf32>
      %820 = vector.shape_cast %819 : vector<1x1x32xf32> to vector<1x32xf32>
      %821 = vector.broadcast %820 : vector<1x32xf32> to vector<4x32xf32>
      %822 = arith.addf %818, %821 : vector<4x32xf32>
      %823 = arith.addf %800, %822 : vector<4x32xf32>
      %824 = vector.extract_strided_slice %802 {offsets = [0, 0], sizes = [1, 32], strides = [1, 1]} : vector<2x32xf32> to vector<1x32xf32>
      %825 = vector.shape_cast %824 : vector<1x32xf32> to vector<32xf32>
      %826 = vector.extract_strided_slice %802 {offsets = [1, 0], sizes = [1, 32], strides = [1, 1]} : vector<2x32xf32> to vector<1x32xf32>
      %827 = vector.shape_cast %826 : vector<1x32xf32> to vector<32xf32>
      %cst_244 = arith.constant dense<0.000000e+00> : vector<4xf32>
      %828 = vector.multi_reduction <add>, %823, %cst_244 [1] : vector<4x32xf32> to vector<4xf32>
      %829 = vector.shape_cast %828 : vector<4xf32> to vector<4x1xf32>
      %cst_245 = arith.constant 3.200000e+01 : f32
      %830 = vector.broadcast %cst_245 : f32 to vector<4x1xf32>
      %831 = arith.divf %829, %830 : vector<4x1xf32>
      %832 = vector.broadcast %831 : vector<4x1xf32> to vector<4x32xf32>
      %833 = arith.subf %823, %832 : vector<4x32xf32>
      %834 = arith.mulf %833, %833 : vector<4x32xf32>
      %cst_246 = arith.constant dense<0.000000e+00> : vector<4xf32>
      %835 = vector.multi_reduction <add>, %834, %cst_246 [1] : vector<4x32xf32> to vector<4xf32>
      %836 = vector.shape_cast %835 : vector<4xf32> to vector<4x1xf32>
      %cst_247 = arith.constant 3.200000e+01 : f32
      %837 = vector.broadcast %cst_247 : f32 to vector<4x1xf32>
      %838 = arith.divf %836, %837 : vector<4x1xf32>
      %839 = vector.broadcast %831 : vector<4x1xf32> to vector<4x32xf32>
      %840 = arith.subf %823, %839 : vector<4x32xf32>
      %cst_248 = arith.constant 9.99999974E-6 : f32
      %841 = vector.broadcast %cst_248 : f32 to vector<4x1xf32>
      %842 = arith.addf %838, %841 : vector<4x1xf32>
      %843 = math.rsqrt %842 : vector<4x1xf32>
      %844 = vector.broadcast %843 : vector<4x1xf32> to vector<4x32xf32>
      %845 = arith.mulf %840, %844 : vector<4x32xf32>
      %846 = vector.shape_cast %825 : vector<32xf32> to vector<1x32xf32>
      %847 = vector.broadcast %846 : vector<1x32xf32> to vector<4x32xf32>
      %848 = arith.mulf %845, %847 : vector<4x32xf32>
      %849 = vector.shape_cast %827 : vector<32xf32> to vector<1x32xf32>
      %850 = vector.broadcast %849 : vector<1x32xf32> to vector<4x32xf32>
      %851 = arith.addf %848, %850 : vector<4x32xf32>
      %c1_249 = arith.constant 1 : index
      %c0_250 = arith.constant 0 : index
      %c0_251 = arith.constant 0 : index
      %c0_252 = arith.constant 0 : index
      %852 = vector.load %arg11[%c1_249, %c0_250, %c0_251, %c0_252] : memref<2x4x32x32xf32, #tpu.memory_space<vmem>>, vector<1x4x32x32xf32>
      %853 = vector.shape_cast %852 : vector<1x4x32x32xf32> to vector<4x32x32xf32>
      %c1_253 = arith.constant 1 : index
      %c0_254 = arith.constant 0 : index
      %c0_255 = arith.constant 0 : index
      %854 = vector.load %arg10[%c1_253, %c0_254, %c0_255] : memref<2x4x32xf32, #tpu.memory_space<vmem>>, vector<1x4x32xf32>
      %855 = vector.shape_cast %854 : vector<1x4x32xf32> to vector<4x32xf32>
      %856 = vector.extract_strided_slice %853 {offsets = [0, 0, 0], sizes = [1, 32, 32], strides = [1, 1, 1]} : vector<4x32x32xf32> to vector<1x32x32xf32>
      %857 = vector.shape_cast %856 : vector<1x32x32xf32> to vector<32x32xf32>
      %858 = arith.truncf %851 : vector<4x32xf32> to vector<4x32xbf16>
      %859 = arith.truncf %857 : vector<32x32xf32> to vector<32x32xbf16>
      %cst_256 = arith.constant dense<0.000000e+00> : vector<4x32xf32>
      %860 = tpu.matmul %858, %859, %cst_256 {dimension_numbers = #tpu.dot_dimension_numbers<[1], [0], [0], [1], [0, 0, 1, 1], [], []>} : vector<4x32xbf16>, vector<32x32xbf16>, vector<4x32xf32> -> vector<4x32xf32>
      %861 = vector.extract_strided_slice %855 {offsets = [0, 0], sizes = [1, 32], strides = [1, 1]} : vector<4x32xf32> to vector<1x32xf32>
      %862 = vector.shape_cast %861 : vector<1x32xf32> to vector<32xf32>
      %863 = vector.shape_cast %862 : vector<32xf32> to vector<1x32xf32>
      %864 = vector.broadcast %863 : vector<1x32xf32> to vector<4x32xf32>
      %865 = arith.addf %860, %864 : vector<4x32xf32>
      %866 = vector.extract_strided_slice %853 {offsets = [1, 0, 0], sizes = [1, 32, 32], strides = [1, 1, 1]} : vector<4x32x32xf32> to vector<1x32x32xf32>
      %867 = vector.shape_cast %866 : vector<1x32x32xf32> to vector<32x32xf32>
      %868 = arith.truncf %851 : vector<4x32xf32> to vector<4x32xbf16>
      %869 = arith.truncf %867 : vector<32x32xf32> to vector<32x32xbf16>
      %cst_257 = arith.constant dense<0.000000e+00> : vector<4x32xf32>
      %870 = tpu.matmul %868, %869, %cst_257 {dimension_numbers = #tpu.dot_dimension_numbers<[1], [0], [0], [1], [0, 0, 1, 1], [], []>} : vector<4x32xbf16>, vector<32x32xbf16>, vector<4x32xf32> -> vector<4x32xf32>
      %871 = vector.extract_strided_slice %855 {offsets = [1, 0], sizes = [1, 32], strides = [1, 1]} : vector<4x32xf32> to vector<1x32xf32>
      %872 = vector.shape_cast %871 : vector<1x32xf32> to vector<32xf32>
      %873 = vector.shape_cast %872 : vector<32xf32> to vector<1x32xf32>
      %874 = vector.broadcast %873 : vector<1x32xf32> to vector<4x32xf32>
      %875 = arith.addf %870, %874 : vector<4x32xf32>
      %876 = vector.extract_strided_slice %853 {offsets = [2, 0, 0], sizes = [1, 32, 32], strides = [1, 1, 1]} : vector<4x32x32xf32> to vector<1x32x32xf32>
      %877 = vector.shape_cast %876 : vector<1x32x32xf32> to vector<32x32xf32>
      %878 = arith.truncf %851 : vector<4x32xf32> to vector<4x32xbf16>
      %879 = arith.truncf %877 : vector<32x32xf32> to vector<32x32xbf16>
      %cst_258 = arith.constant dense<0.000000e+00> : vector<4x32xf32>
      %880 = tpu.matmul %878, %879, %cst_258 {dimension_numbers = #tpu.dot_dimension_numbers<[1], [0], [0], [1], [0, 0, 1, 1], [], []>} : vector<4x32xbf16>, vector<32x32xbf16>, vector<4x32xf32> -> vector<4x32xf32>
      %881 = vector.extract_strided_slice %855 {offsets = [2, 0], sizes = [1, 32], strides = [1, 1]} : vector<4x32xf32> to vector<1x32xf32>
      %882 = vector.shape_cast %881 : vector<1x32xf32> to vector<32xf32>
      %883 = vector.shape_cast %882 : vector<32xf32> to vector<1x32xf32>
      %884 = vector.broadcast %883 : vector<1x32xf32> to vector<4x32xf32>
      %885 = arith.addf %880, %884 : vector<4x32xf32>
      %886 = vector.extract_strided_slice %865 {offsets = [0, 0], sizes = [4, 8], strides = [1, 1]} : vector<4x32xf32> to vector<4x8xf32>
      %887 = arith.truncf %886 : vector<4x8xf32> to vector<4x8xbf16>
      %888 = vector.extract_strided_slice %875 {offsets = [0, 0], sizes = [4, 8], strides = [1, 1]} : vector<4x32xf32> to vector<4x8xf32>
      %889 = arith.truncf %888 : vector<4x8xf32> to vector<4x8xbf16>
      %cst_259 = arith.constant dense<0.000000e+00> : vector<4x4xf32>
      %890 = tpu.matmul %887, %889, %cst_259 {dimension_numbers = #tpu.dot_dimension_numbers<[1], [1], [0], [0], [0, 0, 1, 0], [], []>} : vector<4x8xbf16>, vector<4x8xbf16>, vector<4x4xf32> -> vector<4x4xf32>
      %cst_260 = arith.constant 0.353553385 : f32
      %891 = vector.broadcast %cst_260 : f32 to vector<4x4xf32>
      %892 = arith.mulf %890, %891 : vector<4x4xf32>
      %cst_261 = arith.constant dense<0xFF800000> : vector<4xf32>
      %893 = vector.multi_reduction <maximumf>, %892, %cst_261 [1] : vector<4x4xf32> to vector<4xf32>
      %894 = vector.shape_cast %893 : vector<4xf32> to vector<4x1xf32>
      %895 = vector.broadcast %894 : vector<4x1xf32> to vector<4x4xf32>
      %896 = arith.subf %892, %895 : vector<4x4xf32>
      %897 = math.exp %896 : vector<4x4xf32>
      %cst_262 = arith.constant dense<0.000000e+00> : vector<4xf32>
      %898 = vector.multi_reduction <add>, %897, %cst_262 [1] : vector<4x4xf32> to vector<4xf32>
      %899 = vector.shape_cast %898 : vector<4xf32> to vector<4x1xf32>
      %900 = tpu.reciprocal %899 {approx = true} : vector<4x1xf32> -> vector<4x1xf32>
      %901 = vector.broadcast %900 : vector<4x1xf32> to vector<4x4xf32>
      %902 = arith.mulf %897, %901 : vector<4x4xf32>
      %903 = vector.extract_strided_slice %885 {offsets = [0, 0], sizes = [4, 8], strides = [1, 1]} : vector<4x32xf32> to vector<4x8xf32>
      %904 = arith.truncf %902 : vector<4x4xf32> to vector<4x4xbf16>
      %905 = arith.truncf %903 : vector<4x8xf32> to vector<4x8xbf16>
      %cst_263 = arith.constant dense<0.000000e+00> : vector<4x8xf32>
      %906 = tpu.matmul %904, %905, %cst_263 {dimension_numbers = #tpu.dot_dimension_numbers<[1], [0], [0], [1], [0, 0, 1, 1], [], []>} : vector<4x4xbf16>, vector<4x8xbf16>, vector<4x8xf32> -> vector<4x8xf32>
      %907 = vector.extract_strided_slice %865 {offsets = [0, 8], sizes = [4, 8], strides = [1, 1]} : vector<4x32xf32> to vector<4x8xf32>
      %908 = arith.truncf %907 : vector<4x8xf32> to vector<4x8xbf16>
      %909 = vector.extract_strided_slice %875 {offsets = [0, 8], sizes = [4, 8], strides = [1, 1]} : vector<4x32xf32> to vector<4x8xf32>
      %910 = arith.truncf %909 : vector<4x8xf32> to vector<4x8xbf16>
      %cst_264 = arith.constant dense<0.000000e+00> : vector<4x4xf32>
      %911 = tpu.matmul %908, %910, %cst_264 {dimension_numbers = #tpu.dot_dimension_numbers<[1], [1], [0], [0], [0, 0, 1, 0], [], []>} : vector<4x8xbf16>, vector<4x8xbf16>, vector<4x4xf32> -> vector<4x4xf32>
      %cst_265 = arith.constant 0.353553385 : f32
      %912 = vector.broadcast %cst_265 : f32 to vector<4x4xf32>
      %913 = arith.mulf %911, %912 : vector<4x4xf32>
      %cst_266 = arith.constant dense<0xFF800000> : vector<4xf32>
      %914 = vector.multi_reduction <maximumf>, %913, %cst_266 [1] : vector<4x4xf32> to vector<4xf32>
      %915 = vector.shape_cast %914 : vector<4xf32> to vector<4x1xf32>
      %916 = vector.broadcast %915 : vector<4x1xf32> to vector<4x4xf32>
      %917 = arith.subf %913, %916 : vector<4x4xf32>
      %918 = math.exp %917 : vector<4x4xf32>
      %cst_267 = arith.constant dense<0.000000e+00> : vector<4xf32>
      %919 = vector.multi_reduction <add>, %918, %cst_267 [1] : vector<4x4xf32> to vector<4xf32>
      %920 = vector.shape_cast %919 : vector<4xf32> to vector<4x1xf32>
      %921 = tpu.reciprocal %920 {approx = true} : vector<4x1xf32> -> vector<4x1xf32>
      %922 = vector.broadcast %921 : vector<4x1xf32> to vector<4x4xf32>
      %923 = arith.mulf %918, %922 : vector<4x4xf32>
      %924 = vector.extract_strided_slice %885 {offsets = [0, 8], sizes = [4, 8], strides = [1, 1]} : vector<4x32xf32> to vector<4x8xf32>
      %925 = arith.truncf %923 : vector<4x4xf32> to vector<4x4xbf16>
      %926 = arith.truncf %924 : vector<4x8xf32> to vector<4x8xbf16>
      %cst_268 = arith.constant dense<0.000000e+00> : vector<4x8xf32>
      %927 = tpu.matmul %925, %926, %cst_268 {dimension_numbers = #tpu.dot_dimension_numbers<[1], [0], [0], [1], [0, 0, 1, 1], [], []>} : vector<4x4xbf16>, vector<4x8xbf16>, vector<4x8xf32> -> vector<4x8xf32>
      %928 = vector.extract_strided_slice %865 {offsets = [0, 16], sizes = [4, 8], strides = [1, 1]} : vector<4x32xf32> to vector<4x8xf32>
      %929 = arith.truncf %928 : vector<4x8xf32> to vector<4x8xbf16>
      %930 = vector.extract_strided_slice %875 {offsets = [0, 16], sizes = [4, 8], strides = [1, 1]} : vector<4x32xf32> to vector<4x8xf32>
      %931 = arith.truncf %930 : vector<4x8xf32> to vector<4x8xbf16>
      %cst_269 = arith.constant dense<0.000000e+00> : vector<4x4xf32>
      %932 = tpu.matmul %929, %931, %cst_269 {dimension_numbers = #tpu.dot_dimension_numbers<[1], [1], [0], [0], [0, 0, 1, 0], [], []>} : vector<4x8xbf16>, vector<4x8xbf16>, vector<4x4xf32> -> vector<4x4xf32>
      %cst_270 = arith.constant 0.353553385 : f32
      %933 = vector.broadcast %cst_270 : f32 to vector<4x4xf32>
      %934 = arith.mulf %932, %933 : vector<4x4xf32>
      %cst_271 = arith.constant dense<0xFF800000> : vector<4xf32>
      %935 = vector.multi_reduction <maximumf>, %934, %cst_271 [1] : vector<4x4xf32> to vector<4xf32>
      %936 = vector.shape_cast %935 : vector<4xf32> to vector<4x1xf32>
      %937 = vector.broadcast %936 : vector<4x1xf32> to vector<4x4xf32>
      %938 = arith.subf %934, %937 : vector<4x4xf32>
      %939 = math.exp %938 : vector<4x4xf32>
      %cst_272 = arith.constant dense<0.000000e+00> : vector<4xf32>
      %940 = vector.multi_reduction <add>, %939, %cst_272 [1] : vector<4x4xf32> to vector<4xf32>
      %941 = vector.shape_cast %940 : vector<4xf32> to vector<4x1xf32>
      %942 = tpu.reciprocal %941 {approx = true} : vector<4x1xf32> -> vector<4x1xf32>
      %943 = vector.broadcast %942 : vector<4x1xf32> to vector<4x4xf32>
      %944 = arith.mulf %939, %943 : vector<4x4xf32>
      %945 = vector.extract_strided_slice %885 {offsets = [0, 16], sizes = [4, 8], strides = [1, 1]} : vector<4x32xf32> to vector<4x8xf32>
      %946 = arith.truncf %944 : vector<4x4xf32> to vector<4x4xbf16>
      %947 = arith.truncf %945 : vector<4x8xf32> to vector<4x8xbf16>
      %cst_273 = arith.constant dense<0.000000e+00> : vector<4x8xf32>
      %948 = tpu.matmul %946, %947, %cst_273 {dimension_numbers = #tpu.dot_dimension_numbers<[1], [0], [0], [1], [0, 0, 1, 1], [], []>} : vector<4x4xbf16>, vector<4x8xbf16>, vector<4x8xf32> -> vector<4x8xf32>
      %949 = vector.extract_strided_slice %865 {offsets = [0, 24], sizes = [4, 8], strides = [1, 1]} : vector<4x32xf32> to vector<4x8xf32>
      %950 = arith.truncf %949 : vector<4x8xf32> to vector<4x8xbf16>
      %951 = vector.extract_strided_slice %875 {offsets = [0, 24], sizes = [4, 8], strides = [1, 1]} : vector<4x32xf32> to vector<4x8xf32>
      %952 = arith.truncf %951 : vector<4x8xf32> to vector<4x8xbf16>
      %cst_274 = arith.constant dense<0.000000e+00> : vector<4x4xf32>
      %953 = tpu.matmul %950, %952, %cst_274 {dimension_numbers = #tpu.dot_dimension_numbers<[1], [1], [0], [0], [0, 0, 1, 0], [], []>} : vector<4x8xbf16>, vector<4x8xbf16>, vector<4x4xf32> -> vector<4x4xf32>
      %cst_275 = arith.constant 0.353553385 : f32
      %954 = vector.broadcast %cst_275 : f32 to vector<4x4xf32>
      %955 = arith.mulf %953, %954 : vector<4x4xf32>
      %cst_276 = arith.constant dense<0xFF800000> : vector<4xf32>
      %956 = vector.multi_reduction <maximumf>, %955, %cst_276 [1] : vector<4x4xf32> to vector<4xf32>
      %957 = vector.shape_cast %956 : vector<4xf32> to vector<4x1xf32>
      %958 = vector.broadcast %957 : vector<4x1xf32> to vector<4x4xf32>
      %959 = arith.subf %955, %958 : vector<4x4xf32>
      %960 = math.exp %959 : vector<4x4xf32>
      %cst_277 = arith.constant dense<0.000000e+00> : vector<4xf32>
      %961 = vector.multi_reduction <add>, %960, %cst_277 [1] : vector<4x4xf32> to vector<4xf32>
      %962 = vector.shape_cast %961 : vector<4xf32> to vector<4x1xf32>
      %963 = tpu.reciprocal %962 {approx = true} : vector<4x1xf32> -> vector<4x1xf32>
      %964 = vector.broadcast %963 : vector<4x1xf32> to vector<4x4xf32>
      %965 = arith.mulf %960, %964 : vector<4x4xf32>
      %966 = vector.extract_strided_slice %885 {offsets = [0, 24], sizes = [4, 8], strides = [1, 1]} : vector<4x32xf32> to vector<4x8xf32>
      %967 = arith.truncf %965 : vector<4x4xf32> to vector<4x4xbf16>
      %968 = arith.truncf %966 : vector<4x8xf32> to vector<4x8xbf16>
      %cst_278 = arith.constant dense<0.000000e+00> : vector<4x8xf32>
      %969 = tpu.matmul %967, %968, %cst_278 {dimension_numbers = #tpu.dot_dimension_numbers<[1], [0], [0], [1], [0, 0, 1, 1], [], []>} : vector<4x4xbf16>, vector<4x8xbf16>, vector<4x8xf32> -> vector<4x8xf32>
      %970 = tpu.concatenate %906, %927, %948, %969 in 1 : vector<4x8xf32>, vector<4x8xf32>, vector<4x8xf32>, vector<4x8xf32> -> vector<4x32xf32>
      %971 = vector.extract_strided_slice %853 {offsets = [3, 0, 0], sizes = [1, 32, 32], strides = [1, 1, 1]} : vector<4x32x32xf32> to vector<1x32x32xf32>
      %972 = vector.shape_cast %971 : vector<1x32x32xf32> to vector<32x32xf32>
      %973 = arith.truncf %970 : vector<4x32xf32> to vector<4x32xbf16>
      %974 = arith.truncf %972 : vector<32x32xf32> to vector<32x32xbf16>
      %cst_279 = arith.constant dense<0.000000e+00> : vector<4x32xf32>
      %975 = tpu.matmul %973, %974, %cst_279 {dimension_numbers = #tpu.dot_dimension_numbers<[1], [0], [0], [1], [0, 0, 1, 1], [], []>} : vector<4x32xbf16>, vector<32x32xbf16>, vector<4x32xf32> -> vector<4x32xf32>
      %976 = vector.extract_strided_slice %855 {offsets = [3, 0], sizes = [1, 32], strides = [1, 1]} : vector<4x32xf32> to vector<1x32xf32>
      %977 = vector.shape_cast %976 : vector<1x32xf32> to vector<32xf32>
      %978 = vector.shape_cast %977 : vector<32xf32> to vector<1x32xf32>
      %979 = vector.broadcast %978 : vector<1x32xf32> to vector<4x32xf32>
      %980 = arith.addf %975, %979 : vector<4x32xf32>
      %c1_280 = arith.constant 1 : index
      %c0_281 = arith.constant 0 : index
      %c0_282 = arith.constant 0 : index
      %981 = vector.load %arg7[%c1_280, %c0_281, %c0_282] : memref<2x2x32xf32, #tpu.memory_space<vmem>>, vector<1x2x32xf32>
      %982 = vector.shape_cast %981 : vector<1x2x32xf32> to vector<2x32xf32>
      %983 = arith.addf %851, %980 : vector<4x32xf32>
      %984 = vector.extract_strided_slice %982 {offsets = [0, 0], sizes = [1, 32], strides = [1, 1]} : vector<2x32xf32> to vector<1x32xf32>
      %985 = vector.shape_cast %984 : vector<1x32xf32> to vector<32xf32>
      %986 = vector.extract_strided_slice %982 {offsets = [1, 0], sizes = [1, 32], strides = [1, 1]} : vector<2x32xf32> to vector<1x32xf32>
      %987 = vector.shape_cast %986 : vector<1x32xf32> to vector<32xf32>
      %cst_283 = arith.constant dense<0.000000e+00> : vector<4xf32>
      %988 = vector.multi_reduction <add>, %983, %cst_283 [1] : vector<4x32xf32> to vector<4xf32>
      %989 = vector.shape_cast %988 : vector<4xf32> to vector<4x1xf32>
      %cst_284 = arith.constant 3.200000e+01 : f32
      %990 = vector.broadcast %cst_284 : f32 to vector<4x1xf32>
      %991 = arith.divf %989, %990 : vector<4x1xf32>
      %992 = vector.broadcast %991 : vector<4x1xf32> to vector<4x32xf32>
      %993 = arith.subf %983, %992 : vector<4x32xf32>
      %994 = arith.mulf %993, %993 : vector<4x32xf32>
      %cst_285 = arith.constant dense<0.000000e+00> : vector<4xf32>
      %995 = vector.multi_reduction <add>, %994, %cst_285 [1] : vector<4x32xf32> to vector<4xf32>
      %996 = vector.shape_cast %995 : vector<4xf32> to vector<4x1xf32>
      %cst_286 = arith.constant 3.200000e+01 : f32
      %997 = vector.broadcast %cst_286 : f32 to vector<4x1xf32>
      %998 = arith.divf %996, %997 : vector<4x1xf32>
      %999 = vector.broadcast %991 : vector<4x1xf32> to vector<4x32xf32>
      %1000 = arith.subf %983, %999 : vector<4x32xf32>
      %cst_287 = arith.constant 9.99999974E-6 : f32
      %1001 = vector.broadcast %cst_287 : f32 to vector<4x1xf32>
      %1002 = arith.addf %998, %1001 : vector<4x1xf32>
      %1003 = math.rsqrt %1002 : vector<4x1xf32>
      %1004 = vector.broadcast %1003 : vector<4x1xf32> to vector<4x32xf32>
      %1005 = arith.mulf %1000, %1004 : vector<4x32xf32>
      %1006 = vector.shape_cast %985 : vector<32xf32> to vector<1x32xf32>
      %1007 = vector.broadcast %1006 : vector<1x32xf32> to vector<4x32xf32>
      %1008 = arith.mulf %1005, %1007 : vector<4x32xf32>
      %1009 = vector.shape_cast %987 : vector<32xf32> to vector<1x32xf32>
      %1010 = vector.broadcast %1009 : vector<1x32xf32> to vector<4x32xf32>
      %1011 = arith.addf %1008, %1010 : vector<4x32xf32>
      %c1_288 = arith.constant 1 : index
      %c0_289 = arith.constant 0 : index
      %c0_290 = arith.constant 0 : index
      %c0_291 = arith.constant 0 : index
      %1012 = vector.load %arg6[%c1_288, %c0_289, %c0_290, %c0_291] : memref<2x4x32x32xf32, #tpu.memory_space<vmem>>, vector<1x4x32x32xf32>
      %1013 = vector.shape_cast %1012 : vector<1x4x32x32xf32> to vector<4x32x32xf32>
      %c1_292 = arith.constant 1 : index
      %c0_293 = arith.constant 0 : index
      %c0_294 = arith.constant 0 : index
      %1014 = vector.load %arg5[%c1_292, %c0_293, %c0_294] : memref<2x4x32xf32, #tpu.memory_space<vmem>>, vector<1x4x32xf32>
      %1015 = vector.shape_cast %1014 : vector<1x4x32xf32> to vector<4x32xf32>
      %1016 = vector.extract_strided_slice %1013 {offsets = [0, 0, 0], sizes = [1, 32, 32], strides = [1, 1, 1]} : vector<4x32x32xf32> to vector<1x32x32xf32>
      %1017 = vector.shape_cast %1016 : vector<1x32x32xf32> to vector<32x32xf32>
      %1018 = arith.truncf %1011 : vector<4x32xf32> to vector<4x32xbf16>
      %1019 = arith.truncf %1017 : vector<32x32xf32> to vector<32x32xbf16>
      %cst_295 = arith.constant dense<0.000000e+00> : vector<4x32xf32>
      %1020 = tpu.matmul %1018, %1019, %cst_295 {dimension_numbers = #tpu.dot_dimension_numbers<[1], [0], [0], [1], [0, 0, 1, 1], [], []>} : vector<4x32xbf16>, vector<32x32xbf16>, vector<4x32xf32> -> vector<4x32xf32>
      %1021 = vector.extract_strided_slice %1015 {offsets = [0, 0], sizes = [1, 32], strides = [1, 1]} : vector<4x32xf32> to vector<1x32xf32>
      %1022 = vector.shape_cast %1021 : vector<1x32xf32> to vector<32xf32>
      %1023 = vector.shape_cast %1022 : vector<32xf32> to vector<1x32xf32>
      %1024 = vector.broadcast %1023 : vector<1x32xf32> to vector<4x32xf32>
      %1025 = arith.addf %1020, %1024 : vector<4x32xf32>
      %1026 = vector.extract_strided_slice %1013 {offsets = [1, 0, 0], sizes = [1, 32, 32], strides = [1, 1, 1]} : vector<4x32x32xf32> to vector<1x32x32xf32>
      %1027 = vector.shape_cast %1026 : vector<1x32x32xf32> to vector<32x32xf32>
      %1028 = arith.truncf %480 : vector<4x32xf32> to vector<4x32xbf16>
      %1029 = arith.truncf %1027 : vector<32x32xf32> to vector<32x32xbf16>
      %cst_296 = arith.constant dense<0.000000e+00> : vector<4x32xf32>
      %1030 = tpu.matmul %1028, %1029, %cst_296 {dimension_numbers = #tpu.dot_dimension_numbers<[1], [0], [0], [1], [0, 0, 1, 1], [], []>} : vector<4x32xbf16>, vector<32x32xbf16>, vector<4x32xf32> -> vector<4x32xf32>
      %1031 = vector.extract_strided_slice %1015 {offsets = [1, 0], sizes = [1, 32], strides = [1, 1]} : vector<4x32xf32> to vector<1x32xf32>
      %1032 = vector.shape_cast %1031 : vector<1x32xf32> to vector<32xf32>
      %1033 = vector.shape_cast %1032 : vector<32xf32> to vector<1x32xf32>
      %1034 = vector.broadcast %1033 : vector<1x32xf32> to vector<4x32xf32>
      %1035 = arith.addf %1030, %1034 : vector<4x32xf32>
      %1036 = vector.extract_strided_slice %1013 {offsets = [2, 0, 0], sizes = [1, 32, 32], strides = [1, 1, 1]} : vector<4x32x32xf32> to vector<1x32x32xf32>
      %1037 = vector.shape_cast %1036 : vector<1x32x32xf32> to vector<32x32xf32>
      %1038 = arith.truncf %480 : vector<4x32xf32> to vector<4x32xbf16>
      %1039 = arith.truncf %1037 : vector<32x32xf32> to vector<32x32xbf16>
      %cst_297 = arith.constant dense<0.000000e+00> : vector<4x32xf32>
      %1040 = tpu.matmul %1038, %1039, %cst_297 {dimension_numbers = #tpu.dot_dimension_numbers<[1], [0], [0], [1], [0, 0, 1, 1], [], []>} : vector<4x32xbf16>, vector<32x32xbf16>, vector<4x32xf32> -> vector<4x32xf32>
      %1041 = vector.extract_strided_slice %1015 {offsets = [2, 0], sizes = [1, 32], strides = [1, 1]} : vector<4x32xf32> to vector<1x32xf32>
      %1042 = vector.shape_cast %1041 : vector<1x32xf32> to vector<32xf32>
      %1043 = vector.shape_cast %1042 : vector<32xf32> to vector<1x32xf32>
      %1044 = vector.broadcast %1043 : vector<1x32xf32> to vector<4x32xf32>
      %1045 = arith.addf %1040, %1044 : vector<4x32xf32>
      %1046 = vector.extract_strided_slice %1025 {offsets = [0, 0], sizes = [4, 8], strides = [1, 1]} : vector<4x32xf32> to vector<4x8xf32>
      %1047 = arith.truncf %1046 : vector<4x8xf32> to vector<4x8xbf16>
      %1048 = vector.extract_strided_slice %1035 {offsets = [0, 0], sizes = [4, 8], strides = [1, 1]} : vector<4x32xf32> to vector<4x8xf32>
      %1049 = arith.truncf %1048 : vector<4x8xf32> to vector<4x8xbf16>
      %cst_298 = arith.constant dense<0.000000e+00> : vector<4x4xf32>
      %1050 = tpu.matmul %1047, %1049, %cst_298 {dimension_numbers = #tpu.dot_dimension_numbers<[1], [1], [0], [0], [0, 0, 1, 0], [], []>} : vector<4x8xbf16>, vector<4x8xbf16>, vector<4x4xf32> -> vector<4x4xf32>
      %cst_299 = arith.constant 0.353553385 : f32
      %1051 = vector.broadcast %cst_299 : f32 to vector<4x4xf32>
      %1052 = arith.mulf %1050, %1051 : vector<4x4xf32>
      %cst_300 = arith.constant dense<0xFF800000> : vector<4xf32>
      %1053 = vector.multi_reduction <maximumf>, %1052, %cst_300 [1] : vector<4x4xf32> to vector<4xf32>
      %1054 = vector.shape_cast %1053 : vector<4xf32> to vector<4x1xf32>
      %1055 = vector.broadcast %1054 : vector<4x1xf32> to vector<4x4xf32>
      %1056 = arith.subf %1052, %1055 : vector<4x4xf32>
      %1057 = math.exp %1056 : vector<4x4xf32>
      %cst_301 = arith.constant dense<0.000000e+00> : vector<4xf32>
      %1058 = vector.multi_reduction <add>, %1057, %cst_301 [1] : vector<4x4xf32> to vector<4xf32>
      %1059 = vector.shape_cast %1058 : vector<4xf32> to vector<4x1xf32>
      %1060 = tpu.reciprocal %1059 {approx = true} : vector<4x1xf32> -> vector<4x1xf32>
      %1061 = vector.broadcast %1060 : vector<4x1xf32> to vector<4x4xf32>
      %1062 = arith.mulf %1057, %1061 : vector<4x4xf32>
      %1063 = vector.extract_strided_slice %1045 {offsets = [0, 0], sizes = [4, 8], strides = [1, 1]} : vector<4x32xf32> to vector<4x8xf32>
      %1064 = arith.truncf %1062 : vector<4x4xf32> to vector<4x4xbf16>
      %1065 = arith.truncf %1063 : vector<4x8xf32> to vector<4x8xbf16>
      %cst_302 = arith.constant dense<0.000000e+00> : vector<4x8xf32>
      %1066 = tpu.matmul %1064, %1065, %cst_302 {dimension_numbers = #tpu.dot_dimension_numbers<[1], [0], [0], [1], [0, 0, 1, 1], [], []>} : vector<4x4xbf16>, vector<4x8xbf16>, vector<4x8xf32> -> vector<4x8xf32>
      %1067 = vector.extract_strided_slice %1025 {offsets = [0, 8], sizes = [4, 8], strides = [1, 1]} : vector<4x32xf32> to vector<4x8xf32>
      %1068 = arith.truncf %1067 : vector<4x8xf32> to vector<4x8xbf16>
      %1069 = vector.extract_strided_slice %1035 {offsets = [0, 8], sizes = [4, 8], strides = [1, 1]} : vector<4x32xf32> to vector<4x8xf32>
      %1070 = arith.truncf %1069 : vector<4x8xf32> to vector<4x8xbf16>
      %cst_303 = arith.constant dense<0.000000e+00> : vector<4x4xf32>
      %1071 = tpu.matmul %1068, %1070, %cst_303 {dimension_numbers = #tpu.dot_dimension_numbers<[1], [1], [0], [0], [0, 0, 1, 0], [], []>} : vector<4x8xbf16>, vector<4x8xbf16>, vector<4x4xf32> -> vector<4x4xf32>
      %cst_304 = arith.constant 0.353553385 : f32
      %1072 = vector.broadcast %cst_304 : f32 to vector<4x4xf32>
      %1073 = arith.mulf %1071, %1072 : vector<4x4xf32>
      %cst_305 = arith.constant dense<0xFF800000> : vector<4xf32>
      %1074 = vector.multi_reduction <maximumf>, %1073, %cst_305 [1] : vector<4x4xf32> to vector<4xf32>
      %1075 = vector.shape_cast %1074 : vector<4xf32> to vector<4x1xf32>
      %1076 = vector.broadcast %1075 : vector<4x1xf32> to vector<4x4xf32>
      %1077 = arith.subf %1073, %1076 : vector<4x4xf32>
      %1078 = math.exp %1077 : vector<4x4xf32>
      %cst_306 = arith.constant dense<0.000000e+00> : vector<4xf32>
      %1079 = vector.multi_reduction <add>, %1078, %cst_306 [1] : vector<4x4xf32> to vector<4xf32>
      %1080 = vector.shape_cast %1079 : vector<4xf32> to vector<4x1xf32>
      %1081 = tpu.reciprocal %1080 {approx = true} : vector<4x1xf32> -> vector<4x1xf32>
      %1082 = vector.broadcast %1081 : vector<4x1xf32> to vector<4x4xf32>
      %1083 = arith.mulf %1078, %1082 : vector<4x4xf32>
      %1084 = vector.extract_strided_slice %1045 {offsets = [0, 8], sizes = [4, 8], strides = [1, 1]} : vector<4x32xf32> to vector<4x8xf32>
      %1085 = arith.truncf %1083 : vector<4x4xf32> to vector<4x4xbf16>
      %1086 = arith.truncf %1084 : vector<4x8xf32> to vector<4x8xbf16>
      %cst_307 = arith.constant dense<0.000000e+00> : vector<4x8xf32>
      %1087 = tpu.matmul %1085, %1086, %cst_307 {dimension_numbers = #tpu.dot_dimension_numbers<[1], [0], [0], [1], [0, 0, 1, 1], [], []>} : vector<4x4xbf16>, vector<4x8xbf16>, vector<4x8xf32> -> vector<4x8xf32>
      %1088 = vector.extract_strided_slice %1025 {offsets = [0, 16], sizes = [4, 8], strides = [1, 1]} : vector<4x32xf32> to vector<4x8xf32>
      %1089 = arith.truncf %1088 : vector<4x8xf32> to vector<4x8xbf16>
      %1090 = vector.extract_strided_slice %1035 {offsets = [0, 16], sizes = [4, 8], strides = [1, 1]} : vector<4x32xf32> to vector<4x8xf32>
      %1091 = arith.truncf %1090 : vector<4x8xf32> to vector<4x8xbf16>
      %cst_308 = arith.constant dense<0.000000e+00> : vector<4x4xf32>
      %1092 = tpu.matmul %1089, %1091, %cst_308 {dimension_numbers = #tpu.dot_dimension_numbers<[1], [1], [0], [0], [0, 0, 1, 0], [], []>} : vector<4x8xbf16>, vector<4x8xbf16>, vector<4x4xf32> -> vector<4x4xf32>
      %cst_309 = arith.constant 0.353553385 : f32
      %1093 = vector.broadcast %cst_309 : f32 to vector<4x4xf32>
      %1094 = arith.mulf %1092, %1093 : vector<4x4xf32>
      %cst_310 = arith.constant dense<0xFF800000> : vector<4xf32>
      %1095 = vector.multi_reduction <maximumf>, %1094, %cst_310 [1] : vector<4x4xf32> to vector<4xf32>
      %1096 = vector.shape_cast %1095 : vector<4xf32> to vector<4x1xf32>
      %1097 = vector.broadcast %1096 : vector<4x1xf32> to vector<4x4xf32>
      %1098 = arith.subf %1094, %1097 : vector<4x4xf32>
      %1099 = math.exp %1098 : vector<4x4xf32>
      %cst_311 = arith.constant dense<0.000000e+00> : vector<4xf32>
      %1100 = vector.multi_reduction <add>, %1099, %cst_311 [1] : vector<4x4xf32> to vector<4xf32>
      %1101 = vector.shape_cast %1100 : vector<4xf32> to vector<4x1xf32>
      %1102 = tpu.reciprocal %1101 {approx = true} : vector<4x1xf32> -> vector<4x1xf32>
      %1103 = vector.broadcast %1102 : vector<4x1xf32> to vector<4x4xf32>
      %1104 = arith.mulf %1099, %1103 : vector<4x4xf32>
      %1105 = vector.extract_strided_slice %1045 {offsets = [0, 16], sizes = [4, 8], strides = [1, 1]} : vector<4x32xf32> to vector<4x8xf32>
      %1106 = arith.truncf %1104 : vector<4x4xf32> to vector<4x4xbf16>
      %1107 = arith.truncf %1105 : vector<4x8xf32> to vector<4x8xbf16>
      %cst_312 = arith.constant dense<0.000000e+00> : vector<4x8xf32>
      %1108 = tpu.matmul %1106, %1107, %cst_312 {dimension_numbers = #tpu.dot_dimension_numbers<[1], [0], [0], [1], [0, 0, 1, 1], [], []>} : vector<4x4xbf16>, vector<4x8xbf16>, vector<4x8xf32> -> vector<4x8xf32>
      %1109 = vector.extract_strided_slice %1025 {offsets = [0, 24], sizes = [4, 8], strides = [1, 1]} : vector<4x32xf32> to vector<4x8xf32>
      %1110 = arith.truncf %1109 : vector<4x8xf32> to vector<4x8xbf16>
      %1111 = vector.extract_strided_slice %1035 {offsets = [0, 24], sizes = [4, 8], strides = [1, 1]} : vector<4x32xf32> to vector<4x8xf32>
      %1112 = arith.truncf %1111 : vector<4x8xf32> to vector<4x8xbf16>
      %cst_313 = arith.constant dense<0.000000e+00> : vector<4x4xf32>
      %1113 = tpu.matmul %1110, %1112, %cst_313 {dimension_numbers = #tpu.dot_dimension_numbers<[1], [1], [0], [0], [0, 0, 1, 0], [], []>} : vector<4x8xbf16>, vector<4x8xbf16>, vector<4x4xf32> -> vector<4x4xf32>
      %cst_314 = arith.constant 0.353553385 : f32
      %1114 = vector.broadcast %cst_314 : f32 to vector<4x4xf32>
      %1115 = arith.mulf %1113, %1114 : vector<4x4xf32>
      %cst_315 = arith.constant dense<0xFF800000> : vector<4xf32>
      %1116 = vector.multi_reduction <maximumf>, %1115, %cst_315 [1] : vector<4x4xf32> to vector<4xf32>
      %1117 = vector.shape_cast %1116 : vector<4xf32> to vector<4x1xf32>
      %1118 = vector.broadcast %1117 : vector<4x1xf32> to vector<4x4xf32>
      %1119 = arith.subf %1115, %1118 : vector<4x4xf32>
      %1120 = math.exp %1119 : vector<4x4xf32>
      %cst_316 = arith.constant dense<0.000000e+00> : vector<4xf32>
      %1121 = vector.multi_reduction <add>, %1120, %cst_316 [1] : vector<4x4xf32> to vector<4xf32>
      %1122 = vector.shape_cast %1121 : vector<4xf32> to vector<4x1xf32>
      %1123 = tpu.reciprocal %1122 {approx = true} : vector<4x1xf32> -> vector<4x1xf32>
      %1124 = vector.broadcast %1123 : vector<4x1xf32> to vector<4x4xf32>
      %1125 = arith.mulf %1120, %1124 : vector<4x4xf32>
      %1126 = vector.extract_strided_slice %1045 {offsets = [0, 24], sizes = [4, 8], strides = [1, 1]} : vector<4x32xf32> to vector<4x8xf32>
      %1127 = arith.truncf %1125 : vector<4x4xf32> to vector<4x4xbf16>
      %1128 = arith.truncf %1126 : vector<4x8xf32> to vector<4x8xbf16>
      %cst_317 = arith.constant dense<0.000000e+00> : vector<4x8xf32>
      %1129 = tpu.matmul %1127, %1128, %cst_317 {dimension_numbers = #tpu.dot_dimension_numbers<[1], [0], [0], [1], [0, 0, 1, 1], [], []>} : vector<4x4xbf16>, vector<4x8xbf16>, vector<4x8xf32> -> vector<4x8xf32>
      %1130 = tpu.concatenate %1066, %1087, %1108, %1129 in 1 : vector<4x8xf32>, vector<4x8xf32>, vector<4x8xf32>, vector<4x8xf32> -> vector<4x32xf32>
      %1131 = vector.extract_strided_slice %1013 {offsets = [3, 0, 0], sizes = [1, 32, 32], strides = [1, 1, 1]} : vector<4x32x32xf32> to vector<1x32x32xf32>
      %1132 = vector.shape_cast %1131 : vector<1x32x32xf32> to vector<32x32xf32>
      %1133 = arith.truncf %1130 : vector<4x32xf32> to vector<4x32xbf16>
      %1134 = arith.truncf %1132 : vector<32x32xf32> to vector<32x32xbf16>
      %cst_318 = arith.constant dense<0.000000e+00> : vector<4x32xf32>
      %1135 = tpu.matmul %1133, %1134, %cst_318 {dimension_numbers = #tpu.dot_dimension_numbers<[1], [0], [0], [1], [0, 0, 1, 1], [], []>} : vector<4x32xbf16>, vector<32x32xbf16>, vector<4x32xf32> -> vector<4x32xf32>
      %1136 = vector.extract_strided_slice %1015 {offsets = [3, 0], sizes = [1, 32], strides = [1, 1]} : vector<4x32xf32> to vector<1x32xf32>
      %1137 = vector.shape_cast %1136 : vector<1x32xf32> to vector<32xf32>
      %1138 = vector.shape_cast %1137 : vector<32xf32> to vector<1x32xf32>
      %1139 = vector.broadcast %1138 : vector<1x32xf32> to vector<4x32xf32>
      %1140 = arith.addf %1135, %1139 : vector<4x32xf32>
      %c1_319 = arith.constant 1 : index
      %c0_320 = arith.constant 0 : index
      %c0_321 = arith.constant 0 : index
      %1141 = vector.load %arg8[%c1_319, %c0_320, %c0_321] : memref<2x2x32xf32, #tpu.memory_space<vmem>>, vector<1x2x32xf32>
      %1142 = vector.shape_cast %1141 : vector<1x2x32xf32> to vector<2x32xf32>
      %1143 = arith.addf %1011, %1140 : vector<4x32xf32>
      %1144 = vector.extract_strided_slice %1142 {offsets = [0, 0], sizes = [1, 32], strides = [1, 1]} : vector<2x32xf32> to vector<1x32xf32>
      %1145 = vector.shape_cast %1144 : vector<1x32xf32> to vector<32xf32>
      %1146 = vector.extract_strided_slice %1142 {offsets = [1, 0], sizes = [1, 32], strides = [1, 1]} : vector<2x32xf32> to vector<1x32xf32>
      %1147 = vector.shape_cast %1146 : vector<1x32xf32> to vector<32xf32>
      %cst_322 = arith.constant dense<0.000000e+00> : vector<4xf32>
      %1148 = vector.multi_reduction <add>, %1143, %cst_322 [1] : vector<4x32xf32> to vector<4xf32>
      %1149 = vector.shape_cast %1148 : vector<4xf32> to vector<4x1xf32>
      %cst_323 = arith.constant 3.200000e+01 : f32
      %1150 = vector.broadcast %cst_323 : f32 to vector<4x1xf32>
      %1151 = arith.divf %1149, %1150 : vector<4x1xf32>
      %1152 = vector.broadcast %1151 : vector<4x1xf32> to vector<4x32xf32>
      %1153 = arith.subf %1143, %1152 : vector<4x32xf32>
      %1154 = arith.mulf %1153, %1153 : vector<4x32xf32>
      %cst_324 = arith.constant dense<0.000000e+00> : vector<4xf32>
      %1155 = vector.multi_reduction <add>, %1154, %cst_324 [1] : vector<4x32xf32> to vector<4xf32>
      %1156 = vector.shape_cast %1155 : vector<4xf32> to vector<4x1xf32>
      %cst_325 = arith.constant 3.200000e+01 : f32
      %1157 = vector.broadcast %cst_325 : f32 to vector<4x1xf32>
      %1158 = arith.divf %1156, %1157 : vector<4x1xf32>
      %1159 = vector.broadcast %1151 : vector<4x1xf32> to vector<4x32xf32>
      %1160 = arith.subf %1143, %1159 : vector<4x32xf32>
      %cst_326 = arith.constant 9.99999974E-6 : f32
      %1161 = vector.broadcast %cst_326 : f32 to vector<4x1xf32>
      %1162 = arith.addf %1158, %1161 : vector<4x1xf32>
      %1163 = math.rsqrt %1162 : vector<4x1xf32>
      %1164 = vector.broadcast %1163 : vector<4x1xf32> to vector<4x32xf32>
      %1165 = arith.mulf %1160, %1164 : vector<4x32xf32>
      %1166 = vector.shape_cast %1145 : vector<32xf32> to vector<1x32xf32>
      %1167 = vector.broadcast %1166 : vector<1x32xf32> to vector<4x32xf32>
      %1168 = arith.mulf %1165, %1167 : vector<4x32xf32>
      %1169 = vector.shape_cast %1147 : vector<32xf32> to vector<1x32xf32>
      %1170 = vector.broadcast %1169 : vector<1x32xf32> to vector<4x32xf32>
      %1171 = arith.addf %1168, %1170 : vector<4x32xf32>
      %c1_327 = arith.constant 1 : index
      %c0_328 = arith.constant 0 : index
      %c0_329 = arith.constant 0 : index
      %1172 = vector.load %arg9[%c1_327, %c0_328, %c0_329] : memref<2x2x32xf32, #tpu.memory_space<vmem>>, vector<1x2x32xf32>
      %1173 = vector.shape_cast %1172 : vector<1x2x32xf32> to vector<2x32xf32>
      %c1_330 = arith.constant 1 : index
      %c0_331 = arith.constant 0 : index
      %c0_332 = arith.constant 0 : index
      %1174 = vector.load %arg12[%c1_330, %c0_331, %c0_332] : memref<2x32x64xf32, #tpu.memory_space<vmem>>, vector<1x32x64xf32>
      %1175 = vector.shape_cast %1174 : vector<1x32x64xf32> to vector<32x64xf32>
      %1176 = arith.truncf %1171 : vector<4x32xf32> to vector<4x32xbf16>
      %1177 = arith.truncf %1175 : vector<32x64xf32> to vector<32x64xbf16>
      %cst_333 = arith.constant dense<0.000000e+00> : vector<4x64xf32>
      %1178 = tpu.matmul %1176, %1177, %cst_333 {dimension_numbers = #tpu.dot_dimension_numbers<[1], [0], [0], [1], [0, 0, 1, 1], [], []>} : vector<4x32xbf16>, vector<32x64xbf16>, vector<4x64xf32> -> vector<4x64xf32>
      %c1_334 = arith.constant 1 : index
      %c0_335 = arith.constant 0 : index
      %c0_336 = arith.constant 0 : index
      %1179 = vector.load %arg3[%c1_334, %c0_335, %c0_336] : memref<2x1x64xf32, #tpu.memory_space<vmem>>, vector<1x1x64xf32>
      %1180 = vector.shape_cast %1179 : vector<1x1x64xf32> to vector<1x64xf32>
      %1181 = vector.broadcast %1180 : vector<1x64xf32> to vector<4x64xf32>
      %1182 = arith.addf %1178, %1181 : vector<4x64xf32>
      %cst_337 = arith.constant 0.000000e+00 : f32
      %1183 = vector.broadcast %cst_337 : f32 to vector<4x64xf32>
      %1184 = arith.maximumf %1182, %1183 : vector<4x64xf32>
      %c1_338 = arith.constant 1 : index
      %c0_339 = arith.constant 0 : index
      %c0_340 = arith.constant 0 : index
      %1185 = vector.load %arg13[%c1_338, %c0_339, %c0_340] : memref<2x64x32xf32, #tpu.memory_space<vmem>>, vector<1x64x32xf32>
      %1186 = vector.shape_cast %1185 : vector<1x64x32xf32> to vector<64x32xf32>
      %1187 = arith.truncf %1184 : vector<4x64xf32> to vector<4x64xbf16>
      %1188 = arith.truncf %1186 : vector<64x32xf32> to vector<64x32xbf16>
      %cst_341 = arith.constant dense<0.000000e+00> : vector<4x32xf32>
      %1189 = tpu.matmul %1187, %1188, %cst_341 {dimension_numbers = #tpu.dot_dimension_numbers<[1], [0], [0], [1], [0, 0, 1, 1], [], []>} : vector<4x64xbf16>, vector<64x32xbf16>, vector<4x32xf32> -> vector<4x32xf32>
      %c1_342 = arith.constant 1 : index
      %c0_343 = arith.constant 0 : index
      %c0_344 = arith.constant 0 : index
      %1190 = vector.load %arg4[%c1_342, %c0_343, %c0_344] : memref<2x1x32xf32, #tpu.memory_space<vmem>>, vector<1x1x32xf32>
      %1191 = vector.shape_cast %1190 : vector<1x1x32xf32> to vector<1x32xf32>
      %1192 = vector.broadcast %1191 : vector<1x32xf32> to vector<4x32xf32>
      %1193 = arith.addf %1189, %1192 : vector<4x32xf32>
      %1194 = arith.addf %1171, %1193 : vector<4x32xf32>
      %1195 = vector.extract_strided_slice %1173 {offsets = [0, 0], sizes = [1, 32], strides = [1, 1]} : vector<2x32xf32> to vector<1x32xf32>
      %1196 = vector.shape_cast %1195 : vector<1x32xf32> to vector<32xf32>
      %1197 = vector.extract_strided_slice %1173 {offsets = [1, 0], sizes = [1, 32], strides = [1, 1]} : vector<2x32xf32> to vector<1x32xf32>
      %1198 = vector.shape_cast %1197 : vector<1x32xf32> to vector<32xf32>
      %cst_345 = arith.constant dense<0.000000e+00> : vector<4xf32>
      %1199 = vector.multi_reduction <add>, %1194, %cst_345 [1] : vector<4x32xf32> to vector<4xf32>
      %1200 = vector.shape_cast %1199 : vector<4xf32> to vector<4x1xf32>
      %cst_346 = arith.constant 3.200000e+01 : f32
      %1201 = vector.broadcast %cst_346 : f32 to vector<4x1xf32>
      %1202 = arith.divf %1200, %1201 : vector<4x1xf32>
      %1203 = vector.broadcast %1202 : vector<4x1xf32> to vector<4x32xf32>
      %1204 = arith.subf %1194, %1203 : vector<4x32xf32>
      %1205 = arith.mulf %1204, %1204 : vector<4x32xf32>
      %cst_347 = arith.constant dense<0.000000e+00> : vector<4xf32>
      %1206 = vector.multi_reduction <add>, %1205, %cst_347 [1] : vector<4x32xf32> to vector<4xf32>
      %1207 = vector.shape_cast %1206 : vector<4xf32> to vector<4x1xf32>
      %cst_348 = arith.constant 3.200000e+01 : f32
      %1208 = vector.broadcast %cst_348 : f32 to vector<4x1xf32>
      %1209 = arith.divf %1207, %1208 : vector<4x1xf32>
      %1210 = vector.broadcast %1202 : vector<4x1xf32> to vector<4x32xf32>
      %1211 = arith.subf %1194, %1210 : vector<4x32xf32>
      %cst_349 = arith.constant 9.99999974E-6 : f32
      %1212 = vector.broadcast %cst_349 : f32 to vector<4x1xf32>
      %1213 = arith.addf %1209, %1212 : vector<4x1xf32>
      %1214 = math.rsqrt %1213 : vector<4x1xf32>
      %1215 = vector.broadcast %1214 : vector<4x1xf32> to vector<4x32xf32>
      %1216 = arith.mulf %1211, %1215 : vector<4x32xf32>
      %1217 = vector.shape_cast %1196 : vector<32xf32> to vector<1x32xf32>
      %1218 = vector.broadcast %1217 : vector<1x32xf32> to vector<4x32xf32>
      %1219 = arith.mulf %1216, %1218 : vector<4x32xf32>
      %1220 = vector.shape_cast %1198 : vector<32xf32> to vector<1x32xf32>
      %1221 = vector.broadcast %1220 : vector<1x32xf32> to vector<4x32xf32>
      %1222 = arith.addf %1219, %1221 : vector<4x32xf32>
      %c0_350 = arith.constant 0 : index
      %c0_351 = arith.constant 0 : index
      %1223 = vector.load %arg14[%c0_350, %c0_351] : memref<2x32xf32, #tpu.memory_space<vmem>>, vector<2x32xf32>
      %1224 = vector.extract_strided_slice %1223 {offsets = [0, 0], sizes = [1, 32], strides = [1, 1]} : vector<2x32xf32> to vector<1x32xf32>
      %1225 = vector.shape_cast %1224 : vector<1x32xf32> to vector<32xf32>
      %1226 = vector.extract_strided_slice %1223 {offsets = [1, 0], sizes = [1, 32], strides = [1, 1]} : vector<2x32xf32> to vector<1x32xf32>
      %1227 = vector.shape_cast %1226 : vector<1x32xf32> to vector<32xf32>
      %cst_352 = arith.constant dense<0.000000e+00> : vector<4xf32>
      %1228 = vector.multi_reduction <add>, %1222, %cst_352 [1] : vector<4x32xf32> to vector<4xf32>
      %1229 = vector.shape_cast %1228 : vector<4xf32> to vector<4x1xf32>
      %cst_353 = arith.constant 3.200000e+01 : f32
      %1230 = vector.broadcast %cst_353 : f32 to vector<4x1xf32>
      %1231 = arith.divf %1229, %1230 : vector<4x1xf32>
      %1232 = vector.broadcast %1231 : vector<4x1xf32> to vector<4x32xf32>
      %1233 = arith.subf %1222, %1232 : vector<4x32xf32>
      %1234 = arith.mulf %1233, %1233 : vector<4x32xf32>
      %cst_354 = arith.constant dense<0.000000e+00> : vector<4xf32>
      %1235 = vector.multi_reduction <add>, %1234, %cst_354 [1] : vector<4x32xf32> to vector<4xf32>
      %1236 = vector.shape_cast %1235 : vector<4xf32> to vector<4x1xf32>
      %cst_355 = arith.constant 3.200000e+01 : f32
      %1237 = vector.broadcast %cst_355 : f32 to vector<4x1xf32>
      %1238 = arith.divf %1236, %1237 : vector<4x1xf32>
      %1239 = vector.broadcast %1231 : vector<4x1xf32> to vector<4x32xf32>
      %1240 = arith.subf %1222, %1239 : vector<4x32xf32>
      %cst_356 = arith.constant 9.99999974E-6 : f32
      %1241 = vector.broadcast %cst_356 : f32 to vector<4x1xf32>
      %1242 = arith.addf %1238, %1241 : vector<4x1xf32>
      %1243 = math.rsqrt %1242 : vector<4x1xf32>
      %1244 = vector.broadcast %1243 : vector<4x1xf32> to vector<4x32xf32>
      %1245 = arith.mulf %1240, %1244 : vector<4x32xf32>
      %1246 = vector.shape_cast %1225 : vector<32xf32> to vector<1x32xf32>
      %1247 = vector.broadcast %1246 : vector<1x32xf32> to vector<4x32xf32>
      %1248 = arith.mulf %1245, %1247 : vector<4x32xf32>
      %1249 = vector.shape_cast %1227 : vector<32xf32> to vector<1x32xf32>
      %1250 = vector.broadcast %1249 : vector<1x32xf32> to vector<4x32xf32>
      %1251 = arith.addf %1248, %1250 : vector<4x32xf32>
      %cst_357 = arith.constant dense<0xFF800000> : vector<4xf32>
      %1252 = vector.multi_reduction <maximumf>, %1251, %cst_357 [1] : vector<4x32xf32> to vector<4xf32>
      %1253 = vector.shape_cast %1252 : vector<4xf32> to vector<4x1xf32>
      %1254 = vector.broadcast %1253 : vector<4x1xf32> to vector<4x32xf32>
      %1255 = arith.subf %1251, %1254 : vector<4x32xf32>
      %1256 = math.exp %1255 : vector<4x32xf32>
      %cst_358 = arith.constant dense<0.000000e+00> : vector<4xf32>
      %1257 = vector.multi_reduction <add>, %1256, %cst_358 [1] : vector<4x32xf32> to vector<4xf32>
      %1258 = vector.shape_cast %1257 : vector<4xf32> to vector<4x1xf32>
      %1259 = math.log %1258 : vector<4x1xf32>
      %1260 = vector.broadcast %1259 : vector<4x1xf32> to vector<4x32xf32>
      %1261 = arith.subf %1255, %1260 : vector<4x32xf32>
      %c0_359 = arith.constant 0 : index
      %c0_360 = arith.constant 0 : index
      %c0_361 = arith.constant 0 : index
      %1262 = vector.load %arg26[%c0_359, %c0_360, %c0_361] : memref<1x4x32xf32, #tpu.memory_space<vmem>>, vector<1x4x32xf32>
      %1263 = vector.shape_cast %1262 : vector<1x4x32xf32> to vector<4x32xf32>
      %1264 = vector.shape_cast %1261 : vector<4x32xf32> to vector<1x4x32xf32>
      tpu.vector_store %arg26[%c0_359, %c0_360, %c0_361], %1264 {strides = array<i32>} : memref<1x4x32xf32, #tpu.memory_space<vmem>>, vector<1x4x32xf32>,
    } else {
    }
    return
  }
  func.func @transform_0(%arg0: i32, %arg1: i32) -> (i32, i32, i32, i32) {
    %c0_i32 = arith.constant 0 : i32
    %c0_i32_0 = arith.constant 0 : i32
    %c0_i32_1 = arith.constant 0 : i32
    return %arg0, %arg1, %c0_i32, %c0_i32_0 : i32, i32, i32, i32
  }
  func.func @transform_1(%arg0: i32, %arg1: i32) -> (i32, i32, i32) {
    %c0_i32 = arith.constant 0 : i32
    %c0_i32_0 = arith.constant 0 : i32
    %c0_i32_1 = arith.constant 0 : i32
    %c0_i32_2 = arith.constant 0 : i32
    return %c0_i32, %c0_i32_0, %c0_i32_1 : i32, i32, i32
  }
  func.func @transform_2(%arg0: i32, %arg1: i32) -> (i32, i32, i32) {
    %c0_i32 = arith.constant 0 : i32
    %c0_i32_0 = arith.constant 0 : i32
    %c0_i32_1 = arith.constant 0 : i32
    %c0_i32_2 = arith.constant 0 : i32
    return %c0_i32, %c0_i32_0, %c0_i32_1 : i32, i32, i32
  }
  func.func @transform_3(%arg0: i32, %arg1: i32) -> (i32, i32, i32) {
    %c0_i32 = arith.constant 0 : i32
    %c0_i32_0 = arith.constant 0 : i32
    %c0_i32_1 = arith.constant 0 : i32
    %c0_i32_2 = arith.constant 0 : i32
    return %c0_i32, %c0_i32_0, %c0_i32_1 : i32, i32, i32
  }
  func.func @transform_4(%arg0: i32, %arg1: i32) -> (i32, i32, i32, i32) {
    %c0_i32 = arith.constant 0 : i32
    %c0_i32_0 = arith.constant 0 : i32
    %c0_i32_1 = arith.constant 0 : i32
    %c0_i32_2 = arith.constant 0 : i32
    %c0_i32_3 = arith.constant 0 : i32
    return %c0_i32, %c0_i32_0, %c0_i32_1, %c0_i32_2 : i32, i32, i32, i32
  }
  func.func @transform_5(%arg0: i32, %arg1: i32) -> (i32, i32, i32) {
    %c0_i32 = arith.constant 0 : i32
    %c0_i32_0 = arith.constant 0 : i32
    %c0_i32_1 = arith.constant 0 : i32
    %c0_i32_2 = arith.constant 0 : i32
    return %c0_i32, %c0_i32_0, %c0_i32_1 : i32, i32, i32
  }
  func.func @transform_6(%arg0: i32, %arg1: i32) -> (i32, i32, i32) {
    %c0_i32 = arith.constant 0 : i32
    %c0_i32_0 = arith.constant 0 : i32
    %c0_i32_1 = arith.constant 0 : i32
    %c0_i32_2 = arith.constant 0 : i32
    return %c0_i32, %c0_i32_0, %c0_i32_1 : i32, i32, i32
  }
  func.func @transform_7(%arg0: i32, %arg1: i32) -> (i32, i32, i32) {
    %c0_i32 = arith.constant 0 : i32
    %c0_i32_0 = arith.constant 0 : i32
    %c0_i32_1 = arith.constant 0 : i32
    %c0_i32_2 = arith.constant 0 : i32
    return %c0_i32, %c0_i32_0, %c0_i32_1 : i32, i32, i32
  }
  func.func @transform_8(%arg0: i32, %arg1: i32) -> (i32, i32, i32) {
    %c0_i32 = arith.constant 0 : i32
    %c0_i32_0 = arith.constant 0 : i32
    %c0_i32_1 = arith.constant 0 : i32
    %c0_i32_2 = arith.constant 0 : i32
    return %c0_i32, %c0_i32_0, %c0_i32_1 : i32, i32, i32
  }
  func.func @transform_9(%arg0: i32, %arg1: i32) -> (i32, i32, i32, i32) {
    %c0_i32 = arith.constant 0 : i32
    %c0_i32_0 = arith.constant 0 : i32
    %c0_i32_1 = arith.constant 0 : i32
    %c0_i32_2 = arith.constant 0 : i32
    %c0_i32_3 = arith.constant 0 : i32
    return %c0_i32, %c0_i32_0, %c0_i32_1, %c0_i32_2 : i32, i32, i32, i32
  }
  func.func @transform_10(%arg0: i32, %arg1: i32) -> (i32, i32, i32) {
    %c0_i32 = arith.constant 0 : i32
    %c0_i32_0 = arith.constant 0 : i32
    %c0_i32_1 = arith.constant 0 : i32
    %c0_i32_2 = arith.constant 0 : i32
    return %c0_i32, %c0_i32_0, %c0_i32_1 : i32, i32, i32
  }
  func.func @transform_11(%arg0: i32, %arg1: i32) -> (i32, i32, i32) {
    %c0_i32 = arith.constant 0 : i32
    %c0_i32_0 = arith.constant 0 : i32
    %c0_i32_1 = arith.constant 0 : i32
    %c0_i32_2 = arith.constant 0 : i32
    return %c0_i32, %c0_i32_0, %c0_i32_1 : i32, i32, i32
  }
  func.func @transform_12(%arg0: i32, %arg1: i32) -> (i32, i32) {
    %c0_i32 = arith.constant 0 : i32
    %c0_i32_0 = arith.constant 0 : i32
    %c0_i32_1 = arith.constant 0 : i32
    return %c0_i32, %c0_i32_0 : i32, i32
  }
  func.func @transform_13(%arg0: i32, %arg1: i32) -> (i32, i32, i32) {
    %c0_i32 = arith.constant 0 : i32
    %c0_i32_0 = arith.constant 0 : i32
    %c0_i32_1 = arith.constant 0 : i32
    %c0_i32_2 = arith.constant 0 : i32
    return %c0_i32, %c0_i32_0, %c0_i32_1 : i32, i32, i32
  }
  func.func @transform_14(%arg0: i32, %arg1: i32) -> (i32, i32, i32, i32) {
    %c0_i32 = arith.constant 0 : i32
    %c0_i32_0 = arith.constant 0 : i32
    %c0_i32_1 = arith.constant 0 : i32
    %c0_i32_2 = arith.constant 0 : i32
    %c0_i32_3 = arith.constant 0 : i32
    return %c0_i32, %c0_i32_0, %c0_i32_1, %c0_i32_2 : i32, i32, i32, i32
  }
  func.func @transform_15(%arg0: i32, %arg1: i32) -> (i32, i32, i32) {
    %c0_i32 = arith.constant 0 : i32
    %c0_i32_0 = arith.constant 0 : i32
    %c0_i32_1 = arith.constant 0 : i32
    %c0_i32_2 = arith.constant 0 : i32
    return %c0_i32, %c0_i32_0, %c0_i32_1 : i32, i32, i32
  }
  func.func @transform_16(%arg0: i32, %arg1: i32) -> (i32, i32, i32) {
    %c0_i32 = arith.constant 0 : i32
    %c0_i32_0 = arith.constant 0 : i32
    %c0_i32_1 = arith.constant 0 : i32
    %c0_i32_2 = arith.constant 0 : i32
    return %c0_i32, %c0_i32_0, %c0_i32_1 : i32, i32, i32
  }
  func.func @transform_17(%arg0: i32, %arg1: i32) -> (i32, i32, i32) {
    %c0_i32 = arith.constant 0 : i32
    %c0_i32_0 = arith.constant 0 : i32
    %c0_i32_1 = arith.constant 0 : i32
    %c0_i32_2 = arith.constant 0 : i32
    return %c0_i32, %c0_i32_0, %c0_i32_1 : i32, i32, i32
  }
  func.func @transform_18(%arg0: i32, %arg1: i32) -> (i32, i32, i32) {
    %c0_i32 = arith.constant 0 : i32
    %c0_i32_0 = arith.constant 0 : i32
    %c0_i32_1 = arith.constant 0 : i32
    %c0_i32_2 = arith.constant 0 : i32
    return %c0_i32, %c0_i32_0, %c0_i32_1 : i32, i32, i32
  }
  func.func @transform_19(%arg0: i32, %arg1: i32) -> (i32, i32, i32) {
    %c0_i32 = arith.constant 0 : i32
    %c0_i32_0 = arith.constant 0 : i32
    %c0_i32_1 = arith.constant 0 : i32
    %c0_i32_2 = arith.constant 0 : i32
    return %c0_i32, %c0_i32_0, %c0_i32_1 : i32, i32, i32
  }
  func.func @transform_20(%arg0: i32, %arg1: i32) -> (i32, i32, i32) {
    %c0_i32 = arith.constant 0 : i32
    %c0_i32_0 = arith.constant 0 : i32
    %c0_i32_1 = arith.constant 0 : i32
    %c0_i32_2 = arith.constant 0 : i32
    return %c0_i32, %c0_i32_0, %c0_i32_1 : i32, i32, i32
  }
  func.func @transform_21(%arg0: i32, %arg1: i32) -> (i32, i32) {
    %c0_i32 = arith.constant 0 : i32
    %c0_i32_0 = arith.constant 0 : i32
    %c0_i32_1 = arith.constant 0 : i32
    return %c0_i32, %c0_i32_0 : i32, i32
  }
  func.func @transform_22(%arg0: i32, %arg1: i32) -> (i32, i32) {
    %c0_i32 = arith.constant 0 : i32
    %c0_i32_0 = arith.constant 0 : i32
    %c0_i32_1 = arith.constant 0 : i32
    return %c0_i32, %c0_i32_0 : i32, i32
  }
  func.func @transform_23(%arg0: i32, %arg1: i32) -> (i32, i32) {
    %c0_i32 = arith.constant 0 : i32
    %c0_i32_0 = arith.constant 0 : i32
    %c0_i32_1 = arith.constant 0 : i32
    return %c0_i32, %c0_i32_0 : i32, i32
  }
  func.func @transform_24(%arg0: i32, %arg1: i32) -> (i32, i32, i32) {
    %c0_i32 = arith.constant 0 : i32
    %c0_i32_0 = arith.constant 0 : i32
    %c0_i32_1 = arith.constant 0 : i32
    return %arg0, %c0_i32, %c0_i32_0 : i32, i32, i32
  }
}

</mosaic_0001>

<bundles_post_ra>
// kernel: inception_transformer_forward.1
= control target key start
LH: loop header
LB: loop body
LE: loop exit
PB: predicated region body
PF: predicated region fallthrough
CT: control target
= control target key end

     0   :  { %s11421_s0 = inlined_call_operand.vmem [shape: bf16[2,4,64,2048], index: 0, kind: input, shape index: {}]   ;;  %s11422_s1 = inlined_call_operand.vmem [shape: f32[2,1,64], index: 1, kind: input, shape index: {}]   ;;  %s11423_s2 = inlined_call_operand.vmem [shape: f32[2,1,32], index: 2, kind: input, shape index: {}]   ;;  %s11424_s3 = inlined_call_operand.vmem [shape: f32[2,4,32], index: 3, kind: input, shape index: {}]   ;;  %s11425_s4 = inlined_call_operand.vmem [shape: f32[2,4,32,32], index: 4, kind: input, shape index: {}]   ;;  %s11426_s5 = inlined_call_operand.vmem [shape: f32[2,2,32], index: 5, kind: input, shape index: {}]   ;;  %s11427_s6 = inlined_call_operand.vmem [shape: f32[2,2,32], index: 6, kind: input, shape index: {}]   ;;  %s11428_s7 = inlined_call_operand.vmem [shape: f32[2,2,32], index: 7, kind: input, shape index: {}]   ;;  %s11429_s8 = inlined_call_operand.vmem [shape: f32[2,4,32], index: 8, kind: input, shape index: {}]   ;;  %s11430_s9 = inlined_call_operand.vmem [shape: f32[2,4,32,32], index: 9, kind: input, shape index: {}]   ;;  %s11431_s10 = inlined_call_operand.vmem [shape: f32[2,32,64], index: 10, kind: input, shape index: {}]   ;;  %s11432_s11 = inlined_call_operand.vmem [shape: f32[2,64,32], index: 11, kind: input, shape index: {}]   ;;  %s11433_s12 = inlined_call_operand.vmem [shape: f32[2,32], index: 12, kind: input, shape index: {}]   ;;  %s11434_s13 = inlined_call_operand.vmem [shape: f32[2,4,32], index: 13, kind: input, shape index: {}]   ;;  %s11435_s14 = inlined_call_operand.vmem [shape: f32[2,4,32,32], index: 14, kind: input, shape index: {}]   ;;  %s11436_s15 = inlined_call_operand.vmem [shape: f32[2,1,64], index: 15, kind: input, shape index: {}]   ;;  %s11437_s16 = inlined_call_operand.vmem [shape: f32[2,1,32], index: 16, kind: input, shape index: {}]   ;;  %s11438_s17 = inlined_call_operand.vmem [shape: f32[2,2,32], index: 17, kind: input, shape index: {}]   ;;  %s11439_s18 = inlined_call_operand.vmem [shape: f32[2,2,32], index: 18, kind: input, shape index: {}]   ;;  %s11440_s19 = inlined_call_operand.vmem [shape: f32[2,32,64], index: 19, kind: input, shape index: {}]   ;;  %s11441_s20 = inlined_call_operand.vmem [shape: f32[2,64,32], index: 20, kind: input, shape index: {}]   ;;  %s11442_s21 = inlined_call_operand.vmem [shape: f32[2,32], index: 21, kind: input, shape index: {}]   ;;  %s11443_s22 = inlined_call_operand.vmem [shape: f32[1,32], index: 22, kind: input, shape index: {}]   ;;  %s11444_s23 = inlined_call_operand.vmem [shape: f32[2048,32], index: 23, kind: input, shape index: {}]   ;;  %s11445_s24 = inlined_call_operand.hbm [shape: f32[2,4,32], index: 24, kind: output, shape index: {}]  }
   0x1   :  { %11476 = sst [smem:[#allocation15_spill]] %s11421_s0 }
   0x2   :  { %11477 = sst [smem:[#allocation16_spill]] %s11422_s1 }
   0x3   :  { %11478 = sst [smem:[#allocation17_spill]] %s11423_s2 }
   0x4   :  { %11479 = sst [smem:[#allocation18_spill]] %s11424_s3 }
   0x5   :  { %11480 = sst [smem:[#allocation19_spill]] %s11425_s4 }
   0x6   :  { %11481 = sst [smem:[#allocation20_spill]] %s11426_s5 }
   0x7   :  { %11482 = sst [smem:[#allocation21_spill]] %s11427_s6 }
   0x8   :  { %11483 = sst [smem:[#allocation22_spill]] %s11428_s7 }
   0x9   :  { %11484 = sst [smem:[#allocation23_spill]] %s11429_s8 }
   0xa   :  { %11485 = sst [smem:[#allocation24_spill]] %s11434_s13 }
   0xb   :  { %11486 = sst [smem:[#allocation25_spill]] %s11435_s14 }
   0xc   :  { %11487 = sst [smem:[#allocation26_spill]] %s11436_s15 }
   0xd   :  { %11488 = sst [smem:[#allocation27_spill]] %s11437_s16 }
   0xe   :  { %11489 = sst [smem:[#allocation28_spill]] %s11438_s17 }
   0xf   :  { %11490 = sst [smem:[#allocation29_spill]] %s11439_s18 }
  0x10   :  { %11491 = sst [smem:[#allocation30_spill]] %s11440_s19 }
  0x11   :  { %11492 = sst [smem:[#allocation31_spill]] %s11441_s20 }
  0x12   :  { %11493 = sst [smem:[#allocation32_spill]] %s11442_s21 }
  0x13   :  { %11494 = sst [smem:[#allocation33_spill]] %s11443_s22 }
  0x14   :  { %11495 = sst [smem:[#allocation34_spill]] %s11444_s23 }
  0x15   :  { %11496 = sst [smem:[#allocation35_spill]] %s11445_s24 }
  0x16   :  { %29 = vsyncpa [#allocation4], 0 }
  0x17   :  { %31 = vsyncpa [#allocation4 + $0x1], 0  ;;  %s9004_s5 = smov 0   ;;  %s9006_s26 = smov 0  }
  0x18   :  { %s9008_s27 = smov 0   ;;  %s9010_s28 = smov 0  }
  0x19   :  { %s9012_s6 = smov 0   ;;  %s9014_s2 = smov 0  }
  0x1a   :  { %s9016_s29 = smov 0   ;;  %s9018_s0 = smov 0  }
  0x1b LB: > { %11497 = sst [smem:[#allocation6_spill]] %s8837_s5  ;;  %s7353_s7 = sadd.s32 4294967295, %s8865_s0   ;;  %s8865_s0 = sphi %s9018_s0, %s37_s0   ;;  %s8861_s29 = sphi %s9016_s29, %s11556_s29   ;;  %s8857_s2 = sphi %s9014_s2, %s11551_s2   ;;  %s8853_s6 = sphi %s9012_s6, %s11550_s6   ;;  %s8849_s28 = sphi %s9010_s28, %s11549_s28   ;;  %s8845_s27 = sphi %s9008_s27, %s11555_s27   ;;  %s8841_s26 = sphi %s9006_s26, %s11554_s26   ;;  %s8837_s5 = sphi %s9004_s5, %s11553_s5  }
  0x1c   : > { %11498 = sst [smem:[#allocation7_spill]] %s8845_s27  ;;  %s7354_s30 = sadd.s32 4294967294, %s8865_s0  }
  0x1d   : > { %11499 = sst [smem:[#allocation8_spill]] %s8857_s2  ;;  %s46_s3 = sadd.s32 1, %s8857_s2 }
  0x1e   : > { %11500 = sst [smem:[#allocation9_spill]] %s8861_s29  ;;  %p47_p0 = scmp.ge.s32.totalorder %s46_s3, 4 }
  0x1f   : > { %11501 = sst [smem:[#allocation10_spill]] %s8865_s0  ;;  %s49_s25 = sadd.s32 1, %s8861_s29 }
  0x20   : > { %p577_p1 = scmp.ne.s32.totalorder %s8845_s27, %s8841_s26  ;;  %p578_p2 = scmp.eq.s32.totalorder %s7353_s7, 7 }
  0x21   : > { %s11558_s3 = smov (%p47_p0, %s46_s3), 0  ;;  %s11560_s25 = smov (!%p47_p0, %s49_s25), %s8861_s29 }
  0x22   : > { %11502 = sst [smem:[#allocation11_spill]] %s11558_s3  ;;  %p9053_p3 = por %p578_p2, %p577_p1 }
  0x23   : > { %p583_p4 = scmp.ne.s32.totalorder %s8841_s26, %s8837_s5  ;;  %p51_p5 = scmp.ge.s32.totalorder %s11560_s25, 2 }
  0x24   : > { %p584_p6 = scmp.eq.s32.totalorder %s7354_s30, 7  ;;  %p7357_p7 = scmp.ge.s32.totalorder %s8865_s0, 1 }
  0x25   : > { %p683_p8 = scmp.lt.s32.totalorder %s8865_s0, 9  ;;  %s11562_s25 = smov (%p51_p5, %s11560_s25), 0 }
  0x26   : > { %11504 = sst [smem:[#allocation12_spill]] %s11562_s25  ;;  %p9063_p9 = por %p584_p6, %p583_p4 }
  0x27   : > { %p684_p10 = pnand %p7357_p7, %p683_p8  ;;  %s564_s1 = ssub.s32 %s8861_s29, %s11562_s25 }
  0x28   : > { %s11505_s4 = scalar_select %p9063_p9, 1, 0 }
  0x29   : > { %s567_s7 = sadd.s32 1, %s8845_s27  ;;  %p565_p11 = scmp.eq.s32.totalorder %s564_s1, 0  ;;  %v8867_v0 = vmov (!%p684_p10), 0   ;;  %vm1148_vm0 = vcmask (!%p684_p10), 523264   ;;  %v8868_v49 = vmov (!%p684_p10), 1065369472  }
  0x2a   : > { %11506 = sst [smem:[#allocation13_spill]] %s11505_s4  ;;  %687 = sbr.rel (%p684_p10) target bundleno = 14122 (0x372a), region = 116  ;;  %1184 = vmatprep.mubr.bf16.mxu0 (!%p684_p10), %v8867_v0  ;;  %1225 = vmatprep.mubr.bf16.mxu1 (!%p684_p10), %v8867_v0 }
  0x2b   : > { %s9071_s3 = scalar_select %p565_p11, %s8845_s27, %s567_s7  }
  0x2c   : > { %s11463_s30 = sand.u32 (!%p684_p10), 1, %s8841_s26   ;;  %p753_p12 = scmp.lt.s32.totalorder (!%p684_p10), %s8853_s6, 1 }
  0x2d   : > { %11507 = sst [smem:[#allocation14_spill]] %s9071_s3  ;;  %s9077_s2 = sshll.u32 (!%p684_p10), %s11463_s30, 2 }
  0x2e   : > { %p755_p13 = scmp.lt.s32.totalorder (!%p684_p10), %s8849_s28, 3  ;;  %s11508_s0 = sld [smem:[#allocation15_spill]] (!%p684_p10) }
  0x2f   : > { %p7434_p0 = scmp.ne.s32.totalorder (!%p684_p10), %s8849_s28, 0 }
  0x31   : > { %s754_s1 = scalar_select %p753_p12, %s8853_s6, 1 }
  0x32   : > { %s756_s7 = scalar_select %p755_p13, %s8849_s28, 3 }
  0x33   : > { %s7360_s25 = sshll.u32 %s754_s1, 9 }
  0x34   : > { %s7359_s29 = sshll.u32 %s756_s7, 7 }
  0x35   : > { %s759_s3 = sadd.s32 %s7360_s25, %s7359_s29 }
  0x36   : > { %s7361_s27 = sshll.u32 %s759_s3, 2 }
  0x37   : > { %s9087_s24 = scalar_lea.vmem %s11508_s0, %s7361_s27 }
  0x38   : > { %v764_v1 = vld [vmem:[%s9087_s24] sm:$0xff]  ;;  %v765_v3 = vld [vmem:[%s9087_s24 + $0x8] sm:$0xff]  ;;  %v766_v31 = vld [vmem:[%s9087_s24 + $0x10] sm:$0xff] }
  0x39   : > { %v772_v2 = vld [vmem:[%s9087_s24 + $0x40] sm:$0xff]  ;;  %v773_v5 = vld [vmem:[%s9087_s24 + $0x48] sm:$0xff]  ;;  %v774_v32 = vld [vmem:[%s9087_s24 + $0x50] sm:$0xff] }
  0x3a   : > { %v7363_v4 = vcombine.high %v764_v1, %v772_v2  ;;  %v7362_v6 = vcombine.low %v764_v1, %v772_v2  ;;  %v780_v7 = vld [vmem:[%s9087_s24 + $0x80] sm:$0xff]  ;;  %v7365_v9 = vcombine.high %v765_v3, %v773_v5  ;;  %v7364_v10 = vcombine.low %v765_v3, %v773_v5  ;;  %v781_v12 = vld [vmem:[%s9087_s24 + $0x88] sm:$0xff]  ;;  %v767_v33 = vld [vmem:[%s9087_s24 + $0x18] sm:$0xff] }
  0x3b   : > { %v788_v8 = vld [vmem:[%s9087_s24 + $0xc0] sm:$0xff]  ;;  %v789_v13 = vld [vmem:[%s9087_s24 + $0xc8] sm:$0xff]  ;;  %v775_v34 = vld [vmem:[%s9087_s24 + $0x58] sm:$0xff]  ;;  %v7367_v37 = vcombine.high %v766_v31, %v774_v32  ;;  %v7366_v43 = vcombine.low %v766_v31, %v774_v32 }
  0x3c   : > { %v7379_v11 = vcombine.high %v780_v7, %v788_v8  ;;  %v796_v14 = vld [vmem:[%s9087_s24 + $0x100] sm:$0xff]  ;;  %1152 = vmatprep.subr.bf16.mxu0 %v7363_v4  ;;  %v7381_v15 = vcombine.high %v781_v12, %v789_v13  ;;  %v797_v17 = vld [vmem:[%s9087_s24 + $0x108] sm:$0xff]  ;;  %1193 = vmatprep.subr.bf16.mxu1 %v7365_v9  ;;  %v7378_v19 = vcombine.low %v780_v7, %v788_v8  ;;  %v782_v39 = vld [vmem:[%s9087_s24 + $0x90] sm:$0xff] }
  0x3d   : > { %v804_v16 = vld [vmem:[%s9087_s24 + $0x140] sm:$0xff]  ;;  %v805_v18 = vld [vmem:[%s9087_s24 + $0x148] sm:$0xff]  ;;  %1153 = vmatpush1.bf16.msra.mxu0 %v7362_v6  ;;  %1194 = vmatpush1.bf16.msra.mxu1 %v7364_v10  ;;  %v7380_v20 = vcombine.low %v781_v12, %v789_v13  ;;  %v7369_v38 = vcombine.high %v767_v33, %v775_v34  ;;  %v790_v40 = vld [vmem:[%s9087_s24 + $0xd0] sm:$0xff]  ;;  %v7368_v44 = vcombine.low %v767_v33, %v775_v34 }
  0x3e   : > { %1154 = vmatprep.subr.bf16.mxu0 %v7379_v11  ;;  %v7395_v21 = vcombine.high %v796_v14, %v804_v16  ;;  %1195 = vmatprep.subr.bf16.mxu1 %v7381_v15  ;;  %v7397_v22 = vcombine.high %v797_v17, %v805_v18  ;;  %v812_v23 = vld [vmem:[%s9087_s24 + $0x180] sm:$0xff]  ;;  %v813_v25 = vld [vmem:[%s9087_s24 + $0x188] sm:$0xff]  ;;  %v7394_v27 = vcombine.low %v796_v14, %v804_v16  ;;  %v783_v41 = vld [vmem:[%s9087_s24 + $0x98] sm:$0xff] }
  0x3f   : > { %v820_v24 = vld [vmem:[%s9087_s24 + $0x1c0] sm:$0xff]  ;;  %v821_v26 = vld [vmem:[%s9087_s24 + $0x1c8] sm:$0xff]  ;;  %v7396_v28 = vcombine.low %v797_v17, %v805_v18  ;;  %v791_v42 = vld [vmem:[%s9087_s24 + $0xd8] sm:$0xff]  ;;  %v7383_v45 = vcombine.high %v782_v39, %v790_v40  ;;  %v7382_v52 = vcombine.low %v782_v39, %v790_v40 }
  0x40   : > { %v7411_v29 = vcombine.high %v812_v23, %v820_v24  ;;  %v7413_v30 = vcombine.high %v813_v25, %v821_v26  ;;  %v7410_v35 = vcombine.low %v812_v23, %v820_v24  ;;  %v7412_v36 = vcombine.low %v813_v25, %v821_v26  ;;  %v798_v47 = vld [vmem:[%s9087_s24 + $0x110] sm:$0xff]  ;;  %v799_v50 = vld [vmem:[%s9087_s24 + $0x118] sm:$0xff]  ;;  %v768_v1 = vld [vmem:[%s9087_s24 + $0x20] sm:$0xff] }
  0x41   : > { %1155 = vmatpush1.bf16.msra.mxu0 %v7378_v19  ;;  %1196 = vmatpush1.bf16.msra.mxu1 %v7380_v20  ;;  %v7385_v46 = vcombine.high %v783_v41, %v791_v42  ;;  %v806_v48 = vld [vmem:[%s9087_s24 + $0x150] sm:$0xff]  ;;  %v807_v51 = vld [vmem:[%s9087_s24 + $0x158] sm:$0xff]  ;;  %v7384_v53 = vcombine.low %v783_v41, %v791_v42  ;;  %v776_v2 = vld [vmem:[%s9087_s24 + $0x60] sm:$0xff] }
  0x42   : > { %1156 = vmatprep.subr.bf16.mxu0 %v7395_v21  ;;  %1197 = vmatprep.subr.bf16.mxu1 %v7397_v22  ;;  %v7399_v54 = vcombine.high %v798_v47, %v806_v48  ;;  %v7401_v55 = vcombine.high %v799_v50, %v807_v51  ;;  %v814_v56 = vld [vmem:[%s9087_s24 + $0x190] sm:$0xff]  ;;  %v815_v58 = vld [vmem:[%s9087_s24 + $0x198] sm:$0xff]  ;;  %v7398_v60 = vcombine.low %v798_v47, %v806_v48  ;;  %v769_v3 = vld [vmem:[%s9087_s24 + $0x28] sm:$0xff] }
  0x43   : > { %v822_v57 = vld [vmem:[%s9087_s24 + $0x1d0] sm:$0xff]  ;;  %v823_v59 = vld [vmem:[%s9087_s24 + $0x1d8] sm:$0xff]  ;;  %v7400_v61 = vcombine.low %v799_v50, %v807_v51  ;;  %v777_v4 = vld [vmem:[%s9087_s24 + $0x68] sm:$0xff]  ;;  %v7371_v7 = vcombine.high %v768_v1, %v776_v2  ;;  %v7370_v13 = vcombine.low %v768_v1, %v776_v2 }
  0x44   : > { %v7415_v62 = vcombine.high %v814_v56, %v822_v57  ;;  %v7417_v63 = vcombine.high %v815_v58, %v823_v59  ;;  %v7414_v5 = vcombine.low %v814_v56, %v822_v57  ;;  %v7416_v6 = vcombine.low %v815_v58, %v823_v59  ;;  %v784_v9 = vld [vmem:[%s9087_s24 + $0xa0] sm:$0xff]  ;;  %v785_v11 = vld [vmem:[%s9087_s24 + $0xa8] sm:$0xff]  ;;  %v770_v33 = vld [vmem:[%s9087_s24 + $0x30] sm:$0xff] }
  0x45   : > { %1157 = vmatpush1.bf16.msra.mxu0 %v7394_v27  ;;  %1198 = vmatpush1.bf16.msra.mxu1 %v7396_v28  ;;  %v7373_v8 = vcombine.high %v769_v3, %v777_v4  ;;  %v792_v10 = vld [vmem:[%s9087_s24 + $0xe0] sm:$0xff]  ;;  %v793_v12 = vld [vmem:[%s9087_s24 + $0xe8] sm:$0xff]  ;;  %v7372_v14 = vcombine.low %v769_v3, %v777_v4  ;;  %v778_v34 = vld [vmem:[%s9087_s24 + $0x70] sm:$0xff] }
  0x46   : > { %1158 = vmatprep.subr.bf16.mxu0 %v7411_v29  ;;  %1199 = vmatprep.subr.bf16.mxu1 %v7413_v30  ;;  %v7387_v15 = vcombine.high %v784_v9, %v792_v10  ;;  %v7389_v16 = vcombine.high %v785_v11, %v793_v12  ;;  %v800_v17 = vld [vmem:[%s9087_s24 + $0x120] sm:$0xff]  ;;  %v801_v19 = vld [vmem:[%s9087_s24 + $0x128] sm:$0xff]  ;;  %v7386_v21 = vcombine.low %v784_v9, %v792_v10  ;;  %v786_v41 = vld [vmem:[%s9087_s24 + $0xb0] sm:$0xff] }
  0x47   : > { %v808_v18 = vld [vmem:[%s9087_s24 + $0x160] sm:$0xff]  ;;  %v809_v20 = vld [vmem:[%s9087_s24 + $0x168] sm:$0xff]  ;;  %v7388_v22 = vcombine.low %v785_v11, %v793_v12  ;;  %v7375_v39 = vcombine.high %v770_v33, %v778_v34  ;;  %v794_v42 = vld [vmem:[%s9087_s24 + $0xf0] sm:$0xff] }
  0x48   : > { %v7403_v23 = vcombine.high %v800_v17, %v808_v18  ;;  %v7405_v24 = vcombine.high %v801_v19, %v809_v20  ;;  %v816_v25 = vld [vmem:[%s9087_s24 + $0x1a0] sm:$0xff]  ;;  %v817_v27 = vld [vmem:[%s9087_s24 + $0x1a8] sm:$0xff]  ;;  %v7402_v29 = vcombine.low %v800_v17, %v808_v18  ;;  %v7404_v30 = vcombine.low %v801_v19, %v809_v20  ;;  %v802_v50 = vld [vmem:[%s9087_s24 + $0x130] sm:$0xff] }
  0x49   : > { %1159 = vmatpush1.bf16.msra.mxu0 %v7410_v35  ;;  %1200 = vmatpush1.bf16.msra.mxu1 %v7412_v36  ;;  %v824_v26 = vld [vmem:[%s9087_s24 + $0x1e0] sm:$0xff]  ;;  %v825_v28 = vld [vmem:[%s9087_s24 + $0x1e8] sm:$0xff]  ;;  %v771_v35 = vld [vmem:[%s9087_s24 + $0x38] sm:$0xff]  ;;  %v7391_v47 = vcombine.high %v786_v41, %v794_v42 }
  0x4a   : > { %1234 = vmatprep.subr.bf16.mxu0 %v7367_v37  ;;  %1275 = vmatprep.subr.bf16.mxu1 %v7369_v38  ;;  %v7419_v31 = vcombine.high %v816_v25, %v824_v26  ;;  %v7421_v32 = vcombine.high %v817_v27, %v825_v28  ;;  %v779_v36 = vld [vmem:[%s9087_s24 + $0x78] sm:$0xff]  ;;  %v7418_v37 = vcombine.low %v816_v25, %v824_v26  ;;  %v810_v51 = vld [vmem:[%s9087_s24 + $0x170] sm:$0xff] }
  0x4b   : > { %v7420_v38 = vcombine.low %v817_v27, %v825_v28  ;;  %v7377_v40 = vcombine.high %v771_v35, %v779_v36  ;;  %v7407_v56 = vcombine.high %v802_v50, %v810_v51  ;;  %v818_v58 = vld [vmem:[%s9087_s24 + $0x1b0] sm:$0xff] }
  0x4c   : > { %7426 = vmatmul.mubr.msk.bf16.vlgmr.msra.gmra.mrb[0].mxu0 %vm1148_vm0, %v8868_v49  ;;  %7427 = vmatmul.mubr.msk.bf16.vlgmr.msra.gmra.mrb[0].mxu1 %vm1148_vm0, %v8868_v49  ;;  %v826_v59 = vld [vmem:[%s9087_s24 + $0x1f0] sm:$0xff] }
  0x4d   : > { %1235 = vmatpush1.bf16.msra.mxu0 %v7366_v43  ;;  %1276 = vmatpush1.bf16.msra.mxu1 %v7368_v44  ;;  %v787_v43 = vld [vmem:[%s9087_s24 + $0xb8] sm:$0xff]  ;;  %v7423_v1 = vcombine.high %v818_v58, %v826_v59  ;;  %v7422_v3 = vcombine.low %v818_v58, %v826_v59 }
  0x4e   : > { %1236 = vmatprep.subr.bf16.mxu0 %v7383_v45  ;;  %1277 = vmatprep.subr.bf16.mxu1 %v7385_v46  ;;  %v795_v44 = vld [vmem:[%s9087_s24 + $0xf8] sm:$0xff]  ;;  %v7374_v45 = vcombine.low %v770_v33, %v778_v34  ;;  %v7376_v46 = vcombine.low %v771_v35, %v779_v36 }
  0x4f   : > { %1266 = vmatprep.mubr.bf16.mxu0 %v8867_v0  ;;  %1307 = vmatprep.mubr.bf16.mxu1 %v8867_v0  ;;  %v7393_v48 = vcombine.high %v787_v43, %v795_v44 }
  0x51   : > { %1237 = vmatpush1.bf16.msra.mxu0 %v7382_v52  ;;  %1278 = vmatpush1.bf16.msra.mxu1 %v7384_v53  ;;  %v803_v52 = vld [vmem:[%s9087_s24 + $0x138] sm:$0xff] }
  0x52   : > { %1238 = vmatprep.subr.bf16.mxu0 %v7399_v54  ;;  %1279 = vmatprep.subr.bf16.mxu1 %v7401_v55  ;;  %v811_v53 = vld [vmem:[%s9087_s24 + $0x178] sm:$0xff]  ;;  %v7390_v54 = vcombine.low %v786_v41, %v794_v42  ;;  %v7392_v55 = vcombine.low %v787_v43, %v795_v44 }
  0x53   : > { %v7409_v57 = vcombine.high %v803_v52, %v811_v53 }
  0x55   : > { %1239 = vmatpush1.bf16.msra.mxu0 %v7398_v60  ;;  %1280 = vmatpush1.bf16.msra.mxu1 %v7400_v61  ;;  %v819_v60 = vld [vmem:[%s9087_s24 + $0x1b8] sm:$0xff] }
  0x56   : > { %1240 = vmatprep.subr.bf16.mxu0 %v7415_v62  ;;  %1281 = vmatprep.subr.bf16.mxu1 %v7417_v63  ;;  %v827_v61 = vld [vmem:[%s9087_s24 + $0x1f8] sm:$0xff]  ;;  %v7406_v62 = vcombine.low %v802_v50, %v810_v51  ;;  %v7408_v63 = vcombine.low %v803_v52, %v811_v53  ;;  %v8869_v52 = vmov (!%p7434_p0), 0.0  }
  0x57   : > { %v7425_v2 = vcombine.high %v819_v60, %v827_v61  ;;  %v7424_v4 = vcombine.low %v819_v60, %v827_v61  ;;  %1500 = vst [vmem:[#allocation2] sm:$0xff] (!%p7434_p0), %v8869_v52  ;;  %1501 = vst [vmem:[#allocation2 + $0x8] sm:$0xff] (!%p7434_p0), %v8869_v52 }
  0x58   : > { %1502 = vst [vmem:[#allocation2 + $0x10] sm:$0xff] (!%p7434_p0), %v8869_v52  ;;  %1503 = vst [vmem:[#allocation2 + $0x18] sm:$0xff] (!%p7434_p0), %v8869_v52 }
  0x59   : > { %1241 = vmatpush1.bf16.msra.mxu0 %v7414_v5  ;;  %1282 = vmatpush1.bf16.msra.mxu1 %v7416_v6  ;;  %1504 = vst [vmem:[#allocation2 + $0x20] sm:$0xff] (!%p7434_p0), %v8869_v52  ;;  %1505 = vst [vmem:[#allocation2 + $0x28] sm:$0xff] (!%p7434_p0), %v8869_v52 }
  0x5a   : > { %1316 = vmatprep.subr.bf16.mxu0 %v7371_v7  ;;  %1357 = vmatprep.subr.bf16.mxu1 %v7373_v8  ;;  %1506 = vst [vmem:[#allocation2 + $0x30] sm:$0xff] (!%p7434_p0), %v8869_v52  ;;  %1507 = vst [vmem:[#allocation2 + $0x38] sm:$0xff] (!%p7434_p0), %v8869_v52 }
  0x5c   : > { %7428 = vmatmul.mubr.msk.bf16.vlgmr.msra.gmra.mrb[4].mxu0 %vm1148_vm0, %v8868_v49  ;;  %7429 = vmatmul.mubr.msk.bf16.vlgmr.msra.gmra.mrb[4].mxu1 %vm1148_vm0, %v8868_v49 }
  0x5d   : > { %1317 = vmatpush1.bf16.msra.mxu0 %v7370_v13  ;;  %1358 = vmatpush1.bf16.msra.mxu1 %v7372_v14 }
  0x5e   : > { %1318 = vmatprep.subr.bf16.mxu0 %v7387_v15  ;;  %1359 = vmatprep.subr.bf16.mxu1 %v7389_v16 }
  0x5f   : > { %1348 = vmatprep.mubr.bf16.mxu0 %v8867_v0  ;;  %1389 = vmatprep.mubr.bf16.mxu1 %v8867_v0 }
  0x61   : > { %1319 = vmatpush1.bf16.msra.mxu0 %v7386_v21  ;;  %1360 = vmatpush1.bf16.msra.mxu1 %v7388_v22 }
  0x62   : > { %1320 = vmatprep.subr.bf16.mxu0 %v7403_v23  ;;  %1361 = vmatprep.subr.bf16.mxu1 %v7405_v24 }
  0x65   : > { %1321 = vmatpush1.bf16.msra.mxu0 %v7402_v29  ;;  %1362 = vmatpush1.bf16.msra.mxu1 %v7404_v30 }
  0x66   : > { %1322 = vmatprep.subr.bf16.mxu0 %v7419_v31  ;;  %1363 = vmatprep.subr.bf16.mxu1 %v7421_v32 }
  0x69   : > { %1323 = vmatpush1.bf16.msra.mxu0 %v7418_v37  ;;  %1364 = vmatpush1.bf16.msra.mxu1 %v7420_v38 }
  0x6a   : > { %1398 = vmatprep.subr.bf16.mxu0 %v7375_v39  ;;  %1439 = vmatprep.subr.bf16.mxu1 %v7377_v40 }
  0x6c   : > { %7430 = vmatmul.mubr.msk.bf16.vlgmr.msra.gmra.mrb[8].mxu0 %vm1148_vm0, %v8868_v49  ;;  %7431 = vmatmul.mubr.msk.bf16.vlgmr.msra.gmra.mrb[8].mxu1 %vm1148_vm0, %v8868_v49 }
  0x6d   : > { %1399 = vmatpush1.bf16.msra.mxu0 %v7374_v45  ;;  %1440 = vmatpush1.bf16.msra.mxu1 %v7376_v46 }
  0x6e   : > { %1400 = vmatprep.subr.bf16.mxu0 %v7391_v47  ;;  %1441 = vmatprep.subr.bf16.mxu1 %v7393_v48 }
  0x6f   : > { %1430 = vmatprep.mubr.bf16.mxu0 %v8867_v0  ;;  %1471 = vmatprep.mubr.bf16.mxu1 %v8867_v0 }
  0x71   : > { %1401 = vmatpush1.bf16.msra.mxu0 %v7390_v54  ;;  %1442 = vmatpush1.bf16.msra.mxu1 %v7392_v55 }
  0x72   : > { %1402 = vmatprep.subr.bf16.mxu0 %v7407_v56  ;;  %1443 = vmatprep.subr.bf16.mxu1 %v7409_v57 }
  0x75   : > { %1403 = vmatpush1.bf16.msra.mxu0 %v7406_v62  ;;  %1444 = vmatpush1.bf16.msra.mxu1 %v7408_v63 }
  0x76   : > { %1404 = vmatprep.subr.bf16.mxu0 %v7423_v1  ;;  %1445 = vmatprep.subr.bf16.mxu1 %v7425_v2 }
  0x79   : > { %1405 = vmatpush1.bf16.msra.mxu0 %v7422_v3  ;;  %1446 = vmatpush1.bf16.msra.mxu1 %v7424_v4 }
  0x7c   : > { %7432 = vmatmul.mubr.msk.bf16.vlgmr.msra.gmra.mrb[12].mxu0 %vm1148_vm0, %v8868_v49  ;;  %7433 = vmatmul.mubr.msk.bf16.vlgmr.msra.gmra.mrb[12].mxu1 %vm1148_vm0, %v8868_v49 }
 0x11f   : > { %v1186_v0 = vpop.f32.mrb[0].mxu0  ;;  %v1227_v6 = vpop.f32.mrb[0].mxu1 }
 0x120   : > { %v9175_v5 = vmul.f32 0.015625, %v1186_v0  ;;  %v1188_v7 = vpop.f32.mrb[1].mxu0  ;;  %v9177_v8 = vmul.f32 0.015625, %v1227_v6  ;;  %v1229_v10 = vpop.f32.mrb[1].mxu1 }
 0x121   : > { %v9179_v9 = vmul.f32 0.015625, %v1188_v7  ;;  %v1190_v11 = vpop.f32.mrb[2].mxu0  ;;  %v9181_v12 = vmul.f32 0.015625, %v1229_v10  ;;  %v1231_v13 = vpop.f32.mrb[2].mxu1 }
 0x122   : > { %v1191_v14 = vpop.f32.mrb[3].mxu0  ;;  %v1232_v15 = vpop.f32.mrb[3].mxu1 }
 0x12f   : > { %v1268_v16 = vpop.f32.mrb[4].mxu0  ;;  %v1309_v49 = vpop.f32.mrb[4].mxu1 }
 0x130   : > { %v9183_v17 = vmul.f32 0.015625, %v1268_v16  ;;  %v1270_v18 = vpop.f32.mrb[5].mxu0  ;;  %v9185_v19 = vmul.f32 0.015625, %v1309_v49  ;;  %v1311_v21 = vpop.f32.mrb[5].mxu1 }
 0x131   : > { %v9187_v20 = vmul.f32 0.015625, %v1270_v18  ;;  %v1272_v22 = vpop.f32.mrb[6].mxu0  ;;  %v9189_v23 = vmul.f32 0.015625, %v1311_v21  ;;  %v1313_v24 = vpop.f32.mrb[6].mxu1 }
 0x132   : > { %v1273_v25 = vpop.f32.mrb[7].mxu0  ;;  %v1314_v26 = vpop.f32.mrb[7].mxu1 }
 0x13f   : > { %v1350_v27 = vpop.f32.mrb[8].mxu0  ;;  %v1391_v29 = vpop.f32.mrb[8].mxu1 }
 0x140   : > { %v9191_v28 = vmul.f32 0.015625, %v1350_v27  ;;  %v1352_v30 = vpop.f32.mrb[9].mxu0  ;;  %v9193_v31 = vmul.f32 0.015625, %v1391_v29  ;;  %v1393_v33 = vpop.f32.mrb[9].mxu1 }
 0x141   : > { %v9195_v32 = vmul.f32 0.015625, %v1352_v30  ;;  %v1354_v34 = vpop.f32.mrb[10].mxu0  ;;  %v9197_v35 = vmul.f32 0.015625, %v1393_v33  ;;  %v1395_v36 = vpop.f32.mrb[10].mxu1 }
 0x142   : > { %v1355_v37 = vpop.f32.mrb[11].mxu0  ;;  %v1396_v38 = vpop.f32.mrb[11].mxu1 }
 0x14c   : > { %1499 = sbr.rel (%p7434_p0) target bundleno = 339 (0x153), region = 120 }
 0x14f   : > { %v1432_v39 = vpop.f32.mrb[12].mxu0  ;;  %v1473_v41 = vpop.f32.mrb[12].mxu1 }
 0x150   : > { %v9199_v40 = vmul.f32 0.015625, %v1432_v39  ;;  %v1434_v42 = vpop.f32.mrb[13].mxu0  ;;  %v9201_v43 = vmul.f32 0.015625, %v1473_v41  ;;  %v1475_v45 = vpop.f32.mrb[13].mxu1 }
 0x151   : > { %v9203_v44 = vmul.f32 0.015625, %v1434_v42  ;;  %v1436_v46 = vpop.f32.mrb[14].mxu0  ;;  %v9205_v47 = vmul.f32 0.015625, %v1475_v45  ;;  %v1477_v48 = vpop.f32.mrb[14].mxu1 }
 0x152   : > { %v1437_v50 = vpop.f32.mrb[15].mxu0  ;;  %v1478_v51 = vpop.f32.mrb[15].mxu1 }
 0x153 PF: > { %v1508_v53 = vlaneseq  ;;  %v1512_v54 = vld [vmem:[#allocation2] sm:$0xff]  ;;  %v1513_v55 = vld [vmem:[#allocation2 + $0x8] sm:$0xff]  ;;  %v1514_v56 = vld [vmem:[#allocation2 + $0x10] sm:$0xff]  ;;  %v1510_v60 = vstv %s8849_s28  ;;  %p7435_p1 = scmp.ne.s32.totalorder %s8849_s28, 3 }
 0x154   : > { %v1515_v57 = vld [vmem:[#allocation2 + $0x18] sm:$0xff]  ;;  %v1516_v58 = vld [vmem:[#allocation2 + $0x20] sm:$0xff]  ;;  %v1517_v61 = vld [vmem:[#allocation2 + $0x28] sm:$0xff]  ;;  %v1594_v1 = vcombine.high %v1512_v54, %v1512_v54  ;;  %v1595_v2 = vcombine.high %v1513_v55, %v1513_v55  ;;  %v1596_v4 = vcombine.high %v1514_v56, %v1514_v56  ;;  %s11511_s23 = sld [smem:[#allocation34_spill]] (!%p7435_p1)  ;;  %s11512_s14 = sld [smem:[#allocation25_spill]] (!%p7435_p1)  ;;  %vm8871_vm2 = vmmov (!%p7435_p1), 0  }
 0x155   : > { %v9209_v59 = vshrl.u32 %v1508_v53, 7  ;;  %v1518_v62 = vld [vmem:[#allocation2 + $0x30] sm:$0xff]  ;;  %v1519_v63 = vld [vmem:[#allocation2 + $0x38] sm:$0xff]  ;;  %v1597_v0 = vcombine.high %v1515_v57, %v1515_v57  ;;  %v1598_v6 = vcombine.high %v1516_v58, %v1516_v58  ;;  %v1599_v10 = vcombine.high %v1517_v61, %v1517_v61  ;;  %s11513_s22 = sld [smem:[#allocation33_spill]] (!%p7435_p1)  ;;  %s11514_s13 = sld [smem:[#allocation24_spill]] (!%p7435_p1) }
 0x156   : > { %v1600_v11 = vcombine.high %v1518_v62, %v1518_v62  ;;  %v1601_v13 = vcombine.high %v1519_v63, %v1519_v63  ;;  %vm2453_vm3 = vcmask (!%p7435_p1), 261120   ;;  %vm2657_vm4 = vcmask (!%p7435_p1), 1041408   ;;  %s11470_s25 = smov (!%p7435_p1), 112   ;;  %s11474_s4 = smov (!%p7435_p1), 120  }
 0x157   : > { %v9213_v3 = vsub.s32 0, %v9209_v59  ;;  %vm9216_vm1 = vcmp.eq.s32.totalorder %v9209_v59, %v1510_v60  ;;  %vm2591_vm5 = vcmask (!%p7435_p1), 64512   ;;  %s11472_s1 = smov (!%p7435_p1), 104   ;;  %vm2639_vm6 = vcmask (!%p7435_p1), 27648   ;;  %s11468_s5 = smov (!%p7435_p1), 8  }
 0x158   : > { %vm2653_vm7 = vcmask (!%p7435_p1), 31744   ;;  %s11466_s7 = smov (!%p7435_p1), 16   ;;  %s11464_s30 = smov (!%p7435_p1), 24   ;;  %vm3050_vm8 = vcmask (!%p7435_p1), 130048   ;;  %vm3052_vm9 = vcmask (!%p7435_p1), 195584   ;;  %vm3106_vm10 = vcmask (!%p7435_p1), 257024  }
 0x159   : > { %v1525_v14 = vrot.slane %v9175_v5, %v9213_v3  ;;  %v1529_v15 = vrot.slane %v9179_v9, %v9213_v3  ;;  %v1533_v16 = vrot.slane %v9177_v8, %v9213_v3  ;;  %v1537_v49 = vrot.slane %v9181_v12, %v9213_v3  ;;  %s11515_s19 = sld [smem:[#allocation30_spill]] (!%p7435_p1)  ;;  %s11516_s20 = sld [smem:[#allocation31_spill]] (!%p7435_p1) }
 0x15a   : > { %v1541_v18 = vrot.slane %v9183_v17, %v9213_v3  ;;  %v1545_v21 = vrot.slane %v9187_v20, %v9213_v3  ;;  %v1549_v22 = vrot.slane %v9185_v19, %v9213_v3  ;;  %v1553_v5 = vrot.slane %v9189_v23, %v9213_v3  ;;  %v1695_v51 = vld [vmem:[%s11511_s23 + $0x88] sm:$0xff] (!%p7435_p1)  ;;  %v1726_v52 = vld [vmem:[%s11511_s23 + $0x180] sm:$0xff] (!%p7435_p1)  ;;  %v1680_v7 = vld [vmem:[%s11511_s23 + $0x10] sm:$0xff] (!%p7435_p1)  ;;  %s11517_s17 = sld [smem:[#allocation28_spill]] (!%p7435_p1)  ;;  %s11518_s15 = sld [smem:[#allocation26_spill]] (!%p7435_p1) }
 0x15b   : > { %v1610_v9 = vsel %vm9216_vm1, %v1525_v14, %v1512_v54  ;;  %v1611_v8 = vsel %vm9216_vm1, %v1529_v15, %v1594_v1  ;;  %v1612_v12 = vsel %vm9216_vm1, %v1533_v16, %v1513_v55  ;;  %v1613_v17 = vsel %vm9216_vm1, %v1537_v49, %v1595_v2  ;;  %v1727_v54 = vld [vmem:[%s11511_s23 + $0x188] sm:$0xff] (!%p7435_p1)  ;;  %v1678_v55 = vld [vmem:[%s11511_s23] sm:$0xff] (!%p7435_p1)  ;;  %v1697_v1 = vld [vmem:[%s11511_s23 + $0x98] sm:$0xff] (!%p7435_p1)  ;;  %s11519_s16 = sld [smem:[#allocation27_spill]] (!%p7435_p1)  ;;  %s11520_s18 = sld [smem:[#allocation29_spill]] (!%p7435_p1) }
 0x15c   : > { %v1642_v24 = vcombine.low %v1610_v9, %v1611_v8  ;;  %v1643_v20 = vcombine.low %v1612_v12, %v1613_v17  ;;  %v1614_v19 = vsel %vm9216_vm1, %v1541_v18, %v1514_v56  ;;  %v1615_v23 = vsel %vm9216_vm1, %v1545_v21, %v1596_v4  ;;  %v1679_v56 = vld [vmem:[%s11511_s23 + $0x8] sm:$0xff] (!%p7435_p1)  ;;  %v1710_v60 = vld [vmem:[%s11511_s23 + $0x100] sm:$0xff] (!%p7435_p1)  ;;  %v1728_v2 = vld [vmem:[%s11511_s23 + $0x190] sm:$0xff] (!%p7435_p1)  ;;  %s11521_s24 = smov (!%p7435_p1), 112   ;;  %s11523_s27 = smov (!%p7435_p1), 16  }
 0x15d   : > { %v1644_v25 = vcombine.low %v1614_v19, %v1615_v23  ;;  %v1616_v26 = vsel %vm9216_vm1, %v1549_v22, %v1515_v57  ;;  %v1617_v27 = vsel %vm9216_vm1, %v1553_v5, %v1597_v0  ;;  %v1557_v29 = vrot.slane %v9191_v28, %v9213_v3  ;;  %v1729_v4 = vld [vmem:[%s11511_s23 + $0x198] sm:$0xff] (!%p7435_p1)  ;;  %v1698_v15 = vld [vmem:[%s11511_s23 + $0xa0] sm:$0xff] (!%p7435_p1)  ;;  %v1699_v16 = vld [vmem:[%s11511_s23 + $0xa8] sm:$0xff] (!%p7435_p1)  ;;  %s11524_s29 = smov (!%p7435_p1), 24   ;;  %s11530_s21 = sld [smem:[#allocation32_spill]] (!%p7435_p1) }
 0x15e   : > { %1658 = vst [vmem:[#allocation2] sm:$0xff] %v1642_v24  ;;  %1659 = vst [vmem:[#allocation2 + $0x8] sm:$0xff] %v1643_v20  ;;  %v1645_v30 = vcombine.low %v1616_v26, %v1617_v27  ;;  %v1561_v33 = vrot.slane %v9195_v32, %v9213_v3  ;;  %v1565_v34 = vrot.slane %v9193_v31, %v9213_v3  ;;  %v1713_v14 = vld [vmem:[%s11511_s23 + $0x118] sm:$0xff] (!%p7435_p1)  ;;  %v1730_v21 = vld [vmem:[%s11511_s23 + $0x1a0] sm:$0xff] (!%p7435_p1)  ;;  %s11531_s28 = sld [smem:[#allocation20_spill]] (!%p7435_p1)  ;;  %s11533_s0 = sld [smem:[#allocation18_spill]] (!%p7435_p1) }
 0x15f   : > { %v1569_v36 = vrot.slane %v9197_v35, %v9213_v3  ;;  %1660 = vst [vmem:[#allocation2 + $0x10] sm:$0xff] %v1644_v25  ;;  %v1618_v37 = vsel %vm9216_vm1, %v1557_v29, %v1516_v58  ;;  %v1573_v38 = vrot.slane %v9199_v40, %v9213_v3  ;;  %v1577_v28 = vrot.slane %v9203_v44, %v9213_v3  ;;  %1669 = sbr.rel (%p7435_p1) target bundleno = 14096 (0x3710), region = 124  ;;  %v1731_v22 = vld [vmem:[%s11511_s23 + $0x1a8] sm:$0xff] (!%p7435_p1)  ;;  %v1682_v5 = vld [vmem:[%s11511_s23 + $0x20] sm:$0xff] (!%p7435_p1)  ;;  %v1700_v20 = vld [vmem:[%s11511_s23 + $0xb0] sm:$0xff] (!%p7435_p1) }
 0x160   : > { %v1581_v39 = vrot.slane %v9201_v43, %v9213_v3  ;;  %1661 = vst [vmem:[#allocation2 + $0x18] sm:$0xff] %v1645_v30  ;;  %v1619_v31 = vsel %vm9216_vm1, %v1561_v33, %v1598_v6  ;;  %v1620_v32 = vsel %vm9216_vm1, %v1565_v34, %v1517_v61  ;;  %v1585_v41 = vrot.slane %v9205_v47, %v9213_v3  ;;  %v1694_v47 = vld [vmem:[%s11511_s23 + $0x80] sm:$0xff] (!%p7435_p1)  ;;  %v1711_v61 = vld [vmem:[%s11511_s23 + $0x108] sm:$0xff] (!%p7435_p1)  ;;  %v1701_v19 = vld [vmem:[%s11511_s23 + $0xb8] sm:$0xff] (!%p7435_p1) }
 0x161   : > { %v1621_v35 = vsel %vm9216_vm1, %v1569_v36, %v1599_v10  ;;  %v1646_v40 = vcombine.low %v1618_v37, %v1619_v31  ;;  %v1622_v44 = vsel %vm9216_vm1, %v1573_v38, %v1518_v62  ;;  %v1623_v43 = vsel %vm9216_vm1, %v1577_v28, %v1600_v11  ;;  %v1696_v62 = vld [vmem:[%s11511_s23 + $0x90] sm:$0xff] (!%p7435_p1)  ;;  %v1681_v10 = vld [vmem:[%s11511_s23 + $0x18] sm:$0xff] (!%p7435_p1)  ;;  %v1683_v8 = vld [vmem:[%s11511_s23 + $0x28] sm:$0xff] (!%p7435_p1) }
 0x162   : > { %v1647_v42 = vcombine.low %v1620_v32, %v1621_v35  ;;  %v1648_v45 = vcombine.low %v1622_v44, %v1623_v43  ;;  %v1624_v46 = vsel %vm9216_vm1, %v1581_v39, %v1519_v63  ;;  %v1625_v48 = vsel %vm9216_vm1, %v1585_v41, %v1601_v13  ;;  %v1712_v11 = vld [vmem:[%s11511_s23 + $0x110] sm:$0xff] (!%p7435_p1)  ;;  %v1714_v12 = vld [vmem:[%s11511_s23 + $0x120] sm:$0xff] (!%p7435_p1)  ;;  %v1715_v17 = vld [vmem:[%s11511_s23 + $0x128] sm:$0xff] (!%p7435_p1) }
 0x163   : > { %1662 = vst [vmem:[#allocation2 + $0x20] sm:$0xff] %v1646_v40  ;;  %v1649_v50 = vcombine.low %v1624_v46, %v1625_v48  ;;  %v1982_v53 = vpack.c.bf16 (!%p7435_p1), %v1695_v51, %v1694_v47  ;;  %v1998_v57 = vpack.c.bf16 (!%p7435_p1), %v1727_v54, %v1726_v52  ;;  %v1974_v58 = vpack.c.bf16 (!%p7435_p1), %v1679_v56, %v1678_v55  ;;  %v1732_v23 = vld [vmem:[%s11511_s23 + $0x1b0] sm:$0xff] (!%p7435_p1)  ;;  %v1733_v27 = vld [vmem:[%s11511_s23 + $0x1b8] sm:$0xff] (!%p7435_p1)  ;;  %v1702_v37 = vld [vmem:[%s11511_s23 + $0xc0] sm:$0xff] (!%p7435_p1) }
 0x164   : > { %1663 = vst [vmem:[#allocation2 + $0x28] sm:$0xff] %v1647_v42  ;;  %1664 = vst [vmem:[#allocation2 + $0x30] sm:$0xff] %v1648_v45  ;;  %v1990_v63 = vpack.c.bf16 (!%p7435_p1), %v1711_v61, %v1710_v60  ;;  %v1983_v0 = vpack.c.bf16 (!%p7435_p1), %v1697_v1, %v1696_v62  ;;  %v1999_v6 = vpack.c.bf16 (!%p7435_p1), %v1729_v4, %v1728_v2  ;;  %v1684_v29 = vld [vmem:[%s11511_s23 + $0x30] sm:$0xff] (!%p7435_p1)  ;;  %v1685_v30 = vld [vmem:[%s11511_s23 + $0x38] sm:$0xff] (!%p7435_p1) }
 0x165   : > { %1665 = vst [vmem:[#allocation2 + $0x38] sm:$0xff] %v1649_v50  ;;  %7613 = vmatprep.subr.bf16.mxu0 (!%p7435_p1), %v1982_v53  ;;  %7635 = vmatprep.subr.bf16.mxu1 (!%p7435_p1), %v1998_v57  ;;  %v1975_v13 = vpack.c.bf16 (!%p7435_p1), %v1681_v10, %v1680_v7  ;;  %v1991_v49 = vpack.c.bf16 (!%p7435_p1), %v1713_v14, %v1712_v11  ;;  %v1716_v34 = vld [vmem:[%s11511_s23 + $0x130] sm:$0xff] (!%p7435_p1)  ;;  %v1717_v36 = vld [vmem:[%s11511_s23 + $0x138] sm:$0xff] (!%p7435_p1)  ;;  %v1703_v38 = vld [vmem:[%s11511_s23 + $0xc8] sm:$0xff] (!%p7435_p1) }
 0x166   : > { %7614 = vmatpush3.bf16.msra.mxu0 %v1974_v58  ;;  %7636 = vmatpush3.bf16.msra.mxu1 %v1990_v63  ;;  %v1984_v18 = vpack.c.bf16 %v1699_v16, %v1698_v15  ;;  %v2000_v9 = vpack.c.bf16 %v1731_v22, %v1730_v21  ;;  %v1976_v24 = vpack.c.bf16 %v1683_v8, %v1682_v5  ;;  %v1734_v28 = vld [vmem:[%s11511_s23 + $0x1c0] sm:$0xff]  ;;  %v1735_v39 = vld [vmem:[%s11511_s23 + $0x1c8] sm:$0xff]  ;;  %v1704_v45 = vld [vmem:[%s11511_s23 + $0xd0] sm:$0xff] }
 0x167   : > { %7615 = vmatprep.subr.bf16.mxu0 %v1983_v0  ;;  %7637 = vmatprep.subr.bf16.mxu1 %v1999_v6  ;;  %v1992_v25 = vpack.c.bf16 %v1715_v17, %v1714_v12  ;;  %v1985_v26 = vpack.c.bf16 %v1701_v19, %v1700_v20  ;;  %v2001_v33 = vpack.c.bf16 %v1733_v27, %v1732_v23  ;;  %v1686_v41 = vld [vmem:[%s11511_s23 + $0x40] sm:$0xff]  ;;  %v1687_v40 = vld [vmem:[%s11511_s23 + $0x48] sm:$0xff]  ;;  %v1705_v46 = vld [vmem:[%s11511_s23 + $0xd8] sm:$0xff] }
 0x168   : > { %v1977_v31 = vpack.c.bf16 %v1685_v30, %v1684_v29  ;;  %v1993_v32 = vpack.c.bf16 %v1717_v36, %v1716_v34  ;;  %v1986_v35 = vpack.c.bf16 %v1703_v38, %v1702_v37  ;;  %v1718_v42 = vld [vmem:[%s11511_s23 + $0x140] sm:$0xff]  ;;  %v2002_v44 = vpack.c.bf16 %v1735_v39, %v1734_v28  ;;  %v1719_v43 = vld [vmem:[%s11511_s23 + $0x148] sm:$0xff]  ;;  %v1736_v48 = vld [vmem:[%s11511_s23 + $0x1d0] sm:$0xff] }
 0x169   : > { %v1737_v50 = vld [vmem:[%s11511_s23 + $0x1d8] sm:$0xff]  ;;  %v1978_v47 = vpack.c.bf16 %v1687_v40, %v1686_v41  ;;  %v1994_v51 = vpack.c.bf16 %v1719_v43, %v1718_v42  ;;  %v1987_v52 = vpack.c.bf16 %v1705_v46, %v1704_v45  ;;  %v1688_v53 = vld [vmem:[%s11511_s23 + $0x50] sm:$0xff]  ;;  %v1706_v58 = vld [vmem:[%s11511_s23 + $0xe0] sm:$0xff] }
 0x16a   : > { %7616 = vmatpush3.bf16.msra.mxu0 %v1975_v13  ;;  %7638 = vmatpush3.bf16.msra.mxu1 %v1991_v49  ;;  %v1689_v54 = vld [vmem:[%s11511_s23 + $0x58] sm:$0xff]  ;;  %v1720_v55 = vld [vmem:[%s11511_s23 + $0x150] sm:$0xff]  ;;  %v2003_v56 = vpack.c.bf16 %v1737_v50, %v1736_v48  ;;  %v1707_v60 = vld [vmem:[%s11511_s23 + $0xe8] sm:$0xff] }
 0x16b   : > { %7617 = vmatprep.subr.bf16.mxu0 %v1984_v18  ;;  %7639 = vmatprep.subr.bf16.mxu1 %v2000_v9  ;;  %v1721_v57 = vld [vmem:[%s11511_s23 + $0x158] sm:$0xff]  ;;  %v1738_v61 = vld [vmem:[%s11511_s23 + $0x1e0] sm:$0xff]  ;;  %v1739_v62 = vld [vmem:[%s11511_s23 + $0x1e8] sm:$0xff]  ;;  %v1979_v63 = vpack.c.bf16 %v1689_v54, %v1688_v53  ;;  %v1988_v0 = vpack.c.bf16 %v1707_v60, %v1706_v58 }
 0x16c   : > { %v1690_v1 = vld [vmem:[%s11511_s23 + $0x60] sm:$0xff]  ;;  %v1691_v2 = vld [vmem:[%s11511_s23 + $0x68] sm:$0xff]  ;;  %v1995_v4 = vpack.c.bf16 %v1721_v57, %v1720_v55  ;;  %v2004_v11 = vpack.c.bf16 %v1739_v62, %v1738_v61  ;;  %v1708_v14 = vld [vmem:[%s11511_s23 + $0xf0] sm:$0xff] }
 0x16d   : > { %v1722_v6 = vld [vmem:[%s11511_s23 + $0x160] sm:$0xff]  ;;  %v9452_v10 = vld [vmem:[#allocation2 + $0x8] sm:$0xff]  ;;  %v1709_v15 = vld [vmem:[%s11511_s23 + $0xf8] sm:$0xff]  ;;  %v1980_v22 = vpack.c.bf16 %v1691_v2, %v1690_v1 }
 0x16e   : > { %7618 = vmatpush3.bf16.msra.mxu0 %v1976_v24  ;;  %7640 = vmatpush3.bf16.msra.mxu1 %v1992_v25  ;;  %v9450_v7 = vld [vmem:[#allocation2] sm:$0xff]  ;;  %v1723_v13 = vld [vmem:[%s11511_s23 + $0x168] sm:$0xff]  ;;  %v1943_v49 = vcombine.high %v9452_v10, %v9452_v10  ;;  %v1740_v18 = vld [vmem:[%s11511_s23 + $0x1f0] sm:$0xff]  ;;  %v1989_v12 = vpack.c.bf16 %v1709_v15, %v1708_v14  ;;  %v1960_v42 = vpack.c.bf16 %v9452_v10, %v9452_v10 }
 0x16f   : > { %7619 = vmatprep.subr.bf16.mxu0 %v1985_v26  ;;  %7641 = vmatprep.subr.bf16.mxu1 %v2001_v33  ;;  %v1942_v16 = vcombine.high %v9450_v7, %v9450_v7  ;;  %v1741_v21 = vld [vmem:[%s11511_s23 + $0x1f8] sm:$0xff]  ;;  %v1996_v8 = vpack.c.bf16 %v1723_v13, %v1722_v6  ;;  %v1692_v17 = vld [vmem:[%s11511_s23 + $0x70] sm:$0xff]  ;;  %v1758_v25 = vld [vmem:[%s11511_s23 + $0x280] sm:$0xff] }
 0x170   : > { %v1961_v9 = vpack.c.bf16 %v1943_v49, %v1943_v49  ;;  %v1693_v24 = vld [vmem:[%s11511_s23 + $0x78] sm:$0xff]  ;;  %v1724_v20 = vld [vmem:[%s11511_s23 + $0x170] sm:$0xff]  ;;  %v2005_v19 = vpack.c.bf16 %v1741_v21, %v1740_v18  ;;  %v1759_v26 = vld [vmem:[%s11511_s23 + $0x288] sm:$0xff] }
 0x171   : > { %v1959_v5 = vpack.c.bf16 %v1942_v16, %v1942_v16  ;;  %v1725_v23 = vld [vmem:[%s11511_s23 + $0x178] sm:$0xff]  ;;  %v1790_v27 = vld [vmem:[%s11511_s23 + $0x380] sm:$0xff]  ;;  %v1791_v29 = vld [vmem:[%s11511_s23 + $0x388] sm:$0xff]  ;;  %v1981_v30 = vpack.c.bf16 %v1693_v24, %v1692_v17  ;;  %v2014_v34 = vpack.c.bf16 %v1759_v26, %v1758_v25 }
 0x172   : > { %7620 = vmatpush3.bf16.msra.mxu0 %v1977_v31  ;;  %7642 = vmatpush3.bf16.msra.mxu1 %v1993_v32  ;;  %v1997_v33 = vpack.c.bf16 %v1725_v23, %v1724_v20  ;;  %v1742_v36 = vld [vmem:[%s11511_s23 + $0x200] sm:$0xff]  ;;  %v1743_v37 = vld [vmem:[%s11511_s23 + $0x208] sm:$0xff]  ;;  %v2030_v28 = vpack.c.bf16 %v1791_v29, %v1790_v27  ;;  %v1760_v31 = vld [vmem:[%s11511_s23 + $0x290] sm:$0xff] }
 0x173   : > { %7621 = vmatprep.subr.bf16.mxu0 %v1986_v35  ;;  %7643 = vmatprep.subr.bf16.mxu1 %v2002_v44  ;;  %v1774_v38 = vld [vmem:[%s11511_s23 + $0x300] sm:$0xff]  ;;  %v1775_v39 = vld [vmem:[%s11511_s23 + $0x308] sm:$0xff]  ;;  %v1761_v32 = vld [vmem:[%s11511_s23 + $0x298] sm:$0xff]  ;;  %v1958_v35 = vpack.c.bf16 %v9450_v7, %v9450_v7  ;;  %v2006_v44 = vpack.c.bf16 %v1743_v37, %v1742_v36 }
 0x174   : > { %2141 = vmatprep.mubr.bf16.mxu0 %v1959_v5  ;;  %2181 = vmatprep.mubr.bf16.mxu1 %v1961_v9  ;;  %v1792_v41 = vld [vmem:[%s11511_s23 + $0x390] sm:$0xff]  ;;  %v1793_v40 = vld [vmem:[%s11511_s23 + $0x398] sm:$0xff]  ;;  %v2022_v43 = vpack.c.bf16 %v1775_v39, %v1774_v38  ;;  %v2015_v45 = vpack.c.bf16 %v1761_v32, %v1760_v31  ;;  %v1763_v53 = vld [vmem:[%s11511_s23 + $0x2a8] sm:$0xff] }
 0x175   : > { %v1744_v46 = vld [vmem:[%s11511_s23 + $0x210] sm:$0xff]  ;;  %v1745_v48 = vld [vmem:[%s11511_s23 + $0x218] sm:$0xff]  ;;  %v1794_v54 = vld [vmem:[%s11511_s23 + $0x3a0] sm:$0xff] }
 0x176   : > { %7622 = vmatpush3.bf16.msra.mxu0 %v1978_v47  ;;  %7644 = vmatpush3.bf16.msra.mxu1 %v1994_v51  ;;  %v1776_v50 = vld [vmem:[%s11511_s23 + $0x310] sm:$0xff]  ;;  %v2031_v47 = vpack.c.bf16 %v1793_v40, %v1792_v41  ;;  %v1777_v51 = vld [vmem:[%s11511_s23 + $0x318] sm:$0xff]  ;;  %v1795_v55 = vld [vmem:[%s11511_s23 + $0x3a8] sm:$0xff] }
 0x177   : > { %7623 = vmatprep.subr.bf16.mxu0 %v1987_v52  ;;  %7645 = vmatprep.subr.bf16.mxu1 %v2003_v56  ;;  %v1762_v52 = vld [vmem:[%s11511_s23 + $0x2a0] sm:$0xff]  ;;  %v2007_v56 = vpack.c.bf16 %v1745_v48, %v1744_v46  ;;  %v2023_v57 = vpack.c.bf16 %v1777_v51, %v1776_v50  ;;  %v1747_v61 = vld [vmem:[%s11511_s23 + $0x228] sm:$0xff]  ;;  %v1764_v2 = vld [vmem:[%s11511_s23 + $0x2b0] sm:$0xff] }
 0x178   : > { %v2016_v58 = vpack.c.bf16 %v1763_v53, %v1762_v52  ;;  %v1746_v60 = vld [vmem:[%s11511_s23 + $0x220] sm:$0xff]  ;;  %v1779_v1 = vld [vmem:[%s11511_s23 + $0x328] sm:$0xff]  ;;  %v1797_v6 = vld [vmem:[%s11511_s23 + $0x3b8] sm:$0xff] }
 0x179   : > { %v1778_v62 = vld [vmem:[%s11511_s23 + $0x320] sm:$0xff]  ;;  %v2008_v7 = vpack.c.bf16 %v1747_v61, %v1746_v60  ;;  %v1748_v10 = vld [vmem:[%s11511_s23 + $0x230] sm:$0xff]  ;;  %v1749_v14 = vld [vmem:[%s11511_s23 + $0x238] sm:$0xff] }
 0x17a   : > { %7624 = vmatpush3.bf16.msra.mxu0 %v1979_v63  ;;  %7646 = vmatpush3.bf16.msra.mxu1 %v1995_v4  ;;  %v2032_v63 = vpack.c.bf16 %v1795_v55, %v1794_v54  ;;  %v1765_v4 = vld [vmem:[%s11511_s23 + $0x2b8] sm:$0xff]  ;;  %v1780_v15 = vld [vmem:[%s11511_s23 + $0x330] sm:$0xff]  ;;  %v1766_v18 = vld [vmem:[%s11511_s23 + $0x2c0] sm:$0xff] }
 0x17b   : > { %7625 = vmatprep.subr.bf16.mxu0 %v1988_v0  ;;  %7647 = vmatprep.subr.bf16.mxu1 %v2004_v11  ;;  %v1796_v0 = vld [vmem:[%s11511_s23 + $0x3b0] sm:$0xff]  ;;  %v2024_v11 = vpack.c.bf16 %v1779_v1, %v1778_v62  ;;  %v2017_v13 = vpack.c.bf16 %v1765_v4, %v1764_v2  ;;  %v1781_v16 = vld [vmem:[%s11511_s23 + $0x338] sm:$0xff]  ;;  %v1767_v21 = vld [vmem:[%s11511_s23 + $0x2c8] sm:$0xff] }
 0x17c   : > { %v2033_v49 = vpack.c.bf16 %v1797_v6, %v1796_v0  ;;  %v1799_v5 = vld [vmem:[%s11511_s23 + $0x3c8] sm:$0xff]  ;;  %v9597_v9 = vld [vmem:[#allocation2 + $0x10] sm:$0xff]  ;;  %v2025_v20 = vpack.c.bf16 %v1781_v16, %v1780_v15  ;;  %v1750_v23 = vld [vmem:[%s11511_s23 + $0x240] sm:$0xff] }
 0x17d   : > { %v1944_v17 = vcombine.high %v9597_v9, %v9597_v9  ;;  %v1751_v25 = vld [vmem:[%s11511_s23 + $0x248] sm:$0xff]  ;;  %v1782_v26 = vld [vmem:[%s11511_s23 + $0x340] sm:$0xff]  ;;  %v1800_v37 = vld [vmem:[%s11511_s23 + $0x3d0] sm:$0xff] }
 0x17e   : > { %7626 = vmatpush3.bf16.msra.mxu0 %v1980_v22  ;;  %7648 = vmatpush3.bf16.msra.mxu1 %v1996_v8  ;;  %v1798_v22 = vld [vmem:[%s11511_s23 + $0x3c0] sm:$0xff]  ;;  %v9599_v8 = vld [vmem:[#allocation2 + $0x18] sm:$0xff]  ;;  %v1783_v29 = vld [vmem:[%s11511_s23 + $0x348] sm:$0xff] }
 0x17f   : > { %7627 = vmatprep.subr.bf16.mxu0 %v1989_v12  ;;  %7649 = vmatprep.subr.bf16.mxu1 %v2005_v19  ;;  %v2009_v12 = vpack.c.bf16 %v1749_v14, %v1748_v10  ;;  %v1945_v24 = vcombine.high %v9599_v8, %v9599_v8  ;;  %v2018_v19 = vpack.c.bf16 %v1767_v21, %v1766_v18  ;;  %v1801_v38 = vld [vmem:[%s11511_s23 + $0x3d8] sm:$0xff]  ;;  %v1752_v32 = vld [vmem:[%s11511_s23 + $0x250] sm:$0xff]  ;;  %v1803_v46 = vld [vmem:[%s11511_s23 + $0x3e8] sm:$0xff] }
 0x180   : > { %v2034_v27 = vpack.c.bf16 %v1799_v5, %v1798_v22  ;;  %v2026_v39 = vpack.c.bf16 %v1783_v29, %v1782_v26  ;;  %v1784_v41 = vld [vmem:[%s11511_s23 + $0x350] sm:$0xff]  ;;  %v2035_v40 = vpack.c.bf16 %v1801_v38, %v1800_v37  ;;  %v1754_v51 = vld [vmem:[%s11511_s23 + $0x260] sm:$0xff]  ;;  %v1755_v52 = vld [vmem:[%s11511_s23 + $0x268] sm:$0xff] }
 0x181   : > { %v1965_v36 = vpack.c.bf16 %v1945_v24, %v1945_v24  ;;  %v1786_v53 = vld [vmem:[%s11511_s23 + $0x360] sm:$0xff]  ;;  %v1787_v55 = vld [vmem:[%s11511_s23 + $0x368] sm:$0xff]  ;;  %v1805_v60 = vld [vmem:[%s11511_s23 + $0x3f8] sm:$0xff]  ;;  %v2012_v61 = vpack.c.bf16 %v1755_v52, %v1754_v51  ;;  %v1962_v24 = vpack.c.bf16 %v9597_v9, %v9597_v9 }
 0x182   : > { %7628 = vmatpush3.bf16.msra.mxu0 %v1981_v30  ;;  %7650 = vmatpush3.bf16.msra.mxu1 %v1997_v33  ;;  %v1768_v30 = vld [vmem:[%s11511_s23 + $0x2d0] sm:$0xff]  ;;  %v1769_v33 = vld [vmem:[%s11511_s23 + $0x2d8] sm:$0xff]  ;;  %v2028_v62 = vpack.c.bf16 %v1787_v55, %v1786_v53  ;;  %v1823_v10 = vld [vmem:[%s11511_s23 + $0x488] sm:$0xff] }
 0x183   : > { %7657 = vmatprep.subr.bf16.mxu0 %v2014_v34  ;;  %7679 = vmatprep.subr.bf16.mxu1 %v2030_v28  ;;  %v1963_v34 = vpack.c.bf16 %v1944_v17, %v1944_v17  ;;  %v2010_v28 = vpack.c.bf16 %v1751_v25, %v1750_v23  ;;  %v2019_v31 = vpack.c.bf16 %v1769_v33, %v1768_v30  ;;  %v1756_v1 = vld [vmem:[%s11511_s23 + $0x270] sm:$0xff]  ;;  %v1757_v2 = vld [vmem:[%s11511_s23 + $0x278] sm:$0xff]  ;;  %v1807_v18 = vld [vmem:[%s11511_s23 + $0x408] sm:$0xff] }
 0x184   : > { %v1788_v4 = vld [vmem:[%s11511_s23 + $0x370] sm:$0xff]  ;;  %v1789_v6 = vld [vmem:[%s11511_s23 + $0x378] sm:$0xff]  ;;  %v2013_v14 = vpack.c.bf16 %v1757_v2, %v1756_v1  ;;  %v1838_v21 = vld [vmem:[%s11511_s23 + $0x500] sm:$0xff]  ;;  %v1964_v23 = vpack.c.bf16 %v9599_v8, %v9599_v8 }
 0x185   : > { %2142 = vmatmul.mubr.bf16.vlgmr.msra.gmra.mrb[0].mxu0 %v1958_v35  ;;  %2182 = vmatmul.mubr.bf16.vlgmr.msra.gmra.mrb[0].mxu1 %v1960_v42  ;;  %v1753_v35 = vld [vmem:[%s11511_s23 + $0x258] sm:$0xff]  ;;  %v2029_v15 = vpack.c.bf16 %v1789_v6, %v1788_v4  ;;  %v1839_v5 = vld [vmem:[%s11511_s23 + $0x508] sm:$0xff]  ;;  %v1808_v26 = vld [vmem:[%s11511_s23 + $0x410] sm:$0xff] }
 0x186   : > { %7658 = vmatpush3.bf16.msra.mxu0 %v2006_v44  ;;  %7680 = vmatpush3.bf16.msra.mxu1 %v2022_v43  ;;  %v1785_v42 = vld [vmem:[%s11511_s23 + $0x358] sm:$0xff]  ;;  %v1770_v44 = vld [vmem:[%s11511_s23 + $0x2e0] sm:$0xff]  ;;  %v1771_v43 = vld [vmem:[%s11511_s23 + $0x2e8] sm:$0xff]  ;;  %v2011_v48 = vpack.c.bf16 %v1753_v35, %v1752_v32 }
 0x187   : > { %7659 = vmatprep.subr.bf16.mxu0 %v2015_v45  ;;  %7681 = vmatprep.subr.bf16.mxu1 %v2031_v47  ;;  %v1802_v45 = vld [vmem:[%s11511_s23 + $0x3e0] sm:$0xff]  ;;  %v2027_v50 = vpack.c.bf16 %v1785_v42, %v1784_v41  ;;  %v2020_v47 = vpack.c.bf16 %v1771_v43, %v1770_v44  ;;  %v1825_v17 = vld [vmem:[%s11511_s23 + $0x498] sm:$0xff]  ;;  %v1840_v30 = vld [vmem:[%s11511_s23 + $0x510] sm:$0xff] }
 0x188   : > { %2221 = vmatprep.mubr.bf16.mxu0 %v1963_v34  ;;  %2261 = vmatprep.mubr.bf16.mxu1 %v1965_v36  ;;  %v2036_v54 = vpack.c.bf16 %v1803_v46, %v1802_v45  ;;  %v1809_v9 = vld [vmem:[%s11511_s23 + $0x418] sm:$0xff]  ;;  %v9738_v33 = vld [vmem:[#allocation2 + $0x20] sm:$0xff]  ;;  %v9740_v8 = vld [vmem:[#allocation2 + $0x28] sm:$0xff] }
 0x189   : > { %v1841_v36 = vld [vmem:[%s11511_s23 + $0x518] sm:$0xff]  ;;  %v1826_v37 = vld [vmem:[%s11511_s23 + $0x4a0] sm:$0xff]  ;;  %v1827_v38 = vld [vmem:[%s11511_s23 + $0x4a8] sm:$0xff]  ;;  %v2039_v35 = vpack.c.bf16 %v1809_v9, %v1808_v26 }
 0x18a   : > { %7660 = vmatpush3.bf16.msra.mxu0 %v2007_v56  ;;  %7682 = vmatpush3.bf16.msra.mxu1 %v2023_v57  ;;  %v1772_v56 = vld [vmem:[%s11511_s23 + $0x2f0] sm:$0xff]  ;;  %v1773_v57 = vld [vmem:[%s11511_s23 + $0x2f8] sm:$0xff]  ;;  %v1859_v32 = vld [vmem:[%s11511_s23 + $0x5a8] sm:$0xff]  ;;  %v2055_v42 = vpack.c.bf16 %v1841_v36, %v1840_v30  ;;  %v2048_v44 = vpack.c.bf16 %v1827_v38, %v1826_v37 }
 0x18b   : > { %7661 = vmatprep.subr.bf16.mxu0 %v2016_v58  ;;  %7683 = vmatprep.subr.bf16.mxu1 %v2032_v63  ;;  %v1804_v58 = vld [vmem:[%s11511_s23 + $0x3f0] sm:$0xff]  ;;  %v2021_v63 = vpack.c.bf16 %v1773_v57, %v1772_v56  ;;  %v1810_v43 = vld [vmem:[%s11511_s23 + $0x420] sm:$0xff]  ;;  %v1811_v45 = vld [vmem:[%s11511_s23 + $0x428] sm:$0xff] }
 0x18c   : > { %v2037_v0 = vpack.c.bf16 %v1805_v60, %v1804_v58  ;;  %v1842_v46 = vld [vmem:[%s11511_s23 + $0x520] sm:$0xff]  ;;  %v1829_v51 = vld [vmem:[%s11511_s23 + $0x4b8] sm:$0xff]  ;;  %v1860_v52 = vld [vmem:[%s11511_s23 + $0x5b0] sm:$0xff] }
 0x18d   : > { %v1861_v53 = vld [vmem:[%s11511_s23 + $0x5b8] sm:$0xff]  ;;  %v1812_v57 = vld [vmem:[%s11511_s23 + $0x430] sm:$0xff]  ;;  %v1831_v1 = vld [vmem:[%s11511_s23 + $0x4c8] sm:$0xff] }
 0x18e   : > { %7662 = vmatpush3.bf16.msra.mxu0 %v2008_v7  ;;  %7684 = vmatpush3.bf16.msra.mxu1 %v2024_v11  ;;  %v1822_v7 = vld [vmem:[%s11511_s23 + $0x480] sm:$0xff]  ;;  %v1813_v58 = vld [vmem:[%s11511_s23 + $0x438] sm:$0xff]  ;;  %v1844_v60 = vld [vmem:[%s11511_s23 + $0x530] sm:$0xff] }
 0x18f   : > { %7663 = vmatprep.subr.bf16.mxu0 %v2017_v13  ;;  %7685 = vmatprep.subr.bf16.mxu1 %v2033_v49  ;;  %v1854_v11 = vld [vmem:[%s11511_s23 + $0x580] sm:$0xff]  ;;  %v1855_v13 = vld [vmem:[%s11511_s23 + $0x588] sm:$0xff]  ;;  %v2046_v16 = vpack.c.bf16 %v1823_v10, %v1822_v7 }
 0x190   : > { %v1806_v49 = vld [vmem:[%s11511_s23 + $0x400] sm:$0xff]  ;;  %v2062_v22 = vpack.c.bf16 %v1855_v13, %v1854_v11  ;;  %v1863_v4 = vld [vmem:[%s11511_s23 + $0x5c8] sm:$0xff] }
 0x191   : > { %v2038_v25 = vpack.c.bf16 %v1807_v18, %v1806_v49  ;;  %v1862_v2 = vld [vmem:[%s11511_s23 + $0x5c0] sm:$0xff]  ;;  %v1815_v11 = vld [vmem:[%s11511_s23 + $0x448] sm:$0xff]  ;;  %v1833_v49 = vld [vmem:[%s11511_s23 + $0x4d8] sm:$0xff] }
 0x192   : > { %7664 = vmatpush3.bf16.msra.mxu0 %v2009_v12  ;;  %7686 = vmatpush3.bf16.msra.mxu1 %v2025_v20  ;;  %v1824_v12 = vld [vmem:[%s11511_s23 + $0x490] sm:$0xff]  ;;  %v1814_v10 = vld [vmem:[%s11511_s23 + $0x440] sm:$0xff]  ;;  %v1835_v26 = vld [vmem:[%s11511_s23 + $0x4e8] sm:$0xff] }
 0x193   : > { %7665 = vmatprep.subr.bf16.mxu0 %v2018_v19  ;;  %7687 = vmatprep.subr.bf16.mxu1 %v2034_v27  ;;  %v1856_v20 = vld [vmem:[%s11511_s23 + $0x590] sm:$0xff]  ;;  %v1857_v19 = vld [vmem:[%s11511_s23 + $0x598] sm:$0xff]  ;;  %v2054_v27 = vpack.c.bf16 %v1839_v5, %v1838_v21  ;;  %v2047_v29 = vpack.c.bf16 %v1825_v17, %v1824_v12  ;;  %v1846_v13 = vld [vmem:[%s11511_s23 + $0x540] sm:$0xff] }
 0x194   : > { %v2063_v34 = vpack.c.bf16 %v1857_v19, %v1856_v20  ;;  %v1864_v18 = vld [vmem:[%s11511_s23 + $0x5d0] sm:$0xff]  ;;  %v1865_v21 = vld [vmem:[%s11511_s23 + $0x5d8] sm:$0xff]  ;;  %v1866_v9 = vld [vmem:[%s11511_s23 + $0x5e0] sm:$0xff] }
 0x195   : > { %v1816_v17 = vld [vmem:[%s11511_s23 + $0x450] sm:$0xff]  ;;  %v2067_v19 = vpack.c.bf16 %v1865_v21, %v1864_v18  ;;  %v1818_v36 = vld [vmem:[%s11511_s23 + $0x460] sm:$0xff]  ;;  %v1819_v37 = vld [vmem:[%s11511_s23 + $0x468] sm:$0xff] }
 0x196   : > { %7666 = vmatpush3.bf16.msra.mxu0 %v2010_v28  ;;  %7688 = vmatpush3.bf16.msra.mxu1 %v2026_v39  ;;  %v1946_v28 = vcombine.high %v9738_v33, %v9738_v33  ;;  %v1947_v39 = vcombine.high %v9740_v8, %v9740_v8  ;;  %v1848_v20 = vld [vmem:[%s11511_s23 + $0x550] sm:$0xff]  ;;  %v1850_v38 = vld [vmem:[%s11511_s23 + $0x560] sm:$0xff] }
 0x197   : > { %7667 = vmatprep.subr.bf16.mxu0 %v2019_v31  ;;  %7689 = vmatprep.subr.bf16.mxu1 %v2035_v40  ;;  %v1858_v31 = vld [vmem:[%s11511_s23 + $0x5a0] sm:$0xff]  ;;  %v1904_v18 = vld [vmem:[%s11511_s23 + $0x710] sm:$0xff] }
 0x198   : > { %v1967_v41 = vpack.c.bf16 %v1946_v28, %v1946_v28  ;;  %v1969_v40 = vpack.c.bf16 %v1947_v39, %v1947_v39  ;;  %v1851_v39 = vld [vmem:[%s11511_s23 + $0x568] sm:$0xff] }
 0x19a   : > { %7668 = vmatpush3.bf16.msra.mxu0 %v2011_v48  ;;  %7690 = vmatpush3.bf16.msra.mxu1 %v2027_v50  ;;  %v2064_v48 = vpack.c.bf16 %v1859_v32, %v1858_v31  ;;  %v1843_v50 = vld [vmem:[%s11511_s23 + $0x528] sm:$0xff]  ;;  %v1836_v31 = vld [vmem:[%s11511_s23 + $0x4f0] sm:$0xff]  ;;  %v1837_v32 = vld [vmem:[%s11511_s23 + $0x4f8] sm:$0xff] }
 0x19b   : > { %7669 = vmatprep.subr.bf16.mxu0 %v2020_v47  ;;  %7691 = vmatprep.subr.bf16.mxu1 %v2036_v54  ;;  %v1828_v47 = vld [vmem:[%s11511_s23 + $0x4b0] sm:$0xff]  ;;  %v2040_v54 = vpack.c.bf16 %v1811_v45, %v1810_v43  ;;  %v2056_v55 = vpack.c.bf16 %v1843_v50, %v1842_v46  ;;  %v1821_v45 = vld [vmem:[%s11511_s23 + $0x478] sm:$0xff] }
 0x19c   : > { %v2049_v56 = vpack.c.bf16 %v1829_v51, %v1828_v47  ;;  %v1820_v43 = vld [vmem:[%s11511_s23 + $0x470] sm:$0xff]  ;;  %v1853_v50 = vld [vmem:[%s11511_s23 + $0x578] sm:$0xff]  ;;  %v1886_v47 = vld [vmem:[%s11511_s23 + $0x680] sm:$0xff] }
 0x19d   : > { %v1852_v46 = vld [vmem:[%s11511_s23 + $0x570] sm:$0xff]  ;;  %v1887_v51 = vld [vmem:[%s11511_s23 + $0x688] sm:$0xff] }
 0x19e   : > { %7670 = vmatpush3.bf16.msra.mxu0 %v2012_v61  ;;  %7692 = vmatpush3.bf16.msra.mxu1 %v2028_v62  ;;  %v2065_v61 = vpack.c.bf16 %v1861_v53, %v1860_v52  ;;  %v1845_v62 = vld [vmem:[%s11511_s23 + $0x538] sm:$0xff]  ;;  %v1918_v52 = vld [vmem:[%s11511_s23 + $0x780] sm:$0xff]  ;;  %v1919_v53 = vld [vmem:[%s11511_s23 + $0x788] sm:$0xff] }
 0x19f   : > { %7671 = vmatprep.subr.bf16.mxu0 %v2021_v63  ;;  %7693 = vmatprep.subr.bf16.mxu1 %v2037_v0  ;;  %v1830_v63 = vld [vmem:[%s11511_s23 + $0x4c0] sm:$0xff]  ;;  %v2041_v0 = vpack.c.bf16 %v1813_v58, %v1812_v57  ;;  %v2057_v6 = vpack.c.bf16 %v1845_v62, %v1844_v60  ;;  %v2061_v57 = vpack.c.bf16 %v1853_v50, %v1852_v46  ;;  %v1927_v46 = vld [vmem:[%s11511_s23 + $0x7c8] sm:$0xff] }
 0x1a0   : > { %v2050_v7 = vpack.c.bf16 %v1831_v1, %v1830_v63  ;;  %v2078_v58 = vpack.c.bf16 %v1887_v51, %v1886_v47  ;;  %v1870_v60 = vld [vmem:[%s11511_s23 + $0x600] sm:$0xff]  ;;  %v2094_v63 = vpack.c.bf16 %v1919_v53, %v1918_v52  ;;  %v1903_v1 = vld [vmem:[%s11511_s23 + $0x708] sm:$0xff] }
 0x1a1   : > { %v1902_v62 = vld [vmem:[%s11511_s23 + $0x700] sm:$0xff]  ;;  %v1879_v52 = vld [vmem:[%s11511_s23 + $0x648] sm:$0xff] }
 0x1a2   : > { %7672 = vmatpush3.bf16.msra.mxu0 %v2013_v14  ;;  %7694 = vmatpush3.bf16.msra.mxu1 %v2029_v15  ;;  %v2066_v14 = vpack.c.bf16 %v1863_v4, %v1862_v2  ;;  %v1847_v15 = vld [vmem:[%s11511_s23 + $0x548] sm:$0xff]  ;;  %v1888_v2 = vld [vmem:[%s11511_s23 + $0x690] sm:$0xff]  ;;  %v1889_v4 = vld [vmem:[%s11511_s23 + $0x698] sm:$0xff] }
 0x1a3   : > { %7701 = vmatprep.subr.bf16.mxu0 %v2046_v16  ;;  %7723 = vmatprep.subr.bf16.mxu1 %v2062_v22  ;;  %v1832_v16 = vld [vmem:[%s11511_s23 + $0x4d0] sm:$0xff]  ;;  %v2042_v22 = vpack.c.bf16 %v1815_v11, %v1814_v10  ;;  %v2058_v5 = vpack.c.bf16 %v1847_v15, %v1846_v13  ;;  %v1921_v10 = vld [vmem:[%s11511_s23 + $0x798] sm:$0xff]  ;;  %v1968_v13 = vpack.c.bf16 %v9740_v8, %v9740_v8  ;;  %v1878_v51 = vld [vmem:[%s11511_s23 + $0x640] sm:$0xff] }
 0x1a4   : > { %v2051_v12 = vpack.c.bf16 %v1833_v49, %v1832_v16  ;;  %v2086_v15 = vpack.c.bf16 %v1903_v1, %v1902_v62  ;;  %v1872_v16 = vld [vmem:[%s11511_s23 + $0x610] sm:$0xff]  ;;  %v1873_v49 = vld [vmem:[%s11511_s23 + $0x618] sm:$0xff]  ;;  %v1910_v53 = vld [vmem:[%s11511_s23 + $0x740] sm:$0xff] }
 0x1a5   : > { %2222 = vmatmul.mubr.bf16.vlgmr.msra.gmra.mrb[4].mxu0 %v1962_v24  ;;  %2262 = vmatmul.mubr.bf16.vlgmr.msra.gmra.mrb[4].mxu1 %v1964_v23  ;;  %v1817_v24 = vld [vmem:[%s11511_s23 + $0x458] sm:$0xff] }
 0x1a6   : > { %7702 = vmatpush3.bf16.msra.mxu0 %v2038_v25  ;;  %7724 = vmatpush3.bf16.msra.mxu1 %v2054_v27  ;;  %v1849_v23 = vld [vmem:[%s11511_s23 + $0x558] sm:$0xff]  ;;  %v1834_v25 = vld [vmem:[%s11511_s23 + $0x4e0] sm:$0xff]  ;;  %v1867_v27 = vld [vmem:[%s11511_s23 + $0x5e8] sm:$0xff] }
 0x1a7   : > { %7703 = vmatprep.subr.bf16.mxu0 %v2047_v29  ;;  %7725 = vmatprep.subr.bf16.mxu1 %v2063_v34  ;;  %v2043_v29 = vpack.c.bf16 %v1817_v24, %v1816_v17  ;;  %v2059_v30 = vpack.c.bf16 %v1849_v23, %v1848_v20  ;;  %v2052_v34 = vpack.c.bf16 %v1835_v26, %v1834_v25  ;;  %v1905_v8 = vld [vmem:[%s11511_s23 + $0x718] sm:$0xff]  ;;  %v1922_v17 = vld [vmem:[%s11511_s23 + $0x7a0] sm:$0xff]  ;;  %v1923_v24 = vld [vmem:[%s11511_s23 + $0x7a8] sm:$0xff] }
 0x1a8   : > { %2301 = vmatprep.mubr.bf16.mxu0 %v1967_v41  ;;  %2341 = vmatprep.mubr.bf16.mxu1 %v1969_v40  ;;  %v2068_v28 = vpack.c.bf16 %v1867_v27, %v1866_v9  ;;  %v1869_v41 = vld [vmem:[%s11511_s23 + $0x5f8] sm:$0xff]  ;;  %v2044_v40 = vpack.c.bf16 %v1819_v37, %v1818_v36  ;;  %v2087_v23 = vpack.c.bf16 %v1905_v8, %v1904_v18  ;;  %v1874_v26 = vld [vmem:[%s11511_s23 + $0x620] sm:$0xff]  ;;  %v1875_v9 = vld [vmem:[%s11511_s23 + $0x628] sm:$0xff] }
 0x1a9   : > { %v1906_v27 = vld [vmem:[%s11511_s23 + $0x720] sm:$0xff]  ;;  %v1893_v36 = vld [vmem:[%s11511_s23 + $0x6b8] sm:$0xff]  ;;  %v1924_v37 = vld [vmem:[%s11511_s23 + $0x7b0] sm:$0xff] }
 0x1aa   : > { %7704 = vmatpush3.bf16.msra.mxu0 %v2039_v35  ;;  %7726 = vmatpush3.bf16.msra.mxu1 %v2055_v42  ;;  %v1868_v35 = vld [vmem:[%s11511_s23 + $0x5f0] sm:$0xff]  ;;  %v2060_v42 = vpack.c.bf16 %v1851_v39, %v1850_v38  ;;  %v1925_v38 = vld [vmem:[%s11511_s23 + $0x7b8] sm:$0xff]  ;;  %v1882_v18 = vld [vmem:[%s11511_s23 + $0x660] sm:$0xff] }
 0x1ab   : > { %7705 = vmatprep.subr.bf16.mxu0 %v2048_v44  ;;  %7727 = vmatprep.subr.bf16.mxu1 %v2064_v48  ;;  %v2053_v44 = vpack.c.bf16 %v1837_v32, %v1836_v31  ;;  %v2069_v48 = vpack.c.bf16 %v1869_v41, %v1868_v35  ;;  %v1876_v32 = vld [vmem:[%s11511_s23 + $0x630] sm:$0xff]  ;;  %v1877_v35 = vld [vmem:[%s11511_s23 + $0x638] sm:$0xff]  ;;  %v1914_v8 = vld [vmem:[%s11511_s23 + $0x760] sm:$0xff] }
 0x1ac   : > { %v1908_v41 = vld [vmem:[%s11511_s23 + $0x730] sm:$0xff]  ;;  %v1929_v62 = vld [vmem:[%s11511_s23 + $0x7d8] sm:$0xff] }
 0x1ae   : > { %7706 = vmatpush3.bf16.msra.mxu0 %v2040_v54  ;;  %7728 = vmatpush3.bf16.msra.mxu1 %v2056_v55  ;;  %v9905_v54 = vld [vmem:[#allocation2 + $0x30] sm:$0xff]  ;;  %v2045_v55 = vpack.c.bf16 %v1821_v45, %v1820_v43  ;;  %v1895_v43 = vld [vmem:[%s11511_s23 + $0x6c8] sm:$0xff]  ;;  %v1926_v45 = vld [vmem:[%s11511_s23 + $0x7c0] sm:$0xff] }
 0x1af   : > { %7707 = vmatprep.subr.bf16.mxu0 %v2049_v56  ;;  %7729 = vmatprep.subr.bf16.mxu1 %v2065_v61  ;;  %v9907_v56 = vld [vmem:[#allocation2 + $0x38] sm:$0xff]  ;;  %v1871_v61 = vld [vmem:[%s11511_s23 + $0x608] sm:$0xff] }
 0x1b0   : > { %v1949_v11 = vcombine.high %v9907_v56, %v9907_v56 }
 0x1b2   : > { %7708 = vmatpush3.bf16.msra.mxu0 %v2041_v0  ;;  %7730 = vmatpush3.bf16.msra.mxu1 %v2057_v6  ;;  %v1948_v0 = vcombine.high %v9905_v54, %v9905_v54  ;;  %v1966_v6 = vpack.c.bf16 %v9738_v33, %v9738_v33  ;;  %v2079_v33 = vpack.c.bf16 %v1889_v4, %v1888_v2  ;;  %v1880_v4 = vld [vmem:[%s11511_s23 + $0x650] sm:$0xff] }
 0x1b3   : > { %7709 = vmatprep.subr.bf16.mxu0 %v2050_v7  ;;  %7731 = vmatprep.subr.bf16.mxu1 %v2066_v14  ;;  %v1920_v7 = vld [vmem:[%s11511_s23 + $0x790] sm:$0xff]  ;;  %v2070_v14 = vpack.c.bf16 %v1871_v61, %v1870_v60  ;;  %v1973_v20 = vpack.c.bf16 %v1949_v11, %v1949_v11  ;;  %v1897_v60 = vld [vmem:[%s11511_s23 + $0x6d8] sm:$0xff]  ;;  %v1898_v11 = vld [vmem:[%s11511_s23 + $0x6e0] sm:$0xff] }
 0x1b4   : > { %v2095_v21 = vpack.c.bf16 %v1921_v10, %v1920_v7  ;;  %v1928_v61 = vld [vmem:[%s11511_s23 + $0x7d0] sm:$0xff]  ;;  %v1913_v10 = vld [vmem:[%s11511_s23 + $0x758] sm:$0xff] }
 0x1b5   : > { %v2099_v7 = vpack.c.bf16 %v1929_v62, %v1928_v61 }
 0x1b6   : > { %7710 = vmatpush3.bf16.msra.mxu0 %v2042_v22  ;;  %7732 = vmatpush3.bf16.msra.mxu1 %v2058_v5  ;;  %v1890_v22 = vld [vmem:[%s11511_s23 + $0x6a0] sm:$0xff]  ;;  %v1891_v5 = vld [vmem:[%s11511_s23 + $0x6a8] sm:$0xff] }
 0x1b7   : > { %7711 = vmatprep.subr.bf16.mxu0 %v2051_v12  ;;  %7733 = vmatprep.subr.bf16.mxu1 %v2067_v19  ;;  %v1971_v12 = vpack.c.bf16 %v1948_v0, %v1948_v0  ;;  %v2071_v19 = vpack.c.bf16 %v1873_v49, %v1872_v16  ;;  %v2080_v25 = vpack.c.bf16 %v1891_v5, %v1890_v22  ;;  %v1881_v0 = vld [vmem:[%s11511_s23 + $0x658] sm:$0xff]  ;;  %v1915_v5 = vld [vmem:[%s11511_s23 + $0x768] sm:$0xff] }
 0x1ba   : > { %7712 = vmatpush3.bf16.msra.mxu0 %v2043_v29  ;;  %7734 = vmatpush3.bf16.msra.mxu1 %v2059_v30  ;;  %v2096_v29 = vpack.c.bf16 %v1923_v24, %v1922_v17  ;;  %v1907_v30 = vld [vmem:[%s11511_s23 + $0x728] sm:$0xff]  ;;  %v1901_v17 = vld [vmem:[%s11511_s23 + $0x6f8] sm:$0xff]  ;;  %v1932_v24 = vld [vmem:[%s11511_s23 + $0x7f0] sm:$0xff] }
 0x1bb   : > { %7713 = vmatprep.subr.bf16.mxu0 %v2052_v34  ;;  %7735 = vmatprep.subr.bf16.mxu1 %v2068_v28  ;;  %v1892_v34 = vld [vmem:[%s11511_s23 + $0x6b0] sm:$0xff]  ;;  %v2072_v28 = vpack.c.bf16 %v1875_v9, %v1874_v26  ;;  %v2088_v39 = vpack.c.bf16 %v1907_v30, %v1906_v27  ;;  %v1885_v9 = vld [vmem:[%s11511_s23 + $0x678] sm:$0xff] }
 0x1bc   : > { %v2081_v31 = vpack.c.bf16 %v1893_v36, %v1892_v34  ;;  %v1884_v26 = vld [vmem:[%s11511_s23 + $0x670] sm:$0xff]  ;;  %v1917_v30 = vld [vmem:[%s11511_s23 + $0x778] sm:$0xff] }
 0x1bd   : > { %v2077_v34 = vpack.c.bf16 %v1885_v9, %v1884_v26 }
 0x1be   : > { %7714 = vmatpush3.bf16.msra.mxu0 %v2044_v40  ;;  %7736 = vmatpush3.bf16.msra.mxu1 %v2060_v42  ;;  %v2097_v40 = vpack.c.bf16 %v1925_v38, %v1924_v37  ;;  %v1909_v42 = vld [vmem:[%s11511_s23 + $0x738] sm:$0xff]  ;;  %v1970_v37 = vpack.c.bf16 %v9905_v54, %v9905_v54  ;;  %v1972_v38 = vpack.c.bf16 %v9907_v56, %v9907_v56  ;;  %v2438_v56 = vld [vmem:[%s11512_s14 + $0x48] sm:$0xff] }
 0x1bf   : > { %7715 = vmatprep.subr.bf16.mxu0 %v2053_v44  ;;  %7737 = vmatprep.subr.bf16.mxu1 %v2069_v48  ;;  %v1894_v44 = vld [vmem:[%s11511_s23 + $0x6c0] sm:$0xff]  ;;  %v2073_v48 = vpack.c.bf16 %v1877_v35, %v1876_v32  ;;  %v2089_v50 = vpack.c.bf16 %v1909_v42, %v1908_v41  ;;  %v8870_v32 = vmov 0.0   ;;  %v2431_v41 = vld [vmem:[%s11512_s14 + $0x10] sm:$0xff] }
 0x1c0   : > { %v2082_v47 = vpack.c.bf16 %v1895_v43, %v1894_v44  ;;  %v2439_v42 = vld [vmem:[%s11512_s14 + $0x50] sm:$0xff]  ;;  %v2440_v43 = vld [vmem:[%s11512_s14 + $0x58] sm:$0xff] }
 0x1c2   : > { %7716 = vmatpush3.bf16.msra.mxu0 %v2045_v55  ;;  %7738 = vmatpush3.bf16.msra.mxu1 %v2061_v57  ;;  %v2098_v55 = vpack.c.bf16 %v1927_v46, %v1926_v45  ;;  %v1911_v57 = vld [vmem:[%s11511_s23 + $0x748] sm:$0xff]  ;;  %v2544_v45 = vpack.c.bf16 %v2440_v43, %v2439_v42  ;;  %v10176_v42 = vld [vmem:[%s11514_s13] sm:$0xf] }
 0x1c3   : > { %7745 = vmatprep.subr.bf16.mxu0 %v2078_v58  ;;  %7767 = vmatprep.subr.bf16.mxu1 %v2094_v63  ;;  %v1896_v58 = vld [vmem:[%s11511_s23 + $0x6d0] sm:$0xff]  ;;  %v2074_v63 = vpack.c.bf16 %v1879_v52, %v1878_v51  ;;  %v2090_v1 = vpack.c.bf16 %v1911_v57, %v1910_v53 }
 0x1c4   : > { %v2083_v2 = vpack.c.bf16 %v1897_v60, %v1896_v58 }
 0x1c5   : > { %2302 = vmatmul.mubr.bf16.vlgmr.msra.gmra.mrb[8].mxu0 %v1966_v6  ;;  %2342 = vmatmul.mubr.bf16.vlgmr.msra.gmra.mrb[8].mxu1 %v1968_v13  ;;  %v1912_v6 = vld [vmem:[%s11511_s23 + $0x750] sm:$0xff]  ;;  %v1899_v13 = vld [vmem:[%s11511_s23 + $0x6e8] sm:$0xff] }
 0x1c6   : > { %7746 = vmatpush3.bf16.msra.mxu0 %v2070_v14  ;;  %7768 = vmatpush3.bf16.msra.mxu1 %v2086_v15  ;;  %v1930_v14 = vld [vmem:[%s11511_s23 + $0x7e0] sm:$0xff]  ;;  %v1931_v15 = vld [vmem:[%s11511_s23 + $0x7e8] sm:$0xff]  ;;  %v2091_v16 = vpack.c.bf16 %v1913_v10, %v1912_v6  ;;  %v2084_v49 = vpack.c.bf16 %v1899_v13, %v1898_v11 }
 0x1c7   : > { %7747 = vmatprep.subr.bf16.mxu0 %v2079_v33  ;;  %7769 = vmatprep.subr.bf16.mxu1 %v2095_v21  ;;  %v2075_v33 = vpack.c.bf16 %v1881_v0, %v1880_v4  ;;  %v1883_v21 = vld [vmem:[%s11511_s23 + $0x668] sm:$0xff]  ;;  %v2100_v22 = vpack.c.bf16 %v1931_v15, %v1930_v14 }
 0x1c8   : > { %2381 = vmatprep.mubr.bf16.mxu0 %v1971_v12  ;;  %2421 = vmatprep.mubr.bf16.mxu1 %v1973_v20  ;;  %v1900_v12 = vld [vmem:[%s11511_s23 + $0x6f0] sm:$0xff]  ;;  %v1933_v20 = vld [vmem:[%s11511_s23 + $0x7f8] sm:$0xff] }
 0x1c9   : > { %v2101_v27 = vpack.c.bf16 %v1933_v20, %v1932_v24 }
 0x1ca   : > { %7748 = vmatpush3.bf16.msra.mxu0 %v2071_v19  ;;  %7770 = vmatpush3.bf16.msra.mxu1 %v2087_v23  ;;  %v2076_v19 = vpack.c.bf16 %v1883_v21, %v1882_v18  ;;  %v2092_v23 = vpack.c.bf16 %v1915_v5, %v1914_v8 }
 0x1cb   : > { %7749 = vmatprep.subr.bf16.mxu0 %v2080_v25  ;;  %7771 = vmatprep.subr.bf16.mxu1 %v2096_v29  ;;  %v2085_v25 = vpack.c.bf16 %v1901_v17, %v1900_v12  ;;  %v1916_v29 = vld [vmem:[%s11511_s23 + $0x770] sm:$0xff] }
 0x1cc   : > { %v2093_v36 = vpack.c.bf16 %v1917_v30, %v1916_v29 }
 0x1ce   : > { %7750 = vmatpush3.bf16.msra.mxu0 %v2072_v28  ;;  %7772 = vmatpush3.bf16.msra.mxu1 %v2088_v39  ;;  %v2429_v28 = vld [vmem:[%s11512_s14] sm:$0xff]  ;;  %v2430_v39 = vld [vmem:[%s11512_s14 + $0x8] sm:$0xff] }
 0x1cf   : > { %7751 = vmatprep.subr.bf16.mxu0 %v2081_v31  ;;  %7773 = vmatprep.subr.bf16.mxu1 %v2097_v40  ;;  %v2437_v31 = vld [vmem:[%s11512_s14 + $0x40] sm:$0xff]  ;;  %v2447_v54 = vpack.c.bf16 %v2430_v39, %v2429_v28  ;;  %v2432_v40 = vld [vmem:[%s11512_s14 + $0x18] sm:$0xff]  ;;  %v2434_v28 = vld [vmem:[%s11512_s14 + $0x28] sm:$0xff] }
 0x1d0   : > { %v2543_v35 = vpack.c.bf16 %v2438_v56, %v2437_v31  ;;  %v2448_v44 = vpack.c.bf16 %v2432_v40, %v2431_v41  ;;  %v2435_v56 = vld [vmem:[%s11512_s14 + $0x30] sm:$0xff]  ;;  %v10171_v40 = vsub.s32 2, %v9209_v59 }
 0x1d2   : > { %7752 = vmatpush3.bf16.msra.mxu0 %v2073_v48  ;;  %7774 = vmatpush3.bf16.msra.mxu1 %v2089_v50  ;;  %v7436_v50 = vld [vmem:[%s11513_s22] ss:$0 sm:$0xff]  ;;  %s11539_s22 = sld [smem:[#allocation22_spill]] }
 0x1d3   : > { %7753 = vmatprep.subr.bf16.mxu0 %v2082_v47  ;;  %7775 = vmatprep.subr.bf16.mxu1 %v2098_v55 }
 0x1d6   : > { %7754 = vmatpush3.bf16.msra.mxu0 %v2074_v63  ;;  %7776 = vmatpush3.bf16.msra.mxu1 %v2090_v1 }
 0x1d7   : > { %7755 = vmatprep.subr.bf16.mxu0 %v2083_v2  ;;  %7777 = vmatprep.subr.bf16.mxu1 %v2099_v7 }
 0x1da   : > { %7756 = vmatpush3.bf16.msra.mxu0 %v2075_v33  ;;  %7778 = vmatpush3.bf16.msra.mxu1 %v2091_v16 }
 0x1db   : > { %7757 = vmatprep.subr.bf16.mxu0 %v2084_v49  ;;  %7779 = vmatprep.subr.bf16.mxu1 %v2100_v22 }
 0x1de   : > { %7758 = vmatpush3.bf16.msra.mxu0 %v2076_v19  ;;  %7780 = vmatpush3.bf16.msra.mxu1 %v2092_v23 }
 0x1df   : > { %7759 = vmatprep.subr.bf16.mxu0 %v2085_v25  ;;  %7781 = vmatprep.subr.bf16.mxu1 %v2101_v27 }
 0x1e2   : > { %7760 = vmatpush3.bf16.msra.mxu0 %v2077_v34  ;;  %7782 = vmatpush3.bf16.msra.mxu1 %v2093_v36 }
 0x1e3   : > { %7989 = vmatprep.subr.bf16.mxu1 %v8870_v32  ;;  %8005 = vmatprep.subr.bf16.mxu0 %v8870_v32 }
 0x1e5   : > { %2382 = vmatmul.mubr.bf16.vlgmr.msra.gmra.mrb[12].mxu0 %v1970_v37  ;;  %2422 = vmatmul.mubr.bf16.vlgmr.msra.gmra.mrb[12].mxu1 %v1972_v38  ;;  %v2433_v38 = vld [vmem:[%s11512_s14 + $0x20] sm:$0xff] }
 0x1e6   : > { %7990 = vmatpush3.bf16.msra.mxu1 %v2447_v54  ;;  %8006 = vmatpush3.bf16.msra.mxu0 %v2543_v35  ;;  %v2497_v31 = vpack.c.bf16 %v2434_v28, %v2433_v38  ;;  %v2436_v35 = vld [vmem:[%s11512_s14 + $0x38] sm:$0xff] }
 0x1e7   : > { %7991 = vmatprep.subr.bf16.mxu1 %v8870_v32  ;;  %8007 = vmatprep.subr.bf16.mxu0 %v8870_v32  ;;  %v2498_v41 = vpack.c.bf16 %v2436_v35, %v2435_v56 }
 0x1e8   : > { %7993 = vmatprep.mubr.msk.bf16.mxu1 %vm8871_vm2, %v8870_v32  ;;  %8009 = vmatprep.mubr.msk.bf16.mxu0 %vm8871_vm2, %v8870_v32 }
 0x1ea   : > { %7992 = vmatpush3.bf16.msra.mxu1 %v2448_v44  ;;  %8008 = vmatpush3.bf16.msra.mxu0 %v2544_v45  ;;  %v2548_v44 = vrot.slane %v10176_v42, %v10171_v40 }
 0x1eb   : > { %7997 = vmatprep.subr.bf16.mxu1 %v8870_v32  ;;  %8019 = vmatprep.subr.bf16.mxu0 %v8870_v32 }
 0x258   : > { %v7629_v46 = vpop.f32.mrb[0].mxu0  ;;  %v7651_v48 = vpop.f32.mrb[0].mxu1 }
 0x259   : > { %v7630_v47 = vpop.f32.mrb[1].mxu0  ;;  %v7652_v52 = vpop.f32.mrb[1].mxu1 }
 0x25a   : > { %v7631_v51 = vadd.f32 %v7630_v47, %v7629_v46  ;;  %v7632_v53 = vpop.f32.mrb[2].mxu0  ;;  %v7653_v55 = vadd.f32 %v7652_v52, %v7651_v48  ;;  %v7654_v57 = vpop.f32.mrb[2].mxu1  ;;  %v10181_v47 = vsub.s32 1, %v9209_v59 }
 0x25b   : > { %v7633_v58 = vpop.f32.mrb[3].mxu0  ;;  %v7655_v61 = vpop.f32.mrb[3].mxu1 }
 0x25c   : > { %v2144_v60 = vadd.f32 %v7631_v51, %v7436_v50  ;;  %v2452_v61 = vrot.slane %v10176_v42, %v9213_v3 }
 0x25e   : > { %v2184_v62 = vadd.f32 %v7653_v55, %v2144_v60  ;;  %v2502_v60 = vrot.slane %v10176_v42, %v10181_v47 }
 0x278   : > { %v7673_v63 = vpop.f32.mrb[4].mxu0  ;;  %v7695_v1 = vpop.f32.mrb[4].mxu1 }
 0x279   : > { %v7674_v2 = vpop.f32.mrb[5].mxu0  ;;  %v7696_v0 = vpop.f32.mrb[5].mxu1 }
 0x27a   : > { %v7675_v4 = vadd.f32 %v7674_v2, %v7673_v63  ;;  %v7676_v6 = vpop.f32.mrb[6].mxu0  ;;  %v7697_v7 = vadd.f32 %v7696_v0, %v7695_v1  ;;  %v7698_v10 = vpop.f32.mrb[6].mxu1 }
 0x27b   : > { %v7677_v11 = vpop.f32.mrb[7].mxu0  ;;  %v7699_v14 = vpop.f32.mrb[7].mxu1 }
 0x27c   : > { %v2224_v13 = vadd.f32 %v7675_v4, %v2184_v62 }
 0x27e   : > { %v2264_v15 = vadd.f32 %v7697_v7, %v2224_v13 }
 0x298   : > { %v7717_v33 = vpop.f32.mrb[8].mxu0  ;;  %v7739_v16 = vpop.f32.mrb[8].mxu1 }
 0x299   : > { %v7718_v49 = vpop.f32.mrb[9].mxu0  ;;  %v7740_v21 = vpop.f32.mrb[9].mxu1 }
 0x29a   : > { %v7719_v18 = vadd.f32 %v7718_v49, %v7717_v33  ;;  %v7720_v8 = vpop.f32.mrb[10].mxu0  ;;  %v7741_v22 = vadd.f32 %v7740_v21, %v7739_v16  ;;  %v7742_v5 = vpop.f32.mrb[10].mxu1 }
 0x29b   : > { %v7721_v12 = vpop.f32.mrb[11].mxu0  ;;  %v7743_v24 = vpop.f32.mrb[11].mxu1 }
 0x29c   : > { %v2304_v17 = vadd.f32 %v7719_v18, %v2264_v15 }
 0x29e   : > { %v2344_v20 = vadd.f32 %v7741_v22, %v2304_v17 }
 0x2b8   : > { %v7761_v19 = vpop.f32.mrb[12].mxu0  ;;  %v7783_v23 = vpop.f32.mrb[12].mxu1 }
 0x2b9   : > { %v7762_v25 = vpop.f32.mrb[13].mxu0  ;;  %v7784_v9 = vpop.f32.mrb[13].mxu1 }
 0x2ba   : > { %v7763_v26 = vadd.f32 %v7762_v25, %v7761_v19  ;;  %v7764_v27 = vpop.f32.mrb[14].mxu0  ;;  %v7785_v29 = vadd.f32 %v7784_v9, %v7783_v23  ;;  %v7786_v30 = vpop.f32.mrb[14].mxu1 }
 0x2bb   : > { %v7765_v34 = vpop.f32.mrb[15].mxu0  ;;  %v7787_v37 = vpop.f32.mrb[15].mxu1 }
 0x2bc   : > { %v2384_v36 = vadd.f32 %v7763_v26, %v2344_v20 }
 0x2be   : > { %v10144_v39 = vadd.f32 %v7785_v29, %v2384_v36 }
 0x2c0   : > { %v10148_v54 = vpack.c.bf16 %v10144_v39, %v10144_v39 }
 0x2c2   : > { %7994 = vmatmul.mubr.msk.bf16.vlgmr.msra.gmra.mrb[16].mxu1 %vm2453_vm3, %v10148_v54  ;;  %8010 = vmatmul.mubr.msk.bf16.vlgmr.msra.gmra.mrb[16].mxu0 %vm2453_vm3, %v10148_v54 }
 0x2c3   : > { %7998 = vmatpush3.bf16.msra.mxu1 %v2497_v31  ;;  %8001 = vmatprep.mubr.msk.bf16.mxu1 %vm8871_vm2, %v8870_v32 }
 0x2c4   : > { %7999 = vmatprep.subr.bf16.mxu1 %v8870_v32  ;;  %8021 = vmatprep.mubr.msk.bf16.mxu0 %vm8871_vm2, %v8870_v32 }
 0x2c7   : > { %8000 = vmatpush3.bf16.msra.mxu1 %v2498_v41 }
 0x2c8   : > { %8013 = vmatprep.subr.bf16.mxu1 %v8870_v32 }
 0x2ca   : > { %8002 = vmatmul.mubr.msk.bf16.vlgmr.msra.gmra.mrb[20].mxu1 %vm2453_vm3, %v10148_v54 }
 0x2cb   : > { %8015 = vmatprep.mubr.msk.bf16.mxu1 %vm8871_vm2, %v8870_v32 }
 0x395   : > { %v2491_v43 = vpop.f32.mrb[16].mxu1  ;;  %v2583_v45 = vpop.f32.mrb[16].mxu0 }
 0x396   : > { %v2584_v46 = vadd.f32 %v2583_v45, %v2548_v44  ;;  %v7995_v48 = vpop.f32.mrb[17].mxu1  ;;  %v8011_v50 = vpop.f32.mrb[17].mxu0  ;;  %v2492_v4 = vadd.f32 %v2491_v43, %v2452_v61 }
 0x397   : > { %v2494_v51 = vpop.f32.mrb[18].mxu1  ;;  %v2586_v52 = vpop.f32.mrb[18].mxu0 }
 0x398   : > { %v10183_v53 = vpack.c.bf16 %v2584_v46, %v2584_v46  ;;  %v7996_v55 = vpop.f32.mrb[19].mxu1  ;;  %v8012_v57 = vpop.f32.mrb[19].mxu0  ;;  %v2589_v10 = vpack.c.bf16 %v2492_v4, %v2492_v4 }
 0x39a   : > { %v2659_v58 = vsel %vm2657_vm4, %v10183_v53, 0 }
 0x39b   : > { %8020 = vmatpush3.bf16.msra.mxu0 %v2659_v58 }
 0x39c   : > { %8031 = vmatprep.subr.bf16.mxu0 %v8870_v32 }
 0x39d   : > { %v2537_v62 = vpop.f32.mrb[20].mxu1 }
 0x39e   : > { %v2538_v63 = vadd.f32 %v2537_v62, %v2502_v60  ;;  %v8003_v1 = vpop.f32.mrb[21].mxu1 }
 0x39f   : > { %v2540_v2 = vpop.f32.mrb[22].mxu1 }
 0x3a0   : > { %v2590_v0 = vpack.c.bf16 %v2538_v63, %v2538_v63  ;;  %v8004_v6 = vpop.f32.mrb[23].mxu1 }
 0x3a2   : > { %2817 = vrot.lane.b32.xlu1 %v2590_v0, %s11470_s25  ;;  %2705 = vrot.lane.b32.xlu0 %v2590_v0, %s11474_s4  ;;  %v2596_v7 = vsel %vm2591_vm5, %v2590_v0, 0 }
 0x3a3   : > { %8014 = vmatpush3.bf16.xpose.msra.mxu1 %v2596_v7 }
 0x3a4   : > { %8025 = vmatprep.subr.bf16.mxu1 %v8870_v32 }
 0x3a6   : > { %2815 = vrot.lane.b32.xlu1 %v2589_v10, %s11470_s25  ;;  %2702 = vrot.lane.b32.xlu0 %v2589_v10, %s11474_s4 }
 0x3aa   : > { %2926 = vrot.lane.b32.xlu1 %v2589_v10, %s11472_s1  ;;  %2928 = vrot.lane.b32.xlu0 %v2590_v0, %s11472_s1 }
 0x3ab   : > { %8016 = vmatmul.mubr.msk.bf16.vlgmr.msra.gmra.mrb[24].mxu1 %vm2591_vm5, %v2589_v10 }
 0x3ac   : > { %8027 = vmatprep.mubr.msk.bf16.mxu1 %vm8871_vm2, %v8870_v32 }
 0x414   : > { %v2706_v11 = vpop.permute.xlu0 %2705  ;;  %v2818_v14 = vpop.permute.xlu1 %2817 }
 0x415   : > { %v2711_v13 = vsel %vm2591_vm5, %v2706_v11, 0  ;;  %v2823_v33 = vsel %vm2591_vm5, %v2818_v14, 0 }
 0x416   : > { %8026 = vmatpush3.bf16.xpose.msra.mxu1 %v2711_v13 }
 0x417   : > { %8037 = vmatprep.subr.bf16.mxu1 %v8870_v32 }
 0x418   : > { %v2703_v15 = vpop.permute.xlu0 %2702  ;;  %v2816_v49 = vpop.permute.xlu1 %2815 }
 0x41c   : > { %v2929_v16 = vpop.permute.xlu0 %2928  ;;  %v2927_v21 = vpop.permute.xlu1 %2926 }
 0x41d   : > { %8028 = vmatmul.mubr.msk.bf16.vlgmr.msra.gmra.mrb[28].mxu1 %vm2591_vm5, %v2703_v15  ;;  %v2934_v18 = vsel %vm2591_vm5, %v2929_v16, 0 }
 0x41e   : > { %8038 = vmatpush3.bf16.xpose.msra.mxu1 %v2823_v33  ;;  %8039 = vmatprep.mubr.msk.bf16.mxu1 %vm8871_vm2, %v8870_v32 }
 0x41f   : > { %8049 = vmatprep.subr.bf16.mxu1 %v8870_v32 }
 0x425   : > { %8040 = vmatmul.mubr.msk.bf16.vlgmr.msra.gmra.mrb[32].mxu1 %vm2591_vm5, %v2816_v49 }
 0x426   : > { %8050 = vmatpush3.bf16.xpose.msra.mxu1 %v2934_v18  ;;  %8051 = vmatprep.mubr.msk.bf16.mxu1 %vm8871_vm2, %v8870_v32 }
 0x427   : > { %8061 = vmatprep.subr.bf16.mxu1 %v8870_v32 }
 0x42d   : > { %8052 = vmatmul.mubr.msk.bf16.vlgmr.msra.gmra.mrb[36].mxu1 %vm2591_vm5, %v2927_v21 }
 0x42e   : > { %8065 = vmatprep.mubr.msk.bf16.mxu1 %vm8871_vm2, %v8870_v32 }
 0x47e   : > { %v2632_v8 = vpop.f32.mrb[24].mxu1 }
 0x47f   : > { %v2638_v22 = vmul.f32 0.35355338, %v2632_v8  ;;  %v8017_v5 = vpop.f32.mrb[25].mxu1 }
 0x480   : > { %v2635_v12 = vpop.f32.mrb[26].mxu1 }
 0x481   : > { %v8018_v17 = vpop.f32.mrb[27].mxu1  ;;  %v2640_v24 = vsel %vm2639_vm6, %v2638_v22, -inf }
 0x482   : > { %2641 = vmax.xlane.f32.xlu0 %v2640_v24 }
 0x4f0   : > { %v2747_v20 = vpop.f32.mrb[28].mxu1 }
 0x4f1   : > { %v2753_v19 = vmul.f32 0.35355338, %v2747_v20  ;;  %v8029_v23 = vpop.f32.mrb[29].mxu1 }
 0x4f2   : > { %v2750_v25 = vpop.f32.mrb[30].mxu1 }
 0x4f3   : > { %v8030_v26 = vpop.f32.mrb[31].mxu1  ;;  %v2754_v9 = vsel %vm2639_vm6, %v2753_v19, -inf }
 0x4f4   : > { %2755 = vmax.xlane.f32.xlu1 %v2754_v9 }
 0x4f8   : > { %v2859_v27 = vpop.f32.mrb[32].mxu1 }
 0x4f9   : > { %v2865_v29 = vmul.f32 0.35355338, %v2859_v27  ;;  %v8041_v30 = vpop.f32.mrb[33].mxu1 }
 0x4fa   : > { %v2862_v34 = vpop.f32.mrb[34].mxu1  ;;  %v2441_v30 = vld [vmem:[%s11512_s14 + $0x60] sm:$0xff] }
 0x4fb   : > { %v8042_v36 = vpop.f32.mrb[35].mxu1  ;;  %v2866_v37 = vsel %vm2639_vm6, %v2865_v29, -inf  ;;  %v2442_v34 = vld [vmem:[%s11512_s14 + $0x68] sm:$0xff] }
 0x4fc   : > { %2867 = vmax.xlane.f32.xlu0 %v2866_v37  ;;  %v3055_v36 = vpack.c.bf16 %v2442_v34, %v2441_v30 }
 0x4fe   : > { %8062 = vmatpush3.bf16.msra.mxu1 %v3055_v36 }
 0x4ff   : > { %8063 = vmatprep.subr.bf16.mxu1 %v8870_v32 }
 0x500   : > { %v2970_v38 = vpop.f32.mrb[36].mxu1 }
 0x501   : > { %v2976_v28 = vmul.f32 0.35355338, %v2970_v38  ;;  %v8053_v31 = vpop.f32.mrb[37].mxu1 }
 0x502   : > { %v2973_v56 = vpop.f32.mrb[38].mxu1 }
 0x503   : > { %v8054_v35 = vpop.f32.mrb[39].mxu1  ;;  %v2977_v41 = vsel %vm2639_vm6, %v2976_v28, -inf  ;;  %v2443_v56 = vld [vmem:[%s11512_s14 + $0x70] sm:$0xff] }
 0x504   : > { %2978 = vmax.xlane.f32.xlu0 %v2977_v41  ;;  %v2444_v35 = vld [vmem:[%s11512_s14 + $0x78] sm:$0xff] }
 0x505   : > { %v3056_v41 = vpack.c.bf16 %v2444_v35, %v2443_v56  ;;  %v3196_v56 = vld [vmem:[%s11516_s20 + $0x30] sm:$0xff]  ;;  %v3197_v35 = vld [vmem:[%s11516_s20 + $0x38] sm:$0xff] }
 0x507   : > { %8064 = vmatpush3.bf16.msra.mxu1 %v3056_v41  ;;  %v3202_v41 = vpack.c.bf16 %v3197_v35, %v3196_v56 }
 0x508   : > { %8077 = vmatprep.subr.bf16.mxu1 %v8870_v32 }
 0x50f   : > { %v2642_v44 = vpop.xlane.xlu0 %2641 }
 0x510   : > { %v2643_v43 = vsub.f32 %v2638_v22, %v2642_v44 }
 0x512   : > { %v2644_v45 = vmul.f32 1.442695, %v2643_v43 }
 0x514   : > { %8647 = vpow2.f32 %v2644_v45 }
 0x51e   : > { %v8648_v46 = vpop.eup %8647 }
 0x51f   : > { %v2646_v48 = vsel %vm2639_vm6, %v8648_v46, 0.0 }
 0x520   : > { %2647 = vadd.xlane.f32.xlu1 %v2646_v48 }
 0x531   : > { %2767 = vrot.lane.b32.xlu1 %v10183_v53, %s11474_s4 }
 0x581   : > { %v2756_v50 = vpop.xlane.xlu1 %2755 }
 0x582   : > { %v2757_v51 = vsub.f32 %v2753_v19, %v2756_v50 }
 0x584   : > { %v2758_v52 = vmul.f32 1.442695, %v2757_v51 }
 0x586   : > { %8649 = vpow2.f32 %v2758_v52 }
 0x589   : > { %v2868_v55 = vpop.xlane.xlu0 %2867 }
 0x58a   : > { %v2869_v57 = vsub.f32 %v2865_v29, %v2868_v55 }
 0x58c   : > { %v2870_v58 = vmul.f32 1.442695, %v2869_v57 }
 0x58e   : > { %8651 = vpow2.f32 %v2870_v58 }
 0x590   : > { %v8650_v60 = vpop.eup %8649 }
 0x591   : > { %v2979_v61 = vpop.xlane.xlu0 %2978  ;;  %v2760_v62 = vsel %vm2639_vm6, %v8650_v60, 0.0 }
 0x592   : > { %v2980_v63 = vsub.f32 %v2976_v28, %v2979_v61  ;;  %2761 = vadd.xlane.f32.xlu0 %v2760_v62 }
 0x594   : > { %v2981_v1 = vmul.f32 1.442695, %v2980_v63 }
 0x596   : > { %8653 = vpow2.f32 %v2981_v1  ;;  %v10274_v1 = vsub.s32 3, %v9209_v59 }
 0x598   : > { %v8652_v2 = vpop.eup %8651 }
 0x599   : > { %v2872_v4 = vsel %vm2639_vm6, %v8652_v2, 0.0 }
 0x59a   : > { %2873 = vadd.xlane.f32.xlu1 %v2872_v4 }
 0x5a0   : > { %v8654_v0 = vpop.eup %8653 }
 0x5a1   : > { %v2983_v6 = vsel %vm2639_vm6, %v8654_v0, 0.0 }
 0x5a2   : > { %2984 = vadd.xlane.f32.xlu0 %v2983_v6 }
 0x5ab   : > { %2989 = vrot.lane.b32.xlu1 %v10183_v53, %s11472_s1 }
 0x5ad   : > { %v2648_v7 = vpop.xlane.xlu1 %2647 }
 0x5ae   : > { %8655 = vrcp.f32 %v2648_v7 }
 0x5b1   : > { %v2768_v13 = vpop.permute.xlu1 %2767 }
 0x5b2   : > { %v2773_v15 = vsel %vm2657_vm4, %v2768_v13, 0 }
 0x5b8   : > { %v8656_v10 = vpop.eup %8655  ;;  %2878 = vrot.lane.b32.xlu0 %v10183_v53, %s11470_s25  ;;  %s11538_s25 = sld [smem:[#allocation17_spill]] }
 0x5b9   : > { %v2650_v11 = vmul.f32 %v8656_v10, %v8648_v46 }
 0x5bb   : > { %v2651_v14 = vpack.c.bf16 %v2650_v11, %v2650_v11 }
 0x5bd   : > { %8022 = vmatmul.mubr.msk.bf16.vlgmr.msra.gmra.mrb[20].mxu0 %vm2653_vm7, %v2651_v14 }
 0x5be   : > { %8032 = vmatpush3.bf16.msra.mxu0 %v2773_v15  ;;  %8033 = vmatprep.mubr.msk.bf16.mxu0 %vm8871_vm2, %v8870_v32 }
 0x5bf   : > { %8043 = vmatprep.subr.bf16.mxu0 %v8870_v32 }
 0x61f   : > { %v2762_v33 = vpop.xlane.xlu0 %2761 }
 0x620   : > { %8657 = vrcp.f32 %v2762_v33 }
 0x627   : > { %v2874_v16 = vpop.xlane.xlu1 %2873 }
 0x628   : > { %8659 = vrcp.f32 %v2874_v16 }
 0x62a   : > { %v8658_v49 = vpop.eup %8657 }
 0x62b   : > { %v2764_v53 = vmul.f32 %v8658_v49, %v8650_v60  ;;  %v2990_v17 = vpop.permute.xlu1 %2989  ;;  %v3133_v49 = vld [vmem:[%s11515_s19 + $0x8] sm:$0xff] }
 0x62c   : > { %v2995_v20 = vsel %vm2657_vm4, %v2990_v17, 0 }
 0x62d   : > { %v2765_v18 = vpack.c.bf16 %v2764_v53, %v2764_v53 }
 0x62f   : > { %8034 = vmatmul.mubr.msk.bf16.vlgmr.msra.gmra.mrb[24].mxu0 %vm2653_vm7, %v2765_v18  ;;  %v2985_v21 = vpop.xlane.xlu0 %2984  ;;  %v3134_v18 = vld [vmem:[%s11515_s19 + $0x10] sm:$0xff] }
 0x630   : > { %8661 = vrcp.f32 %v2985_v21  ;;  %8045 = vmatprep.mubr.msk.bf16.mxu0 %vm8871_vm2, %v8870_v32  ;;  %v3135_v21 = vld [vmem:[%s11515_s19 + $0x18] sm:$0xff] }
 0x632   : > { %v8660_v8 = vpop.eup %8659 }
 0x633   : > { %v2879_v22 = vpop.permute.xlu0 %2878  ;;  %v2876_v5 = vmul.f32 %v8660_v8, %v8652_v2  ;;  %v3060_v2 = vrot.slane %v10176_v42, %v10274_v1  ;;  %v3132_v42 = vld [vmem:[%s11515_s19] sm:$0xff]  ;;  %v3138_v8 = vpack.c.bf16 %v3135_v21, %v3134_v18  ;;  %v7464_v18 = vld [vmem:[%s11512_s14 + $0xd8] sm:$0xff] }
 0x634   : > { %v2884_v12 = vsel %vm2657_vm4, %v2879_v22, 0  ;;  %v3137_v53 = vpack.c.bf16 %v3133_v49, %v3132_v42  ;;  %v3190_v22 = vld [vmem:[%s11516_s20] sm:$0xff]  ;;  %v7456_v42 = vld [vmem:[%s11512_s14 + $0x98] sm:$0xff]  ;;  %v7463_v49 = vld [vmem:[%s11512_s14 + $0xd0] sm:$0xff] }
 0x635   : > { %8044 = vmatpush3.bf16.msra.mxu0 %v2884_v12  ;;  %v2877_v24 = vpack.c.bf16 %v2876_v5, %v2876_v5  ;;  %v3191_v5 = vld [vmem:[%s11516_s20 + $0x8] sm:$0xff]  ;;  %v3192_v12 = vld [vmem:[%s11516_s20 + $0x10] sm:$0xff]  ;;  %v3393_v21 = vpack.c.bf16 %v7464_v18, %v7463_v49 }
 0x636   : > { %8055 = vmatprep.subr.bf16.mxu0 %v8870_v32  ;;  %v3199_v17 = vpack.c.bf16 %v3191_v5, %v3190_v22 }
 0x638   : > { %8046 = vmatmul.mubr.msk.bf16.vlgmr.msra.gmra.mrb[28].mxu0 %vm2653_vm7, %v2877_v24  ;;  %v3193_v24 = vld [vmem:[%s11516_s20 + $0x18] sm:$0xff] }
 0x639   : > { %8056 = vmatpush3.bf16.msra.mxu0 %v2995_v20  ;;  %8057 = vmatprep.mubr.msk.bf16.mxu0 %vm8871_vm2, %v8870_v32  ;;  %v3200_v20 = vpack.c.bf16 %v3193_v24, %v3192_v12  ;;  %v3131_v12 = vld [vmem:[%s11520_s18] sm:$0x3] }
 0x63a   : > { %v8662_v19 = vpop.eup %8661  ;;  %8069 = vmatprep.subr.bf16.mxu0 %v8870_v32 }
 0x63b   : > { %v2987_v23 = vmul.f32 %v8662_v19, %v8654_v0 }
 0x63d   : > { %v2988_v25 = vpack.c.bf16 %v2987_v23, %v2987_v23 }
 0x640   : > { %8058 = vmatmul.mubr.msk.bf16.vlgmr.msra.gmra.mrb[32].mxu0 %vm2653_vm7, %v2988_v25 }
 0x641   : > { %8073 = vmatprep.mubr.msk.bf16.mxu0 %vm8871_vm2, %v8870_v32  ;;  %8070 = vmatpush3.bf16.msra.mxu0 %v3137_v53 }
 0x642   : > { %8071 = vmatprep.subr.bf16.mxu0 %v8870_v32 }
 0x645   : > { %8072 = vmatpush3.bf16.msra.mxu0 %v3138_v8 }
 0x646   : > { %8089 = vmatprep.subr.bf16.mxu0 %v8870_v32 }
 0x690   : > { %v2695_v26 = vpop.f32.mrb[20].mxu0 }
 0x691   : > { %v8023_v9 = vpop.f32.mrb[21].mxu0 }
 0x692   : > { %v2698_v27 = vpop.f32.mrb[22].mxu0 }
 0x693   : > { %v8024_v29 = vpop.f32.mrb[23].mxu0 }
 0x702   : > { %v2809_v37 = vpop.f32.mrb[24].mxu0 }
 0x703   : > { %3038 = vrot.lane.b32.xlu1 %v2809_v37, %s11468_s5  ;;  %v8035_v38 = vpop.f32.mrb[25].mxu0  ;;  %s11528_s5 = sld [smem:[#allocation19_spill]] }
 0x704   : > { %v2812_v28 = vpop.f32.mrb[26].mxu0  ;;  %v3194_v38 = vld [vmem:[%s11516_s20 + $0x20] sm:$0xff] }
 0x705   : > { %v8036_v31 = vpop.f32.mrb[27].mxu0  ;;  %v3195_v28 = vld [vmem:[%s11516_s20 + $0x28] sm:$0xff] }
 0x706   : > { %v3201_v31 = vpack.c.bf16 %v3195_v28, %v3194_v38 }
 0x709   : > { %s11529_s3 = smov %s11528_s5 }
 0x70b   : > { %v2920_v44 = vpop.f32.mrb[28].mxu0 }
 0x70c   : > { %3042 = vrot.lane.b32.xlu0 %v2920_v44, %s11466_s7  ;;  %v8047_v43 = vpop.f32.mrb[29].mxu0  ;;  %v7449_v44 = vld [vmem:[%s11518_s15] ss:$0 sm:$0xff]  ;;  %s11532_s7 = smov %s11531_s28 }
 0x70d   : > { %v2923_v45 = vpop.f32.mrb[30].mxu0 }
 0x70e   : > { %v8048_v46 = vpop.f32.mrb[31].mxu0 }
 0x713   : > { %v3031_v48 = vpop.f32.mrb[32].mxu0 }
 0x714   : > { %3046 = vrot.lane.b32.xlu1 %v3031_v48, %s11464_s30  ;;  %v8059_v50 = vpop.f32.mrb[33].mxu0  ;;  %s11522_s30 = smov 8  }
 0x715   : > { %v3034_v51 = vpop.f32.mrb[34].mxu0 }
 0x716   : > { %v8060_v52 = vpop.f32.mrb[35].mxu0 }
 0x775   : > { %v3039_v55 = vpop.permute.xlu1 %3038 }
 0x776   : > { %v3049_v58 = vsel %vm2591_vm5, %v2695_v26, %v3039_v55  ;;  %v3104_v26 = vld [vmem:[%s11517_s17] sm:$0x3] }
 0x777   : > { %v3124_v9 = vrot.slane %v3104_v26, %v9213_v3  ;;  %v3129_v30 = vrot.slane %v3104_v26, %v10181_v47  ;;  %v7451_v55 = vld [vmem:[%s11519_s16] ss:$0 sm:$0xff]  ;;  %v7458_v26 = vld [vmem:[%s11512_s14 + $0xa8] sm:$0xff] }
 0x77e   : > { %v3043_v57 = vpop.permute.xlu0 %3042 }
 0x77f   : > { %v3051_v60 = vsel %vm3050_vm8, %v3049_v58, %v3043_v57 }
 0x786   : > { %v3047_v61 = vpop.permute.xlu1 %3046 }
 0x787   : > { %v3053_v62 = vsel %vm3052_vm9, %v3051_v60, %v3047_v61 }
 0x788   : > { %v3054_v63 = vpack.c.bf16 %v3053_v62, %v3053_v62 }
 0x78a   : > { %8066 = vmatmul.mubr.msk.bf16.vlgmr.msra.gmra.mrb[40].mxu1 %vm2453_vm3, %v3054_v63 }
 0x78b   : > { %8085 = vmatprep.mubr.msk.bf16.mxu1 %vm8871_vm2, %v8870_v32  ;;  %8078 = vmatpush3.bf16.msra.mxu1 %v3199_v17  ;;  %v3270_v17 = vrot.slane %v3131_v12, %v9213_v3 }
 0x78c   : > { %8079 = vmatprep.subr.bf16.mxu1 %v8870_v32 }
 0x78f   : > { %8080 = vmatpush3.bf16.msra.mxu1 %v3200_v20 }
 0x790   : > { %8081 = vmatprep.subr.bf16.mxu1 %v8870_v32 }
 0x793   : > { %8082 = vmatpush3.bf16.msra.mxu1 %v3201_v31 }
 0x794   : > { %8083 = vmatprep.subr.bf16.mxu1 %v8870_v32 }
 0x797   : > { %8084 = vmatpush3.bf16.msra.mxu1 %v3202_v41 }
 0x798   : > { %8105 = vmatprep.subr.bf16.mxu1 %v8870_v32 }
 0x85d   : > { %v3098_v4 = vpop.f32.mrb[40].mxu1 }
 0x85e   : > { %v3099_v0 = vadd.f32 %v3098_v4, %v3060_v2  ;;  %v8067_v6 = vpop.f32.mrb[41].mxu1 }
 0x85f   : > { %v3101_v7 = vpop.f32.mrb[42].mxu1 }
 0x860   : > { %v8068_v10 = vpop.f32.mrb[43].mxu1  ;;  %v3105_v11 = vadd.f32 %v3099_v0, %v10144_v39 }
 0x862   : > { %v3107_v13 = vsel %vm3106_vm10, %v3105_v11, 0.0 }
 0x863   : > { %3108 = vadd.xlane.f32.xlu0 %v3107_v13  ;;  %v7454_v13 = vld [vmem:[%s11512_s14 + $0x88] sm:$0xff] }
 0x8f0   : > { %v3109_v14 = vpop.xlane.xlu0 %3108 }
 0x8f1   : > { %v3111_v15 = vmul.f32 0.03125, %v3109_v14  ;;  %v7461_v14 = vld [vmem:[%s11512_s14 + $0xc0] sm:$0xff] }
 0x8f3   : > { %v3112_v33 = vsub.f32 %v3105_v11, %v3111_v15  ;;  %v7453_v11 = vld [vmem:[%s11512_s14 + $0x80] sm:$0xff] }
 0x8f4   : > { %v3297_v15 = vpack.c.bf16 %v7454_v13, %v7453_v11 }
 0x8f5   : > { %v3113_v16 = vmul.f32 %v3112_v33, %v3112_v33 }
 0x8f7   : > { %v3114_v59 = vsel %vm3106_vm10, %v3113_v16, 0.0 }
 0x8f8   : > { %3115 = vadd.xlane.f32.xlu1 %v3114_v59  ;;  %v7455_v59 = vld [vmem:[%s11512_s14 + $0x90] sm:$0xff] }
 0x8f9   : > { %v3298_v53 = vpack.c.bf16 %v7456_v42, %v7455_v59 }
 0x985   : > { %v3116_v19 = vpop.xlane.xlu1 %3115 }
 0x986   : > { %v3117_v23 = vmul.f32 0.03125, %v3116_v19  ;;  %v3275_v19 = vrot.slane %v3131_v12, %v10181_v47 }
 0x988   : > { %v3118_v25 = vadd.f32 1e-05, %v3117_v23 }
 0x98a   : > { %8663 = vrsqrt.f32 %v3118_v25  ;;  %v7457_v25 = vld [vmem:[%s11512_s14 + $0xa0] sm:$0xff] }
 0x994   : > { %v8664_v27 = vpop.eup %8663 }
 0x995   : > { %v3120_v29 = vmul.f32 %v8664_v27, %v3112_v33  ;;  %v7462_v33 = vld [vmem:[%s11512_s14 + $0xc8] sm:$0xff]  ;;  %v3346_v27 = vpack.c.bf16 %v7458_v26, %v7457_v25 }
 0x996   : > { %v3392_v16 = vpack.c.bf16 %v7462_v33, %v7461_v14 }
 0x997   : > { %v3125_v34 = vmul.f32 %v3124_v9, %v3120_v29 }
 0x999   : > { %v3130_v36 = vadd.f32 %v3129_v30, %v3125_v34  ;;  %v7459_v30 = vld [vmem:[%s11512_s14 + $0xb0] sm:$0xff]  ;;  %v7460_v34 = vld [vmem:[%s11512_s14 + $0xb8] sm:$0xff] }
 0x99b   : > { %v3136_v37 = vpack.c.bf16 %v3130_v36, %v3130_v36 }
 0x99d   : > { %8074 = vmatmul.mubr.msk.bf16.vlgmr.msra.gmra.mrb[36].mxu0 %vm2453_vm3, %v3136_v37  ;;  %v10405_v37 = vld [vmem:[%s11514_s13 + $0x4] sm:$0xf]  ;;  %s11525_s13 = sld [smem:[#allocation23_spill]] }
 0x99e   : > { %8093 = vmatprep.mubr.msk.bf16.mxu0 %vm8871_vm2, %v8870_v32  ;;  %8090 = vmatpush3.bf16.msra.mxu0 %v3297_v15  ;;  %v3302_v38 = vrot.slane %v10405_v37, %v9213_v3  ;;  %v3397_v28 = vrot.slane %v10405_v37, %v10171_v40 }
 0x99f   : > { %8091 = vmatprep.subr.bf16.mxu0 %v8870_v32 }
 0x9a2   : > { %8092 = vmatpush3.bf16.msra.mxu0 %v3298_v53 }
 0x9a3   : > { %8097 = vmatprep.subr.bf16.mxu0 %v8870_v32 }
 0xa70   : > { %v3183_v43 = vpop.f32.mrb[36].mxu0 }
 0xa71   : > { %v3184_v45 = vadd.f32 %v7449_v44, %v3183_v43  ;;  %v8075_v46 = vpop.f32.mrb[37].mxu0 }
 0xa72   : > { %v3186_v48 = vpop.f32.mrb[38].mxu0 }
 0xa73   : > { %v3189_v50 = vmax.f32 %v3184_v45, 0.0  ;;  %v8076_v51 = vpop.f32.mrb[39].mxu0 }
 0xa75   : > { %v3198_v52 = vpack.c.bf16 %v3189_v50, %v3189_v50 }
 0xa77   : > { %8086 = vmatmul.mubr.msk.bf16.vlgmr.msra.gmra.mrb[44].mxu1 %vm1148_vm0, %v3198_v52 }
 0xa78   : > { %8109 = vmatprep.mubr.msk.bf16.mxu1 %vm8871_vm2, %v8870_v32  ;;  %8106 = vmatpush3.bf16.msra.mxu1 %v3392_v16 }
 0xa79   : > { %8107 = vmatprep.subr.bf16.mxu1 %v8870_v32 }
 0xa7c   : > { %8108 = vmatpush3.bf16.msra.mxu1 %v3393_v21 }
 0xa7d   : > { %8119 = vmatprep.subr.bf16.mxu1 %v8870_v32 }
 0xb4a   : > { %v3247_v57 = vpop.f32.mrb[44].mxu1 }
 0xb4b   : > { %v3248_v58 = vadd.f32 %v7451_v55, %v3247_v57  ;;  %v8087_v60 = vpop.f32.mrb[45].mxu1  ;;  %v3351_v57 = vrot.slane %v10405_v37, %v10181_v47 }
 0xb4c   : > { %v3250_v61 = vpop.f32.mrb[46].mxu1 }
 0xb4d   : > { %v8088_v62 = vpop.f32.mrb[47].mxu1  ;;  %v3253_v63 = vadd.f32 %v3248_v58, %v3130_v36  ;;  %v3347_v36 = vpack.c.bf16 %v7460_v34, %v7459_v30 }
 0xb4f   : > { %v3254_v2 = vsel %vm3106_vm10, %v3253_v63, 0.0 }
 0xb50   : > { %3255 = vadd.xlane.f32.xlu0 %v3254_v2 }
 0xbdd   : > { %v3256_v4 = vpop.xlane.xlu0 %3255 }
 0xbde   : > { %v3257_v0 = vmul.f32 0.03125, %v3256_v4 }
 0xbe0   : > { %v3258_v6 = vsub.f32 %v3253_v63, %v3257_v0 }
 0xbe2   : > { %v3259_v7 = vmul.f32 %v3258_v6, %v3258_v6 }
 0xbe4   : > { %v3260_v10 = vsel %vm3106_vm10, %v3259_v7, 0.0 }
 0xbe5   : > { %3261 = vadd.xlane.f32.xlu0 %v3260_v10 }
 0xc72   : > { %v3262_v8 = vpop.xlane.xlu0 %3261 }
 0xc73   : > { %v3263_v22 = vmul.f32 0.03125, %v3262_v8 }
 0xc75   : > { %v3264_v5 = vadd.f32 1e-05, %v3263_v22 }
 0xc77   : > { %8665 = vrsqrt.f32 %v3264_v5 }
 0xc81   : > { %v8666_v24 = vpop.eup %8665 }
 0xc82   : > { %v3266_v20 = vmul.f32 %v8666_v24, %v3258_v6 }
 0xc84   : > { %v3271_v23 = vmul.f32 %v3270_v17, %v3266_v20 }
 0xc86   : > { %v10381_v9 = vadd.f32 %v3275_v19, %v3271_v23 }
 0xc88   : > { %v3296_v29 = vpack.c.bf16 %v10381_v9, %v10381_v9 }
 0xc8a   : > { %8094 = vmatmul.mubr.msk.bf16.vlgmr.msra.gmra.mrb[40].mxu0 %vm2453_vm3, %v3296_v29  ;;  %8110 = vmatmul.mubr.msk.bf16.vlgmr.msra.gmra.mrb[48].mxu1 %vm2453_vm3, %v3296_v29 }
 0xc8b   : > { %8098 = vmatpush3.bf16.msra.mxu0 %v3346_v27  ;;  %8101 = vmatprep.mubr.msk.bf16.mxu0 %vm8871_vm2, %v8870_v32 }
 0xc8c   : > { %8099 = vmatprep.subr.bf16.mxu0 %v8870_v32  ;;  %8121 = vmatprep.mubr.msk.bf16.mxu1 %vm8871_vm2, %v8870_v32 }
 0xc8f   : > { %8100 = vmatpush3.bf16.msra.mxu0 %v3347_v36 }
 0xc90   : > { %8113 = vmatprep.subr.bf16.mxu0 %v8870_v32 }
 0xc92   : > { %8102 = vmatmul.mubr.msk.bf16.vlgmr.msra.gmra.mrb[44].mxu0 %vm2453_vm3, %v3296_v29 }
 0xc93   : > { %8115 = vmatprep.mubr.msk.bf16.mxu0 %vm8871_vm2, %v8870_v32 }
 0xd5d   : > { %v3340_v31 = vpop.f32.mrb[40].mxu0  ;;  %v3432_v56 = vpop.f32.mrb[48].mxu1 }
 0xd5e   : > { %v3341_v35 = vadd.f32 %v3340_v31, %v3302_v38  ;;  %v3433_v41 = vadd.f32 %v3432_v56, %v3397_v28  ;;  %v8095_v44 = vpop.f32.mrb[41].mxu0  ;;  %v8111_v43 = vpop.f32.mrb[49].mxu1 }
 0xd5f   : > { %v3343_v45 = vpop.f32.mrb[42].mxu0  ;;  %v3435_v46 = vpop.f32.mrb[50].mxu1 }
 0xd60   : > { %v3438_v48 = vpack.c.bf16 %v3341_v35, %v3341_v35  ;;  %v10411_v50 = vpack.c.bf16 %v3433_v41, %v3433_v41  ;;  %v8096_v51 = vpop.f32.mrb[43].mxu0  ;;  %v8112_v52 = vpop.f32.mrb[51].mxu1 }
 0xd62   : > { %3547 = vrot.lane.b32.xlu0 %v3438_v48, %s11474_s4  ;;  %v3504_v55 = vsel %vm2657_vm4, %v10411_v50, 0 }
 0xd63   : > { %8120 = vmatpush3.bf16.msra.mxu1 %v3504_v55 }
 0xd64   : > { %8131 = vmatprep.subr.bf16.mxu1 %v8870_v32 }
 0xd65   : > { %v3386_v58 = vpop.f32.mrb[44].mxu0 }
 0xd66   : > { %v3387_v60 = vadd.f32 %v3386_v58, %v3351_v57  ;;  %v8103_v61 = vpop.f32.mrb[45].mxu0 }
 0xd67   : > { %v3389_v62 = vpop.f32.mrb[46].mxu0 }
 0xd68   : > { %v3439_v63 = vpack.c.bf16 %v3387_v60, %v3387_v60  ;;  %v8104_v2 = vpop.f32.mrb[47].mxu0 }
 0xd6a   : > { %3773 = vrot.lane.b32.xlu0 %v3439_v63, %s11472_s1  ;;  %3550 = vrot.lane.b32.xlu1 %v3439_v63, %s11474_s4  ;;  %v3444_v4 = vsel %vm2591_vm5, %v3439_v63, 0 }
 0xd6b   : > { %8114 = vmatpush3.bf16.xpose.msra.mxu0 %v3444_v4 }
 0xd6c   : > { %8125 = vmatprep.subr.bf16.mxu0 %v8870_v32 }
 0xd6e   : > { %3662 = vrot.lane.b32.xlu1 %v3439_v63, %s11521_s24 }
 0xd72   : > { %3660 = vrot.lane.b32.xlu1 %v3438_v48, %s11521_s24  ;;  %8116 = vmatmul.mubr.msk.bf16.vlgmr.msra.gmra.mrb[48].mxu0 %vm2591_vm5, %v3438_v48 }
 0xd73   : > { %8127 = vmatprep.mubr.msk.bf16.mxu0 %vm8871_vm2, %v8870_v32 }
 0xd76   : > { %3771 = vrot.lane.b32.xlu1 %v3438_v48, %s11472_s1 }
 0xdd4   : > { %v3548_v10 = vpop.permute.xlu0 %3547 }
 0xddc   : > { %v3551_v0 = vpop.permute.xlu1 %3550  ;;  %v3774_v13 = vpop.permute.xlu0 %3773 }
 0xddd   : > { %v3556_v6 = vsel %vm2591_vm5, %v3551_v0, 0  ;;  %v3779_v15 = vsel %vm2591_vm5, %v3774_v13, 0 }
 0xdde   : > { %8126 = vmatpush3.bf16.xpose.msra.mxu0 %v3556_v6 }
 0xddf   : > { %8137 = vmatprep.subr.bf16.mxu0 %v8870_v32 }
 0xde0   : > { %v3663_v7 = vpop.permute.xlu1 %3662 }
 0xde1   : > { %v3668_v11 = vsel %vm2591_vm5, %v3663_v7, 0 }
 0xde4   : > { %v3661_v14 = vpop.permute.xlu1 %3660 }
 0xde5   : > { %8128 = vmatmul.mubr.msk.bf16.vlgmr.msra.gmra.mrb[52].mxu0 %vm2591_vm5, %v3548_v10 }
 0xde6   : > { %8138 = vmatpush3.bf16.xpose.msra.mxu0 %v3668_v11  ;;  %8139 = vmatprep.mubr.msk.bf16.mxu0 %vm8871_vm2, %v8870_v32 }
 0xde7   : > { %8149 = vmatprep.subr.bf16.mxu0 %v8870_v32 }
 0xde8   : > { %v3772_v33 = vpop.permute.xlu1 %3771 }
 0xded   : > { %8140 = vmatmul.mubr.msk.bf16.vlgmr.msra.gmra.mrb[56].mxu0 %vm2591_vm5, %v3661_v14 }
 0xdee   : > { %8150 = vmatpush3.bf16.xpose.msra.mxu0 %v3779_v15  ;;  %8151 = vmatprep.mubr.msk.bf16.mxu0 %vm8871_vm2, %v8870_v32 }
 0xdef   : > { %8161 = vmatprep.subr.bf16.mxu0 %v8870_v32 }
 0xdf5   : > { %8152 = vmatmul.mubr.msk.bf16.vlgmr.msra.gmra.mrb[60].mxu0 %vm2591_vm5, %v3772_v33 }
 0xdf6   : > { %8165 = vmatprep.mubr.msk.bf16.mxu0 %vm8871_vm2, %v8870_v32 }
 0xe45   : > { %v3480_v16 = vpop.f32.mrb[48].mxu0 }
 0xe46   : > { %v3486_v59 = vmul.f32 0.35355338, %v3480_v16  ;;  %v8117_v42 = vpop.f32.mrb[49].mxu0 }
 0xe47   : > { %v3483_v49 = vpop.f32.mrb[50].mxu0 }
 0xe48   : > { %v8118_v53 = vpop.f32.mrb[51].mxu0  ;;  %v3487_v18 = vsel %vm2639_vm6, %v3486_v59, -inf }
 0xe49   : > { %3488 = vmax.xlane.f32.xlu0 %v3487_v18 }
 0xeb8   : > { %v3592_v21 = vpop.f32.mrb[52].mxu0 }
 0xeb9   : > { %v3598_v8 = vmul.f32 0.35355338, %v3592_v21  ;;  %v8129_v22 = vpop.f32.mrb[53].mxu0 }
 0xeba   : > { %v3595_v5 = vpop.f32.mrb[54].mxu0 }
 0xebb   : > { %v8130_v12 = vpop.f32.mrb[55].mxu0  ;;  %v3599_v17 = vsel %vm2639_vm6, %v3598_v8, -inf }
 0xebc   : > { %3600 = vmax.xlane.f32.xlu1 %v3599_v17 }
 0xec0   : > { %v3704_v24 = vpop.f32.mrb[56].mxu0 }
 0xec1   : > { %v3710_v20 = vmul.f32 0.35355338, %v3704_v24  ;;  %v8141_v19 = vpop.f32.mrb[57].mxu0 }
 0xec2   : > { %v3707_v23 = vpop.f32.mrb[58].mxu0 }
 0xec3   : > { %v8142_v25 = vpop.f32.mrb[59].mxu0  ;;  %v3711_v26 = vsel %vm2639_vm6, %v3710_v20, -inf  ;;  %v7465_v23 = vld [vmem:[%s11512_s14 + $0xe0] sm:$0xff] }
 0xec4   : > { %3712 = vmax.xlane.f32.xlu0 %v3711_v26  ;;  %v7466_v25 = vld [vmem:[%s11512_s14 + $0xe8] sm:$0xff] }
 0xec5   : > { %v3898_v26 = vpack.c.bf16 %v7466_v25, %v7465_v23 }
 0xec7   : > { %8162 = vmatpush3.bf16.msra.mxu0 %v3898_v26  ;;  %v4148_v26 = vld [vmem:[%s11430_s9] sm:$0xff] }
 0xec8   : > { %v3815_v27 = vpop.f32.mrb[60].mxu0  ;;  %8163 = vmatprep.subr.bf16.mxu0 %v8870_v32 }
 0xec9   : > { %v3821_v29 = vmul.f32 0.35355338, %v3815_v27  ;;  %v8153_v30 = vpop.f32.mrb[61].mxu0 }
 0xeca   : > { %v3818_v34 = vpop.f32.mrb[62].mxu0 }
 0xecb   : > { %v8154_v36 = vpop.f32.mrb[63].mxu0  ;;  %v3822_v38 = vsel %vm2639_vm6, %v3821_v29, -inf }
 0xecc   : > { %3823 = vmax.xlane.f32.xlu0 %v3822_v38  ;;  %v7467_v36 = vld [vmem:[%s11512_s14 + $0xf0] sm:$0xff]  ;;  %v7468_v38 = vld [vmem:[%s11512_s14 + $0xf8] sm:$0xff]  ;;  %s11534_s14 = smov %s11533_s0 }
 0xed6   : > { %v3489_v28 = vpop.xlane.xlu0 %3488 }
 0xed7   : > { %v3490_v31 = vsub.f32 %v3486_v59, %v3489_v28  ;;  %v3899_v28 = vpack.c.bf16 %v7468_v38, %v7467_v36  ;;  %v4150_v36 = vld [vmem:[%s11430_s9 + $0x10] sm:$0xff]  ;;  %v4151_v38 = vld [vmem:[%s11430_s9 + $0x18] sm:$0xff] }
 0xed9   : > { %v3491_v56 = vmul.f32 1.442695, %v3490_v31  ;;  %8164 = vmatpush3.bf16.msra.mxu0 %v3899_v28  ;;  %v4166_v28 = vpack.c.bf16 %v4151_v38, %v4150_v36 }
 0xeda   : > { %8177 = vmatprep.subr.bf16.mxu0 %v8870_v32 }
 0xedb   : > { %8667 = vpow2.f32 %v3491_v56 }
 0xee5   : > { %v8668_v35 = vpop.eup %8667 }
 0xee6   : > { %v3493_v41 = vsel %vm2639_vm6, %v8668_v35, 0.0 }
 0xee7   : > { %3494 = vadd.xlane.f32.xlu1 %v3493_v41 }
 0xef8   : > { %3612 = vrot.lane.b32.xlu1 %v10411_v50, %s11474_s4  ;;  %s11526_s4 = smov 120  }
 0xf49   : > { %v3601_v44 = vpop.xlane.xlu1 %3600 }
 0xf4a   : > { %v3602_v43 = vsub.f32 %v3598_v8, %v3601_v44 }
 0xf4c   : > { %v3603_v45 = vmul.f32 1.442695, %v3602_v43 }
 0xf4e   : > { %8669 = vpow2.f32 %v3603_v45 }
 0xf51   : > { %v3713_v46 = vpop.xlane.xlu0 %3712 }
 0xf52   : > { %v3714_v48 = vsub.f32 %v3710_v20, %v3713_v46 }
 0xf54   : > { %v3715_v51 = vmul.f32 1.442695, %v3714_v48 }
 0xf56   : > { %8671 = vpow2.f32 %v3715_v51 }
 0xf58   : > { %v8670_v52 = vpop.eup %8669 }
 0xf59   : > { %v3824_v55 = vpop.xlane.xlu0 %3823  ;;  %v3605_v57 = vsel %vm2639_vm6, %v8670_v52, 0.0 }
 0xf5a   : > { %v3825_v58 = vsub.f32 %v3821_v29, %v3824_v55  ;;  %3606 = vadd.xlane.f32.xlu0 %v3605_v57 }
 0xf5c   : > { %v3826_v60 = vmul.f32 1.442695, %v3825_v58 }
 0xf5e   : > { %8673 = vpow2.f32 %v3826_v60 }
 0xf60   : > { %v8672_v61 = vpop.eup %8671 }
 0xf61   : > { %v3717_v62 = vsel %vm2639_vm6, %v8672_v61, 0.0 }
 0xf62   : > { %3718 = vadd.xlane.f32.xlu1 %v3717_v62 }
 0xf68   : > { %v8674_v63 = vpop.eup %8673 }
 0xf69   : > { %v3828_v2 = vsel %vm2639_vm6, %v8674_v63, 0.0 }
 0xf6a   : > { %3829 = vadd.xlane.f32.xlu0 %v3828_v2 }
 0xf73   : > { %3834 = vrot.lane.b32.xlu1 %v10411_v50, %s11472_s1  ;;  %s11527_s1 = smov 104  }
 0xf74   : > { %v3495_v4 = vpop.xlane.xlu1 %3494 }
 0xf75   : > { %8675 = vrcp.f32 %v3495_v4 }
 0xf78   : > { %v3613_v7 = vpop.permute.xlu1 %3612 }
 0xf79   : > { %v3618_v11 = vsel %vm2657_vm4, %v3613_v7, 0 }
 0xf7f   : > { %v8676_v0 = vpop.eup %8675 }
 0xf80   : > { %3723 = vrot.lane.b32.xlu0 %v10411_v50, %s11521_s24  ;;  %v3497_v6 = vmul.f32 %v8676_v0, %v8668_v35 }
 0xf82   : > { %v3498_v10 = vpack.c.bf16 %v3497_v6, %v3497_v6 }
 0xf84   : > { %8122 = vmatmul.mubr.msk.bf16.vlgmr.msra.gmra.mrb[52].mxu1 %vm2653_vm7, %v3498_v10 }
 0xf85   : > { %8132 = vmatpush3.bf16.msra.mxu1 %v3618_v11  ;;  %8133 = vmatprep.mubr.msk.bf16.mxu1 %vm8871_vm2, %v8870_v32 }
 0xf86   : > { %8143 = vmatprep.subr.bf16.mxu1 %v8870_v32 }
 0xfe7   : > { %v3607_v13 = vpop.xlane.xlu0 %3606 }
 0xfe8   : > { %8677 = vrcp.f32 %v3607_v13 }
 0xfef   : > { %v3719_v14 = vpop.xlane.xlu1 %3718 }
 0xff0   : > { %8679 = vrcp.f32 %v3719_v14 }
 0xff2   : > { %v8678_v15 = vpop.eup %8677 }
 0xff3   : > { %v3609_v33 = vmul.f32 %v8678_v15, %v8670_v52  ;;  %v3835_v18 = vpop.permute.xlu1 %3834 }
 0xff4   : > { %v3840_v8 = vsel %vm2657_vm4, %v3835_v18, 0 }
 0xff5   : > { %v3610_v50 = vpack.c.bf16 %v3609_v33, %v3609_v33  ;;  %v7485_v33 = vld [vmem:[%s11515_s19 + $0x28] sm:$0xff] }
 0xff7   : > { %v3830_v16 = vpop.xlane.xlu0 %3829  ;;  %8134 = vmatmul.mubr.msk.bf16.vlgmr.msra.gmra.mrb[56].mxu1 %vm2653_vm7, %v3610_v50 }
 0xff8   : > { %8681 = vrcp.f32 %v3830_v16  ;;  %8145 = vmatprep.mubr.msk.bf16.mxu1 %vm8871_vm2, %v8870_v32  ;;  %v7487_v16 = vld [vmem:[%s11515_s19 + $0x38] sm:$0xff] }
 0xffa   : > { %v8680_v59 = vpop.eup %8679 }
 0xffb   : > { %v3724_v42 = vpop.permute.xlu0 %3723  ;;  %v3721_v49 = vmul.f32 %v8680_v59, %v8672_v61  ;;  %v3903_v61 = vrot.slane %v10405_v37, %v10274_v1  ;;  %v7484_v37 = vld [vmem:[%s11515_s19 + $0x20] sm:$0xff] }
 0xffc   : > { %v3729_v53 = vsel %vm2657_vm4, %v3724_v42, 0  ;;  %v3981_v50 = vpack.c.bf16 %v7485_v33, %v7484_v37  ;;  %v7491_v42 = vld [vmem:[%s11516_s20 + $0x40] sm:$0xff] }
 0xffd   : > { %8144 = vmatpush3.bf16.msra.mxu1 %v3729_v53  ;;  %v3722_v21 = vpack.c.bf16 %v3721_v49, %v3721_v49  ;;  %v7492_v49 = vld [vmem:[%s11516_s20 + $0x48] sm:$0xff]  ;;  %v7493_v53 = vld [vmem:[%s11516_s20 + $0x50] sm:$0xff] }
 0xffe   : > { %8155 = vmatprep.subr.bf16.mxu1 %v8870_v32  ;;  %v4045_v18 = vpack.c.bf16 %v7492_v49, %v7491_v42 }
0x1000   : > { %8146 = vmatmul.mubr.msk.bf16.vlgmr.msra.gmra.mrb[60].mxu1 %vm2653_vm7, %v3722_v21  ;;  %v7494_v21 = vld [vmem:[%s11516_s20 + $0x58] sm:$0xff] }
0x1001   : > { %8156 = vmatpush3.bf16.msra.mxu1 %v3840_v8  ;;  %8157 = vmatprep.mubr.msk.bf16.mxu1 %vm8871_vm2, %v8870_v32  ;;  %v4046_v8 = vpack.c.bf16 %v7494_v21, %v7493_v53 }
0x1002   : > { %v8682_v22 = vpop.eup %8681  ;;  %8169 = vmatprep.subr.bf16.mxu1 %v8870_v32 }
0x1003   : > { %v3832_v5 = vmul.f32 %v8682_v22, %v8674_v63 }
0x1005   : > { %v3833_v12 = vpack.c.bf16 %v3832_v5, %v3832_v5 }
0x1008   : > { %8158 = vmatmul.mubr.msk.bf16.vlgmr.msra.gmra.mrb[64].mxu1 %vm2653_vm7, %v3833_v12 }
0x1009   : > { %8173 = vmatprep.mubr.msk.bf16.mxu1 %vm8871_vm2, %v8870_v32  ;;  %8170 = vmatpush3.bf16.msra.mxu1 %v3981_v50 }
0x100a   : > { %8171 = vmatprep.subr.bf16.mxu1 %v8870_v32 }
0x1057   : > { %v3540_v17 = vpop.f32.mrb[52].mxu1 }
0x1058   : > { %v8123_v24 = vpop.f32.mrb[53].mxu1 }
0x1059   : > { %v3543_v20 = vpop.f32.mrb[54].mxu1 }
0x105a   : > { %v8124_v19 = vpop.f32.mrb[55].mxu1 }
0x10ca   : > { %v3654_v27 = vpop.f32.mrb[56].mxu1 }
0x10cb   : > { %3883 = vrot.lane.b32.xlu1 %v3654_v27, %s11522_s30  ;;  %v8135_v29 = vpop.f32.mrb[57].mxu1  ;;  %v4149_v27 = vld [vmem:[%s11430_s9 + $0x8] sm:$0xff] }
0x10cc   : > { %v3657_v30 = vpop.f32.mrb[58].mxu1 }
0x10cd   : > { %v8136_v34 = vpop.f32.mrb[59].mxu1  ;;  %v4165_v30 = vpack.c.bf16 %v4149_v27, %v4148_v26 }
0x10d3   : > { %v3765_v31 = vpop.f32.mrb[60].mxu1 }
0x10d4   : > { %3887 = vrot.lane.b32.xlu0 %v3765_v31, %s11523_s27  ;;  %v8147_v56 = vpop.f32.mrb[61].mxu1  ;;  %v4152_v31 = vld [vmem:[%s11430_s9 + $0x20] sm:$0xff] }
0x10d5   : > { %v3768_v35 = vpop.f32.mrb[62].mxu1  ;;  %v4153_v56 = vld [vmem:[%s11430_s9 + $0x28] sm:$0xff] }
0x10d6   : > { %v8148_v41 = vpop.f32.mrb[63].mxu1  ;;  %v4211_v35 = vpack.c.bf16 %v4153_v56, %v4152_v31 }
0x10d7   : > { %v4154_v41 = vld [vmem:[%s11430_s9 + $0x30] sm:$0xff] }
0x10db   : > { %v3876_v44 = vpop.f32.mrb[64].mxu1 }
0x10dc   : > { %3891 = vrot.lane.b32.xlu1 %v3876_v44, %s11524_s29  ;;  %v8159_v43 = vpop.f32.mrb[65].mxu1  ;;  %v4155_v44 = vld [vmem:[%s11430_s9 + $0x38] sm:$0xff] }
0x10dd   : > { %v3879_v45 = vpop.f32.mrb[66].mxu1  ;;  %v4212_v43 = vpack.c.bf16 %v4155_v44, %v4154_v41 }
0x10de   : > { %v8160_v46 = vpop.f32.mrb[67].mxu1  ;;  %v7495_v45 = vld [vmem:[%s11516_s20 + $0x60] sm:$0xff] }
0x10df   : > { %v7496_v46 = vld [vmem:[%s11516_s20 + $0x68] sm:$0xff] }
0x113d   : > { %v3884_v48 = vpop.permute.xlu1 %3883 }
0x113e   : > { %v3894_v52 = vsel %vm2591_vm5, %v3540_v17, %v3884_v48  ;;  %v7482_v17 = vld [vmem:[%s11517_s17 + $0x2] sm:$0x3]  ;;  %v4047_v48 = vpack.c.bf16 %v7496_v46, %v7495_v45 }
0x113f   : > { %v3966_v24 = vrot.slane %v7482_v17, %v9213_v3  ;;  %v3971_v23 = vrot.slane %v7482_v17, %v10181_v47 }
0x1146   : > { %v3888_v51 = vpop.permute.xlu0 %3887 }
0x1147   : > { %v3895_v55 = vsel %vm3050_vm8, %v3894_v52, %v3888_v51  ;;  %v7497_v51 = vld [vmem:[%s11516_s20 + $0x70] sm:$0xff]  ;;  %v7498_v52 = vld [vmem:[%s11516_s20 + $0x78] sm:$0xff]  ;;  %s11540_s20 = scalar_lea.vmem [#allocation3], %s9077_s2 }
0x114e   : > { %v3892_v57 = vpop.permute.xlu1 %3891 }
0x114f   : > { %v3896_v58 = vsel %vm3052_vm9, %v3895_v55, %v3892_v57  ;;  %v4048_v55 = vpack.c.bf16 %v7498_v52, %v7497_v51  ;;  %v7489_v57 = vld [vmem:[%s11518_s15 + $0x1] ss:$0 sm:$0xff] }
0x1150   : > { %v3897_v60 = vpack.c.bf16 %v3896_v58, %v3896_v58 }
0x1152   : > { %8166 = vmatmul.mubr.msk.bf16.vlgmr.msra.gmra.mrb[64].mxu0 %vm2453_vm3, %v3897_v60 }
0x1153   : > { %8185 = vmatprep.mubr.msk.bf16.mxu0 %vm8871_vm2, %v8870_v32  ;;  %8178 = vmatpush3.bf16.msra.mxu0 %v4045_v18 }
0x1154   : > { %8179 = vmatprep.subr.bf16.mxu0 %v8870_v32 }
0x1157   : > { %8180 = vmatpush3.bf16.msra.mxu0 %v4046_v8 }
0x1158   : > { %8181 = vmatprep.subr.bf16.mxu0 %v8870_v32 }
0x115b   : > { %8182 = vmatpush3.bf16.msra.mxu0 %v4047_v48 }
0x115c   : > { %8183 = vmatprep.subr.bf16.mxu0 %v8870_v32 }
0x115f   : > { %8184 = vmatpush3.bf16.msra.mxu0 %v4048_v55 }
0x1160   : > { %8205 = vmatprep.subr.bf16.mxu0 %v8870_v32 }
0x1225   : > { %v3941_v62 = vpop.f32.mrb[64].mxu0 }
0x1226   : > { %v3942_v63 = vadd.f32 %v3941_v62, %v3903_v61  ;;  %v8167_v2 = vpop.f32.mrb[65].mxu0  ;;  %v4156_v62 = vld [vmem:[%s11430_s9 + $0x40] sm:$0xff] }
0x1227   : > { %v3944_v4 = vpop.f32.mrb[66].mxu0 }
0x1228   : > { %v8168_v0 = vpop.f32.mrb[67].mxu0  ;;  %v3949_v6 = vadd.f32 %v3942_v63, %v10381_v9  ;;  %v7486_v9 = vld [vmem:[%s11515_s19 + $0x30] sm:$0xff]  ;;  %v4157_v63 = vld [vmem:[%s11430_s9 + $0x48] sm:$0xff]  ;;  %v10606_v4 = vld [vmem:[%s11525_s13] sm:$0xf] }
0x1229   : > { %v3982_v59 = vpack.c.bf16 %v7487_v16, %v7486_v9  ;;  %v4216_v42 = vrot.slane %v10606_v4, %v10181_v47  ;;  %v4262_v38 = vrot.slane %v10606_v4, %v10171_v40 }
0x122a   : > { %v3950_v7 = vsel %vm3106_vm10, %v3949_v6, 0.0 }
0x122b   : > { %3951 = vadd.xlane.f32.xlu0 %v3950_v7  ;;  %8172 = vmatpush3.bf16.msra.mxu1 %v3982_v59  ;;  %v4257_v7 = vpack.c.bf16 %v4157_v63, %v4156_v62 }
0x122c   : > { %8189 = vmatprep.subr.bf16.mxu1 %v8870_v32 }
0x12b8   : > { %v3952_v10 = vpop.xlane.xlu0 %3951 }
0x12b9   : > { %v3953_v11 = vmul.f32 0.03125, %v3952_v10 }
0x12bb   : > { %v3954_v13 = vsub.f32 %v3949_v6, %v3953_v11  ;;  %v4170_v11 = vrot.slane %v10606_v4, %v9213_v3 }
0x12bd   : > { %v3955_v14 = vmul.f32 %v3954_v13, %v3954_v13 }
0x12bf   : > { %v3956_v15 = vsel %vm3106_vm10, %v3955_v14, 0.0  ;;  %v4159_v14 = vld [vmem:[%s11430_s9 + $0x58] sm:$0xff] }
0x12c0   : > { %3957 = vadd.xlane.f32.xlu1 %v3956_v15 }
0x134d   : > { %v3958_v22 = vpop.xlane.xlu1 %3957 }
0x134e   : > { %v3959_v5 = vmul.f32 0.03125, %v3958_v22 }
0x1350   : > { %v3960_v12 = vadd.f32 1e-05, %v3959_v5 }
0x1352   : > { %8683 = vrsqrt.f32 %v3960_v12 }
0x135c   : > { %v8684_v20 = vpop.eup %8683 }
0x135d   : > { %v3962_v19 = vmul.f32 %v8684_v20, %v3954_v13  ;;  %v4158_v13 = vld [vmem:[%s11430_s9 + $0x50] sm:$0xff] }
0x135e   : > { %v4258_v37 = vpack.c.bf16 %v4159_v14, %v4158_v13 }
0x135f   : > { %v3967_v25 = vmul.f32 %v3966_v24, %v3962_v19 }
0x1361   : > { %v10543_v29 = vadd.f32 %v3971_v23, %v3967_v25 }
0x1363   : > { %v3980_v34 = vpack.c.bf16 %v10543_v29, %v10543_v29 }
0x1365   : > { %8174 = vmatmul.mubr.msk.bf16.vlgmr.msra.gmra.mrb[68].mxu1 %vm2453_vm3, %v3980_v34 }
0x1366   : > { %8190 = vmatpush3.bf16.msra.mxu1 %v4165_v30  ;;  %8193 = vmatprep.mubr.msk.bf16.mxu1 %vm8871_vm2, %v8870_v32 }
0x1367   : > { %8191 = vmatprep.subr.bf16.mxu1 %v8870_v32 }
0x136a   : > { %8192 = vmatpush3.bf16.msra.mxu1 %v4166_v28 }
0x136b   : > { %8197 = vmatprep.subr.bf16.mxu1 %v8870_v32 }
0x136d   : > { %8194 = vmatmul.mubr.msk.bf16.vlgmr.msra.gmra.mrb[72].mxu1 %vm2453_vm3, %v10148_v54 }
0x136e   : > { %8198 = vmatpush3.bf16.msra.mxu1 %v4211_v35  ;;  %8201 = vmatprep.mubr.msk.bf16.mxu1 %vm8871_vm2, %v8870_v32 }
0x136f   : > { %8199 = vmatprep.subr.bf16.mxu1 %v8870_v32 }
0x1372   : > { %8200 = vmatpush3.bf16.msra.mxu1 %v4212_v43 }
0x1373   : > { %8213 = vmatprep.subr.bf16.mxu1 %v8870_v32 }
0x1375   : > { %8202 = vmatmul.mubr.msk.bf16.vlgmr.msra.gmra.mrb[76].mxu1 %vm2453_vm3, %v10148_v54 }
0x1376   : > { %8215 = vmatprep.mubr.msk.bf16.mxu1 %vm8871_vm2, %v8870_v32 }
0x1438   : > { %v4028_v58 = vpop.f32.mrb[68].mxu1 }
0x1439   : > { %v4029_v60 = vadd.f32 %v7489_v57, %v4028_v58  ;;  %v8175_v61 = vpop.f32.mrb[69].mxu1 }
0x143a   : > { %v4031_v2 = vpop.f32.mrb[70].mxu1 }
0x143b   : > { %v4034_v0 = vmax.f32 %v4029_v60, 0.0  ;;  %v8176_v6 = vpop.f32.mrb[71].mxu1 }
0x143d   : > { %v4044_v10 = vpack.c.bf16 %v4034_v0, %v4034_v0 }
0x143f   : > { %8186 = vmatmul.mubr.msk.bf16.vlgmr.msra.gmra.mrb[68].mxu0 %vm1148_vm0, %v4044_v10 }
0x1440   : > { %v4205_v15 = vpop.f32.mrb[72].mxu1  ;;  %8206 = vmatpush3.bf16.msra.mxu0 %v4257_v7  ;;  %8209 = vmatprep.mubr.msk.bf16.mxu0 %vm8871_vm2, %v8870_v32 }
0x1441   : > { %v4206_v33 = vadd.f32 %v4205_v15, %v4170_v11  ;;  %v8195_v50 = vpop.f32.mrb[73].mxu1  ;;  %8207 = vmatprep.subr.bf16.mxu0 %v8870_v32 }
0x1442   : > { %v4208_v9 = vpop.f32.mrb[74].mxu1 }
0x1443   : > { %v4303_v16 = vpack.c.bf16 %v4206_v33, %v4206_v33  ;;  %v8196_v59 = vpop.f32.mrb[75].mxu1 }
0x1444   : > { %8208 = vmatpush3.bf16.msra.mxu0 %v4258_v37 }
0x1445   : > { %4412 = vrot.lane.b32.xlu1 %v4303_v16, %s11526_s4  ;;  %8219 = vmatprep.subr.bf16.mxu0 %v8870_v32 }
0x1447   : > { %8210 = vmatmul.mubr.msk.bf16.vlgmr.msra.gmra.mrb[72].mxu0 %vm2453_vm3, %v10148_v54 }
0x1448   : > { %v4251_v49 = vpop.f32.mrb[76].mxu1  ;;  %8221 = vmatprep.mubr.msk.bf16.mxu0 %vm8871_vm2, %v8870_v32 }
0x1449   : > { %v4252_v53 = vadd.f32 %v4251_v49, %v4216_v42  ;;  %4525 = vrot.lane.b32.xlu1 %v4303_v16, %s11521_s24  ;;  %v8203_v18 = vpop.f32.mrb[77].mxu1 }
0x144a   : > { %v4254_v21 = vpop.f32.mrb[78].mxu1 }
0x144b   : > { %v4304_v8 = vpack.c.bf16 %v4252_v53, %v4252_v53  ;;  %v8204_v22 = vpop.f32.mrb[79].mxu1 }
0x144d   : > { %4636 = vrot.lane.b32.xlu1 %v4303_v16, %s11527_s1  ;;  %4415 = vrot.lane.b32.xlu0 %v4304_v8, %s11526_s4  ;;  %v4309_v5 = vsel %vm2591_vm5, %v4304_v8, 0 }
0x144e   : > { %8214 = vmatpush3.bf16.xpose.msra.mxu1 %v4309_v5 }
0x144f   : > { %8225 = vmatprep.subr.bf16.mxu1 %v8870_v32 }
0x1451   : > { %4527 = vrot.lane.b32.xlu0 %v4304_v8, %s11521_s24 }
0x1455   : > { %4638 = vrot.lane.b32.xlu0 %v4304_v8, %s11527_s1  ;;  %8216 = vmatmul.mubr.msk.bf16.vlgmr.msra.gmra.mrb[80].mxu1 %vm2591_vm5, %v4303_v16 }
0x1456   : > { %8227 = vmatprep.mubr.msk.bf16.mxu1 %vm8871_vm2, %v8870_v32 }
0x14b7   : > { %v4413_v24 = vpop.permute.xlu1 %4412 }
0x14bb   : > { %v4526_v23 = vpop.permute.xlu1 %4525 }
0x14bf   : > { %v4416_v54 = vpop.permute.xlu0 %4415  ;;  %v4637_v26 = vpop.permute.xlu1 %4636 }
0x14c0   : > { %v4421_v12 = vsel %vm2591_vm5, %v4416_v54, 0 }
0x14c1   : > { %8226 = vmatpush3.bf16.xpose.msra.mxu1 %v4421_v12 }
0x14c2   : > { %8237 = vmatprep.subr.bf16.mxu1 %v8870_v32 }
0x14c3   : > { %v4528_v17 = vpop.permute.xlu0 %4527 }
0x14c4   : > { %v4533_v20 = vsel %vm2591_vm5, %v4528_v17, 0 }
0x14c7   : > { %v4639_v19 = vpop.permute.xlu0 %4638 }
0x14c8   : > { %8228 = vmatmul.mubr.msk.bf16.vlgmr.msra.gmra.mrb[84].mxu1 %vm2591_vm5, %v4413_v24  ;;  %v4644_v25 = vsel %vm2591_vm5, %v4639_v19, 0 }
0x14c9   : > { %8238 = vmatpush3.bf16.xpose.msra.mxu1 %v4533_v20  ;;  %8239 = vmatprep.mubr.msk.bf16.mxu1 %vm8871_vm2, %v8870_v32 }
0x14ca   : > { %8249 = vmatprep.subr.bf16.mxu1 %v8870_v32 }
0x14d0   : > { %8240 = vmatmul.mubr.msk.bf16.vlgmr.msra.gmra.mrb[88].mxu1 %vm2591_vm5, %v4526_v23 }
0x14d1   : > { %8250 = vmatpush3.bf16.xpose.msra.mxu1 %v4644_v25  ;;  %8251 = vmatprep.mubr.msk.bf16.mxu1 %vm8871_vm2, %v8870_v32 }
0x14d2   : > { %8261 = vmatprep.subr.bf16.mxu1 %v8870_v32 }
0x14d8   : > { %8252 = vmatmul.mubr.msk.bf16.vlgmr.msra.gmra.mrb[92].mxu1 %vm2591_vm5, %v4637_v26 }
0x14d9   : > { %8265 = vmatprep.mubr.msk.bf16.mxu1 %vm8871_vm2, %v8870_v32 }
0x1512   : > { %v10653_v27 = vpop.f32.mrb[68].mxu0 }
0x1513   : > { %v8187_v30 = vpop.f32.mrb[69].mxu0 }
0x1514   : > { %v4097_v34 = vpop.f32.mrb[70].mxu0 }
0x1515   : > { %v8188_v36 = vpop.f32.mrb[71].mxu0 }
0x151a   : > { %v4297_v28 = vpop.f32.mrb[72].mxu0 }
0x151b   : > { %v4298_v31 = vadd.f32 %v4297_v28, %v4262_v38  ;;  %v8211_v56 = vpop.f32.mrb[73].mxu0 }
0x151c   : > { %v4300_v35 = vpop.f32.mrb[74].mxu0 }
0x151d   : > { %v10657_v41 = vpack.c.bf16 %v4298_v31, %v4298_v31  ;;  %v8212_v44 = vpop.f32.mrb[75].mxu0 }
0x151f   : > { %v4369_v43 = vsel %vm2657_vm4, %v10657_v41, 0 }
0x1520   : > { %8220 = vmatpush3.bf16.msra.mxu0 %v4369_v43 }
0x1521   : > { %8231 = vmatprep.subr.bf16.mxu0 %v8870_v32 }
0x1528   : > { %v4345_v45 = vpop.f32.mrb[80].mxu1 }
0x1529   : > { %v4351_v46 = vmul.f32 0.35355338, %v4345_v45  ;;  %v8217_v48 = vpop.f32.mrb[81].mxu1 }
0x152a   : > { %v4348_v51 = vpop.f32.mrb[82].mxu1 }
0x152b   : > { %v8218_v52 = vpop.f32.mrb[83].mxu1  ;;  %v4352_v55 = vsel %vm2639_vm6, %v4351_v46, -inf }
0x152c   : > { %4353 = vmax.xlane.f32.xlu0 %v4352_v55 }
0x159b   : > { %v4457_v57 = vpop.f32.mrb[84].mxu1 }
0x159c   : > { %v4463_v58 = vmul.f32 0.35355338, %v4457_v57  ;;  %v8229_v60 = vpop.f32.mrb[85].mxu1 }
0x159d   : > { %v4460_v61 = vpop.f32.mrb[86].mxu1 }
0x159e   : > { %v8230_v62 = vpop.f32.mrb[87].mxu1  ;;  %v4464_v63 = vsel %vm2639_vm6, %v4463_v58, -inf }
0x159f   : > { %4465 = vmax.xlane.f32.xlu1 %v4464_v63 }
0x15a3   : > { %v4569_v2 = vpop.f32.mrb[88].mxu1 }
0x15a4   : > { %v4575_v0 = vmul.f32 0.35355338, %v4569_v2  ;;  %v8241_v6 = vpop.f32.mrb[89].mxu1 }
0x15a5   : > { %v4572_v7 = vpop.f32.mrb[90].mxu1 }
0x15a6   : > { %v8242_v10 = vpop.f32.mrb[91].mxu1  ;;  %v4576_v11 = vsel %vm2639_vm6, %v4575_v0, -inf  ;;  %v4160_v7 = vld [vmem:[%s11430_s9 + $0x60] sm:$0xff] }
0x15a7   : > { %4577 = vmax.xlane.f32.xlu0 %v4576_v11  ;;  %v4161_v10 = vld [vmem:[%s11430_s9 + $0x68] sm:$0xff] }
0x15a8   : > { %v4763_v11 = vpack.c.bf16 %v4161_v10, %v4160_v7 }
0x15aa   : > { %8262 = vmatpush3.bf16.msra.mxu1 %v4763_v11 }
0x15ab   : > { %v4680_v13 = vpop.f32.mrb[92].mxu1  ;;  %8263 = vmatprep.subr.bf16.mxu1 %v8870_v32 }
0x15ac   : > { %v4686_v14 = vmul.f32 0.35355338, %v4680_v13  ;;  %v8253_v15 = vpop.f32.mrb[93].mxu1 }
0x15ad   : > { %v4683_v37 = vpop.f32.mrb[94].mxu1 }
0x15ae   : > { %v8254_v33 = vpop.f32.mrb[95].mxu1  ;;  %v4687_v50 = vsel %vm2639_vm6, %v4686_v14, -inf }
0x15af   : > { %4688 = vmax.xlane.f32.xlu0 %v4687_v50  ;;  %v4162_v33 = vld [vmem:[%s11430_s9 + $0x70] sm:$0xff]  ;;  %v4163_v50 = vld [vmem:[%s11430_s9 + $0x78] sm:$0xff] }
0x15b9   : > { %v4354_v9 = vpop.xlane.xlu0 %4353 }
0x15ba   : > { %v4355_v16 = vsub.f32 %v4351_v46, %v4354_v9  ;;  %v4764_v9 = vpack.c.bf16 %v4163_v50, %v4162_v33  ;;  %v4837_v33 = vld [vmem:[%s11529_s3] sm:$0xff]  ;;  %v4838_v50 = vld [vmem:[%s11529_s3 + $0x8] sm:$0xff] }
0x15bc   : > { %v4356_v59 = vmul.f32 1.442695, %v4355_v16  ;;  %8264 = vmatpush3.bf16.msra.mxu1 %v4764_v9  ;;  %v4843_v9 = vld [vmem:[%s11529_s3 + $0x30] sm:$0xff] }
0x15bd   : > { %8277 = vmatprep.subr.bf16.mxu1 %v8870_v32 }
0x15be   : > { %8685 = vpow2.f32 %v4356_v59 }
0x15c8   : > { %v8686_v42 = vpop.eup %8685 }
0x15c9   : > { %v4358_v49 = vsel %vm2639_vm6, %v8686_v42, 0.0 }
0x15ca   : > { %4359 = vadd.xlane.f32.xlu1 %v4358_v49 }
0x15db   : > { %4477 = vrot.lane.b32.xlu1 %v10657_v41, %s11526_s4 }
0x162c   : > { %v4466_v53 = vpop.xlane.xlu1 %4465 }
0x162d   : > { %v4467_v18 = vsub.f32 %v4463_v58, %v4466_v53 }
0x162f   : > { %v4468_v21 = vmul.f32 1.442695, %v4467_v18 }
0x1631   : > { %8687 = vpow2.f32 %v4468_v21 }
0x1634   : > { %v4578_v8 = vpop.xlane.xlu0 %4577 }
0x1635   : > { %v4579_v22 = vsub.f32 %v4575_v0, %v4578_v8 }
0x1637   : > { %v4580_v5 = vmul.f32 1.442695, %v4579_v22  ;;  %v7500_v22 = vld [vmem:[%s11519_s16 + $0x1] ss:$0 sm:$0xff] }
0x1639   : > { %8689 = vpow2.f32 %v4580_v5  ;;  %v4095_v5 = vadd.f32 %v7500_v22, %v10653_v27 }
0x163b   : > { %v8688_v54 = vpop.eup %8687 }
0x163c   : > { %v4689_v12 = vpop.xlane.xlu0 %4688  ;;  %v4470_v17 = vsel %vm2639_vm6, %v8688_v54, 0.0 }
0x163d   : > { %v4690_v24 = vsub.f32 %v4686_v14, %v4689_v12  ;;  %4471 = vadd.xlane.f32.xlu0 %v4470_v17 }
0x163f   : > { %v4691_v20 = vmul.f32 1.442695, %v4690_v24 }
0x1641   : > { %8691 = vpow2.f32 %v4691_v20 }
0x1643   : > { %v8690_v19 = vpop.eup %8689 }
0x1644   : > { %v4582_v23 = vsel %vm2639_vm6, %v8690_v19, 0.0 }
0x1645   : > { %4583 = vadd.xlane.f32.xlu1 %v4582_v23 }
0x164b   : > { %v8692_v25 = vpop.eup %8691 }
0x164c   : > { %v4693_v26 = vsel %vm2639_vm6, %v8692_v25, 0.0 }
0x164d   : > { %4694 = vadd.xlane.f32.xlu0 %v4693_v26 }
0x1656   : > { %4699 = vrot.lane.b32.xlu1 %v10657_v41, %s11527_s1 }
0x1657   : > { %v4360_v30 = vpop.xlane.xlu1 %4359 }
0x1658   : > { %8693 = vrcp.f32 %v4360_v30 }
0x165b   : > { %v4478_v38 = vpop.permute.xlu1 %4477 }
0x165c   : > { %v4483_v31 = vsel %vm2657_vm4, %v4478_v38, 0 }
0x1662   : > { %v8694_v34 = vpop.eup %8693 }
0x1663   : > { %v4362_v36 = vmul.f32 %v8694_v34, %v8686_v42  ;;  %4588 = vrot.lane.b32.xlu0 %v10657_v41, %s11521_s24 }
0x1665   : > { %v4363_v28 = vpack.c.bf16 %v4362_v36, %v4362_v36 }
0x1667   : > { %8222 = vmatmul.mubr.msk.bf16.vlgmr.msra.gmra.mrb[76].mxu0 %vm2653_vm7, %v4363_v28 }
0x1668   : > { %8232 = vmatpush3.bf16.msra.mxu0 %v4483_v31  ;;  %8233 = vmatprep.mubr.msk.bf16.mxu0 %vm8871_vm2, %v8870_v32 }
0x1669   : > { %8243 = vmatprep.subr.bf16.mxu0 %v8870_v32 }
0x16ca   : > { %v4472_v56 = vpop.xlane.xlu0 %4471 }
0x16cb   : > { %8695 = vrcp.f32 %v4472_v56  ;;  %v7483_v56 = vld [vmem:[%s11520_s18 + $0x2] sm:$0x3]  ;;  %s11537_s18 = sld [smem:[#allocation16_spill]] }
0x16d2   : > { %v4584_v35 = vpop.xlane.xlu1 %4583 }
0x16d3   : > { %8697 = vrcp.f32 %v4584_v35  ;;  %v4768_v35 = vrot.slane %v10606_v4, %v10274_v1 }
0x16d5   : > { %v8696_v44 = vpop.eup %8695 }
0x16d6   : > { %v4474_v43 = vmul.f32 %v8696_v44, %v8688_v54  ;;  %v4700_v55 = vpop.permute.xlu1 %4699  ;;  %v4100_v54 = vadd.f32 %v4095_v5, %v10543_v29  ;;  %v4117_v44 = vrot.slane %v7483_v56, %v9213_v3 }
0x16d7   : > { %v4705_v58 = vsel %vm2657_vm4, %v4700_v55, 0 }
0x16d8   : > { %v4475_v45 = vpack.c.bf16 %v4474_v43, %v4474_v43  ;;  %v4101_v12 = vsel %vm3106_vm10, %v4100_v54, 0.0 }
0x16da   : > { %8234 = vmatmul.mubr.msk.bf16.vlgmr.msra.gmra.mrb[80].mxu0 %vm2653_vm7, %v4475_v45  ;;  %v4695_v41 = vpop.xlane.xlu0 %4694 }
0x16db   : > { %8699 = vrcp.f32 %v4695_v41  ;;  %8245 = vmatprep.mubr.msk.bf16.mxu0 %vm8871_vm2, %v8870_v32 }
0x16dd   : > { %v8698_v46 = vpop.eup %8697 }
0x16de   : > { %v4586_v48 = vmul.f32 %v8698_v46, %v8690_v19  ;;  %v4589_v51 = vpop.permute.xlu0 %4588  ;;  %v4122_v46 = vrot.slane %v7483_v56, %v10181_v47  ;;  %v4846_v56 = vld [vmem:[%s11529_s3 + $0x48] sm:$0xff] }
0x16df   : > { %v4594_v52 = vsel %vm2657_vm4, %v4589_v51, 0 }
0x16e0   : > { %8244 = vmatpush3.bf16.msra.mxu0 %v4594_v52  ;;  %v4587_v57 = vpack.c.bf16 %v4586_v48, %v4586_v48 }
0x16e1   : > { %8255 = vmatprep.subr.bf16.mxu0 %v8870_v32 }
0x16e3   : > { %8246 = vmatmul.mubr.msk.bf16.vlgmr.msra.gmra.mrb[84].mxu0 %vm2653_vm7, %v4587_v57 }
0x16e4   : > { %8256 = vmatpush3.bf16.msra.mxu0 %v4705_v58  ;;  %8257 = vmatprep.mubr.msk.bf16.mxu0 %vm8871_vm2, %v8870_v32 }
0x16e5   : > { %v8700_v60 = vpop.eup %8699  ;;  %8269 = vmatprep.subr.bf16.mxu0 %v8870_v32 }
0x16e6   : > { %v4697_v61 = vmul.f32 %v8700_v60, %v8692_v25 }
0x16e8   : > { %v4698_v62 = vpack.c.bf16 %v4697_v61, %v4697_v61 }
0x16eb   : > { %8258 = vmatmul.mubr.msk.bf16.vlgmr.msra.gmra.mrb[88].mxu0 %vm2653_vm7, %v4698_v62 }
0x16ec   : > { %8273 = vmatprep.mubr.msk.bf16.mxu0 %vm8871_vm2, %v8870_v32 }
0x173a   : > { %v4405_v63 = vpop.f32.mrb[76].mxu0 }
0x173b   : > { %v8223_v2 = vpop.f32.mrb[77].mxu0 }
0x173c   : > { %v4408_v0 = vpop.f32.mrb[78].mxu0 }
0x173d   : > { %v8224_v6 = vpop.f32.mrb[79].mxu0 }
0x17ad   : > { %v4519_v13 = vpop.f32.mrb[80].mxu0 }
0x17ae   : > { %4748 = vrot.lane.b32.xlu1 %v4519_v13, %s11522_s30  ;;  %v8235_v14 = vpop.f32.mrb[81].mxu0 }
0x17af   : > { %v4522_v15 = vpop.f32.mrb[82].mxu0 }
0x17b0   : > { %v8236_v37 = vpop.f32.mrb[83].mxu0  ;;  %v4842_v15 = vld [vmem:[%s11529_s3 + $0x28] sm:$0xff] }
0x17b6   : > { %v4630_v16 = vpop.f32.mrb[84].mxu0 }
0x17b7   : > { %4752 = vrot.lane.b32.xlu0 %v4630_v16, %s11523_s27  ;;  %v8247_v59 = vpop.f32.mrb[85].mxu0  ;;  %v4855_v16 = vpack.c.bf16 %v4838_v50, %v4837_v33 }
0x17b8   : > { %v4633_v42 = vpop.f32.mrb[86].mxu0  ;;  %v4844_v59 = vld [vmem:[%s11529_s3 + $0x38] sm:$0xff] }
0x17b9   : > { %v8248_v49 = vpop.f32.mrb[87].mxu0  ;;  %v4906_v42 = vpack.c.bf16 %v4844_v59, %v4843_v9  ;;  %8270 = vmatpush3.bf16.msra.mxu0 %v4855_v16 }
0x17ba   : > { %8271 = vmatprep.subr.bf16.mxu0 %v8870_v32  ;;  %v4839_v49 = vld [vmem:[%s11529_s3 + $0x10] sm:$0xff] }
0x17be   : > { %v4741_v53 = vpop.f32.mrb[88].mxu0 }
0x17bf   : > { %4756 = vrot.lane.b32.xlu1 %v4741_v53, %s11524_s29  ;;  %v8259_v18 = vpop.f32.mrb[89].mxu0  ;;  %v4840_v53 = vld [vmem:[%s11529_s3 + $0x18] sm:$0xff] }
0x17c0   : > { %v4744_v21 = vpop.f32.mrb[90].mxu0  ;;  %v4856_v18 = vpack.c.bf16 %v4840_v53, %v4839_v49 }
0x17c1   : > { %v8260_v8 = vpop.f32.mrb[91].mxu0 }
0x17c2   : > { %8272 = vmatpush3.bf16.msra.mxu0 %v4856_v18 }
0x17c3   : > { %8285 = vmatprep.subr.bf16.mxu0 %v8870_v32 }
0x17d6   : > { %4102 = vadd.xlane.f32.xlu0 %v4101_v12 }
0x1820   : > { %v4749_v17 = vpop.permute.xlu1 %4748 }
0x1821   : > { %v4759_v20 = vsel %vm2591_vm5, %v4405_v63, %v4749_v17  ;;  %v4124_v17 = vld [vmem:[%s11530_s21] sm:$0x3] }
0x1829   : > { %v4753_v24 = vpop.permute.xlu0 %4752 }
0x182a   : > { %v4760_v19 = vsel %vm3050_vm8, %v4759_v20, %v4753_v24  ;;  %v4141_v24 = vrot.slane %v4124_v17, %v9213_v3 }
0x1831   : > { %v4757_v23 = vpop.permute.xlu1 %4756 }
0x1832   : > { %v4761_v25 = vsel %vm3052_vm9, %v4760_v19, %v4757_v23  ;;  %v4812_v19 = vld [vmem:[%s11531_s28] sm:$0x3] }
0x1833   : > { %v4762_v26 = vpack.c.bf16 %v4761_v25, %v4761_v25  ;;  %v4146_v25 = vrot.slane %v4124_v17, %v10181_v47 }
0x1835   : > { %8266 = vmatmul.mubr.msk.bf16.vlgmr.msra.gmra.mrb[96].mxu1 %vm2453_vm3, %v4762_v26  ;;  %v4830_v26 = vrot.slane %v4812_v19, %v9213_v3 }
0x1836   : > { %8281 = vmatprep.mubr.msk.bf16.mxu1 %vm8871_vm2, %v8870_v32 }
0x1863   : > { %v4103_v27 = vpop.xlane.xlu0 %4102 }
0x1864   : > { %v4104_v29 = vmul.f32 0.03125, %v4103_v27 }
0x1866   : > { %v4105_v30 = vsub.f32 %v4100_v54, %v4104_v29 }
0x1868   : > { %v4106_v34 = vmul.f32 %v4105_v30, %v4105_v30 }
0x186a   : > { %v4107_v36 = vsel %vm3106_vm10, %v4106_v34, 0.0 }
0x186b   : > { %4108 = vadd.xlane.f32.xlu1 %v4107_v36  ;;  %v4835_v36 = vrot.slane %v4812_v19, %v10181_v47 }
0x18f8   : > { %v4109_v38 = vpop.xlane.xlu1 %4108 }
0x18f9   : > { %v4110_v28 = vmul.f32 0.03125, %v4109_v38 }
0x18fb   : > { %v4111_v31 = vadd.f32 1e-05, %v4110_v28 }
0x18fd   : > { %8701 = vrsqrt.f32 %v4111_v31  ;;  %v4845_v31 = vld [vmem:[%s11529_s3 + $0x40] sm:$0xff] }
0x1907   : > { %v8702_v43 = vpop.eup %8701 }
0x1908   : > { %v4806_v45 = vpop.f32.mrb[96].mxu1  ;;  %v4113_v41 = vmul.f32 %v8702_v43, %v4105_v30 }
0x1909   : > { %v8267_v48 = vpop.f32.mrb[97].mxu1  ;;  %v4807_v51 = vadd.f32 %v4806_v45, %v4768_v35  ;;  %v4847_v45 = vld [vmem:[%s11529_s3 + $0x50] sm:$0xff] }
0x190a   : > { %v4809_v52 = vpop.f32.mrb[98].mxu1  ;;  %v4118_v55 = vmul.f32 %v4117_v44, %v4113_v41  ;;  %v4954_v44 = vpack.c.bf16 %v4846_v56, %v4845_v31  ;;  %v4848_v41 = vld [vmem:[%s11529_s3 + $0x58] sm:$0xff]  ;;  %v10808_v48 = vld [vmem:[%s11533_s0] sm:$0xf]  ;;  %s11535_s0 = sld [smem:[#allocation21_spill]] }
0x190b   : > { %v8268_v57 = vpop.f32.mrb[99].mxu1  ;;  %v4813_v61 = vadd.f32 %v4807_v51, %v10144_v39  ;;  %v4841_v39 = vld [vmem:[%s11528_s5 + $0x20] sm:$0xff]  ;;  %v4910_v51 = vrot.slane %v10808_v48, %v10181_v47 }
0x190c   : > { %v4123_v58 = vadd.f32 %v4122_v46, %v4118_v55  ;;  %v4905_v37 = vpack.c.bf16 %v4842_v15, %v4841_v39  ;;  %v4955_v46 = vpack.c.bf16 %v4848_v41, %v4847_v45 }
0x190d   : > { %v4814_v4 = vsel %vm3106_vm10, %v4813_v61, 0.0 }
0x190e   : > { %v4125_v60 = vsel %vm3106_vm10, %v4123_v58, 0.0  ;;  %8278 = vmatpush3.bf16.msra.mxu1 %v4905_v37 }
0x190f   : > { %4126 = vadd.xlane.f32.xlu0 %v4125_v60  ;;  %8279 = vmatprep.subr.bf16.mxu1 %v8870_v32 }
0x1910   : > { %s11536_s15 = smov %s11535_s0 }
0x1912   : > { %8280 = vmatpush3.bf16.msra.mxu1 %v4906_v42 }
0x1913   : > { %4815 = vadd.xlane.f32.xlu0 %v4814_v4  ;;  %8293 = vmatprep.subr.bf16.mxu1 %v8870_v32 }
0x199c   : > { %v4127_v62 = vpop.xlane.xlu0 %4126 }
0x199d   : > { %v4128_v63 = vmul.f32 0.03125, %v4127_v62 }
0x199f   : > { %v4129_v2 = vsub.f32 %v4123_v58, %v4128_v63  ;;  %v4860_v58 = vrot.slane %v10808_v48, %v9213_v3 }
0x19a0   : > { %v4816_v0 = vpop.xlane.xlu0 %4815 }
0x19a1   : > { %v4817_v6 = vmul.f32 0.03125, %v4816_v0  ;;  %v4130_v7 = vmul.f32 %v4129_v2, %v4129_v2 }
0x19a3   : > { %v4818_v10 = vsub.f32 %v4813_v61, %v4817_v6  ;;  %v4131_v11 = vsel %vm3106_vm10, %v4130_v7, 0.0 }
0x19a4   : > { %4132 = vadd.xlane.f32.xlu1 %v4131_v11  ;;  %v4959_v11 = vrot.slane %v10808_v48, %v10171_v40 }
0x19a5   : > { %v4819_v13 = vmul.f32 %v4818_v10, %v4818_v10 }
0x19a7   : > { %v4820_v14 = vsel %vm3106_vm10, %v4819_v13, 0.0 }
0x19a8   : > { %4821 = vadd.xlane.f32.xlu0 %v4820_v14 }
0x1a31   : > { %v4133_v21 = vpop.xlane.xlu1 %4132 }
0x1a32   : > { %v4134_v8 = vmul.f32 0.03125, %v4133_v21 }
0x1a34   : > { %v4135_v22 = vadd.f32 1e-05, %v4134_v8 }
0x1a35   : > { %v4822_v5 = vpop.xlane.xlu0 %4821 }
0x1a36   : > { %8703 = vrsqrt.f32 %v4135_v22  ;;  %v4823_v54 = vmul.f32 0.03125, %v4822_v5 }
0x1a38   : > { %v4824_v12 = vadd.f32 1e-05, %v4823_v54 }
0x1a3a   : > { %8705 = vrsqrt.f32 %v4824_v12 }
0x1a40   : > { %v8704_v20 = vpop.eup %8703 }
0x1a41   : > { %v4137_v23 = vmul.f32 %v8704_v20, %v4129_v2 }
0x1a43   : > { %v4142_v27 = vmul.f32 %v4141_v24, %v4137_v23 }
0x1a44   : > { %v8706_v29 = vpop.eup %8705 }
0x1a45   : > { %v4826_v30 = vmul.f32 %v8706_v29, %v4818_v10  ;;  %v4147_v34 = vadd.f32 %v4146_v25, %v4142_v27 }
0x1a47   : > { %v4831_v38 = vmul.f32 %v4830_v26, %v4826_v30  ;;  %v10774_v28 = vpack.c.bf16 %v4147_v34, %v4147_v34 }
0x1a49   : > { %8282 = vmatmul.mubr.msk.bf16.vlgmr.msra.gmra.mrb[100].mxu1 %vm2453_vm3, %v10774_v28  ;;  %v10784_v35 = vadd.f32 %v4835_v36, %v4831_v38 }
0x1a4a   : > { %8295 = vmatprep.mubr.msk.bf16.mxu1 %vm8871_vm2, %v8870_v32 }
0x1a4b   : > { %v4854_v43 = vpack.c.bf16 %v10784_v35, %v10784_v35 }
0x1a4d   : > { %8274 = vmatmul.mubr.msk.bf16.vlgmr.msra.gmra.mrb[92].mxu0 %vm2453_vm3, %v4854_v43 }
0x1a4e   : > { %8286 = vmatpush3.bf16.msra.mxu0 %v4954_v44  ;;  %8289 = vmatprep.mubr.msk.bf16.mxu0 %vm8871_vm2, %v8870_v32 }
0x1a4f   : > { %8287 = vmatprep.subr.bf16.mxu0 %v8870_v32 }
0x1a52   : > { %8288 = vmatpush3.bf16.msra.mxu0 %v4955_v46 }
0x1a53   : > { %8299 = vmatprep.subr.bf16.mxu0 %v8870_v32 }
0x1a55   : > { %8290 = vmatmul.mubr.msk.bf16.vlgmr.msra.gmra.mrb[96].mxu0 %vm2453_vm3, %v10774_v28 }
0x1a56   : > { %8301 = vmatprep.mubr.msk.bf16.mxu0 %vm8871_vm2, %v8870_v32 }
0x1b1c   : > { %v4948_v52 = vpop.f32.mrb[100].mxu1 }
0x1b1d   : > { %v4949_v55 = vadd.f32 %v4948_v52, %v4910_v51  ;;  %v8283_v57 = vpop.f32.mrb[101].mxu1 }
0x1b1e   : > { %v4951_v60 = vpop.f32.mrb[102].mxu1 }
0x1b1f   : > { %v5001_v61 = vpack.c.bf16 %v4949_v55, %v4949_v55  ;;  %v8284_v4 = vpop.f32.mrb[103].mxu1 }
0x1b20   : > { %v4898_v62 = vpop.f32.mrb[92].mxu0 }
0x1b21   : > { %v4899_v63 = vadd.f32 %v4898_v62, %v4860_v58  ;;  %v8275_v2 = vpop.f32.mrb[93].mxu0  ;;  %5112 = vrot.lane.b32.xlu1 %v5001_v61, %s11526_s4  ;;  %v5006_v0 = vsel %vm2591_vm5, %v5001_v61, 0 }
0x1b22   : > { %v4901_v6 = vpop.f32.mrb[94].mxu0  ;;  %8294 = vmatpush3.bf16.xpose.msra.mxu1 %v5006_v0 }
0x1b23   : > { %v5000_v7 = vpack.c.bf16 %v4899_v63, %v4899_v63  ;;  %v8276_v10 = vpop.f32.mrb[95].mxu0  ;;  %8305 = vmatprep.subr.bf16.mxu1 %v8870_v32 }
0x1b25   : > { %5109 = vrot.lane.b32.xlu0 %v5000_v7, %s11526_s4  ;;  %5224 = vrot.lane.b32.xlu1 %v5001_v61, %s11521_s24 }
0x1b28   : > { %v4994_v13 = vpop.f32.mrb[96].mxu0 }
0x1b29   : > { %v4995_v14 = vadd.f32 %v4994_v13, %v4959_v11  ;;  %v8291_v39 = vpop.f32.mrb[97].mxu0  ;;  %5335 = vrot.lane.b32.xlu0 %v5001_v61, %s11527_s1  ;;  %5222 = vrot.lane.b32.xlu1 %v5000_v7, %s11521_s24 }
0x1b2a   : > { %8296 = vmatmul.mubr.msk.bf16.vlgmr.msra.gmra.mrb[104].mxu1 %vm2591_vm5, %v5000_v7  ;;  %v4997_v15 = vpop.f32.mrb[98].mxu0 }
0x1b2b   : > { %v10824_v37 = vpack.c.bf16 %v4995_v14, %v4995_v14  ;;  %v8292_v33 = vpop.f32.mrb[99].mxu0  ;;  %8307 = vmatprep.mubr.msk.bf16.mxu1 %vm8871_vm2, %v8870_v32 }
0x1b2d   : > { %5333 = vrot.lane.b32.xlu1 %v5000_v7, %s11527_s1  ;;  %v5066_v50 = vsel %vm2657_vm4, %v10824_v37, 0 }
0x1b2e   : > { %8300 = vmatpush3.bf16.msra.mxu0 %v5066_v50 }
0x1b2f   : > { %8311 = vmatprep.subr.bf16.mxu0 %v8870_v32 }
0x1b93   : > { %v5113_v9 = vpop.permute.xlu1 %5112 }
0x1b94   : > { %v5118_v16 = vsel %vm2591_vm5, %v5113_v9, 0 }
0x1b95   : > { %8306 = vmatpush3.bf16.xpose.msra.mxu1 %v5118_v16 }
0x1b96   : > { %8317 = vmatprep.subr.bf16.mxu1 %v8870_v32 }
0x1b97   : > { %v5225_v59 = vpop.permute.xlu1 %5224  ;;  %v5110_v42 = vpop.permute.xlu0 %5109 }
0x1b98   : > { %v5230_v49 = vsel %vm2591_vm5, %v5225_v59, 0 }
0x1b9b   : > { %v5336_v53 = vpop.permute.xlu0 %5335  ;;  %v5223_v18 = vpop.permute.xlu1 %5222 }
0x1b9c   : > { %8308 = vmatmul.mubr.msk.bf16.vlgmr.msra.gmra.mrb[108].mxu1 %vm2591_vm5, %v5110_v42  ;;  %v5341_v21 = vsel %vm2591_vm5, %v5336_v53, 0 }
0x1b9d   : > { %8318 = vmatpush3.bf16.xpose.msra.mxu1 %v5230_v49  ;;  %8319 = vmatprep.mubr.msk.bf16.mxu1 %vm8871_vm2, %v8870_v32 }
0x1b9e   : > { %8329 = vmatprep.subr.bf16.mxu1 %v8870_v32 }
0x1b9f   : > { %v5334_v8 = vpop.permute.xlu1 %5333 }
0x1ba4   : > { %8320 = vmatmul.mubr.msk.bf16.vlgmr.msra.gmra.mrb[112].mxu1 %vm2591_vm5, %v5223_v18 }
0x1ba5   : > { %8330 = vmatpush3.bf16.xpose.msra.mxu1 %v5341_v21  ;;  %8331 = vmatprep.mubr.msk.bf16.mxu1 %vm8871_vm2, %v8870_v32 }
0x1ba6   : > { %8341 = vmatprep.subr.bf16.mxu1 %v8870_v32 }
0x1bac   : > { %8332 = vmatmul.mubr.msk.bf16.vlgmr.msra.gmra.mrb[116].mxu1 %vm2591_vm5, %v5334_v8 }
0x1bad   : > { %8345 = vmatprep.mubr.msk.bf16.mxu1 %vm8871_vm2, %v8870_v32 }
0x1bfd   : > { %v5042_v22 = vpop.f32.mrb[104].mxu1 }
0x1bfe   : > { %v5048_v5 = vmul.f32 0.35355338, %v5042_v22  ;;  %v8297_v54 = vpop.f32.mrb[105].mxu1 }
0x1bff   : > { %v5045_v12 = vpop.f32.mrb[106].mxu1 }
0x1c00   : > { %v8298_v17 = vpop.f32.mrb[107].mxu1  ;;  %v5049_v24 = vsel %vm2639_vm6, %v5048_v5, -inf }
0x1c01   : > { %5050 = vmax.xlane.f32.xlu0 %v5049_v24 }
0x1c6f   : > { %v5154_v20 = vpop.f32.mrb[108].mxu1 }
0x1c70   : > { %v5160_v19 = vmul.f32 0.35355338, %v5154_v20  ;;  %v8309_v23 = vpop.f32.mrb[109].mxu1 }
0x1c71   : > { %v5157_v25 = vpop.f32.mrb[110].mxu1 }
0x1c72   : > { %v8310_v26 = vpop.f32.mrb[111].mxu1  ;;  %v5161_v27 = vsel %vm2639_vm6, %v5160_v19, -inf }
0x1c73   : > { %5162 = vmax.xlane.f32.xlu1 %v5161_v27 }
0x1c77   : > { %v5266_v29 = vpop.f32.mrb[112].mxu1 }
0x1c78   : > { %v5272_v30 = vmul.f32 0.35355338, %v5266_v29  ;;  %v8321_v34 = vpop.f32.mrb[113].mxu1 }
0x1c79   : > { %v5269_v36 = vpop.f32.mrb[114].mxu1  ;;  %v4849_v34 = vld [vmem:[%s11529_s3 + $0x60] sm:$0xff] }
0x1c7a   : > { %v8322_v38 = vpop.f32.mrb[115].mxu1  ;;  %v5273_v31 = vsel %vm2639_vm6, %v5272_v30, -inf  ;;  %v4850_v36 = vld [vmem:[%s11529_s3 + $0x68] sm:$0xff] }
0x1c7b   : > { %5274 = vmax.xlane.f32.xlu0 %v5273_v31  ;;  %v5460_v38 = vpack.c.bf16 %v4850_v36, %v4849_v34 }
0x1c7d   : > { %8342 = vmatpush3.bf16.msra.mxu1 %v5460_v38 }
0x1c7e   : > { %8343 = vmatprep.subr.bf16.mxu1 %v8870_v32 }
0x1c7f   : > { %v5377_v56 = vpop.f32.mrb[116].mxu1 }
0x1c80   : > { %v5383_v44 = vmul.f32 0.35355338, %v5377_v56  ;;  %v8333_v43 = vpop.f32.mrb[117].mxu1 }
0x1c81   : > { %v5380_v45 = vpop.f32.mrb[118].mxu1 }
0x1c82   : > { %v8334_v41 = vpop.f32.mrb[119].mxu1  ;;  %v5384_v46 = vsel %vm2639_vm6, %v5383_v44, -inf  ;;  %v4851_v45 = vld [vmem:[%s11529_s3 + $0x70] sm:$0xff] }
0x1c83   : > { %5385 = vmax.xlane.f32.xlu0 %v5384_v46  ;;  %v4852_v41 = vld [vmem:[%s11529_s3 + $0x78] sm:$0xff] }
0x1c84   : > { %v5461_v46 = vpack.c.bf16 %v4852_v41, %v4851_v45  ;;  %v5600_v45 = vld [vmem:[%s11432_s11 + $0x38] sm:$0xff] }
0x1c86   : > { %8344 = vmatpush3.bf16.msra.mxu1 %v5461_v46  ;;  %v7526_v46 = vld [vmem:[%s11537_s18] ss:$0 sm:$0xff] }
0x1c87   : > { %8357 = vmatprep.subr.bf16.mxu1 %v8870_v32 }
0x1c8e   : > { %v5051_v51 = vpop.xlane.xlu0 %5050 }
0x1c8f   : > { %v5052_v52 = vsub.f32 %v5048_v5, %v5051_v51 }
0x1c91   : > { %v5053_v55 = vmul.f32 1.442695, %v5052_v52 }
0x1c93   : > { %8707 = vpow2.f32 %v5053_v55 }
0x1c9d   : > { %v8708_v57 = vpop.eup %8707 }
0x1c9e   : > { %v5055_v58 = vsel %vm2639_vm6, %v8708_v57, 0.0 }
0x1c9f   : > { %5056 = vadd.xlane.f32.xlu1 %v5055_v58 }
0x1cb0   : > { %5174 = vrot.lane.b32.xlu1 %v10824_v37, %s11526_s4 }
0x1d00   : > { %v5163_v60 = vpop.xlane.xlu1 %5162 }
0x1d01   : > { %v5164_v61 = vsub.f32 %v5160_v19, %v5163_v60 }
0x1d03   : > { %v5165_v4 = vmul.f32 1.442695, %v5164_v61 }
0x1d05   : > { %8709 = vpow2.f32 %v5165_v4 }
0x1d08   : > { %v5275_v62 = vpop.xlane.xlu0 %5274 }
0x1d09   : > { %v5276_v63 = vsub.f32 %v5272_v30, %v5275_v62 }
0x1d0b   : > { %v5277_v2 = vmul.f32 1.442695, %v5276_v63 }
0x1d0d   : > { %8711 = vpow2.f32 %v5277_v2 }
0x1d0f   : > { %v8710_v0 = vpop.eup %8709 }
0x1d10   : > { %v5386_v6 = vpop.xlane.xlu0 %5385  ;;  %v5167_v7 = vsel %vm2639_vm6, %v8710_v0, 0.0 }
0x1d11   : > { %v5387_v10 = vsub.f32 %v5383_v44, %v5386_v6  ;;  %5168 = vadd.xlane.f32.xlu0 %v5167_v7 }
0x1d13   : > { %v5388_v11 = vmul.f32 1.442695, %v5387_v10 }
0x1d15   : > { %8713 = vpow2.f32 %v5388_v11  ;;  %v5465_v11 = vrot.slane %v10808_v48, %v10274_v1  ;;  %v5535_v48 = vld [vmem:[%s11431_s10] sm:$0xff] }
0x1d17   : > { %v8712_v13 = vpop.eup %8711 }
0x1d18   : > { %v5279_v14 = vsel %vm2639_vm6, %v8712_v13, 0.0 }
0x1d19   : > { %5280 = vadd.xlane.f32.xlu1 %v5279_v14 }
0x1d1f   : > { %v8714_v39 = vpop.eup %8713 }
0x1d20   : > { %v5390_v15 = vsel %vm2639_vm6, %v8714_v39, 0.0 }
0x1d21   : > { %5391 = vadd.xlane.f32.xlu0 %v5390_v15 }
0x1d2a   : > { %5396 = vrot.lane.b32.xlu1 %v10824_v37, %s11527_s1 }
0x1d2c   : > { %v5057_v33 = vpop.xlane.xlu1 %5056 }
0x1d2d   : > { %8715 = vrcp.f32 %v5057_v33 }
0x1d30   : > { %v5175_v16 = vpop.permute.xlu1 %5174 }
0x1d31   : > { %v5180_v42 = vsel %vm2657_vm4, %v5175_v16, 0 }
0x1d37   : > { %v8716_v50 = vpop.eup %8715  ;;  %5285 = vrot.lane.b32.xlu0 %v10824_v37, %s11521_s24 }
0x1d38   : > { %v5059_v9 = vmul.f32 %v8716_v50, %v8708_v57 }
0x1d3a   : > { %v5060_v59 = vpack.c.bf16 %v5059_v9, %v5059_v9 }
0x1d3c   : > { %8302 = vmatmul.mubr.msk.bf16.vlgmr.msra.gmra.mrb[100].mxu0 %vm2653_vm7, %v5060_v59 }
0x1d3d   : > { %8312 = vmatpush3.bf16.msra.mxu0 %v5180_v42  ;;  %8313 = vmatprep.mubr.msk.bf16.mxu0 %vm8871_vm2, %v8870_v32 }
0x1d3e   : > { %8323 = vmatprep.subr.bf16.mxu0 %v8870_v32 }
0x1d9e   : > { %v5169_v49 = vpop.xlane.xlu0 %5168 }
0x1d9f   : > { %8717 = vrcp.f32 %v5169_v49 }
0x1da6   : > { %v5281_v53 = vpop.xlane.xlu1 %5280 }
0x1da7   : > { %8719 = vrcp.f32 %v5281_v53 }
0x1da9   : > { %v8718_v18 = vpop.eup %8717 }
0x1daa   : > { %v5171_v21 = vmul.f32 %v8718_v18, %v8710_v0  ;;  %v5397_v17 = vpop.permute.xlu1 %5396  ;;  %v5536_v18 = vld [vmem:[%s11431_s10 + $0x8] sm:$0xff] }
0x1dab   : > { %v5402_v20 = vsel %vm2657_vm4, %v5397_v17, 0  ;;  %v5596_v17 = vld [vmem:[%s11432_s11 + $0x18] sm:$0xff] }
0x1dac   : > { %v5172_v37 = vpack.c.bf16 %v5171_v21, %v5171_v21  ;;  %v5540_v21 = vpack.c.bf16 %v5536_v18, %v5535_v48  ;;  %v7540_v48 = vld [vmem:[%s11430_s9 + $0xd0] sm:$0xff] }
0x1dae   : > { %8314 = vmatmul.mubr.msk.bf16.vlgmr.msra.gmra.mrb[104].mxu0 %vm2653_vm7, %v5172_v37  ;;  %v5392_v8 = vpop.xlane.xlu0 %5391  ;;  %v5538_v37 = vld [vmem:[%s11431_s10 + $0x18] sm:$0xff] }
0x1daf   : > { %8721 = vrcp.f32 %v5392_v8  ;;  %8325 = vmatprep.mubr.msk.bf16.mxu0 %vm8871_vm2, %v8870_v32 }
0x1db1   : > { %v8720_v22 = vpop.eup %8719 }
0x1db2   : > { %v5283_v5 = vmul.f32 %v8720_v22, %v8712_v13  ;;  %v5286_v54 = vpop.permute.xlu0 %5285  ;;  %v5593_v22 = vld [vmem:[%s11432_s11] sm:$0xff] }
0x1db3   : > { %v5291_v12 = vsel %vm2657_vm4, %v5286_v54, 0  ;;  %v5595_v54 = vld [vmem:[%s11432_s11 + $0x10] sm:$0xff] }
0x1db4   : > { %8324 = vmatpush3.bf16.msra.mxu0 %v5291_v12  ;;  %v5284_v24 = vpack.c.bf16 %v5283_v5, %v5283_v5  ;;  %v5594_v5 = vld [vmem:[%s11432_s11 + $0x8] sm:$0xff] }
0x1db5   : > { %8335 = vmatprep.subr.bf16.mxu0 %v8870_v32  ;;  %v5602_v12 = vpack.c.bf16 %v5594_v5, %v5593_v22  ;;  %v5534_v5 = vld [vmem:[%s11539_s22] sm:$0x3] }
0x1db7   : > { %8326 = vmatmul.mubr.msk.bf16.vlgmr.msra.gmra.mrb[108].mxu0 %vm2653_vm7, %v5284_v24  ;;  %v5603_v24 = vpack.c.bf16 %v5596_v17, %v5595_v54  ;;  %v5673_v54 = vrot.slane %v5534_v5, %v9213_v3 }
0x1db8   : > { %8336 = vmatpush3.bf16.msra.mxu0 %v5402_v20  ;;  %8337 = vmatprep.mubr.msk.bf16.mxu0 %vm8871_vm2, %v8870_v32 }
0x1db9   : > { %v8722_v19 = vpop.eup %8721  ;;  %8349 = vmatprep.subr.bf16.mxu0 %v8870_v32 }
0x1dba   : > { %v5394_v23 = vmul.f32 %v8722_v19, %v8714_v39 }
0x1dbc   : > { %v5395_v25 = vpack.c.bf16 %v5394_v23, %v5394_v23 }
0x1dbf   : > { %8338 = vmatmul.mubr.msk.bf16.vlgmr.msra.gmra.mrb[112].mxu0 %vm2653_vm7, %v5395_v25  ;;  %v5509_v25 = vld [vmem:[%s11535_s0] sm:$0x3] }
0x1dc0   : > { %8353 = vmatprep.mubr.msk.bf16.mxu0 %vm8871_vm2, %v8870_v32  ;;  %8350 = vmatpush3.bf16.msra.mxu0 %v5540_v21  ;;  %v7541_v21 = vld [vmem:[%s11430_s9 + $0xd8] sm:$0xff] }
0x1dc1   : > { %8351 = vmatprep.subr.bf16.mxu0 %v8870_v32 }
0x1e0f   : > { %v5102_v26 = vpop.f32.mrb[100].mxu0 }
0x1e10   : > { %v8303_v27 = vpop.f32.mrb[101].mxu0 }
0x1e11   : > { %v5105_v29 = vpop.f32.mrb[102].mxu0 }
0x1e12   : > { %v8304_v30 = vpop.f32.mrb[103].mxu0 }
0x1e13   : > { %v5532_v30 = vrot.slane %v5509_v25, %v10181_v47 }
0x1e81   : > { %v5216_v31 = vpop.f32.mrb[104].mxu0 }
0x1e82   : > { %5445 = vrot.lane.b32.xlu1 %v5216_v31, %s11522_s30  ;;  %v8315_v56 = vpop.f32.mrb[105].mxu0  ;;  %v5597_v31 = vld [vmem:[%s11432_s11 + $0x20] sm:$0xff] }
0x1e83   : > { %v5219_v44 = vpop.f32.mrb[106].mxu0  ;;  %v5598_v56 = vld [vmem:[%s11432_s11 + $0x28] sm:$0xff] }
0x1e84   : > { %v8316_v43 = vpop.f32.mrb[107].mxu0  ;;  %v5604_v44 = vpack.c.bf16 %v5598_v56, %v5597_v31 }
0x1e85   : > { %v5599_v43 = vld [vmem:[%s11432_s11 + $0x30] sm:$0xff] }
0x1e86   : > { %v5605_v41 = vpack.c.bf16 %v5600_v45, %v5599_v43 }
0x1e8a   : > { %v5327_v51 = vpop.f32.mrb[108].mxu0 }
0x1e8b   : > { %5449 = vrot.lane.b32.xlu0 %v5327_v51, %s11523_s27  ;;  %v8327_v52 = vpop.f32.mrb[109].mxu0 }
0x1e8c   : > { %v5330_v55 = vpop.f32.mrb[110].mxu0 }
0x1e8d   : > { %v8328_v57 = vpop.f32.mrb[111].mxu0 }
0x1e92   : > { %v5438_v58 = vpop.f32.mrb[112].mxu0 }
0x1e93   : > { %5453 = vrot.lane.b32.xlu1 %v5438_v58, %s11524_s29  ;;  %v8339_v60 = vpop.f32.mrb[113].mxu0 }
0x1e94   : > { %v5441_v61 = vpop.f32.mrb[114].mxu0 }
0x1e95   : > { %v8340_v4 = vpop.f32.mrb[115].mxu0 }
0x1e96   : > { %v7528_v4 = vld [vmem:[%s11538_s25] ss:$0 sm:$0xff] }
0x1ef4   : > { %v5446_v62 = vpop.permute.xlu1 %5445 }
0x1ef5   : > { %v5456_v2 = vsel %vm2591_vm5, %v5102_v26, %v5446_v62  ;;  %v5527_v26 = vrot.slane %v5509_v25, %v9213_v3 }
0x1efd   : > { %v5450_v63 = vpop.permute.xlu0 %5449 }
0x1efe   : > { %v5457_v0 = vsel %vm3050_vm8, %v5456_v2, %v5450_v63 }
0x1f05   : > { %v5454_v6 = vpop.permute.xlu1 %5453 }
0x1f06   : > { %v5458_v7 = vsel %vm3052_vm9, %v5457_v0, %v5454_v6 }
0x1f07   : > { %v5459_v10 = vpack.c.bf16 %v5458_v7, %v5458_v7 }
0x1f09   : > { %8346 = vmatmul.mubr.msk.bf16.vlgmr.msra.gmra.mrb[120].mxu1 %vm2453_vm3, %v5459_v10 }
0x1f0a   : > { %8365 = vmatprep.mubr.msk.bf16.mxu1 %vm8871_vm2, %v8870_v32  ;;  %8358 = vmatpush3.bf16.msra.mxu1 %v5602_v12 }
0x1f0b   : > { %8359 = vmatprep.subr.bf16.mxu1 %v8870_v32 }
0x1f0e   : > { %8360 = vmatpush3.bf16.msra.mxu1 %v5603_v24  ;;  %v5678_v24 = vrot.slane %v5534_v5, %v10181_v47 }
0x1f0f   : > { %8361 = vmatprep.subr.bf16.mxu1 %v8870_v32 }
0x1f12   : > { %8362 = vmatpush3.bf16.msra.mxu1 %v5604_v44 }
0x1f13   : > { %8363 = vmatprep.subr.bf16.mxu1 %v8870_v32 }
0x1f16   : > { %8364 = vmatpush3.bf16.msra.mxu1 %v5605_v41 }
0x1f17   : > { %8385 = vmatprep.subr.bf16.mxu1 %v8870_v32 }
0x1fdc   : > { %v5503_v13 = vpop.f32.mrb[120].mxu1 }
0x1fdd   : > { %v5504_v14 = vadd.f32 %v5503_v13, %v5465_v11  ;;  %v8347_v39 = vpop.f32.mrb[121].mxu1 }
0x1fde   : > { %v5506_v15 = vpop.f32.mrb[122].mxu1 }
0x1fdf   : > { %v8348_v33 = vpop.f32.mrb[123].mxu1  ;;  %v5510_v50 = vadd.f32 %v5504_v14, %v10784_v35  ;;  %v5537_v35 = vld [vmem:[%s11431_s10 + $0x10] sm:$0xff] }
0x1fe0   : > { %v5541_v8 = vpack.c.bf16 %v5538_v37, %v5537_v35  ;;  %v7530_v33 = vld [vmem:[%s11430_s9 + $0x80] sm:$0xff]  ;;  %v5796_v35 = vpack.c.bf16 %v7541_v21, %v7540_v48 }
0x1fe1   : > { %v5511_v9 = vsel %vm3106_vm10, %v5510_v50, 0.0 }
0x1fe2   : > { %5512 = vadd.xlane.f32.xlu0 %v5511_v9  ;;  %8352 = vmatpush3.bf16.msra.mxu0 %v5541_v8  ;;  %v7538_v9 = vld [vmem:[%s11430_s9 + $0xc0] sm:$0xff] }
0x1fe3   : > { %8369 = vmatprep.subr.bf16.mxu0 %v8870_v32 }
0x206f   : > { %v5513_v16 = vpop.xlane.xlu0 %5512 }
0x2070   : > { %v5514_v59 = vmul.f32 0.03125, %v5513_v16 }
0x2072   : > { %v5515_v42 = vsub.f32 %v5510_v50, %v5514_v59  ;;  %v7531_v50 = vld [vmem:[%s11430_s9 + $0x88] sm:$0xff] }
0x2073   : > { %v5700_v16 = vpack.c.bf16 %v7531_v50, %v7530_v33  ;;  %v7539_v59 = vld [vmem:[%s11430_s9 + $0xc8] sm:$0xff] }
0x2074   : > { %v5516_v49 = vmul.f32 %v5515_v42, %v5515_v42 }
0x2076   : > { %v5517_v53 = vsel %vm3106_vm10, %v5516_v49, 0.0  ;;  %v7532_v49 = vld [vmem:[%s11430_s9 + $0x90] sm:$0xff] }
0x2077   : > { %5518 = vadd.xlane.f32.xlu1 %v5517_v53  ;;  %v7533_v53 = vld [vmem:[%s11430_s9 + $0x98] sm:$0xff] }
0x2078   : > { %v5701_v18 = vpack.c.bf16 %v7533_v53, %v7532_v49 }
0x2104   : > { %v5519_v20 = vpop.xlane.xlu1 %5518 }
0x2105   : > { %v5520_v19 = vmul.f32 0.03125, %v5519_v20 }
0x2107   : > { %v5521_v23 = vadd.f32 1e-05, %v5520_v19  ;;  %v7534_v19 = vld [vmem:[%s11430_s9 + $0xa0] sm:$0xff] }
0x2109   : > { %8723 = vrsqrt.f32 %v5521_v23  ;;  %v7535_v23 = vld [vmem:[%s11430_s9 + $0xa8] sm:$0xff] }
0x2113   : > { %v8724_v27 = vpop.eup %8723 }
0x2114   : > { %v5523_v29 = vmul.f32 %v8724_v27, %v5515_v42  ;;  %v5795_v42 = vpack.c.bf16 %v7539_v59, %v7538_v9 }
0x2116   : > { %v5528_v34 = vmul.f32 %v5527_v26, %v5523_v29  ;;  %v5749_v26 = vpack.c.bf16 %v7535_v23, %v7534_v19  ;;  %v7536_v29 = vld [vmem:[%s11430_s9 + $0xb0] sm:$0xff] }
0x2118   : > { %v5533_v36 = vadd.f32 %v5532_v30, %v5528_v34  ;;  %v7537_v30 = vld [vmem:[%s11430_s9 + $0xb8] sm:$0xff] }
0x2119   : > { %v5750_v34 = vpack.c.bf16 %v7537_v30, %v7536_v29 }
0x211a   : > { %v5539_v38 = vpack.c.bf16 %v5533_v36, %v5533_v36 }
0x211c   : > { %8354 = vmatmul.mubr.msk.bf16.vlgmr.msra.gmra.mrb[116].mxu0 %vm2453_vm3, %v5539_v38 }
0x211d   : > { %8373 = vmatprep.mubr.msk.bf16.mxu0 %vm8871_vm2, %v8870_v32  ;;  %8370 = vmatpush3.bf16.msra.mxu0 %v5700_v16 }
0x211e   : > { %8371 = vmatprep.subr.bf16.mxu0 %v8870_v32 }
0x2121   : > { %8372 = vmatpush3.bf16.msra.mxu0 %v5701_v18 }
0x2122   : > { %8377 = vmatprep.subr.bf16.mxu0 %v8870_v32 }
0x21ef   : > { %v5586_v51 = vpop.f32.mrb[116].mxu0 }
0x21f0   : > { %v5587_v52 = vadd.f32 %v7526_v46, %v5586_v51  ;;  %v8355_v55 = vpop.f32.mrb[117].mxu0 }
0x21f1   : > { %v5589_v57 = vpop.f32.mrb[118].mxu0 }
0x21f2   : > { %v5592_v58 = vmax.f32 %v5587_v52, 0.0  ;;  %v8356_v60 = vpop.f32.mrb[119].mxu0 }
0x21f4   : > { %v5601_v61 = vpack.c.bf16 %v5592_v58, %v5592_v58 }
0x21f6   : > { %8366 = vmatmul.mubr.msk.bf16.vlgmr.msra.gmra.mrb[124].mxu1 %vm1148_vm0, %v5601_v61 }
0x21f7   : > { %8389 = vmatprep.mubr.msk.bf16.mxu1 %vm8871_vm2, %v8870_v32  ;;  %8386 = vmatpush3.bf16.msra.mxu1 %v5795_v42 }
0x21f8   : > { %8387 = vmatprep.subr.bf16.mxu1 %v8870_v32 }
0x21fb   : > { %8388 = vmatpush3.bf16.msra.mxu1 %v5796_v35 }
0x21fc   : > { %8399 = vmatprep.subr.bf16.mxu1 %v8870_v32 }
0x22c9   : > { %v5650_v62 = vpop.f32.mrb[124].mxu1 }
0x22ca   : > { %v5651_v63 = vadd.f32 %v7528_v4, %v5650_v62  ;;  %v8367_v2 = vpop.f32.mrb[125].mxu1 }
0x22cb   : > { %v5653_v0 = vpop.f32.mrb[126].mxu1 }
0x22cc   : > { %v8368_v6 = vpop.f32.mrb[127].mxu1  ;;  %v5656_v7 = vadd.f32 %v5651_v63, %v5533_v36  ;;  %v11031_v36 = vld [vmem:[%s11525_s13 + $0x4] sm:$0xf] }
0x22cd   : > { %v5705_v38 = vrot.slane %v11031_v36, %v9213_v3  ;;  %v5800_v31 = vrot.slane %v11031_v36, %v10171_v40  ;;  %v5754_v4 = vrot.slane %v11031_v36, %v10181_v47 }
0x22ce   : > { %v5657_v10 = vsel %vm3106_vm10, %v5656_v7, 0.0 }
0x22cf   : > { %5658 = vadd.xlane.f32.xlu0 %v5657_v10 }
0x235c   : > { %v5659_v11 = vpop.xlane.xlu0 %5658 }
0x235d   : > { %v5660_v13 = vmul.f32 0.03125, %v5659_v11 }
0x235f   : > { %v5661_v14 = vsub.f32 %v5656_v7, %v5660_v13 }
0x2361   : > { %v5662_v39 = vmul.f32 %v5661_v14, %v5661_v14 }
0x2363   : > { %v5663_v15 = vsel %vm3106_vm10, %v5662_v39, 0.0 }
0x2364   : > { %5664 = vadd.xlane.f32.xlu0 %v5663_v15 }
0x23f1   : > { %v5665_v37 = vpop.xlane.xlu0 %5664 }
0x23f2   : > { %v5666_v8 = vmul.f32 0.03125, %v5665_v37 }
0x23f4   : > { %v5667_v22 = vadd.f32 1e-05, %v5666_v8 }
0x23f6   : > { %8725 = vrsqrt.f32 %v5667_v22 }
0x2400   : > { %v8726_v12 = vpop.eup %8725 }
0x2401   : > { %v5669_v17 = vmul.f32 %v8726_v12, %v5661_v14 }
0x2403   : > { %v5674_v20 = vmul.f32 %v5673_v54, %v5669_v17 }
0x2405   : > { %v11007_v25 = vadd.f32 %v5678_v24, %v5674_v20 }
0x2407   : > { %v5699_v27 = vpack.c.bf16 %v11007_v25, %v11007_v25 }
0x2409   : > { %8374 = vmatmul.mubr.msk.bf16.vlgmr.msra.gmra.mrb[120].mxu0 %vm2453_vm3, %v5699_v27  ;;  %8390 = vmatmul.mubr.msk.bf16.vlgmr.msra.gmra.mrb[128].mxu1 %vm2453_vm3, %v5699_v27 }
0x240a   : > { %8378 = vmatpush3.bf16.msra.mxu0 %v5749_v26  ;;  %8381 = vmatprep.mubr.msk.bf16.mxu0 %vm8871_vm2, %v8870_v32 }
0x240b   : > { %8379 = vmatprep.subr.bf16.mxu0 %v8870_v32  ;;  %8401 = vmatprep.mubr.msk.bf16.mxu1 %vm8871_vm2, %v8870_v32 }
0x240e   : > { %8380 = vmatpush3.bf16.msra.mxu0 %v5750_v34 }
0x240f   : > { %8393 = vmatprep.subr.bf16.mxu0 %v8870_v32 }
0x2411   : > { %8382 = vmatmul.mubr.msk.bf16.vlgmr.msra.gmra.mrb[124].mxu0 %vm2453_vm3, %v5699_v27 }
0x2412   : > { %8395 = vmatprep.mubr.msk.bf16.mxu0 %vm8871_vm2, %v8870_v32 }
0x24dc   : > { %v5743_v56 = vpop.f32.mrb[120].mxu0  ;;  %v5835_v44 = vpop.f32.mrb[128].mxu1 }
0x24dd   : > { %v5744_v43 = vadd.f32 %v5743_v56, %v5705_v38  ;;  %v5836_v45 = vadd.f32 %v5835_v44, %v5800_v31  ;;  %v8375_v41 = vpop.f32.mrb[121].mxu0  ;;  %v8391_v46 = vpop.f32.mrb[129].mxu1 }
0x24de   : > { %v5746_v51 = vpop.f32.mrb[122].mxu0  ;;  %v5838_v52 = vpop.f32.mrb[130].mxu1 }
0x24df   : > { %v5841_v55 = vpack.c.bf16 %v5744_v43, %v5744_v43  ;;  %v11037_v57 = vpack.c.bf16 %v5836_v45, %v5836_v45  ;;  %v8376_v58 = vpop.f32.mrb[123].mxu0  ;;  %v8392_v60 = vpop.f32.mrb[131].mxu1 }
0x24e1   : > { %5950 = vrot.lane.b32.xlu0 %v5841_v55, %s11526_s4  ;;  %v5907_v61 = vsel %vm2657_vm4, %v11037_v57, 0 }
0x24e2   : > { %8400 = vmatpush3.bf16.msra.mxu1 %v5907_v61 }
0x24e3   : > { %8411 = vmatprep.subr.bf16.mxu1 %v8870_v32 }
0x24e4   : > { %v5789_v62 = vpop.f32.mrb[124].mxu0 }
0x24e5   : > { %v5790_v63 = vadd.f32 %v5789_v62, %v5754_v4  ;;  %v8383_v2 = vpop.f32.mrb[125].mxu0 }
0x24e6   : > { %v5792_v0 = vpop.f32.mrb[126].mxu0 }
0x24e7   : > { %v5842_v6 = vpack.c.bf16 %v5790_v63, %v5790_v63  ;;  %v8384_v7 = vpop.f32.mrb[127].mxu0 }
0x24e9   : > { %6176 = vrot.lane.b32.xlu0 %v5842_v6, %s11527_s1  ;;  %5953 = vrot.lane.b32.xlu1 %v5842_v6, %s11526_s4  ;;  %v5847_v10 = vsel %vm2591_vm5, %v5842_v6, 0 }
0x24ea   : > { %8394 = vmatpush3.bf16.xpose.msra.mxu0 %v5847_v10 }
0x24eb   : > { %8405 = vmatprep.subr.bf16.mxu0 %v8870_v32 }
0x24ed   : > { %6065 = vrot.lane.b32.xlu1 %v5842_v6, %s11521_s24 }
0x24f1   : > { %6063 = vrot.lane.b32.xlu1 %v5841_v55, %s11521_s24  ;;  %8396 = vmatmul.mubr.msk.bf16.vlgmr.msra.gmra.mrb[128].mxu0 %vm2591_vm5, %v5841_v55 }
0x24f2   : > { %8407 = vmatprep.mubr.msk.bf16.mxu0 %vm8871_vm2, %v8870_v32 }
0x24f5   : > { %6174 = vrot.lane.b32.xlu1 %v5841_v55, %s11527_s1 }
0x2553   : > { %v5951_v39 = vpop.permute.xlu0 %5950 }
0x255b   : > { %v5954_v11 = vpop.permute.xlu1 %5953  ;;  %v6177_v33 = vpop.permute.xlu0 %6176 }
0x255c   : > { %v5959_v13 = vsel %vm2591_vm5, %v5954_v11, 0  ;;  %v6182_v9 = vsel %vm2591_vm5, %v6177_v33, 0 }
0x255d   : > { %8406 = vmatpush3.bf16.xpose.msra.mxu0 %v5959_v13 }
0x255e   : > { %8417 = vmatprep.subr.bf16.mxu0 %v8870_v32 }
0x255f   : > { %v6066_v14 = vpop.permute.xlu1 %6065 }
0x2560   : > { %v6071_v15 = vsel %vm2591_vm5, %v6066_v14, 0 }
0x2563   : > { %v6064_v50 = vpop.permute.xlu1 %6063 }
0x2564   : > { %8408 = vmatmul.mubr.msk.bf16.vlgmr.msra.gmra.mrb[132].mxu0 %vm2591_vm5, %v5951_v39 }
0x2565   : > { %8418 = vmatpush3.bf16.xpose.msra.mxu0 %v6071_v15  ;;  %8419 = vmatprep.mubr.msk.bf16.mxu0 %vm8871_vm2, %v8870_v32 }
0x2566   : > { %8429 = vmatprep.subr.bf16.mxu0 %v8870_v32 }
0x2567   : > { %v6175_v16 = vpop.permute.xlu1 %6174 }
0x256c   : > { %8420 = vmatmul.mubr.msk.bf16.vlgmr.msra.gmra.mrb[136].mxu0 %vm2591_vm5, %v6064_v50 }
0x256d   : > { %8430 = vmatpush3.bf16.xpose.msra.mxu0 %v6182_v9  ;;  %8431 = vmatprep.mubr.msk.bf16.mxu0 %vm8871_vm2, %v8870_v32 }
0x256e   : > { %8441 = vmatprep.subr.bf16.mxu0 %v8870_v32 }
0x2574   : > { %8432 = vmatmul.mubr.msk.bf16.vlgmr.msra.gmra.mrb[140].mxu0 %vm2591_vm5, %v6175_v16 }
0x2575   : > { %8445 = vmatprep.mubr.msk.bf16.mxu0 %vm8871_vm2, %v8870_v32 }
0x25c4   : > { %v5883_v59 = vpop.f32.mrb[128].mxu0 }
0x25c5   : > { %v5889_v42 = vmul.f32 0.35355338, %v5883_v59  ;;  %v8397_v49 = vpop.f32.mrb[129].mxu0 }
0x25c6   : > { %v5886_v53 = vpop.f32.mrb[130].mxu0 }
0x25c7   : > { %v8398_v48 = vpop.f32.mrb[131].mxu0  ;;  %v5890_v18 = vsel %vm2639_vm6, %v5889_v42, -inf }
0x25c8   : > { %5891 = vmax.xlane.f32.xlu0 %v5890_v18 }
0x2637   : > { %v5995_v21 = vpop.f32.mrb[132].mxu0 }
0x2638   : > { %v6001_v35 = vmul.f32 0.35355338, %v5995_v21  ;;  %v8409_v37 = vpop.f32.mrb[133].mxu0 }
0x2639   : > { %v5998_v8 = vpop.f32.mrb[134].mxu0 }
0x263a   : > { %v8410_v22 = vpop.f32.mrb[135].mxu0  ;;  %v6002_v5 = vsel %vm2639_vm6, %v6001_v35, -inf }
0x263b   : > { %6003 = vmax.xlane.f32.xlu1 %v6002_v5 }
0x263f   : > { %v6107_v54 = vpop.f32.mrb[136].mxu0 }
0x2640   : > { %v6113_v12 = vmul.f32 0.35355338, %v6107_v54  ;;  %v8421_v17 = vpop.f32.mrb[137].mxu0 }
0x2641   : > { %v6110_v24 = vpop.f32.mrb[138].mxu0  ;;  %v7542_v17 = vld [vmem:[%s11430_s9 + $0xe0] sm:$0xff] }
0x2642   : > { %v8422_v20 = vpop.f32.mrb[139].mxu0  ;;  %v6114_v19 = vsel %vm2639_vm6, %v6113_v12, -inf  ;;  %v7543_v24 = vld [vmem:[%s11430_s9 + $0xe8] sm:$0xff] }
0x2643   : > { %6115 = vmax.xlane.f32.xlu0 %v6114_v19  ;;  %v6301_v20 = vpack.c.bf16 %v7543_v24, %v7542_v17 }
0x2645   : > { %8442 = vmatpush3.bf16.msra.mxu0 %v6301_v20 }
0x2646   : > { %8443 = vmatprep.subr.bf16.mxu0 %v8870_v32 }
0x2647   : > { %v6218_v23 = vpop.f32.mrb[140].mxu0 }
0x2648   : > { %v6224_v26 = vmul.f32 0.35355338, %v6218_v23  ;;  %v8433_v27 = vpop.f32.mrb[141].mxu0 }
0x2649   : > { %v6221_v29 = vpop.f32.mrb[142].mxu0 }
0x264a   : > { %v8434_v30 = vpop.f32.mrb[143].mxu0  ;;  %v6225_v34 = vsel %vm2639_vm6, %v6224_v26, -inf  ;;  %v7544_v29 = vld [vmem:[%s11430_s9 + $0xf0] sm:$0xff] }
0x264b   : > { %6226 = vmax.xlane.f32.xlu0 %v6225_v34  ;;  %v7545_v30 = vld [vmem:[%s11430_s9 + $0xf8] sm:$0xff] }
0x264c   : > { %v6302_v34 = vpack.c.bf16 %v7545_v30, %v7544_v29 }
0x264e   : > { %8444 = vmatpush3.bf16.msra.mxu0 %v6302_v34 }
0x264f   : > { %8457 = vmatprep.subr.bf16.mxu0 %v8870_v32 }
0x2655   : > { %v5892_v38 = vpop.xlane.xlu0 %5891 }
0x2656   : > { %v5893_v31 = vsub.f32 %v5889_v42, %v5892_v38 }
0x2658   : > { %v5894_v56 = vmul.f32 1.442695, %v5893_v31 }
0x265a   : > { %8727 = vpow2.f32 %v5894_v56 }
0x2664   : > { %v8728_v44 = vpop.eup %8727 }
0x2665   : > { %v5896_v43 = vsel %vm2639_vm6, %v8728_v44, 0.0 }
0x2666   : > { %5897 = vadd.xlane.f32.xlu1 %v5896_v43 }
0x2677   : > { %6015 = vrot.lane.b32.xlu1 %v11037_v57, %s11526_s4 }
0x26c8   : > { %v6004_v45 = vpop.xlane.xlu1 %6003 }
0x26c9   : > { %v6005_v41 = vsub.f32 %v6001_v35, %v6004_v45 }
0x26cb   : > { %v6006_v46 = vmul.f32 1.442695, %v6005_v41 }
0x26cd   : > { %8729 = vpow2.f32 %v6006_v46 }
0x26d0   : > { %v6116_v51 = vpop.xlane.xlu0 %6115 }
0x26d1   : > { %v6117_v52 = vsub.f32 %v6113_v12, %v6116_v51 }
0x26d3   : > { %v6118_v55 = vmul.f32 1.442695, %v6117_v52 }
0x26d5   : > { %8731 = vpow2.f32 %v6118_v55  ;;  %v7564_v55 = vld [vmem:[%s11529_s3 + $0xa0] sm:$0xff] }
0x26d7   : > { %v8730_v58 = vpop.eup %8729 }
0x26d8   : > { %v6227_v60 = vpop.xlane.xlu0 %6226  ;;  %v6008_v61 = vsel %vm2639_vm6, %v8730_v58, 0.0 }
0x26d9   : > { %v6228_v4 = vsub.f32 %v6224_v26, %v6227_v60  ;;  %6009 = vadd.xlane.f32.xlu0 %v6008_v61 }
0x26db   : > { %v6229_v62 = vmul.f32 1.442695, %v6228_v4 }
0x26dd   : > { %8733 = vpow2.f32 %v6229_v62 }
0x26df   : > { %v8732_v63 = vpop.eup %8731 }
0x26e0   : > { %v6120_v2 = vsel %vm2639_vm6, %v8732_v63, 0.0 }
0x26e1   : > { %6121 = vadd.xlane.f32.xlu1 %v6120_v2 }
0x26e7   : > { %v8734_v0 = vpop.eup %8733 }
0x26e8   : > { %v6231_v6 = vsel %vm2639_vm6, %v8734_v0, 0.0 }
0x26e9   : > { %6232 = vadd.xlane.f32.xlu0 %v6231_v6  ;;  %v7567_v6 = vld [vmem:[%s11529_s3 + $0xb8] sm:$0xff] }
0x26f2   : > { %6237 = vrot.lane.b32.xlu1 %v11037_v57, %s11527_s1 }
0x26f3   : > { %v5898_v7 = vpop.xlane.xlu1 %5897 }
0x26f4   : > { %8735 = vrcp.f32 %v5898_v7 }
0x26f7   : > { %v6016_v13 = vpop.permute.xlu1 %6015 }
0x26f8   : > { %v6021_v39 = vsel %vm2657_vm4, %v6016_v13, 0 }
0x26fe   : > { %v8736_v10 = vpop.eup %8735 }
0x26ff   : > { %v5900_v11 = vmul.f32 %v8736_v10, %v8728_v44  ;;  %6126 = vrot.lane.b32.xlu0 %v11037_v57, %s11521_s24  ;;  %v6306_v10 = vrot.slane %v11031_v36, %v10274_v1 }
0x2701   : > { %v5901_v14 = vpack.c.bf16 %v5900_v11, %v5900_v11 }
0x2703   : > { %8402 = vmatmul.mubr.msk.bf16.vlgmr.msra.gmra.mrb[132].mxu1 %vm2653_vm7, %v5901_v14 }
0x2704   : > { %8412 = vmatpush3.bf16.msra.mxu1 %v6021_v39  ;;  %8413 = vmatprep.mubr.msk.bf16.mxu1 %vm8871_vm2, %v8870_v32 }
0x2705   : > { %8423 = vmatprep.subr.bf16.mxu1 %v8870_v32 }
0x2766   : > { %v6010_v15 = vpop.xlane.xlu0 %6009 }
0x2767   : > { %8737 = vrcp.f32 %v6010_v15  ;;  %v11148_v15 = vld [vmem:[%s11534_s14 + $0x4] sm:$0xf] }
0x276e   : > { %v6122_v33 = vpop.xlane.xlu1 %6121 }
0x276f   : > { %8739 = vrcp.f32 %v6122_v33 }
0x2771   : > { %v8738_v50 = vpop.eup %8737 }
0x2772   : > { %v6012_v9 = vmul.f32 %v8738_v50, %v8730_v58  ;;  %v6238_v48 = vpop.permute.xlu1 %6237  ;;  %v7565_v58 = vld [vmem:[%s11529_s3 + $0xa8] sm:$0xff] }
0x2773   : > { %v6243_v21 = vsel %vm2657_vm4, %v6238_v48, 0 }
0x2774   : > { %v6013_v16 = vpack.c.bf16 %v6012_v9, %v6012_v9 }
0x2776   : > { %v6233_v57 = vpop.xlane.xlu0 %6232  ;;  %8414 = vmatmul.mubr.msk.bf16.vlgmr.msra.gmra.mrb[136].mxu1 %vm2653_vm7, %v6013_v16  ;;  %v6450_v16 = vrot.slane %v11148_v15, %v10181_v47 }
0x2777   : > { %8741 = vrcp.f32 %v6233_v57  ;;  %8425 = vmatprep.mubr.msk.bf16.mxu1 %vm8871_vm2, %v8870_v32 }
0x2779   : > { %v8740_v59 = vpop.eup %8739 }
0x277a   : > { %v6124_v42 = vmul.f32 %v8740_v59, %v8732_v63  ;;  %v6127_v49 = vpop.permute.xlu0 %6126  ;;  %v6445_v63 = vpack.c.bf16 %v7565_v58, %v7564_v55 }
0x277b   : > { %v6132_v53 = vsel %vm2657_vm4, %v6127_v49, 0 }
0x277c   : > { %8424 = vmatpush3.bf16.msra.mxu1 %v6132_v53  ;;  %v6125_v18 = vpack.c.bf16 %v6124_v42, %v6124_v42 }
0x277d   : > { %8435 = vmatprep.subr.bf16.mxu1 %v8870_v32 }
0x277f   : > { %8426 = vmatmul.mubr.msk.bf16.vlgmr.msra.gmra.mrb[140].mxu1 %vm2653_vm7, %v6125_v18 }
0x2780   : > { %8436 = vmatpush3.bf16.msra.mxu1 %v6243_v21  ;;  %8437 = vmatprep.mubr.msk.bf16.mxu1 %vm8871_vm2, %v8870_v32 }
0x2781   : > { %v8742_v35 = vpop.eup %8741  ;;  %8449 = vmatprep.subr.bf16.mxu1 %v8870_v32 }
0x2782   : > { %v6235_v37 = vmul.f32 %v8742_v35, %v8734_v0  ;;  %v7566_v0 = vld [vmem:[%s11529_s3 + $0xb0] sm:$0xff] }
0x2783   : > { %v6446_v7 = vpack.c.bf16 %v7567_v6, %v7566_v0 }
0x2784   : > { %v6236_v8 = vpack.c.bf16 %v6235_v37, %v6235_v37 }
0x2787   : > { %8438 = vmatmul.mubr.msk.bf16.vlgmr.msra.gmra.mrb[144].mxu1 %vm2653_vm7, %v6236_v8  ;;  %v7560_v8 = vld [vmem:[%s11529_s3 + $0x80] sm:$0xff] }
0x2788   : > { %8453 = vmatprep.mubr.msk.bf16.mxu1 %vm8871_vm2, %v8870_v32 }
0x27d6   : > { %v5943_v22 = vpop.f32.mrb[132].mxu1 }
0x27d7   : > { %v8403_v5 = vpop.f32.mrb[133].mxu1 }
0x27d8   : > { %v5946_v54 = vpop.f32.mrb[134].mxu1 }
0x27d9   : > { %v8404_v12 = vpop.f32.mrb[135].mxu1  ;;  %v7562_v54 = vld [vmem:[%s11529_s3 + $0x90] sm:$0xff] }
0x27da   : > { %v7563_v12 = vld [vmem:[%s11529_s3 + $0x98] sm:$0xff] }
0x27db   : > { %v6397_v17 = vpack.c.bf16 %v7563_v12, %v7562_v54 }
0x2849   : > { %v6057_v19 = vpop.f32.mrb[136].mxu1 }
0x284a   : > { %6286 = vrot.lane.b32.xlu1 %v6057_v19, %s11522_s30  ;;  %v8415_v23 = vpop.f32.mrb[137].mxu1 }
0x284b   : > { %v6060_v26 = vpop.f32.mrb[138].mxu1  ;;  %v7559_v23 = vld [vmem:[%s11532_s7 + $0x2] sm:$0x3] }
0x284c   : > { %v8416_v27 = vpop.f32.mrb[139].mxu1  ;;  %v6369_v26 = vrot.slane %v7559_v23, %v9213_v3  ;;  %v6374_v30 = vrot.slane %v7559_v23, %v10181_v47 }
0x2852   : > { %v6168_v38 = vpop.f32.mrb[140].mxu1 }
0x2853   : > { %6290 = vrot.lane.b32.xlu0 %v6168_v38, %s11523_s27  ;;  %v8427_v31 = vpop.f32.mrb[141].mxu1  ;;  %v7568_v38 = vld [vmem:[%s11529_s3 + $0xc0] sm:$0xff] }
0x2854   : > { %v6171_v56 = vpop.f32.mrb[142].mxu1  ;;  %v7569_v31 = vld [vmem:[%s11529_s3 + $0xc8] sm:$0xff] }
0x2855   : > { %v8428_v44 = vpop.f32.mrb[143].mxu1 }
0x2856   : > { %v6491_v44 = vpack.c.bf16 %v7569_v31, %v7568_v38 }
0x285a   : > { %v6279_v43 = vpop.f32.mrb[144].mxu1 }
0x285b   : > { %6294 = vrot.lane.b32.xlu1 %v6279_v43, %s11524_s29  ;;  %v8439_v45 = vpop.f32.mrb[145].mxu1 }
0x285c   : > { %v6282_v41 = vpop.f32.mrb[146].mxu1  ;;  %v7570_v45 = vld [vmem:[%s11529_s3 + $0xd0] sm:$0xff] }
0x285d   : > { %v8440_v46 = vpop.f32.mrb[147].mxu1  ;;  %v7571_v41 = vld [vmem:[%s11529_s3 + $0xd8] sm:$0xff] }
0x285e   : > { %v6492_v46 = vpack.c.bf16 %v7571_v41, %v7570_v45 }
0x28bc   : > { %v6287_v51 = vpop.permute.xlu1 %6286 }
0x28bd   : > { %v6297_v60 = vsel %vm2591_vm5, %v5943_v22, %v6287_v51  ;;  %v7561_v22 = vld [vmem:[%s11529_s3 + $0x88] sm:$0xff]  ;;  %v6401_v51 = vrot.slane %v11148_v15, %v9213_v3 }
0x28be   : > { %v6396_v5 = vpack.c.bf16 %v7561_v22, %v7560_v8 }
0x28c0   : > { %8450 = vmatpush3.bf16.msra.mxu1 %v6396_v5 }
0x28c1   : > { %8451 = vmatprep.subr.bf16.mxu1 %v8870_v32 }
0x28c4   : > { %8452 = vmatpush3.bf16.msra.mxu1 %v6397_v17 }
0x28c5   : > { %v6291_v52 = vpop.permute.xlu0 %6290  ;;  %8465 = vmatprep.subr.bf16.mxu1 %v8870_v32 }
0x28c6   : > { %v6298_v61 = vsel %vm3050_vm8, %v6297_v60, %v6291_v52 }
0x28cd   : > { %v6295_v4 = vpop.permute.xlu1 %6294 }
0x28ce   : > { %v6299_v62 = vsel %vm3052_vm9, %v6298_v61, %v6295_v4 }
0x28cf   : > { %v6300_v2 = vpack.c.bf16 %v6299_v62, %v6299_v62 }
0x28d1   : > { %8446 = vmatmul.mubr.msk.bf16.vlgmr.msra.gmra.mrb[144].mxu0 %vm2453_vm3, %v6300_v2 }
0x28d2   : > { %8458 = vmatpush3.bf16.msra.mxu0 %v6445_v63  ;;  %8461 = vmatprep.mubr.msk.bf16.mxu0 %vm8871_vm2, %v8870_v32 }
0x28d3   : > { %8459 = vmatprep.subr.bf16.mxu0 %v8870_v32 }
0x28d6   : > { %8460 = vmatpush3.bf16.msra.mxu0 %v6446_v7 }
0x28d7   : > { %8473 = vmatprep.subr.bf16.mxu0 %v8870_v32 }
0x28d9   : > { %8462 = vmatmul.mubr.msk.bf16.vlgmr.msra.gmra.mrb[148].mxu0 %vm2453_vm3, %v10774_v28 }
0x28da   : > { %8475 = vmatprep.mubr.msk.bf16.mxu0 %vm8871_vm2, %v8870_v32 }
0x29a4   : > { %v6344_v11 = vpop.f32.mrb[144].mxu0 }
0x29a5   : > { %v6345_v13 = vadd.f32 %v6344_v11, %v6306_v10  ;;  %v8447_v14 = vpop.f32.mrb[145].mxu0 }
0x29a6   : > { %v6347_v39 = vpop.f32.mrb[146].mxu0 }
0x29a7   : > { %v6352_v33 = vadd.f32 %v6345_v13, %v11007_v25  ;;  %v8448_v50 = vpop.f32.mrb[147].mxu0 }
0x29a9   : > { %v6353_v9 = vsel %vm3106_vm10, %v6352_v33, 0.0 }
0x29aa   : > { %6354 = vadd.xlane.f32.xlu0 %v6353_v9 }
0x29ac   : > { %v6485_v57 = vpop.f32.mrb[148].mxu0 }
0x29ad   : > { %v6486_v36 = vadd.f32 %v6485_v57, %v6450_v16  ;;  %v8463_v59 = vpop.f32.mrb[149].mxu0 }
0x29ae   : > { %v6488_v42 = vpop.f32.mrb[150].mxu0 }
0x29af   : > { %v6538_v49 = vpack.c.bf16 %v6486_v36, %v6486_v36  ;;  %v8464_v53 = vpop.f32.mrb[151].mxu0 }
0x29b1   : > { %v6543_v48 = vsel %vm2591_vm5, %v6538_v49, 0 }
0x29b2   : > { %8474 = vmatpush3.bf16.xpose.msra.mxu0 %v6543_v48 }
0x29b3   : > { %8485 = vmatprep.subr.bf16.mxu0 %v8870_v32 }
0x29c0   : > { %6649 = vrot.lane.b32.xlu0 %v6538_v49, %s11526_s4 }
0x29c4   : > { %6761 = vrot.lane.b32.xlu0 %v6538_v49, %s11521_s24 }
0x29c8   : > { %6872 = vrot.lane.b32.xlu0 %v6538_v49, %s11527_s1 }
0x2a37   : > { %v6355_v25 = vpop.xlane.xlu0 %6354 }
0x2a38   : > { %v6356_v18 = vmul.f32 0.03125, %v6355_v25 }
0x2a3a   : > { %v6357_v21 = vsub.f32 %v6352_v33, %v6356_v18 }
0x2a3b   : > { %v6650_v60 = vpop.permute.xlu0 %6649 }
0x2a3c   : > { %v6358_v35 = vmul.f32 %v6357_v21, %v6357_v21  ;;  %v6655_v63 = vsel %vm2591_vm5, %v6650_v60, 0 }
0x2a3e   : > { %v6359_v37 = vsel %vm3106_vm10, %v6358_v35, 0.0 }
0x2a3f   : > { %6360 = vadd.xlane.f32.xlu1 %v6359_v37  ;;  %v6762_v13 = vpop.permute.xlu0 %6761 }
0x2a40   : > { %v6767_v39 = vsel %vm2591_vm5, %v6762_v13, 0 }
0x2a43   : > { %v6873_v33 = vpop.permute.xlu0 %6872 }
0x2a44   : > { %v6878_v9 = vsel %vm2591_vm5, %v6873_v33, 0 }
0x2acc   : > { %v6361_v24 = vpop.xlane.xlu1 %6360 }
0x2acd   : > { %v6362_v20 = vmul.f32 0.03125, %v6361_v24 }
0x2acf   : > { %v6363_v19 = vadd.f32 1e-05, %v6362_v20 }
0x2ad1   : > { %8743 = vrsqrt.f32 %v6363_v19 }
0x2adb   : > { %v8744_v27 = vpop.eup %8743 }
0x2adc   : > { %v6365_v29 = vmul.f32 %v8744_v27, %v6357_v21 }
0x2ade   : > { %v6370_v34 = vmul.f32 %v6369_v26, %v6365_v29 }
0x2ae0   : > { %v11185_v56 = vadd.f32 %v6374_v30, %v6370_v34 }
0x2ae2   : > { %v6395_v43 = vpack.c.bf16 %v11185_v56, %v11185_v56 }
0x2ae4   : > { %8454 = vmatmul.mubr.msk.bf16.vlgmr.msra.gmra.mrb[148].mxu1 %vm2453_vm3, %v6395_v43 }
0x2ae5   : > { %8466 = vmatpush3.bf16.msra.mxu1 %v6491_v44  ;;  %8469 = vmatprep.mubr.msk.bf16.mxu1 %vm8871_vm2, %v8870_v32 }
0x2ae6   : > { %8467 = vmatprep.subr.bf16.mxu1 %v8870_v32 }
0x2ae9   : > { %8468 = vmatpush3.bf16.msra.mxu1 %v6492_v46 }
0x2aea   : > { %8479 = vmatprep.subr.bf16.mxu1 %v8870_v32 }
0x2aec   : > { %8470 = vmatmul.mubr.msk.bf16.vlgmr.msra.gmra.mrb[152].mxu1 %vm2453_vm3, %v10774_v28  ;;  %v6496_v28 = vrot.slane %v11148_v15, %v10171_v40 }
0x2aed   : > { %8481 = vmatprep.mubr.msk.bf16.mxu1 %vm8871_vm2, %v8870_v32 }
0x2bb7   : > { %v6439_v52 = vpop.f32.mrb[148].mxu1 }
0x2bb8   : > { %v6440_v55 = vadd.f32 %v6439_v52, %v6401_v51  ;;  %v8455_v58 = vpop.f32.mrb[149].mxu1 }
0x2bb9   : > { %v6442_v61 = vpop.f32.mrb[150].mxu1 }
0x2bba   : > { %v6537_v4 = vpack.c.bf16 %v6440_v55, %v6440_v55  ;;  %v8456_v62 = vpop.f32.mrb[151].mxu1 }
0x2bbc   : > { %6646 = vrot.lane.b32.xlu1 %v6537_v4, %s11526_s4  ;;  %8476 = vmatmul.mubr.msk.bf16.vlgmr.msra.gmra.mrb[152].mxu0 %vm2591_vm5, %v6537_v4 }
0x2bbd   : > { %8486 = vmatpush3.bf16.xpose.msra.mxu0 %v6655_v63  ;;  %8487 = vmatprep.mubr.msk.bf16.mxu0 %vm8871_vm2, %v8870_v32 }
0x2bbe   : > { %8497 = vmatprep.subr.bf16.mxu0 %v8870_v32 }
0x2bbf   : > { %v6531_v2 = vpop.f32.mrb[152].mxu1 }
0x2bc0   : > { %v6532_v0 = vadd.f32 %v6531_v2, %v6496_v28  ;;  %6759 = vrot.lane.b32.xlu1 %v6537_v4, %s11521_s24  ;;  %v8471_v6 = vpop.f32.mrb[153].mxu1 }
0x2bc1   : > { %v6534_v7 = vpop.f32.mrb[154].mxu1 }
0x2bc2   : > { %v11215_v10 = vpack.c.bf16 %v6532_v0, %v6532_v0  ;;  %v8472_v11 = vpop.f32.mrb[155].mxu1 }
0x2bc4   : > { %6870 = vrot.lane.b32.xlu1 %v6537_v4, %s11527_s1  ;;  %v6603_v40 = vsel %vm2657_vm4, %v11215_v10, 0 }
0x2bc5   : > { %8480 = vmatpush3.bf16.msra.mxu1 %v6603_v40 }
0x2bc6   : > { %8491 = vmatprep.subr.bf16.mxu1 %v8870_v32 }
0x2c2e   : > { %v6647_v14 = vpop.permute.xlu1 %6646 }
0x2c2f   : > { %8488 = vmatmul.mubr.msk.bf16.vlgmr.msra.gmra.mrb[156].mxu0 %vm2591_vm5, %v6647_v14 }
0x2c30   : > { %8498 = vmatpush3.bf16.xpose.msra.mxu0 %v6767_v39  ;;  %8499 = vmatprep.mubr.msk.bf16.mxu0 %vm8871_vm2, %v8870_v32 }
0x2c31   : > { %8509 = vmatprep.subr.bf16.mxu0 %v8870_v32 }
0x2c32   : > { %v6760_v50 = vpop.permute.xlu1 %6759 }
0x2c36   : > { %v6871_v16 = vpop.permute.xlu1 %6870 }
0x2c37   : > { %8500 = vmatmul.mubr.msk.bf16.vlgmr.msra.gmra.mrb[160].mxu0 %vm2591_vm5, %v6760_v50 }
0x2c38   : > { %8510 = vmatpush3.bf16.xpose.msra.mxu0 %v6878_v9  ;;  %8511 = vmatprep.mubr.msk.bf16.mxu0 %vm8871_vm2, %v8870_v32 }
0x2c39   : > { %8521 = vmatprep.subr.bf16.mxu0 %v8870_v32 }
0x2c3f   : > { %8512 = vmatmul.mubr.msk.bf16.vlgmr.msra.gmra.mrb[164].mxu0 %vm2591_vm5, %v6871_v16 }
0x2c40   : > { %8525 = vmatprep.mubr.msk.bf16.mxu0 %vm8871_vm2, %v8870_v32 }
0x2c8f   : > { %v6579_v57 = vpop.f32.mrb[152].mxu0 }
0x2c90   : > { %v6585_v36 = vmul.f32 0.35355338, %v6579_v57  ;;  %v8477_v59 = vpop.f32.mrb[153].mxu0 }
0x2c91   : > { %v6582_v42 = vpop.f32.mrb[154].mxu0 }
0x2c92   : > { %v8478_v49 = vpop.f32.mrb[155].mxu0  ;;  %v6586_v53 = vsel %vm2639_vm6, %v6585_v36, -inf }
0x2c93   : > { %6587 = vmax.xlane.f32.xlu0 %v6586_v53 }
0x2d02   : > { %v6691_v48 = vpop.f32.mrb[156].mxu0 }
0x2d03   : > { %v6697_v25 = vmul.f32 0.35355338, %v6691_v48  ;;  %v8489_v18 = vpop.f32.mrb[157].mxu0 }
0x2d04   : > { %v6694_v21 = vpop.f32.mrb[158].mxu0 }
0x2d05   : > { %v8490_v35 = vpop.f32.mrb[159].mxu0  ;;  %v6698_v37 = vsel %vm2639_vm6, %v6697_v25, -inf }
0x2d06   : > { %6699 = vmax.xlane.f32.xlu1 %v6698_v37 }
0x2d0a   : > { %v6803_v8 = vpop.f32.mrb[160].mxu0 }
0x2d0b   : > { %v6809_v22 = vmul.f32 0.35355338, %v6803_v8  ;;  %v8501_v5 = vpop.f32.mrb[161].mxu0  ;;  %v7572_v8 = vld [vmem:[%s11529_s3 + $0xe0] sm:$0xff] }
0x2d0c   : > { %v6806_v54 = vpop.f32.mrb[162].mxu0 }
0x2d0d   : > { %v8502_v12 = vpop.f32.mrb[163].mxu0  ;;  %v6810_v17 = vsel %vm2639_vm6, %v6809_v22, -inf }
0x2d0e   : > { %6811 = vmax.xlane.f32.xlu0 %v6810_v17 }
0x2d12   : > { %v6914_v24 = vpop.f32.mrb[164].mxu0 }
0x2d13   : > { %v6920_v20 = vmul.f32 0.35355338, %v6914_v24  ;;  %v8513_v19 = vpop.f32.mrb[165].mxu0 }
0x2d14   : > { %v6917_v23 = vpop.f32.mrb[166].mxu0  ;;  %v7575_v19 = vld [vmem:[%s11529_s3 + $0xf8] sm:$0xff] }
0x2d15   : > { %v8514_v26 = vpop.f32.mrb[167].mxu0  ;;  %v6921_v27 = vsel %vm2639_vm6, %v6920_v20, -inf }
0x2d16   : > { %6922 = vmax.xlane.f32.xlu0 %v6921_v27 }
0x2d20   : > { %v6588_v29 = vpop.xlane.xlu0 %6587 }
0x2d21   : > { %v6589_v30 = vsub.f32 %v6585_v36, %v6588_v29 }
0x2d23   : > { %v6590_v34 = vmul.f32 1.442695, %v6589_v30 }
0x2d25   : > { %8745 = vpow2.f32 %v6590_v34 }
0x2d2f   : > { %v8746_v38 = vpop.eup %8745 }
0x2d30   : > { %v6592_v31 = vsel %vm2639_vm6, %v8746_v38, 0.0 }
0x2d31   : > { %6593 = vadd.xlane.f32.xlu1 %v6592_v31 }
0x2d42   : > { %6711 = vrot.lane.b32.xlu1 %v11215_v10, %s11526_s4 }
0x2d93   : > { %v6700_v44 = vpop.xlane.xlu1 %6699 }
0x2d94   : > { %v6701_v43 = vsub.f32 %v6697_v25, %v6700_v44 }
0x2d96   : > { %v6702_v45 = vmul.f32 1.442695, %v6701_v43 }
0x2d98   : > { %8747 = vpow2.f32 %v6702_v45 }
0x2d9b   : > { %v6812_v41 = vpop.xlane.xlu0 %6811 }
0x2d9c   : > { %v6813_v46 = vsub.f32 %v6809_v22, %v6812_v41  ;;  %v7573_v22 = vld [vmem:[%s11529_s3 + $0xe8] sm:$0xff] }
0x2d9d   : > { %v6997_v5 = vpack.c.bf16 %v7573_v22, %v7572_v8  ;;  %v7602_v8 = vld [vmem:[%s11432_s11 + $0x60] sm:$0xff]  ;;  %v7603_v22 = vld [vmem:[%s11432_s11 + $0x68] sm:$0xff] }
0x2d9e   : > { %v6814_v51 = vmul.f32 1.442695, %v6813_v46 }
0x2d9f   : > { %8522 = vmatpush3.bf16.msra.mxu0 %v6997_v5  ;;  %v7146_v5 = vpack.c.bf16 %v7603_v22, %v7602_v8 }
0x2da0   : > { %8749 = vpow2.f32 %v6814_v51  ;;  %8523 = vmatprep.subr.bf16.mxu0 %v8870_v32 }
0x2da2   : > { %v8748_v52 = vpop.eup %8747 }
0x2da3   : > { %v6923_v55 = vpop.xlane.xlu0 %6922  ;;  %v6704_v58 = vsel %vm2639_vm6, %v8748_v52, 0.0 }
0x2da4   : > { %v6924_v60 = vsub.f32 %v6920_v20, %v6923_v55  ;;  %6705 = vadd.xlane.f32.xlu0 %v6704_v58  ;;  %v7574_v20 = vld [vmem:[%s11529_s3 + $0xf0] sm:$0xff]  ;;  %v7002_v58 = vrot.slane %v11148_v15, %v10274_v1  ;;  %v7591_v1 = vld [vmem:[%s11431_s10 + $0x20] sm:$0xff]  ;;  %v7592_v15 = vld [vmem:[%s11431_s10 + $0x28] sm:$0xff] }
0x2da5   : > { %v6998_v23 = vpack.c.bf16 %v7575_v19, %v7574_v20 }
0x2da6   : > { %v6925_v61 = vmul.f32 1.442695, %v6924_v60 }
0x2da7   : > { %8524 = vmatpush3.bf16.msra.mxu0 %v6998_v23 }
0x2da8   : > { %8751 = vpow2.f32 %v6925_v61  ;;  %8537 = vmatprep.subr.bf16.mxu0 %v8870_v32 }
0x2daa   : > { %v8750_v4 = vpop.eup %8749 }
0x2dab   : > { %v6816_v62 = vsel %vm2639_vm6, %v8750_v4, 0.0 }
0x2dac   : > { %6817 = vadd.xlane.f32.xlu1 %v6816_v62 }
0x2db2   : > { %v8752_v63 = vpop.eup %8751 }
0x2db3   : > { %v6927_v28 = vsel %vm2639_vm6, %v8752_v63, 0.0 }
0x2db4   : > { %6928 = vadd.xlane.f32.xlu0 %v6927_v28 }
0x2dbd   : > { %6933 = vrot.lane.b32.xlu1 %v11215_v10, %s11527_s1 }
0x2dbe   : > { %v6594_v2 = vpop.xlane.xlu1 %6593 }
0x2dbf   : > { %8753 = vrcp.f32 %v6594_v2 }
0x2dc2   : > { %v6712_v7 = vpop.permute.xlu1 %6711 }
0x2dc3   : > { %v6717_v40 = vsel %vm2657_vm4, %v6712_v7, 0 }
0x2dc9   : > { %v8754_v0 = vpop.eup %8753 }
0x2dca   : > { %v6596_v6 = vmul.f32 %v8754_v0, %v8746_v38  ;;  %6822 = vrot.lane.b32.xlu0 %v11215_v10, %s11521_s24 }
0x2dcc   : > { %v6597_v11 = vpack.c.bf16 %v6596_v6, %v6596_v6 }
0x2dce   : > { %8482 = vmatmul.mubr.msk.bf16.vlgmr.msra.gmra.mrb[156].mxu1 %vm2653_vm7, %v6597_v11 }
0x2dcf   : > { %8492 = vmatpush3.bf16.msra.mxu1 %v6717_v40  ;;  %8493 = vmatprep.mubr.msk.bf16.mxu1 %vm8871_vm2, %v8870_v32 }
0x2dd0   : > { %8503 = vmatprep.subr.bf16.mxu1 %v8870_v32 }
0x2e31   : > { %v6706_v13 = vpop.xlane.xlu0 %6705 }
0x2e32   : > { %8755 = vrcp.f32 %v6706_v13  ;;  %v7593_v13 = vld [vmem:[%s11431_s10 + $0x30] sm:$0xff] }
0x2e39   : > { %v6818_v14 = vpop.xlane.xlu1 %6817 }
0x2e3a   : > { %8757 = vrcp.f32 %v6818_v14  ;;  %v7594_v14 = vld [vmem:[%s11431_s10 + $0x38] sm:$0xff] }
0x2e3c   : > { %v8756_v39 = vpop.eup %8755 }
0x2e3d   : > { %v6708_v33 = vmul.f32 %v8756_v39, %v8748_v52  ;;  %v6934_v59 = vpop.permute.xlu1 %6933  ;;  %v7081_v39 = vpack.c.bf16 %v7594_v14, %v7593_v13 }
0x2e3e   : > { %v6939_v49 = vsel %vm2657_vm4, %v6934_v59, 0 }
0x2e3f   : > { %v6709_v50 = vpack.c.bf16 %v6708_v33, %v6708_v33  ;;  %v7598_v33 = vld [vmem:[%s11432_s11 + $0x40] sm:$0xff] }
0x2e41   : > { %v6929_v10 = vpop.xlane.xlu0 %6928  ;;  %8494 = vmatmul.mubr.msk.bf16.vlgmr.msra.gmra.mrb[160].mxu1 %vm2653_vm7, %v6709_v50  ;;  %v7599_v50 = vld [vmem:[%s11432_s11 + $0x48] sm:$0xff] }
0x2e42   : > { %8759 = vrcp.f32 %v6929_v10  ;;  %8505 = vmatprep.mubr.msk.bf16.mxu1 %vm8871_vm2, %v8870_v32  ;;  %v7600_v10 = vld [vmem:[%s11432_s11 + $0x50] sm:$0xff] }
0x2e44   : > { %v8758_v9 = vpop.eup %8757 }
0x2e45   : > { %v6820_v16 = vmul.f32 %v8758_v9, %v8750_v4  ;;  %v6823_v57 = vpop.permute.xlu0 %6822  ;;  %v7144_v9 = vpack.c.bf16 %v7599_v50, %v7598_v33  ;;  %v7223_v50 = vld [vmem:[%s11433_s12] sm:$0x3] }
0x2e46   : > { %v6828_v36 = vsel %vm2657_vm4, %v6823_v57, 0 }
0x2e47   : > { %8504 = vmatpush3.bf16.msra.mxu1 %v6828_v36  ;;  %v6821_v42 = vpack.c.bf16 %v6820_v16, %v6820_v16  ;;  %v7601_v16 = vld [vmem:[%s11432_s11 + $0x58] sm:$0xff] }
0x2e48   : > { %8515 = vmatprep.subr.bf16.mxu1 %v8870_v32  ;;  %v7145_v57 = vpack.c.bf16 %v7601_v16, %v7600_v10  ;;  %v7240_v10 = vrot.slane %v7223_v50, %v9213_v3 }
0x2e4a   : > { %8506 = vmatmul.mubr.msk.bf16.vlgmr.msra.gmra.mrb[164].mxu1 %vm2653_vm7, %v6821_v42 }
0x2e4b   : > { %8516 = vmatpush3.bf16.msra.mxu1 %v6939_v49  ;;  %8517 = vmatprep.mubr.msk.bf16.mxu1 %vm8871_vm2, %v8870_v32  ;;  %v7589_v49 = vld [vmem:[%s11536_s15 + $0x2] sm:$0x3] }
0x2e4c   : > { %v8760_v53 = vpop.eup %8759  ;;  %8529 = vmatprep.subr.bf16.mxu1 %v8870_v32 }
0x2e4d   : > { %v6931_v48 = vmul.f32 %v8760_v53, %v8752_v63  ;;  %v7065_v53 = vrot.slane %v7589_v49, %v9213_v3 }
0x2e4f   : > { %v6932_v25 = vpack.c.bf16 %v6931_v48, %v6931_v48 }
0x2e52   : > { %8518 = vmatmul.mubr.msk.bf16.vlgmr.msra.gmra.mrb[168].mxu1 %vm2653_vm7, %v6932_v25 }
0x2e53   : > { %8533 = vmatprep.mubr.msk.bf16.mxu1 %vm8871_vm2, %v8870_v32 }
0x2ea1   : > { %v6639_v18 = vpop.f32.mrb[156].mxu1 }
0x2ea2   : > { %v8483_v21 = vpop.f32.mrb[157].mxu1 }
0x2ea3   : > { %v6642_v35 = vpop.f32.mrb[158].mxu1 }
0x2ea4   : > { %v8484_v37 = vpop.f32.mrb[159].mxu1 }
0x2f14   : > { %v6753_v54 = vpop.f32.mrb[160].mxu1 }
0x2f15   : > { %6982 = vrot.lane.b32.xlu1 %v6753_v54, %s11522_s30  ;;  %v8495_v12 = vpop.f32.mrb[161].mxu1  ;;  %v7604_v54 = vld [vmem:[%s11432_s11 + $0x70] sm:$0xff] }
0x2f16   : > { %v6756_v17 = vpop.f32.mrb[162].mxu1  ;;  %v7605_v12 = vld [vmem:[%s11432_s11 + $0x78] sm:$0xff] }
0x2f17   : > { %v8496_v24 = vpop.f32.mrb[163].mxu1  ;;  %v7147_v17 = vpack.c.bf16 %v7605_v12, %v7604_v54 }
0x2f18   : > { %v7596_v24 = vld [vmem:[%s11537_s18 + $0x1] ss:$0 sm:$0xff] }
0x2f1d   : > { %v6864_v26 = vpop.f32.mrb[164].mxu1 }
0x2f1e   : > { %6986 = vrot.lane.b32.xlu0 %v6864_v26, %s11523_s27  ;;  %v8507_v27 = vpop.f32.mrb[165].mxu1 }
0x2f1f   : > { %v6867_v29 = vpop.f32.mrb[166].mxu1 }
0x2f20   : > { %v8508_v30 = vpop.f32.mrb[167].mxu1 }
0x2f21   : > { %v7607_v30 = vld [vmem:[%s11538_s25 + $0x1] ss:$0 sm:$0xff] }
0x2f25   : > { %v6975_v34 = vpop.f32.mrb[168].mxu1 }
0x2f26   : > { %6990 = vrot.lane.b32.xlu1 %v6975_v34, %s11524_s29  ;;  %v8519_v38 = vpop.f32.mrb[169].mxu1 }
0x2f27   : > { %v6978_v31 = vpop.f32.mrb[170].mxu1 }
0x2f28   : > { %v8520_v44 = vpop.f32.mrb[171].mxu1 }
0x2f87   : > { %v6983_v43 = vpop.permute.xlu1 %6982 }
0x2f88   : > { %v6993_v41 = vsel %vm2591_vm5, %v6639_v18, %v6983_v43  ;;  %v7070_v18 = vrot.slane %v7589_v49, %v10181_v47 }
0x2f90   : > { %v6987_v45 = vpop.permute.xlu0 %6986 }
0x2f91   : > { %v6994_v46 = vsel %vm3050_vm8, %v6993_v41, %v6987_v45 }
0x2f98   : > { %v6991_v51 = vpop.permute.xlu1 %6990 }
0x2f99   : > { %v6995_v52 = vsel %vm3052_vm9, %v6994_v46, %v6991_v51 }
0x2f9a   : > { %v6996_v55 = vpack.c.bf16 %v6995_v52, %v6995_v52 }
0x2f9c   : > { %8526 = vmatmul.mubr.msk.bf16.vlgmr.msra.gmra.mrb[168].mxu0 %vm2453_vm3, %v6996_v55 }
0x2f9d   : > { %8545 = vmatprep.mubr.msk.bf16.mxu0 %vm8871_vm2, %v8870_v32  ;;  %8538 = vmatpush3.bf16.msra.mxu0 %v7144_v9 }
0x2f9e   : > { %8539 = vmatprep.subr.bf16.mxu0 %v8870_v32 }
0x2fa1   : > { %8540 = vmatpush3.bf16.msra.mxu0 %v7145_v57  ;;  %v7245_v57 = vrot.slane %v7223_v50, %v10181_v47 }
0x2fa2   : > { %8541 = vmatprep.subr.bf16.mxu0 %v8870_v32 }
0x2fa5   : > { %8542 = vmatpush3.bf16.msra.mxu0 %v7146_v5 }
0x2fa6   : > { %8543 = vmatprep.subr.bf16.mxu0 %v8870_v32 }
0x2fa9   : > { %8544 = vmatpush3.bf16.msra.mxu0 %v7147_v17 }
0x306f   : > { %v7040_v60 = vpop.f32.mrb[168].mxu0 }
0x3070   : > { %v7041_v61 = vadd.f32 %v7040_v60, %v7002_v58  ;;  %v8527_v4 = vpop.f32.mrb[169].mxu0 }
0x3071   : > { %v7043_v62 = vpop.f32.mrb[170].mxu0 }
0x3072   : > { %v7048_v63 = vadd.f32 %v7041_v61, %v11185_v56  ;;  %v8528_v28 = vpop.f32.mrb[171].mxu0  ;;  %v7080_v56 = vpack.c.bf16 %v7592_v15, %v7591_v1  ;;  %v7590_v62 = vld [vmem:[%s11539_s22 + $0x2] sm:$0x3] }
0x3074   : > { %v7049_v2 = vsel %vm3106_vm10, %v7048_v63, 0.0  ;;  %8530 = vmatpush3.bf16.msra.mxu1 %v7080_v56 }
0x3075   : > { %7050 = vadd.xlane.f32.xlu0 %v7049_v2  ;;  %8531 = vmatprep.subr.bf16.mxu1 %v8870_v32 }
0x3078   : > { %8532 = vmatpush3.bf16.msra.mxu1 %v7081_v39 }
0x3102   : > { %v7051_v0 = vpop.xlane.xlu0 %7050 }
0x3103   : > { %v7052_v6 = vmul.f32 0.03125, %v7051_v0  ;;  %v7221_v0 = vrot.slane %v7590_v62, %v10181_v47 }
0x3105   : > { %v7053_v7 = vsub.f32 %v7048_v63, %v7052_v6  ;;  %v7216_v63 = vrot.slane %v7590_v62, %v9213_v3 }
0x3107   : > { %v7054_v11 = vmul.f32 %v7053_v7, %v7053_v7 }
0x3109   : > { %v7055_v40 = vsel %vm3106_vm10, %v7054_v11, 0.0 }
0x310a   : > { %7056 = vadd.xlane.f32.xlu1 %v7055_v40 }
0x3197   : > { %v7057_v36 = vpop.xlane.xlu1 %7056 }
0x3198   : > { %v7058_v59 = vmul.f32 0.03125, %v7057_v36 }
0x319a   : > { %v7059_v42 = vadd.f32 1e-05, %v7058_v59 }
0x319c   : > { %8761 = vrsqrt.f32 %v7059_v42 }
0x31a6   : > { %v8762_v48 = vpop.eup %8761 }
0x31a7   : > { %v7061_v25 = vmul.f32 %v8762_v48, %v7053_v7 }
0x31a9   : > { %v7066_v21 = vmul.f32 %v7065_v53, %v7061_v25 }
0x31ab   : > { %v7071_v35 = vadd.f32 %v7070_v18, %v7066_v21 }
0x31ad   : > { %v7079_v37 = vpack.c.bf16 %v7071_v35, %v7071_v35 }
0x31af   : > { %8534 = vmatmul.mubr.msk.bf16.vlgmr.msra.gmra.mrb[172].mxu1 %vm2453_vm3, %v7079_v37 }
0x3282   : > { %v7127_v20 = vpop.f32.mrb[172].mxu1 }
0x3283   : > { %v7128_v19 = vadd.f32 %v7596_v24, %v7127_v20  ;;  %v8535_v23 = vpop.f32.mrb[173].mxu1 }
0x3284   : > { %v7130_v26 = vpop.f32.mrb[174].mxu1 }
0x3285   : > { %v7133_v27 = vmax.f32 %v7128_v19, 0.0  ;;  %v8536_v32 = vpop.f32.mrb[175].mxu1 }
0x3287   : > { %v7143_v29 = vpack.c.bf16 %v7133_v27, %v7133_v27 }
0x3289   : > { %8546 = vmatmul.mubr.msk.bf16.vlgmr.msra.gmra.mrb[172].mxu0 %vm1148_vm0, %v7143_v29 }
0x335c   : > { %v7193_v34 = vpop.f32.mrb[172].mxu0 }
0x335d   : > { %v7194_v38 = vadd.f32 %v7607_v30, %v7193_v34  ;;  %v8547_v31 = vpop.f32.mrb[173].mxu0 }
0x335e   : > { %v7196_v44 = vpop.f32.mrb[174].mxu0 }
0x335f   : > { %v7199_v43 = vadd.f32 %v7194_v38, %v7071_v35  ;;  %v8548_v45 = vpop.f32.mrb[175].mxu0 }
0x3361   : > { %v7200_v41 = vsel %vm3106_vm10, %v7199_v43, 0.0 }
0x3362   : > { %7201 = vadd.xlane.f32.xlu0 %v7200_v41 }
0x33ef   : > { %v7202_v46 = vpop.xlane.xlu0 %7201 }
0x33f0   : > { %v7203_v51 = vmul.f32 0.03125, %v7202_v46 }
0x33f2   : > { %v7204_v52 = vsub.f32 %v7199_v43, %v7203_v51 }
0x33f4   : > { %v7205_v55 = vmul.f32 %v7204_v52, %v7204_v52 }
0x33f6   : > { %v7206_v58 = vsel %vm3106_vm10, %v7205_v55, 0.0 }
0x33f7   : > { %7207 = vadd.xlane.f32.xlu0 %v7206_v58 }
0x3484   : > { %v7208_v60 = vpop.xlane.xlu0 %7207 }
0x3485   : > { %v7209_v61 = vmul.f32 0.03125, %v7208_v60 }
0x3487   : > { %v7210_v4 = vadd.f32 1e-05, %v7209_v61 }
0x3489   : > { %8763 = vrsqrt.f32 %v7210_v4 }
0x3493   : > { %v8764_v28 = vpop.eup %8763 }
0x3494   : > { %v7212_v2 = vmul.f32 %v8764_v28, %v7204_v52 }
0x3496   : > { %v7217_v6 = vmul.f32 %v7216_v63, %v7212_v2 }
0x3498   : > { %v7222_v7 = vadd.f32 %v7221_v0, %v7217_v6 }
0x349a   : > { %v7224_v11 = vsel %vm3106_vm10, %v7222_v7, 0.0 }
0x349b   : > { %7225 = vadd.xlane.f32.xlu1 %v7224_v11 }
0x3528   : > { %v7226_v40 = vpop.xlane.xlu1 %7225 }
0x3529   : > { %v7227_v1 = vmul.f32 0.03125, %v7226_v40 }
0x352b   : > { %v7228_v15 = vsub.f32 %v7222_v7, %v7227_v1 }
0x352d   : > { %v7229_v56 = vmul.f32 %v7228_v15, %v7228_v15 }
0x352f   : > { %v7230_v13 = vsel %vm3106_vm10, %v7229_v56, 0.0 }
0x3530   : > { %7231 = vadd.xlane.f32.xlu0 %v7230_v13 }
0x35bd   : > { %v7232_v14 = vpop.xlane.xlu0 %7231 }
0x35be   : > { %v7233_v39 = vmul.f32 0.03125, %v7232_v14 }
0x35c0   : > { %v7234_v33 = vadd.f32 1e-05, %v7233_v39 }
0x35c2   : > { %8765 = vrsqrt.f32 %v7234_v33 }
0x35cc   : > { %v8766_v9 = vpop.eup %8765 }
0x35cd   : > { %v7236_v16 = vmul.f32 %v8766_v9, %v7228_v15 }
0x35cf   : > { %v7241_v36 = vmul.f32 %v7240_v10, %v7236_v16 }
0x35d1   : > { %v7246_v59 = vadd.f32 %v7245_v57, %v7241_v36 }
0x35d3   : > { %v7247_v42 = vsel %vm3106_vm10, %v7246_v59, -inf }
0x35d4   : > { %7248 = vmax.xlane.f32.xlu1 %v7247_v42 }
0x3661   : > { %v7249_v49 = vpop.xlane.xlu1 %7248 }
0x3662   : > { %v7250_v53 = vsub.f32 %v7246_v59, %v7249_v49 }
0x3664   : > { %v7251_v48 = vmul.f32 1.442695, %v7250_v53 }
0x3666   : > { %8767 = vpow2.f32 %v7251_v48 }
0x3670   : > { %v8768_v25 = vpop.eup %8767 }
0x3671   : > { %v7253_v18 = vsel %vm3106_vm10, %v8768_v25, 0.0 }
0x3672   : > { %7254 = vadd.xlane.f32.xlu0 %v7253_v18 }
0x36ff   : > { %v7255_v21 = vpop.xlane.xlu0 %7254 }
0x3700   : > { %8769 = vlog2.f32 %v7255_v21 }
0x370a   : > { %v8770_v3 = vpop.eup %8769 }
0x370b   : > { %v7257_v35 = vmul.f32 0.6931472, %v8770_v3 }
0x370d   : > { %v7258_v37 = vsub.f32 %v7250_v53, %v7257_v35 }
0x370f   : > { %7259 = vst.msk [vmem:[%s11540_s20] sm:$0xf] %vm3106_vm10, %v7258_v37 }
0x3710 PF: > { %s7610_s21 = sshll.u32 %s8853_s6, 6  ;;  %s11541_s4 = sld [smem:[#allocation35_spill]] }
0x3711   : > { %s11542_s28 = scalar_lea.vmem [#allocation3], %s9077_s2  ;;  %s11543_s16 = sand.u32 1, %s8841_s26  }
0x3712   : > { %s7274_s0 = sshll.u32 %s11542_s28, 4  ;;  %s7261_s17 = scalar_lea.sflag [#allocation4], %s11543_s16  ;;  %s7275_s0 = int_to_ptr.vmem [resolvable:$true] %s7274_s0 }
0x3713   : > { %s8771_s19 = scalar_lea.vmem %s7275_s0, 64  ;;  %s8878_s30 = smov [#allocation3]  }
0x3714   : > { %p8772_p2 = scmp.ne.s32.totalorder %s7275_s0, %s8771_s19  ;;  %s8775_s27 = sshll.u32 %s8878_s30, 4  ;;  %s8776_s27 = int_to_ptr.vmem [resolvable:$false] %s8775_s27 }
0x3715   : > { %s8777_s29 = scalar_lea.vmem %s8776_s27, 128  ;;  %p8778_p6 = scmp.lt.s32.totalorder %s7275_s0, %s8776_s27 }
0x3716   : > { %s11370_s1 = scalar_lea.hbm %s11541_s4, %s7610_s21  ;;  %p8773_p4 = pnand %p8772_p2, %p9053_p3 }
0x3717   : > { %p8779_p7 = scmp.lt.s32.totalorder %s8777_s29, %s8771_s19 }
0x3718   : > { %p8774_p5 = pneg %p8773_p4 }
0x3719   : > { %p8780_p8 = por %p8779_p7, %p8778_p6 }
0x371b   : > { %p8781_p10 = pnand %p8780_p8, %p8774_p5 }
0x371d   : > { %8784 = shalt.err (!%p8781_p10)
}
0x371e   : > { %s8785_s6 = scalar_lea.hbm %s11370_s1, 64  ;;  %s8789_s20 = scalar_lea.hbm %s11541_s4, 128 }
0x371f   : > { %p8786_p11 = scmp.ne.s32.totalorder %s11370_s1, %s8785_s6  ;;  %p8790_p0 = scmp.lt.u32.totalorder %s11370_s1, %s11541_s4 }
0x3720   : > { %p8791_p1 = scmp.lt.u32.totalorder %s8789_s20, %s8785_s6  ;;  %p8793_p4 = scmp.lt.u32.totalorder %s8785_s6, %s11370_s1 }
0x3721   : > { %p8787_p12 = pnand %p8786_p11, %p9053_p3 }
0x3722   : > { %p8792_p2 = por %p8791_p1, %p8790_p0 }
0x3723   : > { %p8788_p13 = pneg %p8787_p12 }
0x3724   : > { %p8794_p5 = por %p8793_p4, %p8792_p2 }
0x3726   : > { %p8795_p6 = pnand %p8794_p5, %p8788_p13 }
0x3728   : > { %8798 = shalt.err (!%p8795_p6)
}
0x3729   : > { %8549 = dma.vmem_to_hbm [thread:$0]  (%p9053_p3), %s7275_s0, 64, %s11370_s1, %s7261_s17  }
0x372a PF: > { %s11544_s24 = sld [smem:[#allocation10_spill]]  ;;  %s11545_s28 = sld [smem:[#allocation6_spill]] }
0x3730   : > { %p8555_p7 = scmp.ge.s32.totalorder %s11544_s24, 2  ;;  %s7286_s19 = sand.u32 1, %s11545_s28  }
0x3731   : > { %s7287_s30 = scalar_lea.sflag [#allocation4], %s7286_s19 }
0x3732   : > { %p8552_p8 = pnand %p8555_p7, %p9063_p9 }
0x3734   : > { %8832 = dma.done.wait (!%p8552_p8), %s7287_s30, 64  }
0x3735   : > { %8834 = vsyncadd (!%p8552_p8), %s7287_s30, 4294967232  ;;  %s37_s0 = sadd.s32 1, %s11544_s24   ;;  %s11547_s27 = sld [smem:[#allocation7_spill]] }
0x3736   : > { %p34_p10 = scmp.ge.s32.totalorder %s37_s0, 10   ;;  %s11548_s29 = sld [smem:[#allocation14_spill]] }
0x3737   : > { %s11549_s28 = sld [smem:[#allocation8_spill]]  ;;  %s11550_s6 = sld [smem:[#allocation9_spill]] }
0x3738   : > { %s11551_s2 = sld [smem:[#allocation11_spill]]  ;;  %s11552_s8 = sld [smem:[#allocation12_spill]] }
0x3739   : > { %s11553_s5 = smov %s8841_s26  ;;  %36 = sbr.rel (!%p34_p10) target bundleno = 27 (0x1b), region = 178 }
0x373b   : > { %s11554_s26 = smov %s11547_s27 }
0x373c   : > { %s11555_s27 = smov %s11548_s29 }
0x373e   : > { %s11556_s29 = smov %s11552_s8 }
0x3740   :  { %7292 = vsyncpa [#allocation4], 1 }
0x3741   :  { %7294 = vsyncpa [#allocation4 + $0x1], 1 }

</bundles_post_ra>
